<compile_context>
chip_gen: v5e
topology: v5e:2x2
jax: 0.10.0
libtpu: 0.0.40
codegen_flags: <defaults>
</compile_context>

<pallas_src>
import numpy as np
import jax
import jax.numpy as jnp
from jax.experimental import pallas as pl
from jax.experimental.pallas import tpu as pltpu

D = 128            # embedding_dim
H = 16             # nhead
HD = D // H        # head dim = 8
FF = 768           # dim_feedforward
L = 6              # num encoder layers
EPS = 1e-5         # LayerNorm eps


# ----------------------------------------------------------------------------
# Pallas kernel
# ----------------------------------------------------------------------------
def _make_kernel(task, BC, T):
    use_sigmoid = (task == "compatibility")
    N = BC * T                                   # rows per grid step

    def kernel(x_ref, mask_ref, wqkv_ref, bqkv_ref, wo_ref, bo_ref,
               ln1w_ref, ln1b_ref, w1_ref, b1_ref, w2_ref, b2_ref,
               ln2w_ref, ln2b_ref, fnw_ref, fnb_ref,
               h1w_ref, h1b_ref, h2w_ref, h2b_ref, o_ref):

        def layer_norm(v, w, b):
            mu = jnp.mean(v, axis=-1, keepdims=True)
            c = v - mu
            var = jnp.mean(c * c, axis=-1, keepdims=True)
            return c * jax.lax.rsqrt(var + EPS) * w + b

        def elu(z):
            return jnp.where(z > 0, z, jnp.exp(jnp.minimum(z, 0.0)) - 1.0)

        mask = mask_ref[...]                     # (H*T, D) f32, mask[h*T+j, d] = [d//HD == h]
        h = x_ref[0].reshape(N, D)               # (BC*T, D) f32 activation slab

        for l in range(L):
            # ---- multi-head self attention (post-LN encoder layer) --------
            qkv = jnp.dot(h.astype(jnp.bfloat16), wqkv_ref[l],
                          preferred_element_type=jnp.float32) + bqkv_ref[l]
            q = qkv[:, :D]                       # 1/sqrt(HD) folded into weights
            k = qkv[:, D:2 * D]
            v = qkv[:, 2 * D:]

            ctx_rows = []
            for bi in range(BC):                 # per-batch softmax (no cross-batch mixing)
                r0 = bi * T
                qb = q[r0:r0 + T, :]
                kb = k[r0:r0 + T, :]
                vb = v[r0:r0 + T, :]
                # head-masked tiled K/V: row h*T+j holds head h of token j
                kt = jnp.concatenate([kb] * H, axis=0) * mask      # (H*T, D)
                vt = jnp.concatenate([vb] * H, axis=0) * mask      # (H*T, D)
                # all-head scores in one matmul: s[i, h*T+j] = <q_h[i], k_h[j]>
                s = jax.lax.dot_general(qb, kt, (((1,), (1,)), ((), ())),
                                        preferred_element_type=jnp.float32)
                s = s - jnp.max(s, axis=-1, keepdims=True)
                p = jnp.exp(s)                                     # (T, H*T)
                num = jnp.dot(p, vt, preferred_element_type=jnp.float32)   # (T, D)
                den = jnp.dot(p, mask, preferred_element_type=jnp.float32) # (T, D)
                ctx_rows.append(num * pl.reciprocal(den, approx=True))
            ctx = ctx_rows[0] if BC == 1 else jnp.concatenate(ctx_rows, axis=0)

            # single (N,128)x(128,128) output projection for all heads
            attn = jnp.dot(ctx.astype(jnp.bfloat16), wo_ref[l],
                           preferred_element_type=jnp.float32) + bo_ref[l]
            h = layer_norm(h + attn, ln1w_ref[l], ln1b_ref[l])

            # ---- feed-forward (ReLU activation, PyTorch default) -----------
            ff = jnp.dot(h.astype(jnp.bfloat16), w1_ref[l],
                         preferred_element_type=jnp.float32) + b1_ref[l]
            ff = jnp.maximum(ff, 0.0)
            ff = jnp.dot(ff.astype(jnp.bfloat16), w2_ref[l],
                         preferred_element_type=jnp.float32) + b2_ref[l]
            h = layer_norm(h + ff, ln2w_ref[l], ln2b_ref[l])

        # ---- final encoder norm on CLS rows + head MLP on (BC, D) slab -----
        if BC == 1:
            cls = h[0:1, :]
        else:
            cls = jnp.concatenate([h[bi * T:bi * T + 1, :] for bi in range(BC)],
                                  axis=0)
        cls = layer_norm(cls, fnw_ref[...], fnb_ref[...])
        y = elu(cls)
        y = jnp.dot(y.astype(jnp.bfloat16), h1w_ref[...],
                    preferred_element_type=jnp.float32) + h1b_ref[...]
        y = elu(y)
        y = jnp.dot(y.astype(jnp.bfloat16), h2w_ref[...],
                    preferred_element_type=jnp.float32) + h2b_ref[...]
        if use_sigmoid:
            y = pl.reciprocal(1.0 + jnp.exp(-y), approx=True)
        o_ref[0] = y                              # (BC, 128) lane-dense output

    return kernel


# ----------------------------------------------------------------------------
# Parameter prep for the kernel (bf16 matmul weights, scale folding, padding)
# ----------------------------------------------------------------------------
def prepare_kernel_params(p):
    scale = 1.0 / float(np.sqrt(HD))
    wqkv = p["wqkv"].at[:, :, :D].multiply(scale)       # fold 1/sqrt(HD) into q
    bqkv = p["bqkv"].at[:, :, :D].multiply(scale)
    bf = jnp.bfloat16
    # pad classifier head-2 to 128 output lanes (wrapper slices column 0)
    c2w = jnp.zeros((D, D), jnp.float32).at[:, :1].set(p["c2w"])
    c2b = jnp.zeros((1, D), jnp.float32).at[:, :1].set(p["c2b"])
    return {
        "wqkv": wqkv.astype(bf), "bqkv": bqkv,
        "wo": p["wo"].astype(bf), "bo": p["bo"],
        "ln1w": p["ln1w"], "ln1b": p["ln1b"],
        "w1": p["w1"].astype(bf), "b1": p["b1"],
        "w2": p["w2"].astype(bf), "b2": p["b2"],
        "ln2w": p["ln2w"], "ln2b": p["ln2b"],
        "fnw": p["fnw"], "fnb": p["fnb"],
        "type_emb": p["type_emb"],
        "c1w": p["c1w"].astype(bf), "c1b": p["c1b"],
        "c2w": c2w.astype(bf), "c2b": c2b,
        "e1w": p["e1w"].astype(bf), "e1b": p["e1b"],
        "e2w": p["e2w"].astype(bf), "e2b": p["e2b"],
    }


def outfit_transformer_forward(task, x, kp, batch_chunk=None):
    """x: (B, S, D) float32.  Returns (B,1) for 'compatibility', (B,D) otherwise."""
    B, S, _ = x.shape
    x = x.astype(jnp.float32)
    if task == "compatibility":
        tok = jnp.broadcast_to(kp["type_emb"][0][None, None, :], (B, 1, D))
        x_tok = jnp.concatenate([tok, x], axis=1)
        h1w, h1b, h2w, h2b = kp["c1w"], kp["c1b"], kp["c2w"], kp["c2b"]
        out_dim = 1
    else:
        x_tok = x
        h1w, h1b, h2w, h2b = kp["e1w"], kp["e1b"], kp["e2w"], kp["e2b"]
        out_dim = D
    T = x_tok.shape[1]

    # batch chunking: >=2 grid steps when B>=2 so v7x's two TensorCores both
    # get work; rows inside a chunk are flattened into the GEMM M dimension.
    if batch_chunk is None:
        batch_chunk = max(1, min((B + 1) // 2, 8))
    BC = min(batch_chunk, B)
    G = (B + BC - 1) // BC
    Bp = G * BC
    if Bp > B:
        x_tok = jnp.concatenate(
            [x_tok, jnp.zeros((Bp - B, T, D), jnp.float32)], axis=0)
    x_tok = x_tok.reshape(G, BC, T, D)

    # head-selection mask: mask[h*T + j, d] = 1 iff lane d belongs to head h
    head_of_row = np.repeat(np.arange(H), T)
    head_of_dim = np.arange(D) // HD
    mask = jnp.asarray(
        (head_of_row[:, None] == head_of_dim[None, :]).astype(np.float32))

    operands = (
        x_tok, mask,
        kp["wqkv"], kp["bqkv"], kp["wo"], kp["bo"],
        kp["ln1w"], kp["ln1b"], kp["w1"], kp["b1"], kp["w2"], kp["b2"],
        kp["ln2w"], kp["ln2b"], kp["fnw"], kp["fnb"],
        h1w, h1b, h2w, h2b,
    )
    vmem = pl.BlockSpec(memory_space=pltpu.MemorySpace.VMEM)
    out = pl.pallas_call(
        _make_kernel(task, BC, T),
        grid=(G,),
        out_shape=jax.ShapeDtypeStruct((G, BC, D), jnp.float32),
        in_specs=[pl.BlockSpec((1, BC, T, D), lambda g: (g, 0, 0, 0))]
                 + [vmem] * (len(operands) - 1),
        out_specs=pl.BlockSpec((1, BC, D), lambda g: (g, 0, 0)),
        compiler_params=pltpu.CompilerParams(
            dimension_semantics=("parallel",),
            vmem_limit_bytes=32 * 1024 * 1024),
    )(*operands)
    return out.reshape(Bp, D)[:B, :out_dim]


# ----------------------------------------------------------------------------
# Pure-JAX f32 reference (faithful to the PyTorch module, for correctness)
# ----------------------------------------------------------------------------
def reference_forward(task, x, p):
    B, S, _ = x.shape
    if task == "compatibility":
        tok = jnp.broadcast_to(p["type_emb"][0][None, None, :], (B, 1, D))
        h = jnp.concatenate([tok, x], axis=1)
    else:
        h = x
    T = h.shape[1]

    def ln(v, w, b):
        mu = jnp.mean(v, axis=-1, keepdims=True)
        var = jnp.mean((v - mu) ** 2, axis=-1, keepdims=True)
        return (v - mu) / jnp.sqrt(var + EPS) * w + b

    def elu(z):
        return jnp.where(z > 0, z, jnp.exp(jnp.minimum(z, 0.0)) - 1.0)

    for l in range(L):
        qkv = jnp.einsum("btd,de->bte", h, p["wqkv"][l]) + p["bqkv"][l, 0]
        q, k, v = qkv[..., :D], qkv[..., D:2 * D], qkv[..., 2 * D:]
        q = q.reshape(B, T, H, HD).transpose(0, 2, 1, 3)
        k = k.reshape(B, T, H, HD).transpose(0, 2, 1, 3)
        v = v.reshape(B, T, H, HD).transpose(0, 2, 1, 3)
        s = jnp.einsum("bhqd,bhkd->bhqk", q, k) / np.sqrt(HD)
        a = jax.nn.softmax(s, axis=-1)
        ctx = jnp.einsum("bhqk,bhkd->bhqd", a, v)
        ctx = ctx.transpose(0, 2, 1, 3).reshape(B, T, D)
        attn = jnp.einsum("btd,de->bte", ctx, p["wo"][l]) + p["bo"][l, 0]
        h = ln(h + attn, p["ln1w"][l, 0], p["ln1b"][l, 0])
        ff = jax.nn.relu(jnp.einsum("btd,df->btf", h, p["w1"][l]) + p["b1"][l, 0])
        ff = jnp.einsum("btf,fd->btd", ff, p["w2"][l]) + p["b2"][l, 0]
        h = ln(h + ff, p["ln2w"][l, 0], p["ln2b"][l, 0])

    h = ln(h, p["fnw"][0], p["fnb"][0])
    y = h[:, 0, :]
    if task == "compatibility":
        y = elu(y)
        y = y @ p["c1w"] + p["c1b"][0]
        y = elu(y)
        y = y @ p["c2w"] + p["c2b"][0]
        y = jax.nn.sigmoid(y)
    else:
        y = elu(y)
        y = y @ p["e1w"] + p["e1b"][0]
        y = elu(y)
        y = y @ p["e2w"] + p["e2b"][0]
    return y


# ----------------------------------------------------------------------------
# Deterministic parameter construction
# ----------------------------------------------------------------------------
def make_params(seed=0):
    key = jax.random.PRNGKey(seed)
    ks = iter(jax.random.split(key, 64))

    def u(shape, lim):
        return jax.random.uniform(next(ks), shape, jnp.float32, -lim, lim)

    p = {
        # per-layer stacked weights, stored in right-multiply layout (x @ W)
        "wqkv": u((L, D, 3 * D), 0.05), "bqkv": u((L, 1, 3 * D), 0.02),
        "wo":   u((L, D, D), 0.05),     "bo":   u((L, 1, D), 0.02),
        "ln1w": jnp.ones((L, 1, D), jnp.float32),
        "ln1b": jnp.zeros((L, 1, D), jnp.float32),
        "w1":   u((L, D, FF), 0.05),    "b1":   u((L, 1, FF), 0.02),
        "w2":   u((L, FF, D), 0.05),    "b2":   u((L, 1, D), 0.02),
        "ln2w": jnp.ones((L, 1, D), jnp.float32),
        "ln2b": jnp.zeros((L, 1, D), jnp.float32),
        # final encoder norm
        "fnw": jnp.ones((1, D), jnp.float32),
        "fnb": jnp.zeros((1, D), jnp.float32),
        # type embedding (num_embeddings=2), uniform(-0.1, 0.1)
        "type_emb": u((2, D), 0.1),
        # fc_classifier: Linear(D,D), Linear(D,1)
        "c1w": u((D, D), 0.08), "c1b": u((1, D), 0.02),
        "c2w": u((D, 1), 0.08), "c2b": u((1, 1), 0.02),
        # fc_embed: Linear(D,D), Linear(D,D)
        "e1w": u((D, D), 0.08), "e1b": u((1, D), 0.02),
        "e2w": u((D, D), 0.08), "e2b": u((1, D), 0.02),
    }
    return p


if __name__ == "__main__":
    B, S = 2, 8
    params = make_params(0)
    kparams = prepare_kernel_params(params)
    x = jax.random.normal(jax.random.PRNGKey(0), (B, S, D), jnp.float32)

    # compatibility branch: (B, 1) sigmoid scores
    y_comp = jax.block_until_ready(
        outfit_transformer_forward("compatibility", x, kparams))
    # embedding branch: (B, D)
    y_emb = jax.block_until_ready(
        outfit_transformer_forward("embedding", x, kparams))

    ref_comp = reference_forward("compatibility", x, params)
    ref_emb = reference_forward("embedding", x, params)

    assert y_comp.shape == (B, 1) and y_emb.shape == (B, D)
    # bf16 matmul operands + approximate reciprocals in the kernel vs. a pure
    # f32 reference -> relaxed tolerance (per perf-review guidance).
    np.testing.assert_allclose(np.asarray(y_comp), np.asarray(ref_comp),
                               rtol=3e-2, atol=3e-2)
    np.testing.assert_allclose(np.asarray(y_emb), np.asarray(ref_emb),
                               rtol=3e-2, atol=3e-2)
    print("KERNEL_OK")
</pallas_src>

<mosaic_0001>
module attributes {stable_mosaic.version = 11 : i64} {
  func.func @kernel(%arg0: i32, %arg1: memref<1x1x9x128xf32, #tpu.memory_space<vmem>>, %arg2: memref<144x128xf32, #tpu.memory_space<vmem>>, %arg3: memref<6x128x384xbf16, #tpu.memory_space<vmem>>, %arg4: memref<6x1x384xf32, #tpu.memory_space<vmem>>, %arg5: memref<6x128x128xbf16, #tpu.memory_space<vmem>>, %arg6: memref<6x1x128xf32, #tpu.memory_space<vmem>>, %arg7: memref<6x1x128xf32, #tpu.memory_space<vmem>>, %arg8: memref<6x1x128xf32, #tpu.memory_space<vmem>>, %arg9: memref<6x128x768xbf16, #tpu.memory_space<vmem>>, %arg10: memref<6x1x768xf32, #tpu.memory_space<vmem>>, %arg11: memref<6x768x128xbf16, #tpu.memory_space<vmem>>, %arg12: memref<6x1x128xf32, #tpu.memory_space<vmem>>, %arg13: memref<6x1x128xf32, #tpu.memory_space<vmem>>, %arg14: memref<6x1x128xf32, #tpu.memory_space<vmem>>, %arg15: memref<1x128xf32, #tpu.memory_space<vmem>>, %arg16: memref<1x128xf32, #tpu.memory_space<vmem>>, %arg17: memref<128x128xbf16, #tpu.memory_space<vmem>>, %arg18: memref<1x128xf32, #tpu.memory_space<vmem>>, %arg19: memref<128x128xbf16, #tpu.memory_space<vmem>>, %arg20: memref<1x128xf32, #tpu.memory_space<vmem>>, %arg21: memref<1x1x128xf32, #tpu.memory_space<vmem>>) attributes {dimension_semantics = [#tpu.dimension_semantics<parallel>], iteration_bounds = array<i64: 2>, scalar_prefetch = 0 : i64, scratch_operands = 0 : i64, tpu.core_type = #tpu.core_type<tc>, window_params = [{transform_indices = @transform_0, window_bounds = array<i64: 1, 1, 9, 128>}, {pipeline_mode = #tpu.pipeline_mode<synchronous>, transform_indices = @transform_1, window_bounds = array<i64: 144, 128>}, {pipeline_mode = #tpu.pipeline_mode<synchronous>, transform_indices = @transform_2, window_bounds = array<i64: 6, 128, 384>}, {pipeline_mode = #tpu.pipeline_mode<synchronous>, transform_indices = @transform_3, window_bounds = array<i64: 6, 1, 384>}, {pipeline_mode = #tpu.pipeline_mode<synchronous>, transform_indices = @transform_4, window_bounds = array<i64: 6, 128, 128>}, {pipeline_mode = #tpu.pipeline_mode<synchronous>, transform_indices = @transform_5, window_bounds = array<i64: 6, 1, 128>}, {pipeline_mode = #tpu.pipeline_mode<synchronous>, transform_indices = @transform_6, window_bounds = array<i64: 6, 1, 128>}, {pipeline_mode = #tpu.pipeline_mode<synchronous>, transform_indices = @transform_7, window_bounds = array<i64: 6, 1, 128>}, {pipeline_mode = #tpu.pipeline_mode<synchronous>, transform_indices = @transform_8, window_bounds = array<i64: 6, 128, 768>}, {pipeline_mode = #tpu.pipeline_mode<synchronous>, transform_indices = @transform_9, window_bounds = array<i64: 6, 1, 768>}, {pipeline_mode = #tpu.pipeline_mode<synchronous>, transform_indices = @transform_10, window_bounds = array<i64: 6, 768, 128>}, {pipeline_mode = #tpu.pipeline_mode<synchronous>, transform_indices = @transform_11, window_bounds = array<i64: 6, 1, 128>}, {pipeline_mode = #tpu.pipeline_mode<synchronous>, transform_indices = @transform_12, window_bounds = array<i64: 6, 1, 128>}, {pipeline_mode = #tpu.pipeline_mode<synchronous>, transform_indices = @transform_13, window_bounds = array<i64: 6, 1, 128>}, {pipeline_mode = #tpu.pipeline_mode<synchronous>, transform_indices = @transform_14, window_bounds = array<i64: 1, 128>}, {pipeline_mode = #tpu.pipeline_mode<synchronous>, transform_indices = @transform_15, window_bounds = array<i64: 1, 128>}, {pipeline_mode = #tpu.pipeline_mode<synchronous>, transform_indices = @transform_16, window_bounds = array<i64: 128, 128>}, {pipeline_mode = #tpu.pipeline_mode<synchronous>, transform_indices = @transform_17, window_bounds = array<i64: 1, 128>}, {pipeline_mode = #tpu.pipeline_mode<synchronous>, transform_indices = @transform_18, window_bounds = array<i64: 128, 128>}, {pipeline_mode = #tpu.pipeline_mode<synchronous>, transform_indices = @transform_19, window_bounds = array<i64: 1, 128>}, {transform_indices = @transform_20, window_bounds = array<i64: 1, 1, 128>}]} {
    %c0 = arith.constant 0 : index
    %c0_0 = arith.constant 0 : index
    %0 = vector.load %arg2[%c0, %c0_0] : memref<144x128xf32, #tpu.memory_space<vmem>>, vector<144x128xf32>
    %c0_1 = arith.constant 0 : index
    %c0_2 = arith.constant 0 : index
    %c0_3 = arith.constant 0 : index
    %c0_4 = arith.constant 0 : index
    %1 = vector.load %arg1[%c0_1, %c0_2, %c0_3, %c0_4] : memref<1x1x9x128xf32, #tpu.memory_space<vmem>>, vector<1x1x9x128xf32>
    %2 = vector.shape_cast %1 : vector<1x1x9x128xf32> to vector<1x9x128xf32>
    %3 = vector.shape_cast %2 : vector<1x9x128xf32> to vector<9x128xf32>
    %4 = arith.truncf %3 : vector<9x128xf32> to vector<9x128xbf16>
    %c0_5 = arith.constant 0 : index
    %c0_6 = arith.constant 0 : index
    %c0_7 = arith.constant 0 : index
    %5 = vector.load %arg3[%c0_5, %c0_6, %c0_7] : memref<6x128x384xbf16, #tpu.memory_space<vmem>>, vector<1x128x384xbf16>
    %6 = vector.shape_cast %5 : vector<1x128x384xbf16> to vector<128x384xbf16>
    %cst = arith.constant dense<0.000000e+00> : vector<9x384xf32>
    %7 = tpu.matmul %4, %6, %cst {dimension_numbers = #tpu.dot_dimension_numbers<[1], [0], [0], [1], [0, 0, 1, 1], [], []>} : vector<9x128xbf16>, vector<128x384xbf16>, vector<9x384xf32> -> vector<9x384xf32>
    %c0_8 = arith.constant 0 : index
    %c0_9 = arith.constant 0 : index
    %c0_10 = arith.constant 0 : index
    %8 = vector.load %arg4[%c0_8, %c0_9, %c0_10] : memref<6x1x384xf32, #tpu.memory_space<vmem>>, vector<1x1x384xf32>
    %9 = vector.shape_cast %8 : vector<1x1x384xf32> to vector<1x384xf32>
    %10 = vector.broadcast %9 : vector<1x384xf32> to vector<9x384xf32>
    %11 = arith.addf %7, %10 : vector<9x384xf32>
    %12 = vector.extract_strided_slice %11 {offsets = [0, 0], sizes = [9, 128], strides = [1, 1]} : vector<9x384xf32> to vector<9x128xf32>
    %13 = vector.extract_strided_slice %11 {offsets = [0, 128], sizes = [9, 128], strides = [1, 1]} : vector<9x384xf32> to vector<9x128xf32>
    %14 = vector.extract_strided_slice %11 {offsets = [0, 256], sizes = [9, 128], strides = [1, 1]} : vector<9x384xf32> to vector<9x128xf32>
    %15 = tpu.concatenate %13, %13, %13, %13, %13, %13, %13, %13, %13, %13, %13, %13, %13, %13, %13, %13 in 0 : vector<9x128xf32>, vector<9x128xf32>, vector<9x128xf32>, vector<9x128xf32>, vector<9x128xf32>, vector<9x128xf32>, vector<9x128xf32>, vector<9x128xf32>, vector<9x128xf32>, vector<9x128xf32>, vector<9x128xf32>, vector<9x128xf32>, vector<9x128xf32>, vector<9x128xf32>, vector<9x128xf32>, vector<9x128xf32> -> vector<144x128xf32>
    %16 = arith.mulf %15, %0 : vector<144x128xf32>
    %17 = tpu.concatenate %14, %14, %14, %14, %14, %14, %14, %14, %14, %14, %14, %14, %14, %14, %14, %14 in 0 : vector<9x128xf32>, vector<9x128xf32>, vector<9x128xf32>, vector<9x128xf32>, vector<9x128xf32>, vector<9x128xf32>, vector<9x128xf32>, vector<9x128xf32>, vector<9x128xf32>, vector<9x128xf32>, vector<9x128xf32>, vector<9x128xf32>, vector<9x128xf32>, vector<9x128xf32>, vector<9x128xf32>, vector<9x128xf32> -> vector<144x128xf32>
    %18 = arith.mulf %17, %0 : vector<144x128xf32>
    %cst_11 = arith.constant dense<0.000000e+00> : vector<9x144xf32>
    %19 = tpu.matmul %12, %16, %cst_11 {dimension_numbers = #tpu.dot_dimension_numbers<[1], [1], [0], [0], [0, 0, 1, 0], [], []>} : vector<9x128xf32>, vector<144x128xf32>, vector<9x144xf32> -> vector<9x144xf32>
    %cst_12 = arith.constant dense<0xFF800000> : vector<9xf32>
    %20 = vector.multi_reduction <maximumf>, %19, %cst_12 [1] : vector<9x144xf32> to vector<9xf32>
    %21 = vector.shape_cast %20 : vector<9xf32> to vector<9x1xf32>
    %22 = vector.broadcast %21 : vector<9x1xf32> to vector<9x144xf32>
    %23 = arith.subf %19, %22 : vector<9x144xf32>
    %24 = math.exp %23 : vector<9x144xf32>
    %cst_13 = arith.constant dense<0.000000e+00> : vector<9x128xf32>
    %25 = tpu.matmul %24, %18, %cst_13 {dimension_numbers = #tpu.dot_dimension_numbers<[1], [0], [0], [1], [0, 0, 1, 1], [], []>} : vector<9x144xf32>, vector<144x128xf32>, vector<9x128xf32> -> vector<9x128xf32>
    %cst_14 = arith.constant dense<0.000000e+00> : vector<9x128xf32>
    %26 = tpu.matmul %24, %0, %cst_14 {dimension_numbers = #tpu.dot_dimension_numbers<[1], [0], [0], [1], [0, 0, 1, 1], [], []>} : vector<9x144xf32>, vector<144x128xf32>, vector<9x128xf32> -> vector<9x128xf32>
    %27 = tpu.reciprocal %26 {approx = true} : vector<9x128xf32> -> vector<9x128xf32>
    %28 = arith.mulf %25, %27 : vector<9x128xf32>
    %29 = arith.truncf %28 : vector<9x128xf32> to vector<9x128xbf16>
    %c0_15 = arith.constant 0 : index
    %c0_16 = arith.constant 0 : index
    %c0_17 = arith.constant 0 : index
    %30 = vector.load %arg5[%c0_15, %c0_16, %c0_17] : memref<6x128x128xbf16, #tpu.memory_space<vmem>>, vector<1x128x128xbf16>
    %31 = vector.shape_cast %30 : vector<1x128x128xbf16> to vector<128x128xbf16>
    %cst_18 = arith.constant dense<0.000000e+00> : vector<9x128xf32>
    %32 = tpu.matmul %29, %31, %cst_18 {dimension_numbers = #tpu.dot_dimension_numbers<[1], [0], [0], [1], [0, 0, 1, 1], [], []>} : vector<9x128xbf16>, vector<128x128xbf16>, vector<9x128xf32> -> vector<9x128xf32>
    %c0_19 = arith.constant 0 : index
    %c0_20 = arith.constant 0 : index
    %c0_21 = arith.constant 0 : index
    %33 = vector.load %arg6[%c0_19, %c0_20, %c0_21] : memref<6x1x128xf32, #tpu.memory_space<vmem>>, vector<1x1x128xf32>
    %34 = vector.shape_cast %33 : vector<1x1x128xf32> to vector<1x128xf32>
    %35 = vector.broadcast %34 : vector<1x128xf32> to vector<9x128xf32>
    %36 = arith.addf %32, %35 : vector<9x128xf32>
    %37 = arith.addf %3, %36 : vector<9x128xf32>
    %c0_22 = arith.constant 0 : index
    %c0_23 = arith.constant 0 : index
    %c0_24 = arith.constant 0 : index
    %38 = vector.load %arg7[%c0_22, %c0_23, %c0_24] : memref<6x1x128xf32, #tpu.memory_space<vmem>>, vector<1x1x128xf32>
    %39 = vector.shape_cast %38 : vector<1x1x128xf32> to vector<1x128xf32>
    %c0_25 = arith.constant 0 : index
    %c0_26 = arith.constant 0 : index
    %c0_27 = arith.constant 0 : index
    %40 = vector.load %arg8[%c0_25, %c0_26, %c0_27] : memref<6x1x128xf32, #tpu.memory_space<vmem>>, vector<1x1x128xf32>
    %41 = vector.shape_cast %40 : vector<1x1x128xf32> to vector<1x128xf32>
    %cst_28 = arith.constant dense<0.000000e+00> : vector<9xf32>
    %42 = vector.multi_reduction <add>, %37, %cst_28 [1] : vector<9x128xf32> to vector<9xf32>
    %43 = vector.shape_cast %42 : vector<9xf32> to vector<9x1xf32>
    %cst_29 = arith.constant 1.280000e+02 : f32
    %44 = vector.broadcast %cst_29 : f32 to vector<9x1xf32>
    %45 = arith.divf %43, %44 : vector<9x1xf32>
    %46 = vector.broadcast %45 : vector<9x1xf32> to vector<9x128xf32>
    %47 = arith.subf %37, %46 : vector<9x128xf32>
    %48 = arith.mulf %47, %47 : vector<9x128xf32>
    %cst_30 = arith.constant dense<0.000000e+00> : vector<9xf32>
    %49 = vector.multi_reduction <add>, %48, %cst_30 [1] : vector<9x128xf32> to vector<9xf32>
    %50 = vector.shape_cast %49 : vector<9xf32> to vector<9x1xf32>
    %cst_31 = arith.constant 1.280000e+02 : f32
    %51 = vector.broadcast %cst_31 : f32 to vector<9x1xf32>
    %52 = arith.divf %50, %51 : vector<9x1xf32>
    %cst_32 = arith.constant 9.99999974E-6 : f32
    %53 = vector.broadcast %cst_32 : f32 to vector<9x1xf32>
    %54 = arith.addf %52, %53 : vector<9x1xf32>
    %55 = math.rsqrt %54 : vector<9x1xf32>
    %56 = vector.broadcast %55 : vector<9x1xf32> to vector<9x128xf32>
    %57 = arith.mulf %47, %56 : vector<9x128xf32>
    %58 = vector.broadcast %39 : vector<1x128xf32> to vector<9x128xf32>
    %59 = arith.mulf %57, %58 : vector<9x128xf32>
    %60 = vector.broadcast %41 : vector<1x128xf32> to vector<9x128xf32>
    %61 = arith.addf %59, %60 : vector<9x128xf32>
    %62 = arith.truncf %61 : vector<9x128xf32> to vector<9x128xbf16>
    %c0_33 = arith.constant 0 : index
    %c0_34 = arith.constant 0 : index
    %c0_35 = arith.constant 0 : index
    %63 = vector.load %arg9[%c0_33, %c0_34, %c0_35] : memref<6x128x768xbf16, #tpu.memory_space<vmem>>, vector<1x128x768xbf16>
    %64 = vector.shape_cast %63 : vector<1x128x768xbf16> to vector<128x768xbf16>
    %cst_36 = arith.constant dense<0.000000e+00> : vector<9x768xf32>
    %65 = tpu.matmul %62, %64, %cst_36 {dimension_numbers = #tpu.dot_dimension_numbers<[1], [0], [0], [1], [0, 0, 1, 1], [], []>} : vector<9x128xbf16>, vector<128x768xbf16>, vector<9x768xf32> -> vector<9x768xf32>
    %c0_37 = arith.constant 0 : index
    %c0_38 = arith.constant 0 : index
    %c0_39 = arith.constant 0 : index
    %66 = vector.load %arg10[%c0_37, %c0_38, %c0_39] : memref<6x1x768xf32, #tpu.memory_space<vmem>>, vector<1x1x768xf32>
    %67 = vector.shape_cast %66 : vector<1x1x768xf32> to vector<1x768xf32>
    %68 = vector.broadcast %67 : vector<1x768xf32> to vector<9x768xf32>
    %69 = arith.addf %65, %68 : vector<9x768xf32>
    %cst_40 = arith.constant 0.000000e+00 : f32
    %70 = vector.broadcast %cst_40 : f32 to vector<9x768xf32>
    %71 = arith.maximumf %69, %70 : vector<9x768xf32>
    %72 = arith.truncf %71 : vector<9x768xf32> to vector<9x768xbf16>
    %c0_41 = arith.constant 0 : index
    %c0_42 = arith.constant 0 : index
    %c0_43 = arith.constant 0 : index
    %73 = vector.load %arg11[%c0_41, %c0_42, %c0_43] : memref<6x768x128xbf16, #tpu.memory_space<vmem>>, vector<1x768x128xbf16>
    %74 = vector.shape_cast %73 : vector<1x768x128xbf16> to vector<768x128xbf16>
    %cst_44 = arith.constant dense<0.000000e+00> : vector<9x128xf32>
    %75 = tpu.matmul %72, %74, %cst_44 {dimension_numbers = #tpu.dot_dimension_numbers<[1], [0], [0], [1], [0, 0, 1, 1], [], []>} : vector<9x768xbf16>, vector<768x128xbf16>, vector<9x128xf32> -> vector<9x128xf32>
    %c0_45 = arith.constant 0 : index
    %c0_46 = arith.constant 0 : index
    %c0_47 = arith.constant 0 : index
    %76 = vector.load %arg12[%c0_45, %c0_46, %c0_47] : memref<6x1x128xf32, #tpu.memory_space<vmem>>, vector<1x1x128xf32>
    %77 = vector.shape_cast %76 : vector<1x1x128xf32> to vector<1x128xf32>
    %78 = vector.broadcast %77 : vector<1x128xf32> to vector<9x128xf32>
    %79 = arith.addf %75, %78 : vector<9x128xf32>
    %80 = arith.addf %61, %79 : vector<9x128xf32>
    %c0_48 = arith.constant 0 : index
    %c0_49 = arith.constant 0 : index
    %c0_50 = arith.constant 0 : index
    %81 = vector.load %arg13[%c0_48, %c0_49, %c0_50] : memref<6x1x128xf32, #tpu.memory_space<vmem>>, vector<1x1x128xf32>
    %82 = vector.shape_cast %81 : vector<1x1x128xf32> to vector<1x128xf32>
    %c0_51 = arith.constant 0 : index
    %c0_52 = arith.constant 0 : index
    %c0_53 = arith.constant 0 : index
    %83 = vector.load %arg14[%c0_51, %c0_52, %c0_53] : memref<6x1x128xf32, #tpu.memory_space<vmem>>, vector<1x1x128xf32>
    %84 = vector.shape_cast %83 : vector<1x1x128xf32> to vector<1x128xf32>
    %cst_54 = arith.constant dense<0.000000e+00> : vector<9xf32>
    %85 = vector.multi_reduction <add>, %80, %cst_54 [1] : vector<9x128xf32> to vector<9xf32>
    %86 = vector.shape_cast %85 : vector<9xf32> to vector<9x1xf32>
    %cst_55 = arith.constant 1.280000e+02 : f32
    %87 = vector.broadcast %cst_55 : f32 to vector<9x1xf32>
    %88 = arith.divf %86, %87 : vector<9x1xf32>
    %89 = vector.broadcast %88 : vector<9x1xf32> to vector<9x128xf32>
    %90 = arith.subf %80, %89 : vector<9x128xf32>
    %91 = arith.mulf %90, %90 : vector<9x128xf32>
    %cst_56 = arith.constant dense<0.000000e+00> : vector<9xf32>
    %92 = vector.multi_reduction <add>, %91, %cst_56 [1] : vector<9x128xf32> to vector<9xf32>
    %93 = vector.shape_cast %92 : vector<9xf32> to vector<9x1xf32>
    %cst_57 = arith.constant 1.280000e+02 : f32
    %94 = vector.broadcast %cst_57 : f32 to vector<9x1xf32>
    %95 = arith.divf %93, %94 : vector<9x1xf32>
    %cst_58 = arith.constant 9.99999974E-6 : f32
    %96 = vector.broadcast %cst_58 : f32 to vector<9x1xf32>
    %97 = arith.addf %95, %96 : vector<9x1xf32>
    %98 = math.rsqrt %97 : vector<9x1xf32>
    %99 = vector.broadcast %98 : vector<9x1xf32> to vector<9x128xf32>
    %100 = arith.mulf %90, %99 : vector<9x128xf32>
    %101 = vector.broadcast %82 : vector<1x128xf32> to vector<9x128xf32>
    %102 = arith.mulf %100, %101 : vector<9x128xf32>
    %103 = vector.broadcast %84 : vector<1x128xf32> to vector<9x128xf32>
    %104 = arith.addf %102, %103 : vector<9x128xf32>
    %105 = arith.truncf %104 : vector<9x128xf32> to vector<9x128xbf16>
    %c1 = arith.constant 1 : index
    %c0_59 = arith.constant 0 : index
    %c0_60 = arith.constant 0 : index
    %106 = vector.load %arg3[%c1, %c0_59, %c0_60] : memref<6x128x384xbf16, #tpu.memory_space<vmem>>, vector<1x128x384xbf16>
    %107 = vector.shape_cast %106 : vector<1x128x384xbf16> to vector<128x384xbf16>
    %cst_61 = arith.constant dense<0.000000e+00> : vector<9x384xf32>
    %108 = tpu.matmul %105, %107, %cst_61 {dimension_numbers = #tpu.dot_dimension_numbers<[1], [0], [0], [1], [0, 0, 1, 1], [], []>} : vector<9x128xbf16>, vector<128x384xbf16>, vector<9x384xf32> -> vector<9x384xf32>
    %c1_62 = arith.constant 1 : index
    %c0_63 = arith.constant 0 : index
    %c0_64 = arith.constant 0 : index
    %109 = vector.load %arg4[%c1_62, %c0_63, %c0_64] : memref<6x1x384xf32, #tpu.memory_space<vmem>>, vector<1x1x384xf32>
    %110 = vector.shape_cast %109 : vector<1x1x384xf32> to vector<1x384xf32>
    %111 = vector.broadcast %110 : vector<1x384xf32> to vector<9x384xf32>
    %112 = arith.addf %108, %111 : vector<9x384xf32>
    %113 = vector.extract_strided_slice %112 {offsets = [0, 0], sizes = [9, 128], strides = [1, 1]} : vector<9x384xf32> to vector<9x128xf32>
    %114 = vector.extract_strided_slice %112 {offsets = [0, 128], sizes = [9, 128], strides = [1, 1]} : vector<9x384xf32> to vector<9x128xf32>
    %115 = vector.extract_strided_slice %112 {offsets = [0, 256], sizes = [9, 128], strides = [1, 1]} : vector<9x384xf32> to vector<9x128xf32>
    %116 = tpu.concatenate %114, %114, %114, %114, %114, %114, %114, %114, %114, %114, %114, %114, %114, %114, %114, %114 in 0 : vector<9x128xf32>, vector<9x128xf32>, vector<9x128xf32>, vector<9x128xf32>, vector<9x128xf32>, vector<9x128xf32>, vector<9x128xf32>, vector<9x128xf32>, vector<9x128xf32>, vector<9x128xf32>, vector<9x128xf32>, vector<9x128xf32>, vector<9x128xf32>, vector<9x128xf32>, vector<9x128xf32>, vector<9x128xf32> -> vector<144x128xf32>
    %117 = arith.mulf %116, %0 : vector<144x128xf32>
    %118 = tpu.concatenate %115, %115, %115, %115, %115, %115, %115, %115, %115, %115, %115, %115, %115, %115, %115, %115 in 0 : vector<9x128xf32>, vector<9x128xf32>, vector<9x128xf32>, vector<9x128xf32>, vector<9x128xf32>, vector<9x128xf32>, vector<9x128xf32>, vector<9x128xf32>, vector<9x128xf32>, vector<9x128xf32>, vector<9x128xf32>, vector<9x128xf32>, vector<9x128xf32>, vector<9x128xf32>, vector<9x128xf32>, vector<9x128xf32> -> vector<144x128xf32>
    %119 = arith.mulf %118, %0 : vector<144x128xf32>
    %cst_65 = arith.constant dense<0.000000e+00> : vector<9x144xf32>
    %120 = tpu.matmul %113, %117, %cst_65 {dimension_numbers = #tpu.dot_dimension_numbers<[1], [1], [0], [0], [0, 0, 1, 0], [], []>} : vector<9x128xf32>, vector<144x128xf32>, vector<9x144xf32> -> vector<9x144xf32>
    %cst_66 = arith.constant dense<0xFF800000> : vector<9xf32>
    %121 = vector.multi_reduction <maximumf>, %120, %cst_66 [1] : vector<9x144xf32> to vector<9xf32>
    %122 = vector.shape_cast %121 : vector<9xf32> to vector<9x1xf32>
    %123 = vector.broadcast %122 : vector<9x1xf32> to vector<9x144xf32>
    %124 = arith.subf %120, %123 : vector<9x144xf32>
    %125 = math.exp %124 : vector<9x144xf32>
    %cst_67 = arith.constant dense<0.000000e+00> : vector<9x128xf32>
    %126 = tpu.matmul %125, %119, %cst_67 {dimension_numbers = #tpu.dot_dimension_numbers<[1], [0], [0], [1], [0, 0, 1, 1], [], []>} : vector<9x144xf32>, vector<144x128xf32>, vector<9x128xf32> -> vector<9x128xf32>
    %cst_68 = arith.constant dense<0.000000e+00> : vector<9x128xf32>
    %127 = tpu.matmul %125, %0, %cst_68 {dimension_numbers = #tpu.dot_dimension_numbers<[1], [0], [0], [1], [0, 0, 1, 1], [], []>} : vector<9x144xf32>, vector<144x128xf32>, vector<9x128xf32> -> vector<9x128xf32>
    %128 = tpu.reciprocal %127 {approx = true} : vector<9x128xf32> -> vector<9x128xf32>
    %129 = arith.mulf %126, %128 : vector<9x128xf32>
    %130 = arith.truncf %129 : vector<9x128xf32> to vector<9x128xbf16>
    %c1_69 = arith.constant 1 : index
    %c0_70 = arith.constant 0 : index
    %c0_71 = arith.constant 0 : index
    %131 = vector.load %arg5[%c1_69, %c0_70, %c0_71] : memref<6x128x128xbf16, #tpu.memory_space<vmem>>, vector<1x128x128xbf16>
    %132 = vector.shape_cast %131 : vector<1x128x128xbf16> to vector<128x128xbf16>
    %cst_72 = arith.constant dense<0.000000e+00> : vector<9x128xf32>
    %133 = tpu.matmul %130, %132, %cst_72 {dimension_numbers = #tpu.dot_dimension_numbers<[1], [0], [0], [1], [0, 0, 1, 1], [], []>} : vector<9x128xbf16>, vector<128x128xbf16>, vector<9x128xf32> -> vector<9x128xf32>
    %c1_73 = arith.constant 1 : index
    %c0_74 = arith.constant 0 : index
    %c0_75 = arith.constant 0 : index
    %134 = vector.load %arg6[%c1_73, %c0_74, %c0_75] : memref<6x1x128xf32, #tpu.memory_space<vmem>>, vector<1x1x128xf32>
    %135 = vector.shape_cast %134 : vector<1x1x128xf32> to vector<1x128xf32>
    %136 = vector.broadcast %135 : vector<1x128xf32> to vector<9x128xf32>
    %137 = arith.addf %133, %136 : vector<9x128xf32>
    %138 = arith.addf %104, %137 : vector<9x128xf32>
    %c1_76 = arith.constant 1 : index
    %c0_77 = arith.constant 0 : index
    %c0_78 = arith.constant 0 : index
    %139 = vector.load %arg7[%c1_76, %c0_77, %c0_78] : memref<6x1x128xf32, #tpu.memory_space<vmem>>, vector<1x1x128xf32>
    %140 = vector.shape_cast %139 : vector<1x1x128xf32> to vector<1x128xf32>
    %c1_79 = arith.constant 1 : index
    %c0_80 = arith.constant 0 : index
    %c0_81 = arith.constant 0 : index
    %141 = vector.load %arg8[%c1_79, %c0_80, %c0_81] : memref<6x1x128xf32, #tpu.memory_space<vmem>>, vector<1x1x128xf32>
    %142 = vector.shape_cast %141 : vector<1x1x128xf32> to vector<1x128xf32>
    %cst_82 = arith.constant dense<0.000000e+00> : vector<9xf32>
    %143 = vector.multi_reduction <add>, %138, %cst_82 [1] : vector<9x128xf32> to vector<9xf32>
    %144 = vector.shape_cast %143 : vector<9xf32> to vector<9x1xf32>
    %cst_83 = arith.constant 1.280000e+02 : f32
    %145 = vector.broadcast %cst_83 : f32 to vector<9x1xf32>
    %146 = arith.divf %144, %145 : vector<9x1xf32>
    %147 = vector.broadcast %146 : vector<9x1xf32> to vector<9x128xf32>
    %148 = arith.subf %138, %147 : vector<9x128xf32>
    %149 = arith.mulf %148, %148 : vector<9x128xf32>
    %cst_84 = arith.constant dense<0.000000e+00> : vector<9xf32>
    %150 = vector.multi_reduction <add>, %149, %cst_84 [1] : vector<9x128xf32> to vector<9xf32>
    %151 = vector.shape_cast %150 : vector<9xf32> to vector<9x1xf32>
    %cst_85 = arith.constant 1.280000e+02 : f32
    %152 = vector.broadcast %cst_85 : f32 to vector<9x1xf32>
    %153 = arith.divf %151, %152 : vector<9x1xf32>
    %cst_86 = arith.constant 9.99999974E-6 : f32
    %154 = vector.broadcast %cst_86 : f32 to vector<9x1xf32>
    %155 = arith.addf %153, %154 : vector<9x1xf32>
    %156 = math.rsqrt %155 : vector<9x1xf32>
    %157 = vector.broadcast %156 : vector<9x1xf32> to vector<9x128xf32>
    %158 = arith.mulf %148, %157 : vector<9x128xf32>
    %159 = vector.broadcast %140 : vector<1x128xf32> to vector<9x128xf32>
    %160 = arith.mulf %158, %159 : vector<9x128xf32>
    %161 = vector.broadcast %142 : vector<1x128xf32> to vector<9x128xf32>
    %162 = arith.addf %160, %161 : vector<9x128xf32>
    %163 = arith.truncf %162 : vector<9x128xf32> to vector<9x128xbf16>
    %c1_87 = arith.constant 1 : index
    %c0_88 = arith.constant 0 : index
    %c0_89 = arith.constant 0 : index
    %164 = vector.load %arg9[%c1_87, %c0_88, %c0_89] : memref<6x128x768xbf16, #tpu.memory_space<vmem>>, vector<1x128x768xbf16>
    %165 = vector.shape_cast %164 : vector<1x128x768xbf16> to vector<128x768xbf16>
    %cst_90 = arith.constant dense<0.000000e+00> : vector<9x768xf32>
    %166 = tpu.matmul %163, %165, %cst_90 {dimension_numbers = #tpu.dot_dimension_numbers<[1], [0], [0], [1], [0, 0, 1, 1], [], []>} : vector<9x128xbf16>, vector<128x768xbf16>, vector<9x768xf32> -> vector<9x768xf32>
    %c1_91 = arith.constant 1 : index
    %c0_92 = arith.constant 0 : index
    %c0_93 = arith.constant 0 : index
    %167 = vector.load %arg10[%c1_91, %c0_92, %c0_93] : memref<6x1x768xf32, #tpu.memory_space<vmem>>, vector<1x1x768xf32>
    %168 = vector.shape_cast %167 : vector<1x1x768xf32> to vector<1x768xf32>
    %169 = vector.broadcast %168 : vector<1x768xf32> to vector<9x768xf32>
    %170 = arith.addf %166, %169 : vector<9x768xf32>
    %cst_94 = arith.constant 0.000000e+00 : f32
    %171 = vector.broadcast %cst_94 : f32 to vector<9x768xf32>
    %172 = arith.maximumf %170, %171 : vector<9x768xf32>
    %173 = arith.truncf %172 : vector<9x768xf32> to vector<9x768xbf16>
    %c1_95 = arith.constant 1 : index
    %c0_96 = arith.constant 0 : index
    %c0_97 = arith.constant 0 : index
    %174 = vector.load %arg11[%c1_95, %c0_96, %c0_97] : memref<6x768x128xbf16, #tpu.memory_space<vmem>>, vector<1x768x128xbf16>
    %175 = vector.shape_cast %174 : vector<1x768x128xbf16> to vector<768x128xbf16>
    %cst_98 = arith.constant dense<0.000000e+00> : vector<9x128xf32>
    %176 = tpu.matmul %173, %175, %cst_98 {dimension_numbers = #tpu.dot_dimension_numbers<[1], [0], [0], [1], [0, 0, 1, 1], [], []>} : vector<9x768xbf16>, vector<768x128xbf16>, vector<9x128xf32> -> vector<9x128xf32>
    %c1_99 = arith.constant 1 : index
    %c0_100 = arith.constant 0 : index
    %c0_101 = arith.constant 0 : index
    %177 = vector.load %arg12[%c1_99, %c0_100, %c0_101] : memref<6x1x128xf32, #tpu.memory_space<vmem>>, vector<1x1x128xf32>
    %178 = vector.shape_cast %177 : vector<1x1x128xf32> to vector<1x128xf32>
    %179 = vector.broadcast %178 : vector<1x128xf32> to vector<9x128xf32>
    %180 = arith.addf %176, %179 : vector<9x128xf32>
    %181 = arith.addf %162, %180 : vector<9x128xf32>
    %c1_102 = arith.constant 1 : index
    %c0_103 = arith.constant 0 : index
    %c0_104 = arith.constant 0 : index
    %182 = vector.load %arg13[%c1_102, %c0_103, %c0_104] : memref<6x1x128xf32, #tpu.memory_space<vmem>>, vector<1x1x128xf32>
    %183 = vector.shape_cast %182 : vector<1x1x128xf32> to vector<1x128xf32>
    %c1_105 = arith.constant 1 : index
    %c0_106 = arith.constant 0 : index
    %c0_107 = arith.constant 0 : index
    %184 = vector.load %arg14[%c1_105, %c0_106, %c0_107] : memref<6x1x128xf32, #tpu.memory_space<vmem>>, vector<1x1x128xf32>
    %185 = vector.shape_cast %184 : vector<1x1x128xf32> to vector<1x128xf32>
    %cst_108 = arith.constant dense<0.000000e+00> : vector<9xf32>
    %186 = vector.multi_reduction <add>, %181, %cst_108 [1] : vector<9x128xf32> to vector<9xf32>
    %187 = vector.shape_cast %186 : vector<9xf32> to vector<9x1xf32>
    %cst_109 = arith.constant 1.280000e+02 : f32
    %188 = vector.broadcast %cst_109 : f32 to vector<9x1xf32>
    %189 = arith.divf %187, %188 : vector<9x1xf32>
    %190 = vector.broadcast %189 : vector<9x1xf32> to vector<9x128xf32>
    %191 = arith.subf %181, %190 : vector<9x128xf32>
    %192 = arith.mulf %191, %191 : vector<9x128xf32>
    %cst_110 = arith.constant dense<0.000000e+00> : vector<9xf32>
    %193 = vector.multi_reduction <add>, %192, %cst_110 [1] : vector<9x128xf32> to vector<9xf32>
    %194 = vector.shape_cast %193 : vector<9xf32> to vector<9x1xf32>
    %cst_111 = arith.constant 1.280000e+02 : f32
    %195 = vector.broadcast %cst_111 : f32 to vector<9x1xf32>
    %196 = arith.divf %194, %195 : vector<9x1xf32>
    %cst_112 = arith.constant 9.99999974E-6 : f32
    %197 = vector.broadcast %cst_112 : f32 to vector<9x1xf32>
    %198 = arith.addf %196, %197 : vector<9x1xf32>
    %199 = math.rsqrt %198 : vector<9x1xf32>
    %200 = vector.broadcast %199 : vector<9x1xf32> to vector<9x128xf32>
    %201 = arith.mulf %191, %200 : vector<9x128xf32>
    %202 = vector.broadcast %183 : vector<1x128xf32> to vector<9x128xf32>
    %203 = arith.mulf %201, %202 : vector<9x128xf32>
    %204 = vector.broadcast %185 : vector<1x128xf32> to vector<9x128xf32>
    %205 = arith.addf %203, %204 : vector<9x128xf32>
    %206 = arith.truncf %205 : vector<9x128xf32> to vector<9x128xbf16>
    %c2 = arith.constant 2 : index
    %c0_113 = arith.constant 0 : index
    %c0_114 = arith.constant 0 : index
    %207 = vector.load %arg3[%c2, %c0_113, %c0_114] : memref<6x128x384xbf16, #tpu.memory_space<vmem>>, vector<1x128x384xbf16>
    %208 = vector.shape_cast %207 : vector<1x128x384xbf16> to vector<128x384xbf16>
    %cst_115 = arith.constant dense<0.000000e+00> : vector<9x384xf32>
    %209 = tpu.matmul %206, %208, %cst_115 {dimension_numbers = #tpu.dot_dimension_numbers<[1], [0], [0], [1], [0, 0, 1, 1], [], []>} : vector<9x128xbf16>, vector<128x384xbf16>, vector<9x384xf32> -> vector<9x384xf32>
    %c2_116 = arith.constant 2 : index
    %c0_117 = arith.constant 0 : index
    %c0_118 = arith.constant 0 : index
    %210 = vector.load %arg4[%c2_116, %c0_117, %c0_118] : memref<6x1x384xf32, #tpu.memory_space<vmem>>, vector<1x1x384xf32>
    %211 = vector.shape_cast %210 : vector<1x1x384xf32> to vector<1x384xf32>
    %212 = vector.broadcast %211 : vector<1x384xf32> to vector<9x384xf32>
    %213 = arith.addf %209, %212 : vector<9x384xf32>
    %214 = vector.extract_strided_slice %213 {offsets = [0, 0], sizes = [9, 128], strides = [1, 1]} : vector<9x384xf32> to vector<9x128xf32>
    %215 = vector.extract_strided_slice %213 {offsets = [0, 128], sizes = [9, 128], strides = [1, 1]} : vector<9x384xf32> to vector<9x128xf32>
    %216 = vector.extract_strided_slice %213 {offsets = [0, 256], sizes = [9, 128], strides = [1, 1]} : vector<9x384xf32> to vector<9x128xf32>
    %217 = tpu.concatenate %215, %215, %215, %215, %215, %215, %215, %215, %215, %215, %215, %215, %215, %215, %215, %215 in 0 : vector<9x128xf32>, vector<9x128xf32>, vector<9x128xf32>, vector<9x128xf32>, vector<9x128xf32>, vector<9x128xf32>, vector<9x128xf32>, vector<9x128xf32>, vector<9x128xf32>, vector<9x128xf32>, vector<9x128xf32>, vector<9x128xf32>, vector<9x128xf32>, vector<9x128xf32>, vector<9x128xf32>, vector<9x128xf32> -> vector<144x128xf32>
    %218 = arith.mulf %217, %0 : vector<144x128xf32>
    %219 = tpu.concatenate %216, %216, %216, %216, %216, %216, %216, %216, %216, %216, %216, %216, %216, %216, %216, %216 in 0 : vector<9x128xf32>, vector<9x128xf32>, vector<9x128xf32>, vector<9x128xf32>, vector<9x128xf32>, vector<9x128xf32>, vector<9x128xf32>, vector<9x128xf32>, vector<9x128xf32>, vector<9x128xf32>, vector<9x128xf32>, vector<9x128xf32>, vector<9x128xf32>, vector<9x128xf32>, vector<9x128xf32>, vector<9x128xf32> -> vector<144x128xf32>
    %220 = arith.mulf %219, %0 : vector<144x128xf32>
    %cst_119 = arith.constant dense<0.000000e+00> : vector<9x144xf32>
    %221 = tpu.matmul %214, %218, %cst_119 {dimension_numbers = #tpu.dot_dimension_numbers<[1], [1], [0], [0], [0, 0, 1, 0], [], []>} : vector<9x128xf32>, vector<144x128xf32>, vector<9x144xf32> -> vector<9x144xf32>
    %cst_120 = arith.constant dense<0xFF800000> : vector<9xf32>
    %222 = vector.multi_reduction <maximumf>, %221, %cst_120 [1] : vector<9x144xf32> to vector<9xf32>
    %223 = vector.shape_cast %222 : vector<9xf32> to vector<9x1xf32>
    %224 = vector.broadcast %223 : vector<9x1xf32> to vector<9x144xf32>
    %225 = arith.subf %221, %224 : vector<9x144xf32>
    %226 = math.exp %225 : vector<9x144xf32>
    %cst_121 = arith.constant dense<0.000000e+00> : vector<9x128xf32>
    %227 = tpu.matmul %226, %220, %cst_121 {dimension_numbers = #tpu.dot_dimension_numbers<[1], [0], [0], [1], [0, 0, 1, 1], [], []>} : vector<9x144xf32>, vector<144x128xf32>, vector<9x128xf32> -> vector<9x128xf32>
    %cst_122 = arith.constant dense<0.000000e+00> : vector<9x128xf32>
    %228 = tpu.matmul %226, %0, %cst_122 {dimension_numbers = #tpu.dot_dimension_numbers<[1], [0], [0], [1], [0, 0, 1, 1], [], []>} : vector<9x144xf32>, vector<144x128xf32>, vector<9x128xf32> -> vector<9x128xf32>
    %229 = tpu.reciprocal %228 {approx = true} : vector<9x128xf32> -> vector<9x128xf32>
    %230 = arith.mulf %227, %229 : vector<9x128xf32>
    %231 = arith.truncf %230 : vector<9x128xf32> to vector<9x128xbf16>
    %c2_123 = arith.constant 2 : index
    %c0_124 = arith.constant 0 : index
    %c0_125 = arith.constant 0 : index
    %232 = vector.load %arg5[%c2_123, %c0_124, %c0_125] : memref<6x128x128xbf16, #tpu.memory_space<vmem>>, vector<1x128x128xbf16>
    %233 = vector.shape_cast %232 : vector<1x128x128xbf16> to vector<128x128xbf16>
    %cst_126 = arith.constant dense<0.000000e+00> : vector<9x128xf32>
    %234 = tpu.matmul %231, %233, %cst_126 {dimension_numbers = #tpu.dot_dimension_numbers<[1], [0], [0], [1], [0, 0, 1, 1], [], []>} : vector<9x128xbf16>, vector<128x128xbf16>, vector<9x128xf32> -> vector<9x128xf32>
    %c2_127 = arith.constant 2 : index
    %c0_128 = arith.constant 0 : index
    %c0_129 = arith.constant 0 : index
    %235 = vector.load %arg6[%c2_127, %c0_128, %c0_129] : memref<6x1x128xf32, #tpu.memory_space<vmem>>, vector<1x1x128xf32>
    %236 = vector.shape_cast %235 : vector<1x1x128xf32> to vector<1x128xf32>
    %237 = vector.broadcast %236 : vector<1x128xf32> to vector<9x128xf32>
    %238 = arith.addf %234, %237 : vector<9x128xf32>
    %239 = arith.addf %205, %238 : vector<9x128xf32>
    %c2_130 = arith.constant 2 : index
    %c0_131 = arith.constant 0 : index
    %c0_132 = arith.constant 0 : index
    %240 = vector.load %arg7[%c2_130, %c0_131, %c0_132] : memref<6x1x128xf32, #tpu.memory_space<vmem>>, vector<1x1x128xf32>
    %241 = vector.shape_cast %240 : vector<1x1x128xf32> to vector<1x128xf32>
    %c2_133 = arith.constant 2 : index
    %c0_134 = arith.constant 0 : index
    %c0_135 = arith.constant 0 : index
    %242 = vector.load %arg8[%c2_133, %c0_134, %c0_135] : memref<6x1x128xf32, #tpu.memory_space<vmem>>, vector<1x1x128xf32>
    %243 = vector.shape_cast %242 : vector<1x1x128xf32> to vector<1x128xf32>
    %cst_136 = arith.constant dense<0.000000e+00> : vector<9xf32>
    %244 = vector.multi_reduction <add>, %239, %cst_136 [1] : vector<9x128xf32> to vector<9xf32>
    %245 = vector.shape_cast %244 : vector<9xf32> to vector<9x1xf32>
    %cst_137 = arith.constant 1.280000e+02 : f32
    %246 = vector.broadcast %cst_137 : f32 to vector<9x1xf32>
    %247 = arith.divf %245, %246 : vector<9x1xf32>
    %248 = vector.broadcast %247 : vector<9x1xf32> to vector<9x128xf32>
    %249 = arith.subf %239, %248 : vector<9x128xf32>
    %250 = arith.mulf %249, %249 : vector<9x128xf32>
    %cst_138 = arith.constant dense<0.000000e+00> : vector<9xf32>
    %251 = vector.multi_reduction <add>, %250, %cst_138 [1] : vector<9x128xf32> to vector<9xf32>
    %252 = vector.shape_cast %251 : vector<9xf32> to vector<9x1xf32>
    %cst_139 = arith.constant 1.280000e+02 : f32
    %253 = vector.broadcast %cst_139 : f32 to vector<9x1xf32>
    %254 = arith.divf %252, %253 : vector<9x1xf32>
    %cst_140 = arith.constant 9.99999974E-6 : f32
    %255 = vector.broadcast %cst_140 : f32 to vector<9x1xf32>
    %256 = arith.addf %254, %255 : vector<9x1xf32>
    %257 = math.rsqrt %256 : vector<9x1xf32>
    %258 = vector.broadcast %257 : vector<9x1xf32> to vector<9x128xf32>
    %259 = arith.mulf %249, %258 : vector<9x128xf32>
    %260 = vector.broadcast %241 : vector<1x128xf32> to vector<9x128xf32>
    %261 = arith.mulf %259, %260 : vector<9x128xf32>
    %262 = vector.broadcast %243 : vector<1x128xf32> to vector<9x128xf32>
    %263 = arith.addf %261, %262 : vector<9x128xf32>
    %264 = arith.truncf %263 : vector<9x128xf32> to vector<9x128xbf16>
    %c2_141 = arith.constant 2 : index
    %c0_142 = arith.constant 0 : index
    %c0_143 = arith.constant 0 : index
    %265 = vector.load %arg9[%c2_141, %c0_142, %c0_143] : memref<6x128x768xbf16, #tpu.memory_space<vmem>>, vector<1x128x768xbf16>
    %266 = vector.shape_cast %265 : vector<1x128x768xbf16> to vector<128x768xbf16>
    %cst_144 = arith.constant dense<0.000000e+00> : vector<9x768xf32>
    %267 = tpu.matmul %264, %266, %cst_144 {dimension_numbers = #tpu.dot_dimension_numbers<[1], [0], [0], [1], [0, 0, 1, 1], [], []>} : vector<9x128xbf16>, vector<128x768xbf16>, vector<9x768xf32> -> vector<9x768xf32>
    %c2_145 = arith.constant 2 : index
    %c0_146 = arith.constant 0 : index
    %c0_147 = arith.constant 0 : index
    %268 = vector.load %arg10[%c2_145, %c0_146, %c0_147] : memref<6x1x768xf32, #tpu.memory_space<vmem>>, vector<1x1x768xf32>
    %269 = vector.shape_cast %268 : vector<1x1x768xf32> to vector<1x768xf32>
    %270 = vector.broadcast %269 : vector<1x768xf32> to vector<9x768xf32>
    %271 = arith.addf %267, %270 : vector<9x768xf32>
    %cst_148 = arith.constant 0.000000e+00 : f32
    %272 = vector.broadcast %cst_148 : f32 to vector<9x768xf32>
    %273 = arith.maximumf %271, %272 : vector<9x768xf32>
    %274 = arith.truncf %273 : vector<9x768xf32> to vector<9x768xbf16>
    %c2_149 = arith.constant 2 : index
    %c0_150 = arith.constant 0 : index
    %c0_151 = arith.constant 0 : index
    %275 = vector.load %arg11[%c2_149, %c0_150, %c0_151] : memref<6x768x128xbf16, #tpu.memory_space<vmem>>, vector<1x768x128xbf16>
    %276 = vector.shape_cast %275 : vector<1x768x128xbf16> to vector<768x128xbf16>
    %cst_152 = arith.constant dense<0.000000e+00> : vector<9x128xf32>
    %277 = tpu.matmul %274, %276, %cst_152 {dimension_numbers = #tpu.dot_dimension_numbers<[1], [0], [0], [1], [0, 0, 1, 1], [], []>} : vector<9x768xbf16>, vector<768x128xbf16>, vector<9x128xf32> -> vector<9x128xf32>
    %c2_153 = arith.constant 2 : index
    %c0_154 = arith.constant 0 : index
    %c0_155 = arith.constant 0 : index
    %278 = vector.load %arg12[%c2_153, %c0_154, %c0_155] : memref<6x1x128xf32, #tpu.memory_space<vmem>>, vector<1x1x128xf32>
    %279 = vector.shape_cast %278 : vector<1x1x128xf32> to vector<1x128xf32>
    %280 = vector.broadcast %279 : vector<1x128xf32> to vector<9x128xf32>
    %281 = arith.addf %277, %280 : vector<9x128xf32>
    %282 = arith.addf %263, %281 : vector<9x128xf32>
    %c2_156 = arith.constant 2 : index
    %c0_157 = arith.constant 0 : index
    %c0_158 = arith.constant 0 : index
    %283 = vector.load %arg13[%c2_156, %c0_157, %c0_158] : memref<6x1x128xf32, #tpu.memory_space<vmem>>, vector<1x1x128xf32>
    %284 = vector.shape_cast %283 : vector<1x1x128xf32> to vector<1x128xf32>
    %c2_159 = arith.constant 2 : index
    %c0_160 = arith.constant 0 : index
    %c0_161 = arith.constant 0 : index
    %285 = vector.load %arg14[%c2_159, %c0_160, %c0_161] : memref<6x1x128xf32, #tpu.memory_space<vmem>>, vector<1x1x128xf32>
    %286 = vector.shape_cast %285 : vector<1x1x128xf32> to vector<1x128xf32>
    %cst_162 = arith.constant dense<0.000000e+00> : vector<9xf32>
    %287 = vector.multi_reduction <add>, %282, %cst_162 [1] : vector<9x128xf32> to vector<9xf32>
    %288 = vector.shape_cast %287 : vector<9xf32> to vector<9x1xf32>
    %cst_163 = arith.constant 1.280000e+02 : f32
    %289 = vector.broadcast %cst_163 : f32 to vector<9x1xf32>
    %290 = arith.divf %288, %289 : vector<9x1xf32>
    %291 = vector.broadcast %290 : vector<9x1xf32> to vector<9x128xf32>
    %292 = arith.subf %282, %291 : vector<9x128xf32>
    %293 = arith.mulf %292, %292 : vector<9x128xf32>
    %cst_164 = arith.constant dense<0.000000e+00> : vector<9xf32>
    %294 = vector.multi_reduction <add>, %293, %cst_164 [1] : vector<9x128xf32> to vector<9xf32>
    %295 = vector.shape_cast %294 : vector<9xf32> to vector<9x1xf32>
    %cst_165 = arith.constant 1.280000e+02 : f32
    %296 = vector.broadcast %cst_165 : f32 to vector<9x1xf32>
    %297 = arith.divf %295, %296 : vector<9x1xf32>
    %cst_166 = arith.constant 9.99999974E-6 : f32
    %298 = vector.broadcast %cst_166 : f32 to vector<9x1xf32>
    %299 = arith.addf %297, %298 : vector<9x1xf32>
    %300 = math.rsqrt %299 : vector<9x1xf32>
    %301 = vector.broadcast %300 : vector<9x1xf32> to vector<9x128xf32>
    %302 = arith.mulf %292, %301 : vector<9x128xf32>
    %303 = vector.broadcast %284 : vector<1x128xf32> to vector<9x128xf32>
    %304 = arith.mulf %302, %303 : vector<9x128xf32>
    %305 = vector.broadcast %286 : vector<1x128xf32> to vector<9x128xf32>
    %306 = arith.addf %304, %305 : vector<9x128xf32>
    %307 = arith.truncf %306 : vector<9x128xf32> to vector<9x128xbf16>
    %c3 = arith.constant 3 : index
    %c0_167 = arith.constant 0 : index
    %c0_168 = arith.constant 0 : index
    %308 = vector.load %arg3[%c3, %c0_167, %c0_168] : memref<6x128x384xbf16, #tpu.memory_space<vmem>>, vector<1x128x384xbf16>
    %309 = vector.shape_cast %308 : vector<1x128x384xbf16> to vector<128x384xbf16>
    %cst_169 = arith.constant dense<0.000000e+00> : vector<9x384xf32>
    %310 = tpu.matmul %307, %309, %cst_169 {dimension_numbers = #tpu.dot_dimension_numbers<[1], [0], [0], [1], [0, 0, 1, 1], [], []>} : vector<9x128xbf16>, vector<128x384xbf16>, vector<9x384xf32> -> vector<9x384xf32>
    %c3_170 = arith.constant 3 : index
    %c0_171 = arith.constant 0 : index
    %c0_172 = arith.constant 0 : index
    %311 = vector.load %arg4[%c3_170, %c0_171, %c0_172] : memref<6x1x384xf32, #tpu.memory_space<vmem>>, vector<1x1x384xf32>
    %312 = vector.shape_cast %311 : vector<1x1x384xf32> to vector<1x384xf32>
    %313 = vector.broadcast %312 : vector<1x384xf32> to vector<9x384xf32>
    %314 = arith.addf %310, %313 : vector<9x384xf32>
    %315 = vector.extract_strided_slice %314 {offsets = [0, 0], sizes = [9, 128], strides = [1, 1]} : vector<9x384xf32> to vector<9x128xf32>
    %316 = vector.extract_strided_slice %314 {offsets = [0, 128], sizes = [9, 128], strides = [1, 1]} : vector<9x384xf32> to vector<9x128xf32>
    %317 = vector.extract_strided_slice %314 {offsets = [0, 256], sizes = [9, 128], strides = [1, 1]} : vector<9x384xf32> to vector<9x128xf32>
    %318 = tpu.concatenate %316, %316, %316, %316, %316, %316, %316, %316, %316, %316, %316, %316, %316, %316, %316, %316 in 0 : vector<9x128xf32>, vector<9x128xf32>, vector<9x128xf32>, vector<9x128xf32>, vector<9x128xf32>, vector<9x128xf32>, vector<9x128xf32>, vector<9x128xf32>, vector<9x128xf32>, vector<9x128xf32>, vector<9x128xf32>, vector<9x128xf32>, vector<9x128xf32>, vector<9x128xf32>, vector<9x128xf32>, vector<9x128xf32> -> vector<144x128xf32>
    %319 = arith.mulf %318, %0 : vector<144x128xf32>
    %320 = tpu.concatenate %317, %317, %317, %317, %317, %317, %317, %317, %317, %317, %317, %317, %317, %317, %317, %317 in 0 : vector<9x128xf32>, vector<9x128xf32>, vector<9x128xf32>, vector<9x128xf32>, vector<9x128xf32>, vector<9x128xf32>, vector<9x128xf32>, vector<9x128xf32>, vector<9x128xf32>, vector<9x128xf32>, vector<9x128xf32>, vector<9x128xf32>, vector<9x128xf32>, vector<9x128xf32>, vector<9x128xf32>, vector<9x128xf32> -> vector<144x128xf32>
    %321 = arith.mulf %320, %0 : vector<144x128xf32>
    %cst_173 = arith.constant dense<0.000000e+00> : vector<9x144xf32>
    %322 = tpu.matmul %315, %319, %cst_173 {dimension_numbers = #tpu.dot_dimension_numbers<[1], [1], [0], [0], [0, 0, 1, 0], [], []>} : vector<9x128xf32>, vector<144x128xf32>, vector<9x144xf32> -> vector<9x144xf32>
    %cst_174 = arith.constant dense<0xFF800000> : vector<9xf32>
    %323 = vector.multi_reduction <maximumf>, %322, %cst_174 [1] : vector<9x144xf32> to vector<9xf32>
    %324 = vector.shape_cast %323 : vector<9xf32> to vector<9x1xf32>
    %325 = vector.broadcast %324 : vector<9x1xf32> to vector<9x144xf32>
    %326 = arith.subf %322, %325 : vector<9x144xf32>
    %327 = math.exp %326 : vector<9x144xf32>
    %cst_175 = arith.constant dense<0.000000e+00> : vector<9x128xf32>
    %328 = tpu.matmul %327, %321, %cst_175 {dimension_numbers = #tpu.dot_dimension_numbers<[1], [0], [0], [1], [0, 0, 1, 1], [], []>} : vector<9x144xf32>, vector<144x128xf32>, vector<9x128xf32> -> vector<9x128xf32>
    %cst_176 = arith.constant dense<0.000000e+00> : vector<9x128xf32>
    %329 = tpu.matmul %327, %0, %cst_176 {dimension_numbers = #tpu.dot_dimension_numbers<[1], [0], [0], [1], [0, 0, 1, 1], [], []>} : vector<9x144xf32>, vector<144x128xf32>, vector<9x128xf32> -> vector<9x128xf32>
    %330 = tpu.reciprocal %329 {approx = true} : vector<9x128xf32> -> vector<9x128xf32>
    %331 = arith.mulf %328, %330 : vector<9x128xf32>
    %332 = arith.truncf %331 : vector<9x128xf32> to vector<9x128xbf16>
    %c3_177 = arith.constant 3 : index
    %c0_178 = arith.constant 0 : index
    %c0_179 = arith.constant 0 : index
    %333 = vector.load %arg5[%c3_177, %c0_178, %c0_179] : memref<6x128x128xbf16, #tpu.memory_space<vmem>>, vector<1x128x128xbf16>
    %334 = vector.shape_cast %333 : vector<1x128x128xbf16> to vector<128x128xbf16>
    %cst_180 = arith.constant dense<0.000000e+00> : vector<9x128xf32>
    %335 = tpu.matmul %332, %334, %cst_180 {dimension_numbers = #tpu.dot_dimension_numbers<[1], [0], [0], [1], [0, 0, 1, 1], [], []>} : vector<9x128xbf16>, vector<128x128xbf16>, vector<9x128xf32> -> vector<9x128xf32>
    %c3_181 = arith.constant 3 : index
    %c0_182 = arith.constant 0 : index
    %c0_183 = arith.constant 0 : index
    %336 = vector.load %arg6[%c3_181, %c0_182, %c0_183] : memref<6x1x128xf32, #tpu.memory_space<vmem>>, vector<1x1x128xf32>
    %337 = vector.shape_cast %336 : vector<1x1x128xf32> to vector<1x128xf32>
    %338 = vector.broadcast %337 : vector<1x128xf32> to vector<9x128xf32>
    %339 = arith.addf %335, %338 : vector<9x128xf32>
    %340 = arith.addf %306, %339 : vector<9x128xf32>
    %c3_184 = arith.constant 3 : index
    %c0_185 = arith.constant 0 : index
    %c0_186 = arith.constant 0 : index
    %341 = vector.load %arg7[%c3_184, %c0_185, %c0_186] : memref<6x1x128xf32, #tpu.memory_space<vmem>>, vector<1x1x128xf32>
    %342 = vector.shape_cast %341 : vector<1x1x128xf32> to vector<1x128xf32>
    %c3_187 = arith.constant 3 : index
    %c0_188 = arith.constant 0 : index
    %c0_189 = arith.constant 0 : index
    %343 = vector.load %arg8[%c3_187, %c0_188, %c0_189] : memref<6x1x128xf32, #tpu.memory_space<vmem>>, vector<1x1x128xf32>
    %344 = vector.shape_cast %343 : vector<1x1x128xf32> to vector<1x128xf32>
    %cst_190 = arith.constant dense<0.000000e+00> : vector<9xf32>
    %345 = vector.multi_reduction <add>, %340, %cst_190 [1] : vector<9x128xf32> to vector<9xf32>
    %346 = vector.shape_cast %345 : vector<9xf32> to vector<9x1xf32>
    %cst_191 = arith.constant 1.280000e+02 : f32
    %347 = vector.broadcast %cst_191 : f32 to vector<9x1xf32>
    %348 = arith.divf %346, %347 : vector<9x1xf32>
    %349 = vector.broadcast %348 : vector<9x1xf32> to vector<9x128xf32>
    %350 = arith.subf %340, %349 : vector<9x128xf32>
    %351 = arith.mulf %350, %350 : vector<9x128xf32>
    %cst_192 = arith.constant dense<0.000000e+00> : vector<9xf32>
    %352 = vector.multi_reduction <add>, %351, %cst_192 [1] : vector<9x128xf32> to vector<9xf32>
    %353 = vector.shape_cast %352 : vector<9xf32> to vector<9x1xf32>
    %cst_193 = arith.constant 1.280000e+02 : f32
    %354 = vector.broadcast %cst_193 : f32 to vector<9x1xf32>
    %355 = arith.divf %353, %354 : vector<9x1xf32>
    %cst_194 = arith.constant 9.99999974E-6 : f32
    %356 = vector.broadcast %cst_194 : f32 to vector<9x1xf32>
    %357 = arith.addf %355, %356 : vector<9x1xf32>
    %358 = math.rsqrt %357 : vector<9x1xf32>
    %359 = vector.broadcast %358 : vector<9x1xf32> to vector<9x128xf32>
    %360 = arith.mulf %350, %359 : vector<9x128xf32>
    %361 = vector.broadcast %342 : vector<1x128xf32> to vector<9x128xf32>
    %362 = arith.mulf %360, %361 : vector<9x128xf32>
    %363 = vector.broadcast %344 : vector<1x128xf32> to vector<9x128xf32>
    %364 = arith.addf %362, %363 : vector<9x128xf32>
    %365 = arith.truncf %364 : vector<9x128xf32> to vector<9x128xbf16>
    %c3_195 = arith.constant 3 : index
    %c0_196 = arith.constant 0 : index
    %c0_197 = arith.constant 0 : index
    %366 = vector.load %arg9[%c3_195, %c0_196, %c0_197] : memref<6x128x768xbf16, #tpu.memory_space<vmem>>, vector<1x128x768xbf16>
    %367 = vector.shape_cast %366 : vector<1x128x768xbf16> to vector<128x768xbf16>
    %cst_198 = arith.constant dense<0.000000e+00> : vector<9x768xf32>
    %368 = tpu.matmul %365, %367, %cst_198 {dimension_numbers = #tpu.dot_dimension_numbers<[1], [0], [0], [1], [0, 0, 1, 1], [], []>} : vector<9x128xbf16>, vector<128x768xbf16>, vector<9x768xf32> -> vector<9x768xf32>
    %c3_199 = arith.constant 3 : index
    %c0_200 = arith.constant 0 : index
    %c0_201 = arith.constant 0 : index
    %369 = vector.load %arg10[%c3_199, %c0_200, %c0_201] : memref<6x1x768xf32, #tpu.memory_space<vmem>>, vector<1x1x768xf32>
    %370 = vector.shape_cast %369 : vector<1x1x768xf32> to vector<1x768xf32>
    %371 = vector.broadcast %370 : vector<1x768xf32> to vector<9x768xf32>
    %372 = arith.addf %368, %371 : vector<9x768xf32>
    %cst_202 = arith.constant 0.000000e+00 : f32
    %373 = vector.broadcast %cst_202 : f32 to vector<9x768xf32>
    %374 = arith.maximumf %372, %373 : vector<9x768xf32>
    %375 = arith.truncf %374 : vector<9x768xf32> to vector<9x768xbf16>
    %c3_203 = arith.constant 3 : index
    %c0_204 = arith.constant 0 : index
    %c0_205 = arith.constant 0 : index
    %376 = vector.load %arg11[%c3_203, %c0_204, %c0_205] : memref<6x768x128xbf16, #tpu.memory_space<vmem>>, vector<1x768x128xbf16>
    %377 = vector.shape_cast %376 : vector<1x768x128xbf16> to vector<768x128xbf16>
    %cst_206 = arith.constant dense<0.000000e+00> : vector<9x128xf32>
    %378 = tpu.matmul %375, %377, %cst_206 {dimension_numbers = #tpu.dot_dimension_numbers<[1], [0], [0], [1], [0, 0, 1, 1], [], []>} : vector<9x768xbf16>, vector<768x128xbf16>, vector<9x128xf32> -> vector<9x128xf32>
    %c3_207 = arith.constant 3 : index
    %c0_208 = arith.constant 0 : index
    %c0_209 = arith.constant 0 : index
    %379 = vector.load %arg12[%c3_207, %c0_208, %c0_209] : memref<6x1x128xf32, #tpu.memory_space<vmem>>, vector<1x1x128xf32>
    %380 = vector.shape_cast %379 : vector<1x1x128xf32> to vector<1x128xf32>
    %381 = vector.broadcast %380 : vector<1x128xf32> to vector<9x128xf32>
    %382 = arith.addf %378, %381 : vector<9x128xf32>
    %383 = arith.addf %364, %382 : vector<9x128xf32>
    %c3_210 = arith.constant 3 : index
    %c0_211 = arith.constant 0 : index
    %c0_212 = arith.constant 0 : index
    %384 = vector.load %arg13[%c3_210, %c0_211, %c0_212] : memref<6x1x128xf32, #tpu.memory_space<vmem>>, vector<1x1x128xf32>
    %385 = vector.shape_cast %384 : vector<1x1x128xf32> to vector<1x128xf32>
    %c3_213 = arith.constant 3 : index
    %c0_214 = arith.constant 0 : index
    %c0_215 = arith.constant 0 : index
    %386 = vector.load %arg14[%c3_213, %c0_214, %c0_215] : memref<6x1x128xf32, #tpu.memory_space<vmem>>, vector<1x1x128xf32>
    %387 = vector.shape_cast %386 : vector<1x1x128xf32> to vector<1x128xf32>
    %cst_216 = arith.constant dense<0.000000e+00> : vector<9xf32>
    %388 = vector.multi_reduction <add>, %383, %cst_216 [1] : vector<9x128xf32> to vector<9xf32>
    %389 = vector.shape_cast %388 : vector<9xf32> to vector<9x1xf32>
    %cst_217 = arith.constant 1.280000e+02 : f32
    %390 = vector.broadcast %cst_217 : f32 to vector<9x1xf32>
    %391 = arith.divf %389, %390 : vector<9x1xf32>
    %392 = vector.broadcast %391 : vector<9x1xf32> to vector<9x128xf32>
    %393 = arith.subf %383, %392 : vector<9x128xf32>
    %394 = arith.mulf %393, %393 : vector<9x128xf32>
    %cst_218 = arith.constant dense<0.000000e+00> : vector<9xf32>
    %395 = vector.multi_reduction <add>, %394, %cst_218 [1] : vector<9x128xf32> to vector<9xf32>
    %396 = vector.shape_cast %395 : vector<9xf32> to vector<9x1xf32>
    %cst_219 = arith.constant 1.280000e+02 : f32
    %397 = vector.broadcast %cst_219 : f32 to vector<9x1xf32>
    %398 = arith.divf %396, %397 : vector<9x1xf32>
    %cst_220 = arith.constant 9.99999974E-6 : f32
    %399 = vector.broadcast %cst_220 : f32 to vector<9x1xf32>
    %400 = arith.addf %398, %399 : vector<9x1xf32>
    %401 = math.rsqrt %400 : vector<9x1xf32>
    %402 = vector.broadcast %401 : vector<9x1xf32> to vector<9x128xf32>
    %403 = arith.mulf %393, %402 : vector<9x128xf32>
    %404 = vector.broadcast %385 : vector<1x128xf32> to vector<9x128xf32>
    %405 = arith.mulf %403, %404 : vector<9x128xf32>
    %406 = vector.broadcast %387 : vector<1x128xf32> to vector<9x128xf32>
    %407 = arith.addf %405, %406 : vector<9x128xf32>
    %408 = arith.truncf %407 : vector<9x128xf32> to vector<9x128xbf16>
    %c4 = arith.constant 4 : index
    %c0_221 = arith.constant 0 : index
    %c0_222 = arith.constant 0 : index
    %409 = vector.load %arg3[%c4, %c0_221, %c0_222] : memref<6x128x384xbf16, #tpu.memory_space<vmem>>, vector<1x128x384xbf16>
    %410 = vector.shape_cast %409 : vector<1x128x384xbf16> to vector<128x384xbf16>
    %cst_223 = arith.constant dense<0.000000e+00> : vector<9x384xf32>
    %411 = tpu.matmul %408, %410, %cst_223 {dimension_numbers = #tpu.dot_dimension_numbers<[1], [0], [0], [1], [0, 0, 1, 1], [], []>} : vector<9x128xbf16>, vector<128x384xbf16>, vector<9x384xf32> -> vector<9x384xf32>
    %c4_224 = arith.constant 4 : index
    %c0_225 = arith.constant 0 : index
    %c0_226 = arith.constant 0 : index
    %412 = vector.load %arg4[%c4_224, %c0_225, %c0_226] : memref<6x1x384xf32, #tpu.memory_space<vmem>>, vector<1x1x384xf32>
    %413 = vector.shape_cast %412 : vector<1x1x384xf32> to vector<1x384xf32>
    %414 = vector.broadcast %413 : vector<1x384xf32> to vector<9x384xf32>
    %415 = arith.addf %411, %414 : vector<9x384xf32>
    %416 = vector.extract_strided_slice %415 {offsets = [0, 0], sizes = [9, 128], strides = [1, 1]} : vector<9x384xf32> to vector<9x128xf32>
    %417 = vector.extract_strided_slice %415 {offsets = [0, 128], sizes = [9, 128], strides = [1, 1]} : vector<9x384xf32> to vector<9x128xf32>
    %418 = vector.extract_strided_slice %415 {offsets = [0, 256], sizes = [9, 128], strides = [1, 1]} : vector<9x384xf32> to vector<9x128xf32>
    %419 = tpu.concatenate %417, %417, %417, %417, %417, %417, %417, %417, %417, %417, %417, %417, %417, %417, %417, %417 in 0 : vector<9x128xf32>, vector<9x128xf32>, vector<9x128xf32>, vector<9x128xf32>, vector<9x128xf32>, vector<9x128xf32>, vector<9x128xf32>, vector<9x128xf32>, vector<9x128xf32>, vector<9x128xf32>, vector<9x128xf32>, vector<9x128xf32>, vector<9x128xf32>, vector<9x128xf32>, vector<9x128xf32>, vector<9x128xf32> -> vector<144x128xf32>
    %420 = arith.mulf %419, %0 : vector<144x128xf32>
    %421 = tpu.concatenate %418, %418, %418, %418, %418, %418, %418, %418, %418, %418, %418, %418, %418, %418, %418, %418 in 0 : vector<9x128xf32>, vector<9x128xf32>, vector<9x128xf32>, vector<9x128xf32>, vector<9x128xf32>, vector<9x128xf32>, vector<9x128xf32>, vector<9x128xf32>, vector<9x128xf32>, vector<9x128xf32>, vector<9x128xf32>, vector<9x128xf32>, vector<9x128xf32>, vector<9x128xf32>, vector<9x128xf32>, vector<9x128xf32> -> vector<144x128xf32>
    %422 = arith.mulf %421, %0 : vector<144x128xf32>
    %cst_227 = arith.constant dense<0.000000e+00> : vector<9x144xf32>
    %423 = tpu.matmul %416, %420, %cst_227 {dimension_numbers = #tpu.dot_dimension_numbers<[1], [1], [0], [0], [0, 0, 1, 0], [], []>} : vector<9x128xf32>, vector<144x128xf32>, vector<9x144xf32> -> vector<9x144xf32>
    %cst_228 = arith.constant dense<0xFF800000> : vector<9xf32>
    %424 = vector.multi_reduction <maximumf>, %423, %cst_228 [1] : vector<9x144xf32> to vector<9xf32>
    %425 = vector.shape_cast %424 : vector<9xf32> to vector<9x1xf32>
    %426 = vector.broadcast %425 : vector<9x1xf32> to vector<9x144xf32>
    %427 = arith.subf %423, %426 : vector<9x144xf32>
    %428 = math.exp %427 : vector<9x144xf32>
    %cst_229 = arith.constant dense<0.000000e+00> : vector<9x128xf32>
    %429 = tpu.matmul %428, %422, %cst_229 {dimension_numbers = #tpu.dot_dimension_numbers<[1], [0], [0], [1], [0, 0, 1, 1], [], []>} : vector<9x144xf32>, vector<144x128xf32>, vector<9x128xf32> -> vector<9x128xf32>
    %cst_230 = arith.constant dense<0.000000e+00> : vector<9x128xf32>
    %430 = tpu.matmul %428, %0, %cst_230 {dimension_numbers = #tpu.dot_dimension_numbers<[1], [0], [0], [1], [0, 0, 1, 1], [], []>} : vector<9x144xf32>, vector<144x128xf32>, vector<9x128xf32> -> vector<9x128xf32>
    %431 = tpu.reciprocal %430 {approx = true} : vector<9x128xf32> -> vector<9x128xf32>
    %432 = arith.mulf %429, %431 : vector<9x128xf32>
    %433 = arith.truncf %432 : vector<9x128xf32> to vector<9x128xbf16>
    %c4_231 = arith.constant 4 : index
    %c0_232 = arith.constant 0 : index
    %c0_233 = arith.constant 0 : index
    %434 = vector.load %arg5[%c4_231, %c0_232, %c0_233] : memref<6x128x128xbf16, #tpu.memory_space<vmem>>, vector<1x128x128xbf16>
    %435 = vector.shape_cast %434 : vector<1x128x128xbf16> to vector<128x128xbf16>
    %cst_234 = arith.constant dense<0.000000e+00> : vector<9x128xf32>
    %436 = tpu.matmul %433, %435, %cst_234 {dimension_numbers = #tpu.dot_dimension_numbers<[1], [0], [0], [1], [0, 0, 1, 1], [], []>} : vector<9x128xbf16>, vector<128x128xbf16>, vector<9x128xf32> -> vector<9x128xf32>
    %c4_235 = arith.constant 4 : index
    %c0_236 = arith.constant 0 : index
    %c0_237 = arith.constant 0 : index
    %437 = vector.load %arg6[%c4_235, %c0_236, %c0_237] : memref<6x1x128xf32, #tpu.memory_space<vmem>>, vector<1x1x128xf32>
    %438 = vector.shape_cast %437 : vector<1x1x128xf32> to vector<1x128xf32>
    %439 = vector.broadcast %438 : vector<1x128xf32> to vector<9x128xf32>
    %440 = arith.addf %436, %439 : vector<9x128xf32>
    %441 = arith.addf %407, %440 : vector<9x128xf32>
    %c4_238 = arith.constant 4 : index
    %c0_239 = arith.constant 0 : index
    %c0_240 = arith.constant 0 : index
    %442 = vector.load %arg7[%c4_238, %c0_239, %c0_240] : memref<6x1x128xf32, #tpu.memory_space<vmem>>, vector<1x1x128xf32>
    %443 = vector.shape_cast %442 : vector<1x1x128xf32> to vector<1x128xf32>
    %c4_241 = arith.constant 4 : index
    %c0_242 = arith.constant 0 : index
    %c0_243 = arith.constant 0 : index
    %444 = vector.load %arg8[%c4_241, %c0_242, %c0_243] : memref<6x1x128xf32, #tpu.memory_space<vmem>>, vector<1x1x128xf32>
    %445 = vector.shape_cast %444 : vector<1x1x128xf32> to vector<1x128xf32>
    %cst_244 = arith.constant dense<0.000000e+00> : vector<9xf32>
    %446 = vector.multi_reduction <add>, %441, %cst_244 [1] : vector<9x128xf32> to vector<9xf32>
    %447 = vector.shape_cast %446 : vector<9xf32> to vector<9x1xf32>
    %cst_245 = arith.constant 1.280000e+02 : f32
    %448 = vector.broadcast %cst_245 : f32 to vector<9x1xf32>
    %449 = arith.divf %447, %448 : vector<9x1xf32>
    %450 = vector.broadcast %449 : vector<9x1xf32> to vector<9x128xf32>
    %451 = arith.subf %441, %450 : vector<9x128xf32>
    %452 = arith.mulf %451, %451 : vector<9x128xf32>
    %cst_246 = arith.constant dense<0.000000e+00> : vector<9xf32>
    %453 = vector.multi_reduction <add>, %452, %cst_246 [1] : vector<9x128xf32> to vector<9xf32>
    %454 = vector.shape_cast %453 : vector<9xf32> to vector<9x1xf32>
    %cst_247 = arith.constant 1.280000e+02 : f32
    %455 = vector.broadcast %cst_247 : f32 to vector<9x1xf32>
    %456 = arith.divf %454, %455 : vector<9x1xf32>
    %cst_248 = arith.constant 9.99999974E-6 : f32
    %457 = vector.broadcast %cst_248 : f32 to vector<9x1xf32>
    %458 = arith.addf %456, %457 : vector<9x1xf32>
    %459 = math.rsqrt %458 : vector<9x1xf32>
    %460 = vector.broadcast %459 : vector<9x1xf32> to vector<9x128xf32>
    %461 = arith.mulf %451, %460 : vector<9x128xf32>
    %462 = vector.broadcast %443 : vector<1x128xf32> to vector<9x128xf32>
    %463 = arith.mulf %461, %462 : vector<9x128xf32>
    %464 = vector.broadcast %445 : vector<1x128xf32> to vector<9x128xf32>
    %465 = arith.addf %463, %464 : vector<9x128xf32>
    %466 = arith.truncf %465 : vector<9x128xf32> to vector<9x128xbf16>
    %c4_249 = arith.constant 4 : index
    %c0_250 = arith.constant 0 : index
    %c0_251 = arith.constant 0 : index
    %467 = vector.load %arg9[%c4_249, %c0_250, %c0_251] : memref<6x128x768xbf16, #tpu.memory_space<vmem>>, vector<1x128x768xbf16>
    %468 = vector.shape_cast %467 : vector<1x128x768xbf16> to vector<128x768xbf16>
    %cst_252 = arith.constant dense<0.000000e+00> : vector<9x768xf32>
    %469 = tpu.matmul %466, %468, %cst_252 {dimension_numbers = #tpu.dot_dimension_numbers<[1], [0], [0], [1], [0, 0, 1, 1], [], []>} : vector<9x128xbf16>, vector<128x768xbf16>, vector<9x768xf32> -> vector<9x768xf32>
    %c4_253 = arith.constant 4 : index
    %c0_254 = arith.constant 0 : index
    %c0_255 = arith.constant 0 : index
    %470 = vector.load %arg10[%c4_253, %c0_254, %c0_255] : memref<6x1x768xf32, #tpu.memory_space<vmem>>, vector<1x1x768xf32>
    %471 = vector.shape_cast %470 : vector<1x1x768xf32> to vector<1x768xf32>
    %472 = vector.broadcast %471 : vector<1x768xf32> to vector<9x768xf32>
    %473 = arith.addf %469, %472 : vector<9x768xf32>
    %cst_256 = arith.constant 0.000000e+00 : f32
    %474 = vector.broadcast %cst_256 : f32 to vector<9x768xf32>
    %475 = arith.maximumf %473, %474 : vector<9x768xf32>
    %476 = arith.truncf %475 : vector<9x768xf32> to vector<9x768xbf16>
    %c4_257 = arith.constant 4 : index
    %c0_258 = arith.constant 0 : index
    %c0_259 = arith.constant 0 : index
    %477 = vector.load %arg11[%c4_257, %c0_258, %c0_259] : memref<6x768x128xbf16, #tpu.memory_space<vmem>>, vector<1x768x128xbf16>
    %478 = vector.shape_cast %477 : vector<1x768x128xbf16> to vector<768x128xbf16>
    %cst_260 = arith.constant dense<0.000000e+00> : vector<9x128xf32>
    %479 = tpu.matmul %476, %478, %cst_260 {dimension_numbers = #tpu.dot_dimension_numbers<[1], [0], [0], [1], [0, 0, 1, 1], [], []>} : vector<9x768xbf16>, vector<768x128xbf16>, vector<9x128xf32> -> vector<9x128xf32>
    %c4_261 = arith.constant 4 : index
    %c0_262 = arith.constant 0 : index
    %c0_263 = arith.constant 0 : index
    %480 = vector.load %arg12[%c4_261, %c0_262, %c0_263] : memref<6x1x128xf32, #tpu.memory_space<vmem>>, vector<1x1x128xf32>
    %481 = vector.shape_cast %480 : vector<1x1x128xf32> to vector<1x128xf32>
    %482 = vector.broadcast %481 : vector<1x128xf32> to vector<9x128xf32>
    %483 = arith.addf %479, %482 : vector<9x128xf32>
    %484 = arith.addf %465, %483 : vector<9x128xf32>
    %c4_264 = arith.constant 4 : index
    %c0_265 = arith.constant 0 : index
    %c0_266 = arith.constant 0 : index
    %485 = vector.load %arg13[%c4_264, %c0_265, %c0_266] : memref<6x1x128xf32, #tpu.memory_space<vmem>>, vector<1x1x128xf32>
    %486 = vector.shape_cast %485 : vector<1x1x128xf32> to vector<1x128xf32>
    %c4_267 = arith.constant 4 : index
    %c0_268 = arith.constant 0 : index
    %c0_269 = arith.constant 0 : index
    %487 = vector.load %arg14[%c4_267, %c0_268, %c0_269] : memref<6x1x128xf32, #tpu.memory_space<vmem>>, vector<1x1x128xf32>
    %488 = vector.shape_cast %487 : vector<1x1x128xf32> to vector<1x128xf32>
    %cst_270 = arith.constant dense<0.000000e+00> : vector<9xf32>
    %489 = vector.multi_reduction <add>, %484, %cst_270 [1] : vector<9x128xf32> to vector<9xf32>
    %490 = vector.shape_cast %489 : vector<9xf32> to vector<9x1xf32>
    %cst_271 = arith.constant 1.280000e+02 : f32
    %491 = vector.broadcast %cst_271 : f32 to vector<9x1xf32>
    %492 = arith.divf %490, %491 : vector<9x1xf32>
    %493 = vector.broadcast %492 : vector<9x1xf32> to vector<9x128xf32>
    %494 = arith.subf %484, %493 : vector<9x128xf32>
    %495 = arith.mulf %494, %494 : vector<9x128xf32>
    %cst_272 = arith.constant dense<0.000000e+00> : vector<9xf32>
    %496 = vector.multi_reduction <add>, %495, %cst_272 [1] : vector<9x128xf32> to vector<9xf32>
    %497 = vector.shape_cast %496 : vector<9xf32> to vector<9x1xf32>
    %cst_273 = arith.constant 1.280000e+02 : f32
    %498 = vector.broadcast %cst_273 : f32 to vector<9x1xf32>
    %499 = arith.divf %497, %498 : vector<9x1xf32>
    %cst_274 = arith.constant 9.99999974E-6 : f32
    %500 = vector.broadcast %cst_274 : f32 to vector<9x1xf32>
    %501 = arith.addf %499, %500 : vector<9x1xf32>
    %502 = math.rsqrt %501 : vector<9x1xf32>
    %503 = vector.broadcast %502 : vector<9x1xf32> to vector<9x128xf32>
    %504 = arith.mulf %494, %503 : vector<9x128xf32>
    %505 = vector.broadcast %486 : vector<1x128xf32> to vector<9x128xf32>
    %506 = arith.mulf %504, %505 : vector<9x128xf32>
    %507 = vector.broadcast %488 : vector<1x128xf32> to vector<9x128xf32>
    %508 = arith.addf %506, %507 : vector<9x128xf32>
    %509 = arith.truncf %508 : vector<9x128xf32> to vector<9x128xbf16>
    %c5 = arith.constant 5 : index
    %c0_275 = arith.constant 0 : index
    %c0_276 = arith.constant 0 : index
    %510 = vector.load %arg3[%c5, %c0_275, %c0_276] : memref<6x128x384xbf16, #tpu.memory_space<vmem>>, vector<1x128x384xbf16>
    %511 = vector.shape_cast %510 : vector<1x128x384xbf16> to vector<128x384xbf16>
    %cst_277 = arith.constant dense<0.000000e+00> : vector<9x384xf32>
    %512 = tpu.matmul %509, %511, %cst_277 {dimension_numbers = #tpu.dot_dimension_numbers<[1], [0], [0], [1], [0, 0, 1, 1], [], []>} : vector<9x128xbf16>, vector<128x384xbf16>, vector<9x384xf32> -> vector<9x384xf32>
    %c5_278 = arith.constant 5 : index
    %c0_279 = arith.constant 0 : index
    %c0_280 = arith.constant 0 : index
    %513 = vector.load %arg4[%c5_278, %c0_279, %c0_280] : memref<6x1x384xf32, #tpu.memory_space<vmem>>, vector<1x1x384xf32>
    %514 = vector.shape_cast %513 : vector<1x1x384xf32> to vector<1x384xf32>
    %515 = vector.broadcast %514 : vector<1x384xf32> to vector<9x384xf32>
    %516 = arith.addf %512, %515 : vector<9x384xf32>
    %517 = vector.extract_strided_slice %516 {offsets = [0, 0], sizes = [9, 128], strides = [1, 1]} : vector<9x384xf32> to vector<9x128xf32>
    %518 = vector.extract_strided_slice %516 {offsets = [0, 128], sizes = [9, 128], strides = [1, 1]} : vector<9x384xf32> to vector<9x128xf32>
    %519 = vector.extract_strided_slice %516 {offsets = [0, 256], sizes = [9, 128], strides = [1, 1]} : vector<9x384xf32> to vector<9x128xf32>
    %520 = tpu.concatenate %518, %518, %518, %518, %518, %518, %518, %518, %518, %518, %518, %518, %518, %518, %518, %518 in 0 : vector<9x128xf32>, vector<9x128xf32>, vector<9x128xf32>, vector<9x128xf32>, vector<9x128xf32>, vector<9x128xf32>, vector<9x128xf32>, vector<9x128xf32>, vector<9x128xf32>, vector<9x128xf32>, vector<9x128xf32>, vector<9x128xf32>, vector<9x128xf32>, vector<9x128xf32>, vector<9x128xf32>, vector<9x128xf32> -> vector<144x128xf32>
    %521 = arith.mulf %520, %0 : vector<144x128xf32>
    %522 = tpu.concatenate %519, %519, %519, %519, %519, %519, %519, %519, %519, %519, %519, %519, %519, %519, %519, %519 in 0 : vector<9x128xf32>, vector<9x128xf32>, vector<9x128xf32>, vector<9x128xf32>, vector<9x128xf32>, vector<9x128xf32>, vector<9x128xf32>, vector<9x128xf32>, vector<9x128xf32>, vector<9x128xf32>, vector<9x128xf32>, vector<9x128xf32>, vector<9x128xf32>, vector<9x128xf32>, vector<9x128xf32>, vector<9x128xf32> -> vector<144x128xf32>
    %523 = arith.mulf %522, %0 : vector<144x128xf32>
    %cst_281 = arith.constant dense<0.000000e+00> : vector<9x144xf32>
    %524 = tpu.matmul %517, %521, %cst_281 {dimension_numbers = #tpu.dot_dimension_numbers<[1], [1], [0], [0], [0, 0, 1, 0], [], []>} : vector<9x128xf32>, vector<144x128xf32>, vector<9x144xf32> -> vector<9x144xf32>
    %cst_282 = arith.constant dense<0xFF800000> : vector<9xf32>
    %525 = vector.multi_reduction <maximumf>, %524, %cst_282 [1] : vector<9x144xf32> to vector<9xf32>
    %526 = vector.shape_cast %525 : vector<9xf32> to vector<9x1xf32>
    %527 = vector.broadcast %526 : vector<9x1xf32> to vector<9x144xf32>
    %528 = arith.subf %524, %527 : vector<9x144xf32>
    %529 = math.exp %528 : vector<9x144xf32>
    %cst_283 = arith.constant dense<0.000000e+00> : vector<9x128xf32>
    %530 = tpu.matmul %529, %523, %cst_283 {dimension_numbers = #tpu.dot_dimension_numbers<[1], [0], [0], [1], [0, 0, 1, 1], [], []>} : vector<9x144xf32>, vector<144x128xf32>, vector<9x128xf32> -> vector<9x128xf32>
    %cst_284 = arith.constant dense<0.000000e+00> : vector<9x128xf32>
    %531 = tpu.matmul %529, %0, %cst_284 {dimension_numbers = #tpu.dot_dimension_numbers<[1], [0], [0], [1], [0, 0, 1, 1], [], []>} : vector<9x144xf32>, vector<144x128xf32>, vector<9x128xf32> -> vector<9x128xf32>
    %532 = tpu.reciprocal %531 {approx = true} : vector<9x128xf32> -> vector<9x128xf32>
    %533 = arith.mulf %530, %532 : vector<9x128xf32>
    %534 = arith.truncf %533 : vector<9x128xf32> to vector<9x128xbf16>
    %c5_285 = arith.constant 5 : index
    %c0_286 = arith.constant 0 : index
    %c0_287 = arith.constant 0 : index
    %535 = vector.load %arg5[%c5_285, %c0_286, %c0_287] : memref<6x128x128xbf16, #tpu.memory_space<vmem>>, vector<1x128x128xbf16>
    %536 = vector.shape_cast %535 : vector<1x128x128xbf16> to vector<128x128xbf16>
    %cst_288 = arith.constant dense<0.000000e+00> : vector<9x128xf32>
    %537 = tpu.matmul %534, %536, %cst_288 {dimension_numbers = #tpu.dot_dimension_numbers<[1], [0], [0], [1], [0, 0, 1, 1], [], []>} : vector<9x128xbf16>, vector<128x128xbf16>, vector<9x128xf32> -> vector<9x128xf32>
    %c5_289 = arith.constant 5 : index
    %c0_290 = arith.constant 0 : index
    %c0_291 = arith.constant 0 : index
    %538 = vector.load %arg6[%c5_289, %c0_290, %c0_291] : memref<6x1x128xf32, #tpu.memory_space<vmem>>, vector<1x1x128xf32>
    %539 = vector.shape_cast %538 : vector<1x1x128xf32> to vector<1x128xf32>
    %540 = vector.broadcast %539 : vector<1x128xf32> to vector<9x128xf32>
    %541 = arith.addf %537, %540 : vector<9x128xf32>
    %542 = arith.addf %508, %541 : vector<9x128xf32>
    %c5_292 = arith.constant 5 : index
    %c0_293 = arith.constant 0 : index
    %c0_294 = arith.constant 0 : index
    %543 = vector.load %arg7[%c5_292, %c0_293, %c0_294] : memref<6x1x128xf32, #tpu.memory_space<vmem>>, vector<1x1x128xf32>
    %544 = vector.shape_cast %543 : vector<1x1x128xf32> to vector<1x128xf32>
    %c5_295 = arith.constant 5 : index
    %c0_296 = arith.constant 0 : index
    %c0_297 = arith.constant 0 : index
    %545 = vector.load %arg8[%c5_295, %c0_296, %c0_297] : memref<6x1x128xf32, #tpu.memory_space<vmem>>, vector<1x1x128xf32>
    %546 = vector.shape_cast %545 : vector<1x1x128xf32> to vector<1x128xf32>
    %cst_298 = arith.constant dense<0.000000e+00> : vector<9xf32>
    %547 = vector.multi_reduction <add>, %542, %cst_298 [1] : vector<9x128xf32> to vector<9xf32>
    %548 = vector.shape_cast %547 : vector<9xf32> to vector<9x1xf32>
    %cst_299 = arith.constant 1.280000e+02 : f32
    %549 = vector.broadcast %cst_299 : f32 to vector<9x1xf32>
    %550 = arith.divf %548, %549 : vector<9x1xf32>
    %551 = vector.broadcast %550 : vector<9x1xf32> to vector<9x128xf32>
    %552 = arith.subf %542, %551 : vector<9x128xf32>
    %553 = arith.mulf %552, %552 : vector<9x128xf32>
    %cst_300 = arith.constant dense<0.000000e+00> : vector<9xf32>
    %554 = vector.multi_reduction <add>, %553, %cst_300 [1] : vector<9x128xf32> to vector<9xf32>
    %555 = vector.shape_cast %554 : vector<9xf32> to vector<9x1xf32>
    %cst_301 = arith.constant 1.280000e+02 : f32
    %556 = vector.broadcast %cst_301 : f32 to vector<9x1xf32>
    %557 = arith.divf %555, %556 : vector<9x1xf32>
    %cst_302 = arith.constant 9.99999974E-6 : f32
    %558 = vector.broadcast %cst_302 : f32 to vector<9x1xf32>
    %559 = arith.addf %557, %558 : vector<9x1xf32>
    %560 = math.rsqrt %559 : vector<9x1xf32>
    %561 = vector.broadcast %560 : vector<9x1xf32> to vector<9x128xf32>
    %562 = arith.mulf %552, %561 : vector<9x128xf32>
    %563 = vector.broadcast %544 : vector<1x128xf32> to vector<9x128xf32>
    %564 = arith.mulf %562, %563 : vector<9x128xf32>
    %565 = vector.broadcast %546 : vector<1x128xf32> to vector<9x128xf32>
    %566 = arith.addf %564, %565 : vector<9x128xf32>
    %567 = arith.truncf %566 : vector<9x128xf32> to vector<9x128xbf16>
    %c5_303 = arith.constant 5 : index
    %c0_304 = arith.constant 0 : index
    %c0_305 = arith.constant 0 : index
    %568 = vector.load %arg9[%c5_303, %c0_304, %c0_305] : memref<6x128x768xbf16, #tpu.memory_space<vmem>>, vector<1x128x768xbf16>
    %569 = vector.shape_cast %568 : vector<1x128x768xbf16> to vector<128x768xbf16>
    %cst_306 = arith.constant dense<0.000000e+00> : vector<9x768xf32>
    %570 = tpu.matmul %567, %569, %cst_306 {dimension_numbers = #tpu.dot_dimension_numbers<[1], [0], [0], [1], [0, 0, 1, 1], [], []>} : vector<9x128xbf16>, vector<128x768xbf16>, vector<9x768xf32> -> vector<9x768xf32>
    %c5_307 = arith.constant 5 : index
    %c0_308 = arith.constant 0 : index
    %c0_309 = arith.constant 0 : index
    %571 = vector.load %arg10[%c5_307, %c0_308, %c0_309] : memref<6x1x768xf32, #tpu.memory_space<vmem>>, vector<1x1x768xf32>
    %572 = vector.shape_cast %571 : vector<1x1x768xf32> to vector<1x768xf32>
    %573 = vector.broadcast %572 : vector<1x768xf32> to vector<9x768xf32>
    %574 = arith.addf %570, %573 : vector<9x768xf32>
    %cst_310 = arith.constant 0.000000e+00 : f32
    %575 = vector.broadcast %cst_310 : f32 to vector<9x768xf32>
    %576 = arith.maximumf %574, %575 : vector<9x768xf32>
    %577 = arith.truncf %576 : vector<9x768xf32> to vector<9x768xbf16>
    %c5_311 = arith.constant 5 : index
    %c0_312 = arith.constant 0 : index
    %c0_313 = arith.constant 0 : index
    %578 = vector.load %arg11[%c5_311, %c0_312, %c0_313] : memref<6x768x128xbf16, #tpu.memory_space<vmem>>, vector<1x768x128xbf16>
    %579 = vector.shape_cast %578 : vector<1x768x128xbf16> to vector<768x128xbf16>
    %cst_314 = arith.constant dense<0.000000e+00> : vector<9x128xf32>
    %580 = tpu.matmul %577, %579, %cst_314 {dimension_numbers = #tpu.dot_dimension_numbers<[1], [0], [0], [1], [0, 0, 1, 1], [], []>} : vector<9x768xbf16>, vector<768x128xbf16>, vector<9x128xf32> -> vector<9x128xf32>
    %c5_315 = arith.constant 5 : index
    %c0_316 = arith.constant 0 : index
    %c0_317 = arith.constant 0 : index
    %581 = vector.load %arg12[%c5_315, %c0_316, %c0_317] : memref<6x1x128xf32, #tpu.memory_space<vmem>>, vector<1x1x128xf32>
    %582 = vector.shape_cast %581 : vector<1x1x128xf32> to vector<1x128xf32>
    %583 = vector.broadcast %582 : vector<1x128xf32> to vector<9x128xf32>
    %584 = arith.addf %580, %583 : vector<9x128xf32>
    %585 = arith.addf %566, %584 : vector<9x128xf32>
    %c5_318 = arith.constant 5 : index
    %c0_319 = arith.constant 0 : index
    %c0_320 = arith.constant 0 : index
    %586 = vector.load %arg13[%c5_318, %c0_319, %c0_320] : memref<6x1x128xf32, #tpu.memory_space<vmem>>, vector<1x1x128xf32>
    %587 = vector.shape_cast %586 : vector<1x1x128xf32> to vector<1x128xf32>
    %c5_321 = arith.constant 5 : index
    %c0_322 = arith.constant 0 : index
    %c0_323 = arith.constant 0 : index
    %588 = vector.load %arg14[%c5_321, %c0_322, %c0_323] : memref<6x1x128xf32, #tpu.memory_space<vmem>>, vector<1x1x128xf32>
    %589 = vector.shape_cast %588 : vector<1x1x128xf32> to vector<1x128xf32>
    %cst_324 = arith.constant dense<0.000000e+00> : vector<9xf32>
    %590 = vector.multi_reduction <add>, %585, %cst_324 [1] : vector<9x128xf32> to vector<9xf32>
    %591 = vector.shape_cast %590 : vector<9xf32> to vector<9x1xf32>
    %cst_325 = arith.constant 1.280000e+02 : f32
    %592 = vector.broadcast %cst_325 : f32 to vector<9x1xf32>
    %593 = arith.divf %591, %592 : vector<9x1xf32>
    %594 = vector.broadcast %593 : vector<9x1xf32> to vector<9x128xf32>
    %595 = arith.subf %585, %594 : vector<9x128xf32>
    %596 = arith.mulf %595, %595 : vector<9x128xf32>
    %cst_326 = arith.constant dense<0.000000e+00> : vector<9xf32>
    %597 = vector.multi_reduction <add>, %596, %cst_326 [1] : vector<9x128xf32> to vector<9xf32>
    %598 = vector.shape_cast %597 : vector<9xf32> to vector<9x1xf32>
    %cst_327 = arith.constant 1.280000e+02 : f32
    %599 = vector.broadcast %cst_327 : f32 to vector<9x1xf32>
    %600 = arith.divf %598, %599 : vector<9x1xf32>
    %cst_328 = arith.constant 9.99999974E-6 : f32
    %601 = vector.broadcast %cst_328 : f32 to vector<9x1xf32>
    %602 = arith.addf %600, %601 : vector<9x1xf32>
    %603 = math.rsqrt %602 : vector<9x1xf32>
    %604 = vector.broadcast %603 : vector<9x1xf32> to vector<9x128xf32>
    %605 = arith.mulf %595, %604 : vector<9x128xf32>
    %606 = vector.broadcast %587 : vector<1x128xf32> to vector<9x128xf32>
    %607 = arith.mulf %605, %606 : vector<9x128xf32>
    %608 = vector.broadcast %589 : vector<1x128xf32> to vector<9x128xf32>
    %609 = arith.addf %607, %608 : vector<9x128xf32>
    %610 = vector.extract_strided_slice %609 {offsets = [0, 0], sizes = [1, 128], strides = [1, 1]} : vector<9x128xf32> to vector<1x128xf32>
    %c0_329 = arith.constant 0 : index
    %c0_330 = arith.constant 0 : index
    %611 = vector.load %arg15[%c0_329, %c0_330] : memref<1x128xf32, #tpu.memory_space<vmem>>, vector<1x128xf32>
    %c0_331 = arith.constant 0 : index
    %c0_332 = arith.constant 0 : index
    %612 = vector.load %arg16[%c0_331, %c0_332] : memref<1x128xf32, #tpu.memory_space<vmem>>, vector<1x128xf32>
    %cst_333 = arith.constant dense<0.000000e+00> : vector<1xf32>
    %613 = vector.multi_reduction <add>, %610, %cst_333 [1] : vector<1x128xf32> to vector<1xf32>
    %614 = vector.shape_cast %613 : vector<1xf32> to vector<1x1xf32>
    %cst_334 = arith.constant 1.280000e+02 : f32
    %615 = vector.broadcast %cst_334 : f32 to vector<1x1xf32>
    %616 = arith.divf %614, %615 : vector<1x1xf32>
    %617 = vector.broadcast %616 : vector<1x1xf32> to vector<1x128xf32>
    %618 = arith.subf %610, %617 : vector<1x128xf32>
    %619 = arith.mulf %618, %618 : vector<1x128xf32>
    %cst_335 = arith.constant dense<0.000000e+00> : vector<1xf32>
    %620 = vector.multi_reduction <add>, %619, %cst_335 [1] : vector<1x128xf32> to vector<1xf32>
    %621 = vector.shape_cast %620 : vector<1xf32> to vector<1x1xf32>
    %cst_336 = arith.constant 1.280000e+02 : f32
    %622 = vector.broadcast %cst_336 : f32 to vector<1x1xf32>
    %623 = arith.divf %621, %622 : vector<1x1xf32>
    %cst_337 = arith.constant 9.99999974E-6 : f32
    %624 = vector.broadcast %cst_337 : f32 to vector<1x1xf32>
    %625 = arith.addf %623, %624 : vector<1x1xf32>
    %626 = math.rsqrt %625 : vector<1x1xf32>
    %627 = vector.broadcast %626 : vector<1x1xf32> to vector<1x128xf32>
    %628 = arith.mulf %618, %627 : vector<1x128xf32>
    %629 = arith.mulf %628, %611 : vector<1x128xf32>
    %630 = arith.addf %629, %612 : vector<1x128xf32>
    %cst_338 = arith.constant 0.000000e+00 : f32
    %631 = vector.broadcast %cst_338 : f32 to vector<1x128xf32>
    %632 = arith.cmpf ogt, %630, %631 : vector<1x128xf32>
    %cst_339 = arith.constant 0.000000e+00 : f32
    %633 = vector.broadcast %cst_339 : f32 to vector<1x128xf32>
    %634 = arith.minimumf %630, %633 : vector<1x128xf32>
    %635 = math.exp %634 : vector<1x128xf32>
    %cst_340 = arith.constant 1.000000e+00 : f32
    %636 = vector.broadcast %cst_340 : f32 to vector<1x128xf32>
    %637 = arith.subf %635, %636 : vector<1x128xf32>
    %638 = arith.select %632, %630, %637 : vector<1x128xi1>, vector<1x128xf32>
    %639 = arith.truncf %638 : vector<1x128xf32> to vector<1x128xbf16>
    %c0_341 = arith.constant 0 : index
    %c0_342 = arith.constant 0 : index
    %640 = vector.load %arg17[%c0_341, %c0_342] : memref<128x128xbf16, #tpu.memory_space<vmem>>, vector<128x128xbf16>
    %cst_343 = arith.constant dense<0.000000e+00> : vector<1x128xf32>
    %641 = tpu.matmul %639, %640, %cst_343 {dimension_numbers = #tpu.dot_dimension_numbers<[1], [0], [0], [1], [0, 0, 1, 1], [], []>} : vector<1x128xbf16>, vector<128x128xbf16>, vector<1x128xf32> -> vector<1x128xf32>
    %c0_344 = arith.constant 0 : index
    %c0_345 = arith.constant 0 : index
    %642 = vector.load %arg18[%c0_344, %c0_345] : memref<1x128xf32, #tpu.memory_space<vmem>>, vector<1x128xf32>
    %643 = arith.addf %641, %642 : vector<1x128xf32>
    %cst_346 = arith.constant 0.000000e+00 : f32
    %644 = vector.broadcast %cst_346 : f32 to vector<1x128xf32>
    %645 = arith.cmpf ogt, %643, %644 : vector<1x128xf32>
    %cst_347 = arith.constant 0.000000e+00 : f32
    %646 = vector.broadcast %cst_347 : f32 to vector<1x128xf32>
    %647 = arith.minimumf %643, %646 : vector<1x128xf32>
    %648 = math.exp %647 : vector<1x128xf32>
    %cst_348 = arith.constant 1.000000e+00 : f32
    %649 = vector.broadcast %cst_348 : f32 to vector<1x128xf32>
    %650 = arith.subf %648, %649 : vector<1x128xf32>
    %651 = arith.select %645, %643, %650 : vector<1x128xi1>, vector<1x128xf32>
    %652 = arith.truncf %651 : vector<1x128xf32> to vector<1x128xbf16>
    %c0_349 = arith.constant 0 : index
    %c0_350 = arith.constant 0 : index
    %653 = vector.load %arg19[%c0_349, %c0_350] : memref<128x128xbf16, #tpu.memory_space<vmem>>, vector<128x128xbf16>
    %cst_351 = arith.constant dense<0.000000e+00> : vector<1x128xf32>
    %654 = tpu.matmul %652, %653, %cst_351 {dimension_numbers = #tpu.dot_dimension_numbers<[1], [0], [0], [1], [0, 0, 1, 1], [], []>} : vector<1x128xbf16>, vector<128x128xbf16>, vector<1x128xf32> -> vector<1x128xf32>
    %c0_352 = arith.constant 0 : index
    %c0_353 = arith.constant 0 : index
    %655 = vector.load %arg20[%c0_352, %c0_353] : memref<1x128xf32, #tpu.memory_space<vmem>>, vector<1x128xf32>
    %656 = arith.addf %654, %655 : vector<1x128xf32>
    %cst_354 = arith.constant 0.000000e+00 : f32
    %657 = vector.broadcast %cst_354 : f32 to vector<1x128xf32>
    %658 = arith.subf %657, %656 : vector<1x128xf32>
    %659 = math.exp %658 : vector<1x128xf32>
    %cst_355 = arith.constant 1.000000e+00 : f32
    %660 = vector.broadcast %cst_355 : f32 to vector<1x128xf32>
    %661 = arith.addf %660, %659 : vector<1x128xf32>
    %662 = tpu.reciprocal %661 {approx = true} : vector<1x128xf32> -> vector<1x128xf32>
    %c0_356 = arith.constant 0 : index
    %c0_357 = arith.constant 0 : index
    %c0_358 = arith.constant 0 : index
    %663 = vector.load %arg21[%c0_356, %c0_357, %c0_358] : memref<1x1x128xf32, #tpu.memory_space<vmem>>, vector<1x1x128xf32>
    %664 = vector.shape_cast %663 : vector<1x1x128xf32> to vector<1x128xf32>
    %665 = vector.shape_cast %662 : vector<1x128xf32> to vector<1x1x128xf32>
    tpu.vector_store %arg21[%c0_356, %c0_357, %c0_358], %665 {strides = array<i32>} : memref<1x1x128xf32, #tpu.memory_space<vmem>>, vector<1x1x128xf32>,
    return
  }
  func.func @transform_0(%arg0: i32) -> (i32, i32, i32, i32) {
    %c0_i32 = arith.constant 0 : i32
    %c0_i32_0 = arith.constant 0 : i32
    %c0_i32_1 = arith.constant 0 : i32
    %c0_i32_2 = arith.constant 0 : i32
    return %arg0, %c0_i32, %c0_i32_0, %c0_i32_1 : i32, i32, i32, i32
  }
  func.func @transform_1(%arg0: i32) -> (i32, i32) {
    %c0_i32 = arith.constant 0 : i32
    %c0_i32_0 = arith.constant 0 : i32
    %c0_i32_1 = arith.constant 0 : i32
    return %c0_i32, %c0_i32_0 : i32, i32
  }
  func.func @transform_2(%arg0: i32) -> (i32, i32, i32) {
    %c0_i32 = arith.constant 0 : i32
    %c0_i32_0 = arith.constant 0 : i32
    %c0_i32_1 = arith.constant 0 : i32
    %c0_i32_2 = arith.constant 0 : i32
    return %c0_i32, %c0_i32_0, %c0_i32_1 : i32, i32, i32
  }
  func.func @transform_3(%arg0: i32) -> (i32, i32, i32) {
    %c0_i32 = arith.constant 0 : i32
    %c0_i32_0 = arith.constant 0 : i32
    %c0_i32_1 = arith.constant 0 : i32
    %c0_i32_2 = arith.constant 0 : i32
    return %c0_i32, %c0_i32_0, %c0_i32_1 : i32, i32, i32
  }
  func.func @transform_4(%arg0: i32) -> (i32, i32, i32) {
    %c0_i32 = arith.constant 0 : i32
    %c0_i32_0 = arith.constant 0 : i32
    %c0_i32_1 = arith.constant 0 : i32
    %c0_i32_2 = arith.constant 0 : i32
    return %c0_i32, %c0_i32_0, %c0_i32_1 : i32, i32, i32
  }
  func.func @transform_5(%arg0: i32) -> (i32, i32, i32) {
    %c0_i32 = arith.constant 0 : i32
    %c0_i32_0 = arith.constant 0 : i32
    %c0_i32_1 = arith.constant 0 : i32
    %c0_i32_2 = arith.constant 0 : i32
    return %c0_i32, %c0_i32_0, %c0_i32_1 : i32, i32, i32
  }
  func.func @transform_6(%arg0: i32) -> (i32, i32, i32) {
    %c0_i32 = arith.constant 0 : i32
    %c0_i32_0 = arith.constant 0 : i32
    %c0_i32_1 = arith.constant 0 : i32
    %c0_i32_2 = arith.constant 0 : i32
    return %c0_i32, %c0_i32_0, %c0_i32_1 : i32, i32, i32
  }
  func.func @transform_7(%arg0: i32) -> (i32, i32, i32) {
    %c0_i32 = arith.constant 0 : i32
    %c0_i32_0 = arith.constant 0 : i32
    %c0_i32_1 = arith.constant 0 : i32
    %c0_i32_2 = arith.constant 0 : i32
    return %c0_i32, %c0_i32_0, %c0_i32_1 : i32, i32, i32
  }
  func.func @transform_8(%arg0: i32) -> (i32, i32, i32) {
    %c0_i32 = arith.constant 0 : i32
    %c0_i32_0 = arith.constant 0 : i32
    %c0_i32_1 = arith.constant 0 : i32
    %c0_i32_2 = arith.constant 0 : i32
    return %c0_i32, %c0_i32_0, %c0_i32_1 : i32, i32, i32
  }
  func.func @transform_9(%arg0: i32) -> (i32, i32, i32) {
    %c0_i32 = arith.constant 0 : i32
    %c0_i32_0 = arith.constant 0 : i32
    %c0_i32_1 = arith.constant 0 : i32
    %c0_i32_2 = arith.constant 0 : i32
    return %c0_i32, %c0_i32_0, %c0_i32_1 : i32, i32, i32
  }
  func.func @transform_10(%arg0: i32) -> (i32, i32, i32) {
    %c0_i32 = arith.constant 0 : i32
    %c0_i32_0 = arith.constant 0 : i32
    %c0_i32_1 = arith.constant 0 : i32
    %c0_i32_2 = arith.constant 0 : i32
    return %c0_i32, %c0_i32_0, %c0_i32_1 : i32, i32, i32
  }
  func.func @transform_11(%arg0: i32) -> (i32, i32, i32) {
    %c0_i32 = arith.constant 0 : i32
    %c0_i32_0 = arith.constant 0 : i32
    %c0_i32_1 = arith.constant 0 : i32
    %c0_i32_2 = arith.constant 0 : i32
    return %c0_i32, %c0_i32_0, %c0_i32_1 : i32, i32, i32
  }
  func.func @transform_12(%arg0: i32) -> (i32, i32, i32) {
    %c0_i32 = arith.constant 0 : i32
    %c0_i32_0 = arith.constant 0 : i32
    %c0_i32_1 = arith.constant 0 : i32
    %c0_i32_2 = arith.constant 0 : i32
    return %c0_i32, %c0_i32_0, %c0_i32_1 : i32, i32, i32
  }
  func.func @transform_13(%arg0: i32) -> (i32, i32, i32) {
    %c0_i32 = arith.constant 0 : i32
    %c0_i32_0 = arith.constant 0 : i32
    %c0_i32_1 = arith.constant 0 : i32
    %c0_i32_2 = arith.constant 0 : i32
    return %c0_i32, %c0_i32_0, %c0_i32_1 : i32, i32, i32
  }
  func.func @transform_14(%arg0: i32) -> (i32, i32) {
    %c0_i32 = arith.constant 0 : i32
    %c0_i32_0 = arith.constant 0 : i32
    %c0_i32_1 = arith.constant 0 : i32
    return %c0_i32, %c0_i32_0 : i32, i32
  }
  func.func @transform_15(%arg0: i32) -> (i32, i32) {
    %c0_i32 = arith.constant 0 : i32
    %c0_i32_0 = arith.constant 0 : i32
    %c0_i32_1 = arith.constant 0 : i32
    return %c0_i32, %c0_i32_0 : i32, i32
  }
  func.func @transform_16(%arg0: i32) -> (i32, i32) {
    %c0_i32 = arith.constant 0 : i32
    %c0_i32_0 = arith.constant 0 : i32
    %c0_i32_1 = arith.constant 0 : i32
    return %c0_i32, %c0_i32_0 : i32, i32
  }
  func.func @transform_17(%arg0: i32) -> (i32, i32) {
    %c0_i32 = arith.constant 0 : i32
    %c0_i32_0 = arith.constant 0 : i32
    %c0_i32_1 = arith.constant 0 : i32
    return %c0_i32, %c0_i32_0 : i32, i32
  }
  func.func @transform_18(%arg0: i32) -> (i32, i32) {
    %c0_i32 = arith.constant 0 : i32
    %c0_i32_0 = arith.constant 0 : i32
    %c0_i32_1 = arith.constant 0 : i32
    return %c0_i32, %c0_i32_0 : i32, i32
  }
  func.func @transform_19(%arg0: i32) -> (i32, i32) {
    %c0_i32 = arith.constant 0 : i32
    %c0_i32_0 = arith.constant 0 : i32
    %c0_i32_1 = arith.constant 0 : i32
    return %c0_i32, %c0_i32_0 : i32, i32
  }
  func.func @transform_20(%arg0: i32) -> (i32, i32, i32) {
    %c0_i32 = arith.constant 0 : i32
    %c0_i32_0 = arith.constant 0 : i32
    %c0_i32_1 = arith.constant 0 : i32
    return %arg0, %c0_i32, %c0_i32_0 : i32, i32, i32
  }
}

</mosaic_0001>

<bundles_post_ra>
// kernel: tpu_custom_call.1
= control target key start
LH: loop header
LB: loop body
LE: loop exit
PB: predicated region body
PF: predicated region fallthrough
CT: control target
= control target key end

     0   :  { %s17955_s0 = inlined_call_operand.vmem [shape: f32[2,1,9,128], index: 0, kind: input, shape index: {}]   ;;  %s17956_s1 = inlined_call_operand.hbm [shape: f32[144,128], index: 1, kind: input, shape index: {}]   ;;  %s17957_s2 = inlined_call_operand.hbm [shape: bf16[6,128,384], index: 2, kind: input, shape index: {}]   ;;  %s17958_s3 = inlined_call_operand.hbm [shape: f32[6,1,384], index: 3, kind: input, shape index: {}]   ;;  %s17959_s4 = inlined_call_operand.hbm [shape: bf16[6,128,128], index: 4, kind: input, shape index: {}]   ;;  %s17960_s5 = inlined_call_operand.hbm [shape: f32[6,1,128], index: 5, kind: input, shape index: {}]   ;;  %s17961_s6 = inlined_call_operand.hbm [shape: f32[6,1,128], index: 6, kind: input, shape index: {}]   ;;  %s17962_s7 = inlined_call_operand.hbm [shape: f32[6,1,128], index: 7, kind: input, shape index: {}]   ;;  %s17963_s8 = inlined_call_operand.hbm [shape: bf16[6,128,768], index: 8, kind: input, shape index: {}]   ;;  %s17964_s9 = inlined_call_operand.hbm [shape: f32[6,1,768], index: 9, kind: input, shape index: {}]   ;;  %s17965_s10 = inlined_call_operand.hbm [shape: bf16[6,768,128], index: 10, kind: input, shape index: {}]   ;;  %s17966_s11 = inlined_call_operand.hbm [shape: f32[6,1,128], index: 11, kind: input, shape index: {}]   ;;  %s17967_s12 = inlined_call_operand.hbm [shape: f32[6,1,128], index: 12, kind: input, shape index: {}]   ;;  %s17968_s13 = inlined_call_operand.hbm [shape: f32[6,1,128], index: 13, kind: input, shape index: {}]   ;;  %s17969_s14 = inlined_call_operand.hbm [shape: f32[1,128], index: 14, kind: input, shape index: {}]   ;;  %s17970_s15 = inlined_call_operand.hbm [shape: f32[1,128], index: 15, kind: input, shape index: {}]   ;;  %s17971_s16 = inlined_call_operand.hbm [shape: bf16[128,128], index: 16, kind: input, shape index: {}]   ;;  %s17972_s17 = inlined_call_operand.hbm [shape: f32[1,128], index: 17, kind: input, shape index: {}]   ;;  %s17973_s18 = inlined_call_operand.hbm [shape: bf16[128,128], index: 18, kind: input, shape index: {}]   ;;  %s17974_s19 = inlined_call_operand.hbm [shape: f32[1,128], index: 19, kind: input, shape index: {}]   ;;  %s17975_s20 = inlined_call_operand.hbm [shape: f32[2,1,128], index: 20, kind: output, shape index: {}]  }
   0x1   :  { %17996 = sst [smem:[#allocation53_spill]] %s17955_s0 }
   0x2   :  { %17997 = sst [smem:[#allocation54_spill]] %s17956_s1 }
   0x3   :  { %17998 = sst [smem:[#allocation55_spill]] %s17957_s2 }
   0x4   :  { %17999 = sst [smem:[#allocation56_spill]] %s17958_s3 }
   0x5   :  { %18000 = sst [smem:[#allocation57_spill]] %s17959_s4 }
   0x6   :  { %18001 = sst [smem:[#allocation58_spill]] %s17961_s6 }
   0x7   :  { %18002 = sst [smem:[#allocation59_spill]] %s17963_s8 }
   0x8   :  { %18003 = sst [smem:[#allocation60_spill]] %s17965_s10 }
   0x9   :  { %18004 = sst [smem:[#allocation61_spill]] %s17967_s12 }
   0xa   :  { %18005 = sst [smem:[#allocation62_spill]] %s17975_s20 }
   0xb   :  { %25 = vsyncpa [#allocation3], 0 }
   0xc   :  { %26 = vsyncpa [#allocation6], 0 }
   0xd   :  { %27 = vsyncpa [#allocation9], 0 }
   0xe   :  { %28 = vsyncpa [#allocation12], 0 }
   0xf   :  { %29 = vsyncpa [#allocation15], 0 }
  0x10   :  { %30 = vsyncpa [#allocation18], 0 }
  0x11   :  { %31 = vsyncpa [#allocation21], 0 }
  0x12   :  { %32 = vsyncpa [#allocation24], 0 }
  0x13   :  { %33 = vsyncpa [#allocation27], 0 }
  0x14   :  { %34 = vsyncpa [#allocation30], 0 }
  0x15   :  { %35 = vsyncpa [#allocation4], 0 }
  0x16   :  { %37 = vsyncpa [#allocation4 + $0x1], 0  ;;  %s16214_s1 = smov 0   ;;  %s16216_s22 = smov 0  }
  0x17   :  { %s16218_s23 = smov 0   ;;  %s16220_s24 = smov 0  }
  0x18 LB: > { %18006 = sst [smem:[#allocation44_spill]] %s16061_s1  ;;  %s16235_s2 = sadd.s32 4294967295, %s16073_s24   ;;  %s16073_s24 = sphi %s16220_s24, %s18052_s24   ;;  %s16069_s23 = sphi %s16218_s23, %s18055_s23   ;;  %s16065_s22 = sphi %s16216_s22, %s18054_s22   ;;  %s16061_s1 = sphi %s16214_s1, %s18053_s1  }
  0x19   : > { %18007 = sst [smem:[#allocation45_spill]] %s16065_s22  ;;  %s10907_s25 = sadd.s32 4294967294, %s16073_s24  }
  0x1a   : > { %18008 = sst [smem:[#allocation46_spill]] %s16069_s23  ;;  %s16239_s3 = sadd.s32 1, %s16073_s24  }
  0x1b   : > { %18009 = sst [smem:[#allocation47_spill]] %s16073_s24  ;;  %s475_s26 = sadd.s32 1, %s16069_s23 }
  0x1c   : > { %18010 = sst [smem:[#allocation48_spill]] %s16235_s2  ;;  %s472_s27 = ssub.s32 %s16073_s24, %s16239_s3 }
  0x1d   : > { %18011 = sst [smem:[#allocation49_spill]] %s16239_s3  ;;  %p485_p0 = scmp.ne.s32.totalorder %s16069_s23, %s16065_s22 }
  0x1e   : > { %p473_p1 = scmp.eq.s32.totalorder %s472_s27, 0  ;;  %p486_p2 = scmp.eq.s32.totalorder %s16235_s2, 1 }
  0x1f   : > { %p491_p3 = scmp.ne.s32.totalorder %s16065_s22, %s16061_s1  ;;  %p492_p4 = scmp.eq.s32.totalorder %s10907_s25, 1 }
  0x20   : > { %s16250_s28 = scalar_select %p473_p1, %s16069_s23, %s475_s26  }
  0x21   : > { %p16252_p5 = por %p486_p2, %p485_p0  ;;  %p16256_p6 = por %p492_p4, %p491_p3 }
  0x22   : > { %18012 = sst [smem:[#allocation50_spill]] %s16250_s28  ;;  %p10908_p7 = scmp.ge.s32.totalorder %s16073_s24, 1 }
  0x23   : > { %s18013_s4 = scalar_select %p16252_p5, 1, 0 }
  0x24   : > { %s18015_s29 = scalar_select %p16256_p6, 1, 0 }
  0x25   : > { %18014 = sst [smem:[#allocation51_spill]] %s18013_s4  ;;  %p499_p8 = scmp.lt.s32.totalorder %s16073_s24, 3 }
  0x26   : > { %18016 = sst [smem:[#allocation52_spill]] %s18015_s29  ;;  %p15040_p9 = scmp.eq.s32.totalorder %s16235_s2, 0 }
  0x27   : > { %p16263_p10 = pnand %p10908_p7, %p499_p8  ;;  %s18018_s25 = sld [smem:[#allocation55_spill]] }
  0x28   : > { %s16075_s27 = smov [#allocation5]   ;;  %s18020_s1 = sld [smem:[#allocation57_spill]] }
  0x29   : > { %p14978_p11 = pneg %p16263_p10  ;;  %s526_s28 = sshll.u32 %s16075_s27, 4  ;;  %s527_s28 = int_to_ptr.vmem [resolvable:$true] %s526_s28 }
  0x2a   : > { %s16076_s0 = smov 192   ;;  %s16077_s21 = smov 12  }
  0x2b   : > { %p16274_p12 = pnand %p15040_p9, %p14978_p11  ;;  %s17988_s20 = smov 64  }
  0x2c   : > { %s17990_s4 = smov 4   ;;  %s18021_s6 = sld [smem:[#allocation58_spill]] }
  0x2d   : > { %s524_s26 = sshll.u32 %s18018_s25, 4  ;;  %s16078_s25 = smov [#allocation8]   ;;  %s525_s26 = int_to_ptr.hbm [resolvable:$true] %s524_s26 }
  0x2e   : > { %s552_s24 = sshll.u32 %s18020_s1, 4  ;;  %s554_s27 = sshll.u32 %s16078_s25, 4  ;;  %s553_s24 = int_to_ptr.hbm [resolvable:$true] %s552_s24  ;;  %s555_s27 = int_to_ptr.vmem [resolvable:$true] %s554_s27 }
  0x2f   : > { %14984 = dma.hbm_to_vmem [thread:$0]  (!%p16274_p12), %s525_s26, 18432, %s527_s28, [#allocation6], %s16076_s0, %s16076_s0, %s16077_s21  }
  0x30   : > { %14990 = dma.hbm_to_vmem [thread:$0]  (!%p16274_p12), %s553_s24, 6144, %s555_s27, [#allocation9], %s17988_s20, %s17988_s20, %s17990_s4  }
  0x31   : > { %s16081_s22 = smov [#allocation11]   ;;  %s18022_s8 = sld [smem:[#allocation59_spill]] }
  0x32   : > { %s580_s1 = sshll.u32 %s18021_s6, 4  ;;  %s582_s2 = sshll.u32 %s16081_s22, 4  ;;  %s581_s1 = int_to_ptr.hbm [resolvable:$true] %s580_s1  ;;  %s583_s2 = int_to_ptr.vmem [resolvable:$true] %s582_s2 }
  0x33   : > { %s17992_s21 = smov 16   ;;  %s17994_s25 = smov 1  }
  0x34   : > { %14996 = dma.hbm_to_vmem [thread:$0]  (!%p16274_p12), %s581_s1, 96, %s583_s2, [#allocation12], %s17992_s21, %s17992_s21, %s17994_s25  }
  0x35   : > { %s16084_s24 = smov [#allocation14]   ;;  %s16085_s3 = smov 384  }
  0x36   : > { %s610_s27 = sshll.u32 %s16084_s24, 4  ;;  %s16086_s22 = smov 24   ;;  %s611_s27 = int_to_ptr.vmem [resolvable:$true] %s610_s27 }
  0x37   : > { %s608_s0 = sshll.u32 %s18022_s8, 4  ;;  %s18023_s10 = sld [smem:[#allocation60_spill]]  ;;  %s609_s0 = int_to_ptr.hbm [resolvable:$true] %s608_s0 }
  0x38   : > { %15002 = dma.hbm_to_vmem [thread:$0]  (!%p16274_p12), %s609_s0, 36864, %s611_s27, [#allocation15], %s16085_s3, %s16085_s3, %s16086_s22  }
  0x39   : > { %s16087_s20 = smov [#allocation17]   ;;  %s18024_s12 = sld [smem:[#allocation61_spill]] }
  0x3a   : > { %s638_s4 = sshll.u32 %s16087_s20, 4  ;;  %s18025_s24 = smov 4   ;;  %s639_s4 = int_to_ptr.vmem [resolvable:$true] %s638_s4 }
  0x3b   : > { %s18026_s21 = smov 64   ;;  %s16088_s0 = smov [#allocation20]  }
  0x3c   : > { %s666_s27 = sshll.u32 %s16088_s0, 4  ;;  %s693_s29 = sshll.u32 %s17969_s14, 4  ;;  %s667_s27 = int_to_ptr.vmem [resolvable:$true] %s666_s27  ;;  %s694_s29 = int_to_ptr.hbm [resolvable:$true] %s693_s29 }
  0x3d   : > { %s636_s26 = sshll.u32 %s18023_s10, 4  ;;  %s18027_s20 = smov 16   ;;  %s637_s26 = int_to_ptr.hbm [resolvable:$true] %s636_s26 }
  0x3e   : > { %15008 = dma.hbm_to_vmem [thread:$0]  (!%p16274_p12), %s637_s26, 36864, %s639_s4, [#allocation18], %s18026_s21, %s18026_s21, %s18025_s24  }
  0x3f   : > { %s664_s1 = sshll.u32 %s18024_s12, 4  ;;  %s716_s2 = sshll.u32 %s17971_s16, 4  ;;  %s665_s1 = int_to_ptr.hbm [resolvable:$true] %s664_s1  ;;  %s717_s2 = int_to_ptr.hbm [resolvable:$true] %s716_s2 }
  0x40   : > { %15014 = dma.hbm_to_vmem [thread:$0]  (!%p16274_p12), %s665_s1, 96, %s667_s27, [#allocation21], %s18027_s20, %s18027_s20, %s17994_s25  }
  0x41   : > { %s16089_s4 = smov [#allocation23]   ;;  %s16090_s0 = smov [#allocation26]  }
  0x42   : > { %s695_s26 = sshll.u32 %s16089_s4, 4  ;;  %s718_s3 = sshll.u32 %s16090_s0, 4  ;;  %s696_s26 = int_to_ptr.vmem [resolvable:$true] %s695_s26  ;;  %s719_s3 = int_to_ptr.vmem [resolvable:$true] %s718_s3 }
  0x43   : > { %15020 = dma.hbm_to_vmem [thread:$0]  (!%p16274_p12), %s694_s29, 16, %s696_s26, [#allocation24]  }
  0x44   : > { %s742_s10 = sshll.u32 %s17973_s18, 4  ;;  %s18028_s6 = sld [smem:[#allocation54_spill]]  ;;  %s743_s10 = int_to_ptr.hbm [resolvable:$true] %s742_s10 }
  0x45   : > { %15026 = dma.hbm_to_vmem [thread:$0]  (!%p16274_p12), %s717_s2, 1024, %s719_s3, [#allocation27], %s18026_s21, %s18026_s21, %s18025_s24  }
  0x46   : > { %s16091_s4 = smov [#allocation29]   ;;  %s16092_s8 = smov [#allocation2]  }
  0x47   : > { %s744_s29 = sshll.u32 %s16091_s4, 4  ;;  %s512_s26 = sshll.u32 %s16092_s8, 4  ;;  %s745_s29 = int_to_ptr.vmem [resolvable:$true] %s744_s29  ;;  %s513_s26 = int_to_ptr.vmem [resolvable:$true] %s512_s26 }
  0x48   : > { %15032 = dma.hbm_to_vmem [thread:$0]  (!%p16274_p12), %s743_s10, 1024, %s745_s29, [#allocation30], %s18026_s21, %s18026_s21, %s18025_s24  }
  0x49   : > { %s16093_s0 = smov 128   ;;  %s16094_s22 = smov 8  }
  0x4a   : > { %s510_s28 = sshll.u32 %s18028_s6, 4  ;;  %s18029_s1 = sld [smem:[#allocation56_spill]]  ;;  %s511_s28 = int_to_ptr.hbm [resolvable:$true] %s510_s28 }
  0x4b   : > { %14981 = dma.hbm_to_vmem [thread:$0]  (!%p16274_p12), %s511_s28, 2304, %s513_s26, [#allocation3], %s16093_s0, %s16093_s0, %s16094_s22  }
  0x4c   : > { %s16095_s6 = smov [#allocation7]   ;;  %s566_s10 = sshll.u32 %s17960_s5, 4  ;;  %s567_s10 = int_to_ptr.hbm [resolvable:$true] %s566_s10 }
  0x4d   : > { %s540_s4 = sshll.u32 %s16095_s6, 4  ;;  %s16096_s21 = smov 48   ;;  %s541_s4 = int_to_ptr.vmem [resolvable:$true] %s540_s4 }
  0x4e   : > { %s16097_s24 = smov 3   ;;  %s16098_s28 = smov [#allocation10]  }
  0x4f   : > { %s568_s29 = sshll.u32 %s16098_s28, 4  ;;  %s594_s0 = sshll.u32 %s17962_s7, 4  ;;  %s569_s29 = int_to_ptr.vmem [resolvable:$true] %s568_s29  ;;  %s595_s0 = int_to_ptr.hbm [resolvable:$true] %s594_s0 }
  0x50   : > { %s538_s27 = sshll.u32 %s18029_s1, 4  ;;  %s18030_s22 = smov 1   ;;  %s539_s27 = int_to_ptr.hbm [resolvable:$true] %s538_s27 }
  0x51   : > { %14987 = dma.hbm_to_vmem [thread:$0]  (!%p16274_p12), %s539_s27, 288, %s541_s4, [#allocation6], %s16096_s21, %s16096_s21, %s16097_s24  }
  0x52   : > { %14993 = dma.hbm_to_vmem [thread:$0]  (!%p16274_p12), %s567_s10, 96, %s569_s29, [#allocation9], %s18027_s20, %s18027_s20, %s18030_s22  }
  0x53   : > { %s622_s2 = sshll.u32 %s17964_s9, 4  ;;  %s16099_s3 = smov [#allocation13]   ;;  %s623_s2 = int_to_ptr.hbm [resolvable:$true] %s622_s2 }
  0x54   : > { %s596_s1 = sshll.u32 %s16099_s3, 4  ;;  %s16100_s27 = smov [#allocation16]   ;;  %s597_s1 = int_to_ptr.vmem [resolvable:$true] %s596_s1 }
  0x55   : > { %14999 = dma.hbm_to_vmem [thread:$0]  (!%p16274_p12), %s595_s0, 96, %s597_s1, [#allocation12], %s18027_s20, %s18027_s20, %s18030_s22  }
  0x56   : > { %s624_s6 = sshll.u32 %s16100_s27, 4  ;;  %s16101_s4 = smov 96   ;;  %s625_s6 = int_to_ptr.vmem [resolvable:$true] %s624_s6 }
  0x57   : > { %s16102_s10 = smov 6   ;;  %s650_s28 = sshll.u32 %s17966_s11, 4  ;;  %s651_s28 = int_to_ptr.hbm [resolvable:$true] %s650_s28 }
  0x58   : > { %15005 = dma.hbm_to_vmem [thread:$0]  (!%p16274_p12), %s623_s2, 576, %s625_s6, [#allocation15], %s16101_s4, %s16101_s4, %s16102_s10  }
  0x59   : > { %s16103_s29 = smov [#allocation19]   ;;  %s678_s0 = sshll.u32 %s17968_s13, 4  ;;  %s679_s0 = int_to_ptr.hbm [resolvable:$true] %s678_s0 }
  0x5a   : > { %s652_s8 = sshll.u32 %s16103_s29, 4  ;;  %s16104_s25 = smov [#allocation22]   ;;  %s653_s8 = int_to_ptr.vmem [resolvable:$true] %s652_s8 }
  0x5b   : > { %15011 = dma.hbm_to_vmem [thread:$0]  (!%p16274_p12), %s651_s28, 96, %s653_s8, [#allocation18], %s18027_s20, %s18027_s20, %s18030_s22  }
  0x5c   : > { %s680_s2 = sshll.u32 %s16104_s25, 4  ;;  %s705_s27 = sshll.u32 %s17970_s15, 4  ;;  %s681_s2 = int_to_ptr.vmem [resolvable:$true] %s680_s2  ;;  %s706_s27 = int_to_ptr.hbm [resolvable:$true] %s705_s27 }
  0x5d   : > { %15017 = dma.hbm_to_vmem [thread:$0]  (!%p16274_p12), %s679_s0, 96, %s681_s2, [#allocation21], %s18027_s20, %s18027_s20, %s18030_s22  }
  0x5e   : > { %s731_s10 = sshll.u32 %s17972_s17, 4  ;;  %s16105_s21 = smov [#allocation25]   ;;  %s732_s10 = int_to_ptr.hbm [resolvable:$true] %s731_s10 }
  0x5f   : > { %s707_s24 = sshll.u32 %s16105_s21, 4  ;;  %s16106_s28 = smov [#allocation28]   ;;  %s708_s24 = int_to_ptr.vmem [resolvable:$true] %s707_s24 }
  0x60   : > { %15023 = dma.hbm_to_vmem [thread:$0]  (!%p16274_p12), %s706_s27, 16, %s708_s24, [#allocation24]  }
  0x61   : > { %s733_s29 = sshll.u32 %s16106_s28, 4  ;;  %s757_s12 = sshll.u32 %s17974_s19, 4  ;;  %s734_s29 = int_to_ptr.vmem [resolvable:$true] %s733_s29  ;;  %s758_s12 = int_to_ptr.hbm [resolvable:$true] %s757_s12 }
  0x62   : > { %15029 = dma.hbm_to_vmem [thread:$0]  (!%p16274_p12), %s732_s10, 16, %s734_s29, [#allocation27]  }
  0x63   : > { %s16107_s20 = smov [#allocation31]   ;;  %780 = sbr.rel (%p16263_p10) target bundleno = 10461 (0x28dd), region = 100 }
  0x64   : > { %s759_s22 = sshll.u32 %s16107_s20, 4  ;;  %s18031_s0 = sld [smem:[#allocation48_spill]] (!%p16263_p10)  ;;  %s760_s22 = int_to_ptr.vmem [resolvable:$true] %s759_s22 }
  0x65   : > { %15035 = dma.hbm_to_vmem [thread:$0]  (!%p16274_p12), %s758_s12, 16, %s760_s22, [#allocation30]  }
  0x68   : > { %16016 = dma.done.wait (%p15040_p9), [#allocation3], 2304  }
  0x69   : > { %16018 = vsyncadd (%p15040_p9), [#allocation3], 4294964992 }
  0x6a   : > { %16020 = dma.done.wait (%p15040_p9), [#allocation6], 18720  }
  0x6b   : > { %16022 = vsyncadd (%p15040_p9), [#allocation6], 4294948576 }
  0x6c   : > { %16024 = dma.done.wait (%p15040_p9), [#allocation9], 6240  }
  0x6d   : > { %16026 = vsyncadd (%p15040_p9), [#allocation9], 4294961056 }
  0x6e   : > { %16028 = dma.done.wait (%p15040_p9), [#allocation12], 192  }
  0x6f   : > { %16030 = vsyncadd (%p15040_p9), [#allocation12], 4294967104 }
  0x70   : > { %16032 = dma.done.wait (%p15040_p9), [#allocation15], 37440  }
  0x71   : > { %16034 = vsyncadd (%p15040_p9), [#allocation15], 4294929856 }
  0x72   : > { %16036 = dma.done.wait (%p15040_p9), [#allocation18], 36960  }
  0x73   : > { %16038 = vsyncadd (%p15040_p9), [#allocation18], 4294930336 }
  0x74   : > { %16040 = dma.done.wait (%p15040_p9), [#allocation21], 192  }
  0x75   : > { %16042 = vsyncadd (%p15040_p9), [#allocation21], 4294967104 }
  0x76   : > { %16044 = dma.done.wait (%p15040_p9), [#allocation24], 32  }
  0x77   : > { %16046 = vsyncadd (%p15040_p9), [#allocation24], 4294967264 }
  0x78   : > { %16048 = dma.done.wait (%p15040_p9), [#allocation27], 1040  }
  0x79   : > { %16050 = vsyncadd (%p15040_p9), [#allocation27], 4294966256 }
  0x7a   : > { %16052 = dma.done.wait (%p15040_p9), [#allocation30], 1040  }
  0x7b   : > { %16054 = vsyncadd (%p15040_p9), [#allocation30], 4294966256  ;;  %v14137_v0 = vld [vmem:[#allocation5 + $0xac] sm:$0xf]  ;;  %v11039_v1 = vld [vmem:[#allocation5 + $0xb4] sm:$0xf0] }
  0x7c   : > { %v14134_v2 = vld [vmem:[#allocation5 + $0x94] sm:$0xf]  ;;  %v11042_v3 = vor.u32 %v14137_v0, %v11039_v1  ;;  %v11027_v4 = vld [vmem:[#allocation5 + $0x9c] sm:$0xf0]  ;;  %p928_p13 = scmp.lt.s32.totalorder %s18031_s0, 1  ;;  %s18032_s3 = sld [smem:[#allocation53_spill]] }
  0x7d   : > { %v11030_v5 = vor.u32 %v14134_v2, %v11027_v4  ;;  %v14131_v6 = vld [vmem:[#allocation5 + $0x7c] sm:$0xf]  ;;  %v11015_v7 = vld [vmem:[#allocation5 + $0x84] sm:$0xf0]  ;;  %v14138_v9 = vld [vmem:[#allocation5 + $0xb0] sm:$0xf0] }
  0x7e   : > { %1136 = vmatpush.bf16.msra.mxu1 %v11042_v3  ;;  %s16444_s23 = scalar_select %p928_p13, %s18031_s0, 1  ;;  %v11037_v8 = vld [vmem:[#allocation5 + $0xa8] sm:$0xf]  ;;  %v11025_v10 = vld [vmem:[#allocation5 + $0x90] sm:$0xf]  ;;  %v11018_v11 = vor.u32 %v14131_v6, %v11015_v7  ;;  %vm1202_vm0 = vcmask 1046528  }
  0x7f   : > { %v11038_v12 = vor.u32 %v14138_v9, %v11037_v8  ;;  %v14135_v13 = vld [vmem:[#allocation5 + $0x98] sm:$0xf0]  ;;  %v14128_v14 = vld [vmem:[#allocation5 + $0x64] sm:$0xf]  ;;  %v11003_v15 = vld [vmem:[#allocation5 + $0x6c] sm:$0xf0] }
  0x80   : > { %v11026_v16 = vor.u32 %v14135_v13, %v11025_v10  ;;  %s14115_s30 = sshll.u32 %s16444_s23, 4  ;;  %v11013_v17 = vld [vmem:[#allocation5 + $0x78] sm:$0xf]  ;;  %v14132_v18 = vld [vmem:[#allocation5 + $0x80] sm:$0xf0]  ;;  %v11006_v19 = vor.u32 %v14128_v14, %v11003_v15  ;;  %vm1190_vm1 = vcmask 1044480  }
  0x81   : > { %1122 = vmatpush.bf16.msra.mxu0 %v11038_v12  ;;  %v14125_v20 = vld [vmem:[#allocation5 + $0x4c] sm:$0xf]  ;;  %v10991_v21 = vld [vmem:[#allocation5 + $0x54] sm:$0xf0]  ;;  %v11001_v22 = vld [vmem:[#allocation5 + $0x60] sm:$0xf]  ;;  %v11014_v24 = vor.u32 %v14132_v18, %v11013_v17 }
  0x82   : > { %1137 = vmatpush.bf16.msra.mxu1 %v11030_v5  ;;  %v14129_v23 = vld [vmem:[#allocation5 + $0x68] sm:$0xf0]  ;;  %v14122_v25 = vld [vmem:[#allocation5 + $0x34] sm:$0xf]  ;;  %v10979_v26 = vld [vmem:[#allocation5 + $0x3c] sm:$0xf0]  ;;  %v10994_v27 = vor.u32 %v14125_v20, %v10991_v21  ;;  %s932_s1 = scalar_lea.vmem %s18032_s3, %s14115_s30 }
  0x83   : > { %v10989_v28 = vld [vmem:[#allocation5 + $0x48] sm:$0xf]  ;;  %v14126_v29 = vld [vmem:[#allocation5 + $0x50] sm:$0xf0]  ;;  %v11002_v30 = vor.u32 %v14129_v23, %v11001_v22  ;;  %v14119_v31 = vld [vmem:[#allocation5 + $0x1c] sm:$0xf]  ;;  %v10982_v33 = vor.u32 %v14122_v25, %v10979_v26 }
  0x84   : > { %v10967_v32 = vld [vmem:[#allocation5 + $0x24] sm:$0xf0]  ;;  %v10977_v34 = vld [vmem:[#allocation5 + $0x30] sm:$0xf]  ;;  %v14123_v35 = vld [vmem:[#allocation5 + $0x38] sm:$0xf0]  ;;  %v10990_v36 = vor.u32 %v14126_v29, %v10989_v28 }
  0x85   : > { %1123 = vmatpush.bf16.msra.mxu0 %v11026_v16  ;;  %v10970_v37 = vor.u32 %v14119_v31, %v10967_v32  ;;  %v14116_v38 = vld [vmem:[#allocation5 + $0x4] sm:$0xf]  ;;  %v10955_v39 = vld [vmem:[#allocation5 + $0xc] sm:$0xf0]  ;;  %v10978_v40 = vor.u32 %v14123_v35, %v10977_v34  ;;  %v10965_v41 = vld [vmem:[#allocation5 + $0x18] sm:$0xf] }
  0x86   : > { %1138 = vmatpush.bf16.msra.mxu1 %v11018_v11  ;;  %v14120_v42 = vld [vmem:[#allocation5 + $0x20] sm:$0xf0]  ;;  %v10958_v43 = vor.u32 %v14116_v38, %v10955_v39  ;;  %v16452_v44 = vld [vmem:[%s932_s1] sm:$0xff]  ;;  %v16454_v45 = vld [vmem:[%s932_s1 + $0x8] sm:$0x1]  ;;  %vm1196_vm2 = vcmask 1045504  }
  0x87   : > { %v10966_v46 = vor.u32 %v14120_v42, %v10965_v41  ;;  %v16458_v47 = vpack.c.bf16 %v16454_v45, %v16452_v44  ;;  %v10953_v48 = vld [vmem:[#allocation5] sm:$0xf]  ;;  %v14117_v49 = vld [vmem:[#allocation5 + $0x8] sm:$0xf0]  ;;  %vm1184_vm3 = vcmask 1043456   ;;  %v16471_v61 = vld [vmem:[#allocation2 + $0x88] sm:$0xff] }
  0x88   : > { %v10954_v50 = vor.u32 %v14117_v49, %v10953_v48  ;;  %v16462_v51 = vld [vmem:[#allocation7] sm:$0x7]  ;;  %v16473_v2 = vld [vmem:[#allocation2 + $0x78] sm:$0xff]  ;;  %vm1178_vm4 = vcmask 1042432   ;;  %v16488_v11 = vld [vmem:[#allocation2 + $0x80] sm:$0xff]  ;;  %vm1172_vm5 = vcmask 1041408  }
  0x89   : > { %1124 = vmatpush.bf16.msra.mxu0 %v11014_v24  ;;  %v989_v53 = vperm.slane %v16462_v51, 1  ;;  %v16494_v14 = vld [vmem:[#allocation2 + $0x70] sm:$0xff]  ;;  %v16505_v21 = vld [vmem:[#allocation2 + $0x68] sm:$0xff]  ;;  %vm1166_vm6 = vcmask 1040384   ;;  %v16526_v31 = vld [vmem:[#allocation2 + $0x58] sm:$0xff]  ;;  %vm1341_vm7 = vcmask 130048  }
  0x8a   : > { %1139 = vmatpush.bf16.msra.mxu1 %v11006_v19  ;;  %v16544_v39 = vld [vmem:[#allocation2 + $0x40] sm:$0xff]  ;;  %v16551_v42 = vld [vmem:[#allocation2 + $0x38] sm:$0xff]  ;;  %v16560_v48 = vld [vmem:[#allocation2 + $0x28] sm:$0xff]  ;;  %vm1347_vm8 = vcmask 122880   ;;  %s18045_s27 = sld [smem:[#allocation45_spill]] }
  0x8b   : > { %s18047_s24 = sld [smem:[#allocation62_spill]] }
  0x8d   : > { %1125 = vmatpush.bf16.msra.mxu0 %v11002_v30 }
  0x8e   : > { %1140 = vmatpush.bf16.msra.mxu1 %v10994_v27  ;;  %v16516_v27 = vld [vmem:[#allocation2 + $0x60] sm:$0xff] }
  0x90   : > { %s926_s6 = sand.u32 1, %s18045_s27  }
  0x91   : > { %1126 = vmatpush.bf16.msra.mxu0 %v10990_v36  ;;  %v16540_v36 = vld [vmem:[#allocation2 + $0x48] sm:$0xff]  ;;  %s18048_s28 = smov %s18047_s24  ;;  %s10665_s29 = scalar_lea.hbm %s18047_s24, %s18031_s0 }
  0x92   : > { %1141 = vmatpush.bf16.msra.mxu1 %v10982_v33  ;;  %v16532_v33 = vld [vmem:[#allocation2 + $0x50] sm:$0xff]  ;;  %s927_s8 = scalar_lea.vmem [#allocation32], %s926_s6  ;;  %s10669_s12 = sshll.u32 %s10665_s29, 4  ;;  %s10670_s12 = int_to_ptr.hbm [resolvable:$true] %s10669_s12 }
  0x93   : > { %s10667_s26 = sshll.u32 %s927_s8, 4  ;;  %s10657_s20 = scalar_lea.sflag [#allocation4], %s926_s6  ;;  %s10668_s26 = int_to_ptr.vmem [resolvable:$true] %s10667_s26 }
  0x94   : > { %s15985_s22 = sshra.s32 %s10670_s12, 4  ;;  %s15991_s0 = scalar_lea.hbm %s18048_s28, 2  ;;  %s15986_s22 = int_to_ptr.hbm [resolvable:$true] %s15985_s22 }
  0x95   : > { %1127 = vmatpush.bf16.msra.mxu0 %v10978_v40  ;;  %s15987_s23 = scalar_lea.hbm %s15986_s22, 1  ;;  %p15992_p3 = scmp.lt.s32.totalorder %s15986_s22, %s18048_s28 }
  0x96   : > { %1142 = vmatpush.bf16.msra.mxu1 %v10970_v37  ;;  %v988_v37 = vperm.slane %v16462_v51, 0  ;;  %p15988_p0 = scmp.ne.s32.totalorder %s15986_s22, %s15987_s23  ;;  %p15993_p4 = scmp.lt.s32.totalorder %s15991_s0, %s15987_s23 }
  0x98   : > { %p15989_p1 = pnand %p15988_p0, %p16252_p5  ;;  %p15994_p7 = por %p15993_p4, %p15992_p3 }
  0x99   : > { %1128 = vmatpush.bf16.msra.mxu0 %v10966_v46  ;;  %v16557_v46 = vld [vmem:[#allocation2 + $0x30] sm:$0xff] }
  0x9a   : > { %1143 = vmatpush.bf16.msra.mxu1 %v10958_v43  ;;  %p15990_p2 = pneg %p15989_p1 }
  0x9c   : > { %p15995_p8 = pnand %p15994_p7, %p15990_p2 }
  0x9d   : > { %1144 = vmatmul.bf16.vlgmr.msra.gmra.mxu1 %v16458_v47  ;;  %1129 = vmatpush.bf16.msra.mxu0 %v10954_v50  ;;  %v16565_v50 = vld [vmem:[#allocation2 + $0x20] sm:$0xff] }
  0xa0   : > { %1130 = vmatmul.bf16.vlgmr.msra.gmra.mxu0 %v16458_v47 }
 0x11a   : > { %v1145_v52 = vpop.f32.mrf.mxu1 }
 0x11b   : > { %v16465_v54 = vadd.f32 %v1145_v52, %v989_v53  ;;  %v16568_v52 = vld [vmem:[#allocation2 + $0x18] sm:$0xff] }
 0x11d   : > { %v1203_v57 = vrot.slane %v16465_v54, 1  ;;  %v1191_v58 = vrot.slane %v16465_v54, 3  ;;  %v1197_v59 = vrot.slane %v16465_v54, 2  ;;  %v1185_v60 = vrot.slane %v16465_v54, 4  ;;  %v1131_v38 = vpop.f32.mrf.mxu0 }
 0x11e   : > { %v1179_v13 = vrot.slane %v16465_v54, 5  ;;  %v1173_v20 = vrot.slane %v16465_v54, 6  ;;  %v1167_v26 = vrot.slane %v16465_v54, 7  ;;  %v16548_v41 = vadd.f32 %v1131_v38, %v988_v37 }
 0x11f   : > { %v1224_v43 = vmul.f32 %v16465_v54, %v16540_v36 }
 0x122   : > { %v1147_v55 = vpop.f32.mrf.mxu1 }
 0x123   : > { %v1148_v56 = vadd.f32 %v1147_v55, %v989_v53 }
 0x125   : > { %v1204_v62 = vrot.slane %v1148_v56, 1  ;;  %v1192_v63 = vrot.slane %v1148_v56, 3  ;;  %v1198_v0 = vrot.slane %v1148_v56, 2  ;;  %v1186_v1 = vrot.slane %v1148_v56, 4  ;;  %v1133_v53 = vpop.f32.mrf.mxu0 }
 0x126   : > { %v1180_v3 = vrot.slane %v1148_v56, 5  ;;  %v1174_v17 = vrot.slane %v1148_v56, 6  ;;  %v1168_v24 = vrot.slane %v1148_v56, 7  ;;  %v16538_v35 = vsel %vm1166_vm6, %v1148_v56, %v1167_v26  ;;  %v16573_v56 = vld [vmem:[#allocation2 + $0x10] sm:$0xff] }
 0x127   : > { %v16476_v4 = vsel %vm1202_vm0, %v1203_v57, %v1204_v62  ;;  %v1193_v5 = vsel %vm1190_vm1, %v1191_v58, %v1192_v63  ;;  %v1199_v6 = vsel %vm1196_vm2, %v1197_v59, %v1198_v0  ;;  %v1187_v7 = vsel %vm1184_vm3, %v1185_v60, %v1186_v1  ;;  %v11045_v63 = vld [vmem:[#allocation5 + $0xb0] sm:$0xf]  ;;  %v14139_v0 = vld [vmem:[#allocation5 + $0xb8] sm:$0xf0]  ;;  %v11033_v1 = vld [vmem:[#allocation5 + $0x98] sm:$0xf] }
 0x128   : > { %v1232_v8 = vmul.f32 %v16476_v4, %v16471_v61  ;;  %v16484_v9 = vsel %vm1196_vm2, %v1193_v5, %v1197_v59  ;;  %v16491_v12 = vsel %vm1202_vm0, %v1199_v6, %v1203_v57  ;;  %v16497_v15 = vsel %vm1190_vm1, %v1187_v7, %v1191_v58  ;;  %v16576_v58 = vld [vmem:[#allocation2 + $0x8] sm:$0xff]  ;;  %v11021_v7 = vld [vmem:[#allocation5 + $0x80] sm:$0xf] }
 0x129   : > { %v1230_v10 = vmul.f32 %v16484_v9, %v16473_v2  ;;  %v1181_v16 = vsel %vm1178_vm4, %v1179_v13, %v1180_v3  ;;  %v1231_v18 = vmul.f32 %v16491_v12, %v16488_v11  ;;  %v1229_v19 = vmul.f32 %v16497_v15, %v16494_v14 }
 0x12a   : > { %1332 = vmatpush.xpose.msrb.mxu0 %v1232_v8  ;;  %v16508_v22 = vsel %vm1184_vm3, %v1181_v16, %v1185_v60  ;;  %v1175_v23 = vsel %vm1172_vm5, %v1173_v20, %v1174_v17  ;;  %v1169_v29 = vsel %vm1166_vm6, %v1167_v26, %v1168_v24  ;;  %v1225_v40 = vmul.f32 %v16538_v35, %v16532_v33  ;;  %v16581_v60 = vld [vmem:[#allocation2] sm:$0xff]  ;;  %v14133_v8 = vld [vmem:[#allocation5 + $0x88] sm:$0xf0]  ;;  %v10973_v26 = vld [vmem:[#allocation5 + $0x20] sm:$0xf] }
 0x12b   : > { %1295 = vmatpush.xpose.msra.mxu3 %v1230_v10  ;;  %v1228_v25 = vmul.f32 %v16508_v22, %v16505_v21  ;;  %v16519_v28 = vsel %vm1178_vm4, %v1175_v23, %v1179_v13  ;;  %v16529_v32 = vsel %vm1172_vm5, %v1169_v29, %v1173_v20  ;;  %v1223_v49 = vmul.f32 %v16476_v4, %v16544_v39  ;;  %v14136_v4 = vld [vmem:[#allocation5 + $0xa0] sm:$0xf0]  ;;  %v14130_v13 = vld [vmem:[#allocation5 + $0x70] sm:$0xf0]  ;;  %v10997_v17 = vld [vmem:[#allocation5 + $0x50] sm:$0xf] }
 0x12c   : > { %v1227_v30 = vmul.f32 %v16519_v28, %v16516_v27  ;;  %v1226_v34 = vmul.f32 %v16529_v32, %v16526_v31  ;;  %v1222_v55 = vmul.f32 %v16491_v12, %v16551_v42  ;;  %v1134_v57 = vadd.f32 %v1133_v53, %v988_v37  ;;  %v11009_v12 = vld [vmem:[#allocation5 + $0x68] sm:$0xf]  ;;  %v14124_v23 = vld [vmem:[#allocation5 + $0x40] sm:$0xf0] }
 0x12d   : > { %v1221_v59 = vmul.f32 %v16484_v9, %v16557_v46  ;;  %v1220_v62 = vmul.f32 %v16497_v15, %v16560_v48  ;;  %v11046_v3 = vor.u32 %v14139_v0, %v11045_v63  ;;  %v1219_v5 = vmul.f32 %v16508_v22, %v16565_v50  ;;  %v10985_v22 = vld [vmem:[#allocation5 + $0x38] sm:$0xf] }
 0x12e   : > { %1333 = vmatpush.xpose.msrb.mxu0 %v1231_v18  ;;  %v11034_v6 = vor.u32 %v14136_v4, %v11033_v1  ;;  %v1218_v9 = vmul.f32 %v16519_v28, %v16568_v52  ;;  %v11022_v10 = vor.u32 %v14133_v8, %v11021_v7  ;;  %v1217_v15 = vmul.f32 %v16529_v32, %v16573_v56  ;;  %v14127_v18 = vld [vmem:[#allocation5 + $0x58] sm:$0xf0]  ;;  %v14121_v28 = vld [vmem:[#allocation5 + $0x28] sm:$0xf0]  ;;  %v14118_v32 = vld [vmem:[#allocation5 + $0x10] sm:$0xf0] }
 0x12f   : > { %1296 = vmatpush.xpose.msra.mxu3 %v1229_v19  ;;  %1150 = vmatpush.bf16.msra.mxu2 %v11046_v3  ;;  %v11010_v16 = vor.u32 %v14130_v13, %v11009_v12  ;;  %v1216_v19 = vmul.f32 %v16538_v35, %v16576_v58  ;;  %v10998_v20 = vor.u32 %v14127_v18, %v10997_v17  ;;  %v990_v53 = vperm.slane %v16462_v51, 2 }
 0x130   : > { %v1215_v24 = vmul.f32 %v16465_v54, %v16581_v60  ;;  %v10974_v29 = vor.u32 %v14121_v28, %v10973_v26 }
 0x131   : > { %1334 = vmatmul.f32.vlgmr.msrb.gmra.mxu0 %v16548_v41 }
 0x132   : > { %1416 = vmatpush.msra.mxu0 %v16473_v2 }
 0x133   : > { %1297 = vmatpush.xpose.msra.mxu3 %v1228_v25  ;;  %1151 = vmatpush.bf16.msra.mxu2 %v11034_v6  ;;  %v10986_v25 = vor.u32 %v14124_v23, %v10985_v22 }
 0x134   : > { %1417 = vmatpush.msra.mxu0 %v16494_v14 }
 0x136   : > { %1418 = vmatpush.msra.mxu0 %v16505_v21 }
 0x137   : > { %1298 = vmatpush.xpose.msra.mxu3 %v1227_v30  ;;  %1152 = vmatpush.bf16.msra.mxu2 %v11022_v10  ;;  %v10961_v30 = vld [vmem:[#allocation5 + $0x8] sm:$0xf] }
 0x138   : > { %1419 = vmatpush.msra.mxu0 %v16516_v27 }
 0x139   : > { %1337 = vmatmul.f32.gmra.mxu0 %v1134_v57 }
 0x13a   : > { %1420 = vmatpush.msra.mxu0 %v16526_v31 }
 0x13b   : > { %1299 = vmatpush.xpose.msra.mxu3 %v1226_v34  ;;  %1153 = vmatpush.bf16.msra.mxu2 %v11010_v16  ;;  %v10962_v34 = vor.u32 %v14118_v32, %v10961_v30 }
 0x13c   : > { %1421 = vmatpush.msra.mxu0 %v16532_v33 }
 0x13e   : > { %1422 = vmatpush.msra.mxu0 %v16540_v36 }
 0x13f   : > { %1300 = vmatpush.xpose.msra.mxu3 %v1225_v40  ;;  %1154 = vmatpush.bf16.msra.mxu2 %v10998_v20 }
 0x140   : > { %1423 = vmatpush.msra.mxu0 %v16544_v39 }
 0x142   : > { %1424 = vmatpush.msra.mxu0 %v16551_v42 }
 0x143   : > { %1301 = vmatpush.xpose.msra.mxu3 %v1224_v43  ;;  %1155 = vmatpush.bf16.msra.mxu2 %v10986_v25 }
 0x144   : > { %1425 = vmatpush.msra.mxu0 %v16557_v46 }
 0x146   : > { %1426 = vmatpush.msra.mxu0 %v16560_v48 }
 0x147   : > { %1302 = vmatpush.xpose.msra.mxu3 %v1223_v49  ;;  %1156 = vmatpush.bf16.msra.mxu2 %v10974_v29 }
 0x148   : > { %1427 = vmatpush.msra.mxu0 %v16565_v50 }
 0x14a   : > { %1428 = vmatpush.msra.mxu0 %v16568_v52 }
 0x14b   : > { %1303 = vmatpush.xpose.msra.mxu3 %v1222_v55  ;;  %1157 = vmatpush.bf16.msra.mxu2 %v10962_v34 }
 0x14c   : > { %1429 = vmatpush.msra.mxu0 %v16573_v56 }
 0x14e   : > { %1430 = vmatpush.msra.mxu0 %v16576_v58  ;;  %1158 = vmatmul.bf16.vlgmr.msra.gmra.mxu2 %v16458_v47 }
 0x14f   : > { %1304 = vmatpush.xpose.msra.mxu3 %v1221_v59 }
 0x150   : > { %1431 = vmatpush.msra.mxu0 %v16581_v60 }
 0x153   : > { %1305 = vmatpush.xpose.msra.mxu3 %v1220_v62 }
 0x157   : > { %1306 = vmatpush.xpose.msra.mxu3 %v1219_v5 }
 0x15b   : > { %1307 = vmatpush.xpose.msra.mxu3 %v1218_v9 }
 0x15f   : > { %1308 = vmatpush.xpose.msra.mxu3 %v1217_v15 }
 0x163   : > { %1309 = vmatpush.xpose.msra.mxu3 %v1216_v19 }
 0x167   : > { %1310 = vmatpush.xpose.msra.mxu3 %v1215_v24 }
 0x16a   : > { %1311 = vmatmul.f32.vlgmr.msra.gmra.mxu3 %v16548_v41 }
 0x172   : > { %1314 = vmatmul.f32.gmra.mxu3 %v1134_v57 }
 0x1ae   : > { %v16598_v35 = vpop.f32.mrf.mxu0 }
 0x1af   : > { %v1342_v37 = vsel %vm1341_vm7, %v16598_v35, -inf }
 0x1b6   : > { %v16605_v40 = vpop.f32.mrf.mxu0 }
 0x1b7   : > { %v1348_v47 = vsel %vm1347_vm8, %v16605_v40, -inf }
 0x1d1   : > { %v1159_v55 = vpop.f32.mrf.mxu2 }
 0x1d2   : > { %v16614_v57 = vadd.f32 %v1159_v55, %v990_v53 }
 0x1d4   : > { %v1255_v62 = vrot.slane %v16614_v57, 3  ;;  %v1250_v0 = vrot.slane %v16614_v57, 4  ;;  %v1245_v1 = vrot.slane %v16614_v57, 5  ;;  %v1240_v3 = vrot.slane %v16614_v57, 6 }
 0x1d5   : > { %v1260_v4 = vrot.slane %v16614_v57, 2  ;;  %v1235_v8 = vrot.slane %v16614_v57, 7  ;;  %v1265_v23 = vrot.slane %v16614_v57, 1 }
 0x1d9   : > { %v1161_v59 = vpop.f32.mrf.mxu2 }
 0x1da   : > { %v1162_v63 = vadd.f32 %v1161_v59, %v990_v53 }
 0x1dc   : > { %v1256_v5 = vrot.slane %v1162_v63, 3  ;;  %v1251_v6 = vrot.slane %v1162_v63, 4  ;;  %v1246_v7 = vrot.slane %v1162_v63, 5  ;;  %v1241_v51 = vrot.slane %v1162_v63, 6 }
 0x1dd   : > { %v1236_v9 = vrot.slane %v1162_v63, 7  ;;  %v1261_v10 = vrot.slane %v1162_v63, 2  ;;  %v1266_v24 = vrot.slane %v1162_v63, 1  ;;  %v1270_v34 = vsel %vm1166_vm6, %v1162_v63, %v1235_v8 }
 0x1de   : > { %v1257_v12 = vsel %vm1190_vm1, %v1255_v62, %v1256_v5  ;;  %v1252_v13 = vsel %vm1184_vm3, %v1250_v0, %v1251_v6  ;;  %v1247_v15 = vsel %vm1178_vm4, %v1245_v1, %v1246_v7  ;;  %v1242_v16 = vsel %vm1172_vm5, %v1240_v3, %v1241_v51  ;;  %v14141_v5 = vld [vmem:[#allocation8 + $0x8] sm:$0xff]  ;;  %v14140_v6 = vld [vmem:[#allocation8] sm:$0xff] }
 0x1df   : > { %v1275_v17 = vsel %vm1196_vm2, %v1257_v12, %v1260_v4  ;;  %v1274_v18 = vsel %vm1190_vm1, %v1252_v13, %v1255_v62  ;;  %v1273_v19 = vsel %vm1184_vm3, %v1247_v15, %v1250_v0  ;;  %v1272_v25 = vsel %vm1178_vm4, %v1242_v16, %v1245_v1  ;;  %v14144_v0 = vld [vmem:[#allocation8 + $0x20] sm:$0xff]  ;;  %v14143_v1 = vld [vmem:[#allocation8 + $0x18] sm:$0xff] }
 0x1e0   : > { %v1292_v20 = vmul.f32 %v1275_v17, %v16473_v2  ;;  %v1291_v22 = vmul.f32 %v1274_v18, %v16494_v14  ;;  %v1237_v26 = vsel %vm1166_vm6, %v1235_v8, %v1236_v9  ;;  %v1262_v28 = vsel %vm1196_vm2, %v1260_v4, %v1261_v10  ;;  %v14142_v4 = vld [vmem:[#allocation8 + $0x10] sm:$0xff] }
 0x1e1   : > { %v1290_v29 = vmul.f32 %v1273_v19, %v16505_v21  ;;  %v1271_v30 = vsel %vm1172_vm5, %v1237_v26, %v1240_v3  ;;  %v1289_v32 = vmul.f32 %v1272_v25, %v16516_v27  ;;  %v1267_v2 = vsel %vm1202_vm0, %v1265_v23, %v1266_v24  ;;  %v15145_v26 = vld [vmem:[#allocation10] ss:$0 sm:$0xff] }
 0x1e2   : > { %1370 = vmatpush.msrb.mxu1 %v1292_v20  ;;  %v1276_v14 = vsel %vm1202_vm0, %v1262_v28, %v1265_v23  ;;  %v1287_v21 = vmul.f32 %v1270_v34, %v16532_v33  ;;  %v1286_v27 = vmul.f32 %v16614_v57, %v16540_v36  ;;  %v1282_v33 = vmul.f32 %v1274_v18, %v16560_v48 }
 0x1e3   : > { %v1281_v53 = vmul.f32 %v1273_v19, %v16565_v50  ;;  %v1279_v36 = vmul.f32 %v1271_v30, %v16573_v56 }
 0x1e4   : > { %1371 = vmatpush.msrb.mxu1 %v1291_v22 }
 0x1e6   : > { %1372 = vmatpush.msrb.mxu1 %v1290_v29 }
 0x1e8   : > { %1373 = vmatpush.msrb.mxu1 %v1289_v32 }
 0x1ed   : > { %v16600_v54 = vpop.f32.mrf.mxu3 }
 0x1ee   : > { %v1343_v38 = vmax.f32 %v16600_v54, %v1342_v37  ;;  %v1294_v37 = vmul.f32 %v1267_v2, %v16471_v61 }
 0x1f0   : > { %1344 = vmax.xlane.f32.xlu0 %v1343_v38  ;;  %v1293_v38 = vmul.f32 %v1276_v14, %v16488_v11  ;;  %1407 = vmatpush.msrb.mxu2 %v1294_v37 }
 0x1f2   : > { %1408 = vmatpush.msrb.mxu2 %v1293_v38 }
 0x1f4   : > { %1453 = vmatpush.msra.mxu2 %v16471_v61  ;;  %v1280_v61 = vmul.f32 %v1272_v25, %v16568_v52 }
 0x1f5   : > { %v16607_v41 = vpop.f32.mrf.mxu3 }
 0x1f6   : > { %v1346_v43 = vsel %vm1166_vm6, %v16607_v41, -inf  ;;  %1454 = vmatpush.msra.mxu2 %v16488_v11  ;;  %v1278_v11 = vmul.f32 %v1270_v34, %v16576_v58  ;;  %v16108_v34 = vmov 128.0  }
 0x1f7   : > { %v1349_v49 = vmax.f32 %v1346_v43, %v1348_v47  ;;  %v1288_v43 = vmul.f32 %v1271_v30, %v16526_v31  ;;  %v1285_v47 = vmul.f32 %v1267_v2, %v16544_v39  ;;  %v1283_v31 = vmul.f32 %v1275_v17, %v16557_v46 }
 0x1f8   : > { %v1277_v39 = vmul.f32 %v16614_v57, %v16581_v60  ;;  %v14145_v57 = vld [vmem:[#allocation8 + $0x28] sm:$0xff] }
 0x1f9   : > { %1350 = vmax.xlane.f32.xlu0 %v1349_v49  ;;  %1374 = vmatpush.msrb.mxu1 %v1288_v43  ;;  %v1284_v49 = vmul.f32 %v1276_v14, %v16551_v42  ;;  %v11253_v43 = vld [vmem:[#allocation14 + $0x150] sm:$0xf] }
 0x1fb   : > { %1375 = vmatpush.msrb.mxu1 %v1287_v21  ;;  %v14193_v21 = vld [vmem:[#allocation14 + $0x164] sm:$0xf0] }
 0x1fd   : > { %1376 = vmatpush.msrb.mxu1 %v1286_v27  ;;  %v14190_v27 = vld [vmem:[#allocation14 + $0x154] sm:$0xf] }
 0x1ff   : > { %1377 = vmatpush.msrb.mxu1 %v1285_v47  ;;  %v11254_v47 = vor.u32 %v14193_v21, %v11253_v43  ;;  %v14179_v43 = vld [vmem:[#allocation14 + $0xfc] sm:$0xf]  ;;  %v11215_v21 = vld [vmem:[#allocation14 + $0x110] sm:$0xf0] }
 0x201   : > { %1378 = vmatpush.msrb.mxu1 %v1284_v49  ;;  %v11255_v49 = vld [vmem:[#allocation14 + $0x168] sm:$0xf0] }
 0x203   : > { %1379 = vmatpush.msrb.mxu1 %v1283_v31  ;;  %v11229_v31 = vld [vmem:[#allocation14 + $0x120] sm:$0xf] }
 0x205   : > { %1380 = vmatpush.msrb.mxu1 %v1282_v33  ;;  %v14187_v33 = vld [vmem:[#allocation14 + $0x134] sm:$0xf0] }
 0x207   : > { %1381 = vmatpush.msrb.mxu1 %v1281_v53  ;;  %v11258_v53 = vor.u32 %v14190_v27, %v11255_v49  ;;  %v11218_v27 = vor.u32 %v14179_v43, %v11215_v21  ;;  %v14157_v49 = vld [vmem:[#allocation14 + $0x44] sm:$0xf0]  ;;  %v14152_v43 = vld [vmem:[#allocation14 + $0x1c] sm:$0xf0]  ;;  %v14149_v21 = vld [vmem:[#allocation14 + $0xc] sm:$0xf] }
 0x209   : > { %1382 = vmatpush.msrb.mxu1 %v1280_v61  ;;  %v11231_v61 = vld [vmem:[#allocation14 + $0x138] sm:$0xf0]  ;;  %1929 = vmatpush.bf16.msrb.mxu3 %v11258_v53  ;;  %v11111_v53 = vld [vmem:[#allocation14 + $0x48] sm:$0xf0] }
 0x20b   : > { %1383 = vmatpush.msrb.mxu1 %v1279_v36  ;;  %v11230_v36 = vor.u32 %v14187_v33, %v11229_v31  ;;  %v14154_v31 = vld [vmem:[#allocation14 + $0x34] sm:$0xf] }
 0x20d   : > { %1384 = vmatpush.msrb.mxu1 %v1278_v11 }
 0x20f   : > { %1385 = vmatpush.msrb.mxu1 %v1277_v39 }
 0x263   : > { %v1345_v42 = vpop.xlane.xlu0 %1344 }
 0x264   : > { %v1352_v46 = vsub.f32 %v16600_v54, %v1345_v42  ;;  %v1353_v48 = vsub.f32 %v16598_v35, %v1345_v42 }
 0x266   : > { %v1356_v50 = vmul.f32 1.442695, %v1352_v46  ;;  %v1358_v55 = vmul.f32 1.442695, %v1353_v48 }
 0x268   : > { %15181 = vpow2.f32 %v1356_v50 }
 0x269   : > { %15183 = vpow2.f32 %v1358_v55 }
 0x26c   : > { %v1351_v52 = vpop.xlane.xlu0 %1350 }
 0x26d   : > { %v1354_v56 = vsub.f32 %v16607_v41, %v1351_v52  ;;  %v1355_v58 = vsub.f32 %v16605_v40, %v1351_v52  ;;  %v14147_v40 = vld [vmem:[#allocation8 + $0x38] sm:$0xff]  ;;  %v14146_v41 = vld [vmem:[#allocation8 + $0x30] sm:$0xff] }
 0x26e   : > { %v15182_v59 = vpop.eup %15181  ;;  %1535 = vmatpush.bf16.msra.mxu1 %v14147_v40 }
 0x26f   : > { %v15184_v62 = vpop.eup %15183  ;;  %v1360_v63 = vmul.f32 1.442695, %v1354_v56  ;;  %v1362_v60 = vmul.f32 1.442695, %v1355_v58  ;;  %1386 = vmatmul.f32.vlgmr.msrb.gmra.mxu1 %v15182_v59  ;;  %1432 = vmatmul.f32.vlgmr.msra.gmra.mxu0 %v15182_v59 }
 0x270   : > { %11047 = vmatmul.msk.f32.vlgmr.msrb.gmra.mxu2 %vm1341_vm7, %v15184_v62 }
 0x271   : > { %15185 = vpow2.f32 %v1360_v63  ;;  %1915 = vmatpush.bf16.msrb.mxu2 %v11254_v47  ;;  %v11109_v47 = vld [vmem:[#allocation14 + $0x30] sm:$0xf] }
 0x272   : > { %15187 = vpow2.f32 %v1362_v60  ;;  %1536 = vmatpush.bf16.msra.mxu1 %v14146_v41  ;;  %v11205_v60 = vld [vmem:[#allocation14 + $0xf0] sm:$0xf]  ;;  %v11207_v41 = vld [vmem:[#allocation14 + $0x108] sm:$0xf0]  ;;  %v11110_v33 = vor.u32 %v14157_v49, %v11109_v47 }
 0x275   : > { %1916 = vmatpush.bf16.msrb.mxu2 %v11230_v36  ;;  %v11114_v36 = vor.u32 %v14154_v31, %v11111_v53  ;;  %v14177_v53 = vld [vmem:[#allocation14 + $0xe4] sm:$0xf0] }
 0x276   : > { %1537 = vmatpush.bf16.msra.mxu1 %v14145_v57 }
 0x277   : > { %v15186_v35 = vpop.eup %15185 }
 0x278   : > { %v15188_v54 = vpop.eup %15187  ;;  %1389 = vmatmul.f32.gmra.mxu1 %v15186_v35  ;;  %1435 = vmatmul.f32.gmra.mxu0 %v15186_v35  ;;  %v14181_v35 = vld [vmem:[#allocation14 + $0x104] sm:$0xf0] }
 0x279   : > { %11048 = vmatmul.msk.f32.gmra.mxu2 %vm1341_vm7, %v15188_v54  ;;  %v11206_v40 = vor.u32 %v14181_v35, %v11205_v60 }
 0x27a   : > { %1538 = vmatpush.bf16.msra.mxu1 %v14144_v0  ;;  %v11181_v0 = vld [vmem:[#allocation14 + $0xc0] sm:$0xf] }
 0x27b   : > { %1917 = vmatpush.bf16.msrb.mxu2 %v11206_v40  ;;  %v11167_v40 = vld [vmem:[#allocation14 + $0xb0] sm:$0xf0] }
 0x27e   : > { %1539 = vmatpush.bf16.msra.mxu1 %v14143_v1  ;;  %v14175_v1 = vld [vmem:[#allocation14 + $0xd4] sm:$0xf0] }
 0x281   : > { %11049 = vmatmul.msk.f32.vlgmr.msra.gmra.mxu2 %vm1341_vm7, %v15184_v62 }
 0x282   : > { %1540 = vmatpush.bf16.msra.mxu1 %v14142_v4  ;;  %v11182_v4 = vor.u32 %v14175_v1, %v11181_v0  ;;  %v14195_v0 = vld [vmem:[#allocation14 + $0x174] sm:$0xf0]  ;;  %v14192_v1 = vld [vmem:[#allocation14 + $0x164] sm:$0xf] }
 0x284   : > { %1918 = vmatpush.bf16.msrb.mxu2 %v11182_v4 }
 0x286   : > { %1541 = vmatpush.bf16.msra.mxu1 %v14141_v5  ;;  %v11183_v5 = vld [vmem:[#allocation14 + $0xd8] sm:$0xf0] }
 0x289   : > { %11050 = vmatmul.msk.f32.gmra.mxu2 %vm1341_vm7, %v15188_v54  ;;  %v14178_v54 = vld [vmem:[#allocation14 + $0xf4] sm:$0xf] }
 0x28a   : > { %1542 = vmatpush.bf16.msra.mxu1 %v14140_v6  ;;  %v11210_v57 = vor.u32 %v14178_v54, %v11207_v41  ;;  %v11261_v6 = vld [vmem:[#allocation14 + $0x158] sm:$0xf]  ;;  %v14167_v54 = vld [vmem:[#allocation14 + $0x9c] sm:$0xf]  ;;  %v11269_v41 = vld [vmem:[#allocation14 + $0x160] sm:$0xf] }
 0x28b   : > { %v11270_v4 = vor.u32 %v14195_v0, %v11269_v41  ;;  %v11151_v41 = vld [vmem:[#allocation14 + $0x88] sm:$0xf0] }
 0x2ec   : > { %v1433_v51 = vpop.f32.mrf.mxu0  ;;  %v1387_v9 = vpop.f32.mrf.mxu1 }
 0x2f3   : > { %v1410_v3 = vpop.f32.mrf.mxu2 }
 0x2f4   : > { %v1411_v18 = vadd.f32 %v1410_v3, %v1387_v9  ;;  %v14172_v3 = vld [vmem:[#allocation14 + $0xc4] sm:$0xf]  ;;  %v14191_v9 = vld [vmem:[#allocation14 + $0x15c] sm:$0xf] }
 0x2f5   : > { %v1436_v12 = vpop.f32.mrf.mxu0  ;;  %v1390_v17 = vpop.f32.mrf.mxu1 }
 0x2fc   : > { %v1413_v7 = vpop.f32.mrf.mxu2 }
 0x2fd   : > { %v1414_v19 = vadd.f32 %v1413_v7, %v1390_v17  ;;  %v14194_v7 = vld [vmem:[#allocation14 + $0x16c] sm:$0xf0] }
 0x304   : > { %v1456_v8 = vpop.f32.mrf.mxu2 }
 0x305   : > { %v1457_v10 = vadd.f32 %v1456_v8, %v1433_v51  ;;  %v11186_v51 = vor.u32 %v14172_v3, %v11183_v5  ;;  %v11262_v8 = vor.u32 %v14194_v7, %v11261_v6  ;;  %v11271_v3 = vld [vmem:[#allocation14 + $0x178] sm:$0xf0]  ;;  %v11141_v7 = vld [vmem:[#allocation14 + $0x68] sm:$0xf] }
 0x306   : > { %v11274_v5 = vor.u32 %v14192_v1, %v11271_v3  ;;  %v11125_v3 = vld [vmem:[#allocation14 + $0x40] sm:$0xf] }
 0x307   : > { %15189 = vrcp.f32 %v1457_v10  ;;  %v11263_v10 = vld [vmem:[#allocation14 + $0x170] sm:$0xf0]  ;;  %1943 = vmatpush.bf16.msrb.mxu0 %v11262_v8  ;;  %v14161_v8 = vld [vmem:[#allocation14 + $0x6c] sm:$0xf] }
 0x30c   : > { %v1459_v13 = vpop.f32.mrf.mxu2 }
 0x30d   : > { %v1460_v15 = vadd.f32 %v1459_v13, %v1436_v12  ;;  %v15190_v16 = vpop.eup %15189  ;;  %v11266_v12 = vor.u32 %v14191_v9, %v11263_v10  ;;  %v11157_v13 = vld [vmem:[#allocation14 + $0x90] sm:$0xf] }
 0x30e   : > { %v1464_v22 = vmul.f32 %v15190_v16, %v1411_v18  ;;  %v14166_v16 = vld [vmem:[#allocation14 + $0x94] sm:$0xf]  ;;  %v11159_v18 = vld [vmem:[#allocation14 + $0xa8] sm:$0xf0] }
 0x30f   : > { %15191 = vrcp.f32 %v1460_v15  ;;  %v14169_v15 = vld [vmem:[#allocation14 + $0xa4] sm:$0xf0]  ;;  %1957 = vmatpush.bf16.msrb.mxu1 %v11266_v12  ;;  %v11143_v12 = vld [vmem:[#allocation14 + $0x80] sm:$0xf0] }
 0x310   : > { %15193 = vrcp.f32 %v16108_v34  ;;  %v11158_v17 = vor.u32 %v14169_v15, %v11157_v13  ;;  %v14182_v34 = vld [vmem:[#allocation14 + $0x10c] sm:$0xf0]  ;;  %v14189_v15 = vld [vmem:[#allocation14 + $0x144] sm:$0xf0] }
 0x311   : > { %v11245_v13 = vld [vmem:[#allocation14 + $0x130] sm:$0xf] }
 0x312   : > { %1919 = vmatpush.bf16.msrb.mxu2 %v11158_v17  ;;  %v11246_v17 = vor.u32 %v14189_v15, %v11245_v13  ;;  %v11101_v13 = vld [vmem:[#allocation14 + $0x10] sm:$0xf] }
 0x315   : > { %v15192_v20 = vpop.eup %15191 }
 0x316   : > { %v1465_v23 = vmul.f32 %v15192_v20, %v1414_v19  ;;  %v15194_v37 = vpop.eup %15193  ;;  %v11237_v19 = vld [vmem:[#allocation14 + $0x128] sm:$0xf]  ;;  %v14188_v20 = vld [vmem:[#allocation14 + $0x13c] sm:$0xf0] }
 0x317   : > { %v1559_v38 = vmul.f32 128.0, %v15194_v37  ;;  %vm1563_vm9 = vweird.f32 %v15194_v37 }
 0x318   : > { %v1466_v24 = vpack.c.bf16 %v1465_v23, %v1464_v22  ;;  %v11162_v22 = vor.u32 %v14166_v16, %v11159_v18  ;;  %v11238_v23 = vor.u32 %v14188_v20, %v11237_v19  ;;  %v11146_v16 = vor.u32 %v14161_v8, %v11143_v12  ;;  %v14186_v18 = vld [vmem:[#allocation14 + $0x134] sm:$0xf]  ;;  %v11247_v19 = vld [vmem:[#allocation14 + $0x148] sm:$0xf0] }
 0x319   : > { %v1560_v11 = vsub.f32 1.0, %v1559_v38 }
 0x31a   : > { %1543 = vmatmul.bf16.vlgmr.msra.gmra.mxu1 %v1466_v24  ;;  %v14185_v24 = vld [vmem:[#allocation14 + $0x12c] sm:$0xf]  ;;  %1944 = vmatpush.bf16.msrb.mxu0 %v11238_v23  ;;  %v11117_v23 = vld [vmem:[#allocation14 + $0x38] sm:$0xf] }
 0x31b   : > { %v1561_v39 = vmul.f32 %v15194_v37, %v1560_v11 }
 0x31d   : > { %v1562_v46 = vadd.f32 %v15194_v37, %v1561_v39  ;;  %v11191_v39 = vld [vmem:[#allocation14 + $0xe0] sm:$0xf0] }
 0x31f   : > { %v16670_v48 = vsel %vm1563_vm9, %v15194_v37, %v1562_v46  ;;  %v11085_v46 = vld [vmem:[#allocation14] sm:$0xf] }
 0x397   : > { %v1544_v25 = vpop.f32.mrf.mxu1 }
 0x398   : > { %v1545_v2 = vadd.f32 %v15145_v26, %v1544_v25  ;;  %v11239_v25 = vld [vmem:[#allocation14 + $0x140] sm:$0xf0] }
 0x39a   : > { %v1549_v14 = vadd.f32 %v1545_v2, %v16452_v44  ;;  %v11135_v2 = vld [vmem:[#allocation14 + $0x78] sm:$0xf0] }
 0x39f   : > { %v1546_v28 = vpop.f32.mrf.mxu1 }
 0x3a0   : > { %v1547_v29 = vadd.f32 %v15145_v26, %v1546_v28  ;;  %v11242_v26 = vor.u32 %v14185_v24, %v11239_v25  ;;  %v11133_v28 = vld [vmem:[#allocation14 + $0x60] sm:$0xf]  ;;  %v14158_v24 = vld [vmem:[#allocation14 + $0x4c] sm:$0xf0]  ;;  %v14155_v25 = vld [vmem:[#allocation14 + $0x3c] sm:$0xf] }
 0x3a2   : > { %v1550_v30 = vadd.f32 %v1547_v29, %v16454_v45  ;;  %v14184_v45 = vld [vmem:[#allocation14 + $0x124] sm:$0xf]  ;;  %v14163_v29 = vld [vmem:[#allocation14 + $0x74] sm:$0xf0]  ;;  %1958 = vmatpush.bf16.msrb.mxu1 %v11242_v26  ;;  %v11118_v26 = vor.u32 %v14158_v24, %v11117_v23  ;;  %v14211_v23 = vld [vmem:[#allocation17 + $0x78] sm:$0xff] }
 0x3a3   : > { %v11234_v44 = vor.u32 %v14184_v45, %v11231_v61  ;;  %v11189_v45 = vld [vmem:[#allocation14 + $0xc8] sm:$0xf]  ;;  %v14176_v61 = vld [vmem:[#allocation14 + $0xdc] sm:$0xf0] }
 0x3a4   : > { %v1555_v32 = vsel %vm1166_vm6, %v1550_v30, 0.0  ;;  %v11190_v11 = vor.u32 %v14176_v61, %v11189_v45  ;;  %v14174_v45 = vld [vmem:[#allocation14 + $0xd4] sm:$0xf] }
 0x3a5   : > { %1556 = vadd.xlane.f32.xlu1 %v1555_v32  ;;  %1930 = vmatpush.bf16.msrb.mxu3 %v11234_v44  ;;  %v11134_v32 = vor.u32 %v14163_v29, %v11133_v28  ;;  %v14173_v44 = vld [vmem:[#allocation14 + $0xcc] sm:$0xf]  ;;  %v11119_v28 = vld [vmem:[#allocation14 + $0x50] sm:$0xf0]  ;;  %v11221_v29 = vld [vmem:[#allocation14 + $0x100] sm:$0xf] }
 0x3a6   : > { %1959 = vmatpush.bf16.msrb.mxu1 %v11218_v27  ;;  %v11095_v27 = vld [vmem:[#allocation14 + $0x20] sm:$0xf0] }
 0x3a7   : > { %1920 = vmatpush.bf16.msrb.mxu2 %v11134_v32  ;;  %v11122_v32 = vor.u32 %v14155_v25, %v11119_v28  ;;  %v11098_v31 = vor.u32 %v14149_v21, %v11095_v27 }
 0x3a9   : > { %1931 = vmatpush.bf16.msrb.mxu3 %v11210_v57  ;;  %v11170_v57 = vor.u32 %v14167_v54, %v11167_v40  ;;  %v14165_v54 = vld [vmem:[#allocation14 + $0x84] sm:$0xf0]  ;;  %v14162_v40 = vld [vmem:[#allocation14 + $0x74] sm:$0xf] }
 0x3aa   : > { %v11154_v1 = vor.u32 %v14162_v40, %v11151_v41  ;;  %v14196_v40 = vld [vmem:[#allocation17] sm:$0xff] }
 0x3ab   : > { %1921 = vmatpush.bf16.msrb.mxu2 %v11110_v33  ;;  %v11197_v33 = vld [vmem:[#allocation14 + $0xd0] sm:$0xf]  ;;  %v14204_v41 = vld [vmem:[#allocation17 + $0x40] sm:$0xff] }
 0x3ad   : > { %1553 = vadd.xlane.f32.xlu1 %v1549_v14  ;;  %1932 = vmatpush.bf16.msrb.mxu3 %v11186_v51  ;;  %v14164_v51 = vld [vmem:[#allocation14 + $0x7c] sm:$0xf0] }
 0x3ae   : > { %v11142_v10 = vor.u32 %v14164_v51, %v11141_v7  ;;  %v11127_v7 = vld [vmem:[#allocation14 + $0x58] sm:$0xf0] }
 0x3b1   : > { %1933 = vmatpush.bf16.msrb.mxu3 %v11162_v22  ;;  %v11250_v22 = vor.u32 %v14186_v18, %v11247_v19  ;;  %v11103_v18 = vld [vmem:[#allocation14 + $0x28] sm:$0xf0] }
 0x418   : > { %v1557_v42 = vpop.xlane.xlu1 %1556 }
 0x419   : > { %v1566_v52 = vmul.f32 %v16670_v48, %v1557_v42  ;;  %v11194_v42 = vor.u32 %v14173_v44, %v11191_v39  ;;  %v11173_v44 = vld [vmem:[#allocation14 + $0xa0] sm:$0xf] }
 0x41b   : > { %v16678_v59 = vsub.f32 %v1550_v30, %v1566_v52  ;;  %v14160_v30 = vld [vmem:[#allocation14 + $0x64] sm:$0xf]  ;;  %1960 = vmatpush.bf16.msrb.mxu1 %v11194_v42  ;;  %v14171_v42 = vld [vmem:[#allocation14 + $0xb4] sm:$0xf0] }
 0x41c   : > { %v11138_v37 = vor.u32 %v14160_v30, %v11135_v2  ;;  %v14183_v30 = vld [vmem:[#allocation14 + $0x114] sm:$0xf0] }
 0x41d   : > { %v1570_v62 = vmul.f32 %v16678_v59, %v16678_v59  ;;  %v11222_v2 = vor.u32 %v14183_v30, %v11221_v29  ;;  %v14210_v30 = vld [vmem:[#allocation17 + $0x70] sm:$0xff] }
 0x41e   : > { %1934 = vmatpush.bf16.msrb.mxu3 %v11138_v37  ;;  %v11093_v37 = vld [vmem:[#allocation14 + $0x8] sm:$0xf] }
 0x41f   : > { %v1573_v63 = vsel %vm1166_vm6, %v1570_v62, 0.0  ;;  %v11165_v62 = vld [vmem:[#allocation14 + $0x98] sm:$0xf]  ;;  %1961 = vmatpush.bf16.msrb.mxu1 %v11170_v57  ;;  %v11094_v49 = vor.u32 %v14152_v43, %v11093_v37  ;;  %v14201_v37 = vld [vmem:[#allocation17 + $0x28] sm:$0xff] }
 0x420   : > { %v1554_v50 = vpop.xlane.xlu1 %1553  ;;  %v15147_v43 = vld [vmem:[#allocation13] ss:$0 sm:$0xff] }
 0x421   : > { %v1565_v55 = vmul.f32 %v16670_v48, %v1554_v50  ;;  %v14151_v50 = vld [vmem:[#allocation14 + $0x14] sm:$0xf0] }
 0x422   : > { %1935 = vmatpush.bf16.msrb.mxu3 %v11114_v36  ;;  %v11086_v52 = vor.u32 %v14151_v50, %v11085_v46  ;;  %v11198_v36 = vor.u32 %v14177_v53, %v11197_v33  ;;  %v14168_v46 = vld [vmem:[#allocation14 + $0xa4] sm:$0xf]  ;;  %v11175_v50 = vld [vmem:[#allocation14 + $0xb8] sm:$0xf0] }
 0x423   : > { %v16674_v56 = vsub.f32 %v1549_v14, %v1565_v55  ;;  %v11213_v14 = vld [vmem:[#allocation14 + $0xf8] sm:$0xf]  ;;  %v14148_v55 = vld [vmem:[#allocation14 + $0x4] sm:$0xf]  ;;  %1962 = vmatpush.bf16.msrb.mxu1 %v11146_v16  ;;  %v14153_v16 = vld [vmem:[#allocation14 + $0x24] sm:$0xf0] }
 0x424   : > { %v11214_v38 = vor.u32 %v14182_v34, %v11213_v14  ;;  %1922 = vmatpush.bf16.msrb.mxu2 %v11086_v52  ;;  %v14180_v14 = vld [vmem:[#allocation14 + $0x104] sm:$0xf]  ;;  %v11223_v34 = vld [vmem:[#allocation14 + $0x118] sm:$0xf0] }
 0x425   : > { %v1569_v58 = vmul.f32 %v16674_v56, %v16674_v56 }
 0x426   : > { %1945 = vmatpush.bf16.msrb.mxu0 %v11214_v38  ;;  %v11226_v38 = vor.u32 %v14180_v14, %v11223_v34 }
 0x427   : > { %1571 = vadd.xlane.f32.xlu2 %v1569_v58  ;;  %v11087_v58 = vld [vmem:[#allocation14 + $0x18] sm:$0xf0]  ;;  %1963 = vmatpush.bf16.msrb.mxu1 %v11122_v32  ;;  %v15146_v32 = vld [vmem:[#allocation11] ss:$0 sm:$0xff] }
 0x428   : > { %v11090_v60 = vor.u32 %v14148_v55, %v11087_v58  ;;  %1971 = vmatpush.bf16.msra.mxu2 %v11270_v4  ;;  %v14159_v4 = vld [vmem:[#allocation14 + $0x54] sm:$0xf0] }
 0x42a   : > { %1946 = vmatpush.bf16.msrb.mxu0 %v11190_v11  ;;  %1936 = vmatpush.bf16.msrb.mxu3 %v11090_v60  ;;  %v11199_v11 = vld [vmem:[#allocation14 + $0xe8] sm:$0xf0]  ;;  %v11149_v60 = vld [vmem:[#allocation14 + $0x70] sm:$0xf] }
 0x42b   : > { %v11202_v39 = vor.u32 %v14174_v45, %v11199_v11  ;;  %1964 = vmatpush.bf16.msrb.mxu1 %v11098_v31  ;;  %v11150_v0 = vor.u32 %v14165_v54, %v11149_v60  ;;  %v14208_v31 = vld [vmem:[#allocation17 + $0x60] sm:$0xff]  ;;  %v14219_v45 = vld [vmem:[#allocation17 + $0xb8] sm:$0xff]  ;;  %v14205_v60 = vld [vmem:[#allocation17 + $0x48] sm:$0xff] }
 0x42c   : > { %1972 = vmatpush.bf16.msra.mxu2 %v11246_v17  ;;  %v14150_v17 = vld [vmem:[#allocation14 + $0x14] sm:$0xf]  ;;  %v14207_v11 = vld [vmem:[#allocation17 + $0x58] sm:$0xff] }
 0x42d   : > { %v11106_v28 = vor.u32 %v14150_v17, %v11103_v18  ;;  %v14222_v54 = vld [vmem:[#allocation17 + $0xd0] sm:$0xff]  ;;  %v1661_v17 = vld [vmem:[#allocation16] sm:$0x3f] }
 0x42e   : > { %1985 = vmatpush.bf16.msra.mxu3 %v11274_v5 }
 0x42f   : > { %1574 = vadd.xlane.f32.xlu2 %v1573_v63  ;;  %v14170_v63 = vld [vmem:[#allocation14 + $0xac] sm:$0xf0]  ;;  %2419 = vmatpush.bf16.msra.mxu1 %v14211_v23 }
 0x430   : > { %v11166_v35 = vor.u32 %v14170_v63, %v11165_v62  ;;  %1973 = vmatpush.bf16.msra.mxu2 %v11222_v2  ;;  %v11174_v62 = vor.u32 %v14171_v42, %v11173_v44  ;;  %v11178_v63 = vor.u32 %v14168_v46, %v11175_v50  ;;  %v14226_v44 = vld [vmem:[#allocation17 + $0xf0] sm:$0xff]  ;;  %v14217_v46 = vld [vmem:[#allocation17 + $0xa8] sm:$0xff] }
 0x431   : > { %v14206_v42 = vld [vmem:[#allocation17 + $0x50] sm:$0xff]  ;;  %v14225_v50 = vld [vmem:[#allocation17 + $0xe8] sm:$0xff] }
 0x432   : > { %1947 = vmatpush.bf16.msrb.mxu0 %v11166_v35  ;;  %1986 = vmatpush.bf16.msra.mxu3 %v11250_v22  ;;  %v14203_v22 = vld [vmem:[#allocation17 + $0x38] sm:$0xff]  ;;  %v14237_v23 = vld [vmem:[#allocation17 + $0x148] sm:$0xff] }
 0x433   : > { %2420 = vmatpush.bf16.msra.mxu1 %v14210_v30 }
 0x434   : > { %1974 = vmatpush.bf16.msra.mxu2 %v11198_v36  ;;  %v14199_v36 = vld [vmem:[#allocation17 + $0x18] sm:$0xff] }
 0x436   : > { %1948 = vmatpush.bf16.msrb.mxu0 %v11142_v10  ;;  %1987 = vmatpush.bf16.msra.mxu3 %v11226_v38  ;;  %v11126_v10 = vor.u32 %v14159_v4, %v11125_v3  ;;  %v14209_v38 = vld [vmem:[#allocation17 + $0x68] sm:$0xff]  ;;  %v14234_v4 = vld [vmem:[#allocation17 + $0x130] sm:$0xff] }
 0x437   : > { %2421 = vmatpush.bf16.msra.mxu1 %v14209_v38  ;;  %v14221_v3 = vld [vmem:[#allocation17 + $0xc8] sm:$0xff] }
 0x438   : > { %1975 = vmatpush.bf16.msra.mxu2 %v11174_v62  ;;  %v14223_v62 = vld [vmem:[#allocation17 + $0xd8] sm:$0xff] }
 0x43a   : > { %1949 = vmatpush.bf16.msrb.mxu0 %v11118_v26  ;;  %1988 = vmatpush.bf16.msra.mxu3 %v11202_v39  ;;  %v11102_v26 = vor.u32 %v14153_v16, %v11101_v13  ;;  %v14198_v39 = vld [vmem:[#allocation17 + $0x10] sm:$0xff]  ;;  %v14239_v13 = vld [vmem:[#allocation17 + $0x158] sm:$0xff] }
 0x43b   : > { %2422 = vmatpush.bf16.msra.mxu1 %v14208_v31  ;;  %v14238_v16 = vld [vmem:[#allocation17 + $0x150] sm:$0xff] }
 0x43c   : > { %1976 = vmatpush.bf16.msra.mxu2 %v11150_v0  ;;  %v14243_v0 = vld [vmem:[#allocation17 + $0x178] sm:$0xff] }
 0x43e   : > { %1950 = vmatpush.bf16.msrb.mxu0 %v11094_v49  ;;  %1989 = vmatpush.bf16.msra.mxu3 %v11178_v63  ;;  %v14200_v49 = vld [vmem:[#allocation17 + $0x20] sm:$0xff]  ;;  %v14197_v63 = vld [vmem:[#allocation17 + $0x8] sm:$0xff] }
 0x43f   : > { %2423 = vmatpush.bf16.msra.mxu1 %v14207_v11 }
 0x440   : > { %1977 = vmatpush.bf16.msra.mxu2 %v11126_v10  ;;  %v14240_v10 = vld [vmem:[#allocation17 + $0x160] sm:$0xff] }
 0x442   : > { %1990 = vmatpush.bf16.msra.mxu3 %v11154_v1  ;;  %2405 = vmatpush.bf16.msra.mxu0 %v14203_v22  ;;  %v14213_v1 = vld [vmem:[#allocation17 + $0x88] sm:$0xff] }
 0x443   : > { %2424 = vmatpush.bf16.msra.mxu1 %v14206_v42  ;;  %v14229_v22 = vld [vmem:[#allocation17 + $0x108] sm:$0xff] }
 0x444   : > { %1978 = vmatpush.bf16.msra.mxu2 %v11102_v26  ;;  %v14228_v26 = vld [vmem:[#allocation17 + $0x100] sm:$0xff] }
 0x447   : > { %2425 = vmatpush.bf16.msra.mxu1 %v14205_v60  ;;  %v1668_v60 = vperm.slane %v1661_v17, 5 }
 0x44b   : > { %2426 = vmatpush.bf16.msra.mxu1 %v14204_v41 }
 0x49a   : > { %v1572_v6 = vpop.xlane.xlu2 %1571 }
 0x49b   : > { %v1576_v9 = vmul.f32 %v1572_v6, %v16670_v48  ;;  %v14156_v6 = vld [vmem:[#allocation14 + $0x44] sm:$0xf] }
 0x49c   : > { %v11130_v12 = vor.u32 %v14156_v6, %v11127_v7  ;;  %v14212_v6 = vld [vmem:[#allocation17 + $0x80] sm:$0xff] }
 0x49d   : > { %v16684_v20 = vadd.f32 1e-05, %v1576_v9  ;;  %v14220_v7 = vld [vmem:[#allocation17 + $0xc0] sm:$0xff] }
 0x49e   : > { %1991 = vmatpush.bf16.msra.mxu3 %v11130_v12  ;;  %v14231_v12 = vld [vmem:[#allocation17 + $0x118] sm:$0xff] }
 0x49f   : > { %15195 = vrsqrt.f32 %v16684_v20  ;;  %vm1586_vm11 = vweird.f32 %v16684_v20 }
 0x4a2   : > { %v1575_v47 = vpop.xlane.xlu2 %1574  ;;  %1992 = vmatpush.bf16.msra.mxu3 %v11106_v28  ;;  %v14236_v28 = vld [vmem:[#allocation17 + $0x140] sm:$0xff] }
 0x4a3   : > { %v1577_v61 = vmul.f32 %v1575_v47, %v16670_v48 }
 0x4a5   : > { %v15196_v55 = vpop.eup %15195  ;;  %v1579_v52 = vadd.f32 1e-05, %v1577_v61  ;;  %v14227_v61 = vld [vmem:[#allocation17 + $0xf8] sm:$0xff] }
 0x4a6   : > { %v1581_v58 = vmul.f32 %v15196_v55, %v16684_v20  ;;  %vm1587_vm10 = vweird.f32 %v15196_v55  ;;  %v14202_v20 = vld [vmem:[#allocation17 + $0x30] sm:$0xff] }
 0x4a7   : > { %15197 = vrsqrt.f32 %v1579_v52  ;;  %vm16690_vm12 = vmor %vm1586_vm11, %vm1587_vm10  ;;  %vm1596_vm14 = vweird.f32 %v1579_v52  ;;  %2406 = vmatpush.bf16.msra.mxu0 %v14202_v20 }
 0x4a8   : > { %v1582_v35 = vmul.f32 %v15196_v55, %v1581_v58  ;;  %v14215_v58 = vld [vmem:[#allocation17 + $0x98] sm:$0xff] }
 0x4aa   : > { %v1583_v57 = vmul.f32 0.5, %v1582_v35  ;;  %v14214_v35 = vld [vmem:[#allocation17 + $0x90] sm:$0xff] }
 0x4ab   : > { %2407 = vmatpush.bf16.msra.mxu0 %v14201_v37 }
 0x4ac   : > { %v1584_v5 = vsub.f32 1.5, %v1583_v57  ;;  %v14235_v57 = vld [vmem:[#allocation17 + $0x138] sm:$0xff] }
 0x4ad   : > { %v15198_v51 = vpop.eup %15197 }
 0x4ae   : > { %v1585_v8 = vmul.f32 %v15196_v55, %v1584_v5  ;;  %v1591_v9 = vmul.f32 %v15198_v51, %v1579_v52  ;;  %vm1597_vm13 = vweird.f32 %v15198_v51  ;;  %v14224_v52 = vld [vmem:[#allocation17 + $0xe0] sm:$0xff]  ;;  %v14242_v5 = vld [vmem:[#allocation17 + $0x170] sm:$0xff] }
 0x4af   : > { %vm1598_vm15 = vmor %vm1596_vm14, %vm1597_vm13  ;;  %2408 = vmatpush.bf16.msra.mxu0 %v14200_v49 }
 0x4b0   : > { %v1592_v15 = vmul.f32 %v15198_v51, %v1591_v9  ;;  %v1589_v24 = vsel %vm16690_vm12, %v15196_v55, %v1585_v8  ;;  %v14216_v55 = vld [vmem:[#allocation17 + $0xa0] sm:$0xff]  ;;  %v14241_v8 = vld [vmem:[#allocation17 + $0x168] sm:$0xff] }
 0x4b1   : > { %v1600_v2 = vmul.f32 %v1589_v24, %v16674_v56  ;;  %v14232_v9 = vld [vmem:[#allocation17 + $0x120] sm:$0xff]  ;;  %v1665_v24 = vperm.slane %v1661_v17, 2 }
 0x4b2   : > { %v1593_v25 = vmul.f32 0.5, %v1592_v15  ;;  %v14230_v15 = vld [vmem:[#allocation17 + $0x110] sm:$0xff] }
 0x4b3   : > { %v1605_v21 = vmul.f32 %v15146_v32, %v1600_v2  ;;  %2409 = vmatpush.bf16.msra.mxu0 %v14199_v36  ;;  %v1663_v2 = vperm.slane %v1661_v17, 0 }
 0x4b4   : > { %v1594_v29 = vsub.f32 1.5, %v1593_v25  ;;  %v1666_v25 = vperm.slane %v1661_v17, 3 }
 0x4b5   : > { %v16698_v56 = vadd.f32 %v15147_v43, %v1605_v21 }
 0x4b6   : > { %v1595_v14 = vmul.f32 %v15198_v51, %v1594_v29 }
 0x4b7   : > { %2410 = vmatpush.bf16.msra.mxu0 %v14198_v39 }
 0x4b8   : > { %v1599_v34 = vsel %vm1598_vm15, %v15198_v51, %v1595_v14  ;;  %v14233_v51 = vld [vmem:[#allocation17 + $0x128] sm:$0xff]  ;;  %v1664_v14 = vperm.slane %v1661_v17, 1 }
 0x4b9   : > { %v1601_v27 = vmul.f32 %v1599_v34, %v16678_v59  ;;  %v14218_v59 = vld [vmem:[#allocation17 + $0xb0] sm:$0xff] }
 0x4bb   : > { %v1606_v47 = vmul.f32 %v15146_v32, %v1601_v27  ;;  %2411 = vmatpush.bf16.msra.mxu0 %v14197_v63  ;;  %v1667_v63 = vperm.slane %v1661_v17, 4 }
 0x4bd   : > { %v16700_v33 = vadd.f32 %v15147_v43, %v1606_v47 }
 0x4bf   : > { %v1612_v53 = vpack.c.bf16 %v16700_v33, %v16698_v56  ;;  %2412 = vmatpush.bf16.msra.mxu0 %v14196_v40 }
 0x4c1   : > { %1923 = vmatmul.bf16.vlgmr.msrb.gmra.mxu2 %v1612_v53  ;;  %1937 = vmatmul.bf16.vlgmr.msrb.gmra.mxu3 %v1612_v53 }
 0x4c2   : > { %1951 = vmatmul.bf16.vlgmr.msrb.gmra.mxu0 %v1612_v53  ;;  %1965 = vmatmul.bf16.vlgmr.msrb.gmra.mxu1 %v1612_v53 }
 0x4c3   : > { %2433 = vmatpush.bf16.msrb.mxu2 %v14219_v45  ;;  %2447 = vmatpush.bf16.msrb.mxu3 %v14227_v61 }
 0x4c4   : > { %2461 = vmatpush.bf16.msrb.mxu0 %v14235_v57  ;;  %2475 = vmatpush.bf16.msrb.mxu1 %v14243_v0 }
 0x4c7   : > { %2434 = vmatpush.bf16.msrb.mxu2 %v14218_v59  ;;  %2448 = vmatpush.bf16.msrb.mxu3 %v14226_v44 }
 0x4c8   : > { %2462 = vmatpush.bf16.msrb.mxu0 %v14234_v4  ;;  %2476 = vmatpush.bf16.msrb.mxu1 %v14242_v5 }
 0x4cb   : > { %2435 = vmatpush.bf16.msrb.mxu2 %v14217_v46  ;;  %2449 = vmatpush.bf16.msrb.mxu3 %v14225_v50 }
 0x4cc   : > { %2463 = vmatpush.bf16.msrb.mxu0 %v14233_v51  ;;  %2477 = vmatpush.bf16.msrb.mxu1 %v14241_v8  ;;  %v15148_v51 = vld [vmem:[#allocation19] ss:$0 sm:$0xff] }
 0x4cf   : > { %2436 = vmatpush.bf16.msrb.mxu2 %v14216_v55  ;;  %2450 = vmatpush.bf16.msrb.mxu3 %v14224_v52 }
 0x4d0   : > { %2464 = vmatpush.bf16.msrb.mxu0 %v14232_v9  ;;  %2478 = vmatpush.bf16.msrb.mxu1 %v14240_v10 }
 0x4d1   : > { %1979 = vmatmul.bf16.vlgmr.msra.gmra.mxu2 %v1612_v53  ;;  %1993 = vmatmul.bf16.vlgmr.msra.gmra.mxu3 %v1612_v53 }
 0x4d3   : > { %2437 = vmatpush.bf16.msrb.mxu2 %v14215_v58  ;;  %2451 = vmatpush.bf16.msrb.mxu3 %v14223_v62 }
 0x4d4   : > { %2465 = vmatpush.bf16.msrb.mxu0 %v14231_v12  ;;  %2479 = vmatpush.bf16.msrb.mxu1 %v14239_v13 }
 0x4d7   : > { %2438 = vmatpush.bf16.msrb.mxu2 %v14214_v35  ;;  %2452 = vmatpush.bf16.msrb.mxu3 %v14222_v54 }
 0x4d8   : > { %2466 = vmatpush.bf16.msrb.mxu0 %v14230_v15  ;;  %2480 = vmatpush.bf16.msrb.mxu1 %v14238_v16 }
 0x4db   : > { %2439 = vmatpush.bf16.msrb.mxu2 %v14213_v1  ;;  %2453 = vmatpush.bf16.msrb.mxu3 %v14221_v3 }
 0x4dc   : > { %2467 = vmatpush.bf16.msrb.mxu0 %v14229_v22  ;;  %2481 = vmatpush.bf16.msrb.mxu1 %v14237_v23 }
 0x4df   : > { %2440 = vmatpush.bf16.msrb.mxu2 %v14212_v6  ;;  %2454 = vmatpush.bf16.msrb.mxu3 %v14220_v7 }
 0x4e0   : > { %2468 = vmatpush.bf16.msrb.mxu0 %v14228_v26  ;;  %2482 = vmatpush.bf16.msrb.mxu1 %v14236_v28 }
 0x53f   : > { %v1952_v18 = vpop.f32.mrf.mxu0  ;;  %v1966_v19 = vpop.f32.mrf.mxu1 }
 0x540   : > { %v1953_v30 = vadd.f32 %v1952_v18, %v1665_v24  ;;  %v1967_v32 = vadd.f32 %v1966_v19, %v1666_v25 }
 0x542   : > { %v2001_v21 = vmax.f32 %v1953_v30, 0.0  ;;  %v2002_v27 = vmax.f32 %v1967_v32, 0.0 }
 0x544   : > { %v1924_v29 = vpop.f32.mrf.mxu2  ;;  %v1938_v20 = vpop.f32.mrf.mxu3 }
 0x545   : > { %v1925_v31 = vadd.f32 %v1924_v29, %v1663_v2  ;;  %v1939_v53 = vadd.f32 %v1938_v20, %v1664_v14 }
 0x547   : > { %v1954_v34 = vpop.f32.mrf.mxu0  ;;  %v1968_v37 = vpop.f32.mrf.mxu1  ;;  %v1999_v39 = vmax.f32 %v1925_v31, 0.0  ;;  %v2000_v42 = vmax.f32 %v1939_v53, 0.0 }
 0x548   : > { %v1955_v38 = vadd.f32 %v1954_v34, %v1665_v24  ;;  %v1969_v43 = vadd.f32 %v1968_v37, %v1666_v25 }
 0x54a   : > { %v2007_v47 = vmax.f32 %v1955_v38, 0.0  ;;  %v2008_v49 = vmax.f32 %v1969_v43, 0.0 }
 0x54c   : > { %v2013_v45 = vpack.c.bf16 %v2007_v47, %v2001_v21  ;;  %v2014_v61 = vpack.c.bf16 %v2008_v49, %v2002_v27  ;;  %v1926_v36 = vpop.f32.mrf.mxu2  ;;  %v1940_v11 = vpop.f32.mrf.mxu3 }
 0x54d   : > { %v1927_v59 = vadd.f32 %v1926_v36, %v1663_v2  ;;  %v1941_v44 = vadd.f32 %v1940_v11, %v1664_v14  ;;  %v11553_v36 = vld [vmem:[#allocation5 + $0x168] sm:$0xf]  ;;  %v14266_v11 = vld [vmem:[#allocation5 + $0x170] sm:$0xf0] }
 0x54e   : > { %2441 = vmatmul.bf16.vlgmr.msrb.gmra.mxu2 %v2013_v45  ;;  %2455 = vmatmul.bf16.vlgmr.msrb.gmra.mxu3 %v2014_v61 }
 0x54f   : > { %v2005_v46 = vmax.f32 %v1927_v59, 0.0  ;;  %v2006_v50 = vmax.f32 %v1941_v44, 0.0  ;;  %v14265_v59 = vld [vmem:[#allocation5 + $0x16c] sm:$0xf]  ;;  %v11554_v44 = vor.u32 %v14266_v11, %v11553_v36  ;;  %v11489_v36 = vld [vmem:[#allocation5 + $0xe0] sm:$0xf] }
 0x551   : > { %v2011_v55 = vpack.c.bf16 %v2005_v46, %v1999_v39  ;;  %v2012_v52 = vpack.c.bf16 %v2006_v50, %v2000_v42  ;;  %v11555_v39 = vld [vmem:[#allocation5 + $0x174] sm:$0xf0]  ;;  %v11561_v42 = vld [vmem:[#allocation5 + $0x170] sm:$0xf]  ;;  %v14267_v46 = vld [vmem:[#allocation5 + $0x178] sm:$0xf0]  ;;  %2716 = vmatpush.bf16.msra.mxu2 %v11554_v44 }
 0x552   : > { %v11558_v50 = vor.u32 %v14265_v59, %v11555_v39  ;;  %v14249_v59 = vld [vmem:[#allocation5 + $0xe8] sm:$0xf0] }
 0x553   : > { %2413 = vmatmul.bf16.vlgmr.msra.gmra.mxu0 %v2011_v55  ;;  %2427 = vmatmul.bf16.vlgmr.msra.gmra.mxu1 %v2012_v52  ;;  %v11562_v55 = vor.u32 %v14267_v46, %v11561_v42  ;;  %v11541_v52 = vld [vmem:[#allocation5 + $0x150] sm:$0xf]  ;;  %v11490_v39 = vor.u32 %v14249_v59, %v11489_v36  ;;  %v11469_v42 = vld [vmem:[#allocation5 + $0xc0] sm:$0xf]  ;;  %v14245_v46 = vld [vmem:[#allocation5 + $0xc8] sm:$0xf0] }
 0x554   : > { %v1980_v58 = vpop.f32.mrf.mxu2  ;;  %v1994_v62 = vpop.f32.mrf.mxu3  ;;  %2730 = vmatpush.bf16.msra.mxu3 %v11558_v50  ;;  %v14244_v50 = vld [vmem:[#allocation5 + $0xc4] sm:$0xf] }
 0x555   : > { %v1981_v35 = vadd.f32 %v1980_v58, %v1667_v63  ;;  %v1995_v54 = vadd.f32 %v1994_v62, %v1668_v60  ;;  %2744 = vmatpush.bf16.msra.mxu0 %v11562_v55  ;;  %v14263_v58 = vld [vmem:[#allocation5 + $0x158] sm:$0xf0]  ;;  %v14262_v62 = vld [vmem:[#allocation5 + $0x154] sm:$0xf]  ;;  %v11471_v55 = vld [vmem:[#allocation5 + $0xcc] sm:$0xf0] }
 0x557   : > { %v2003_v1 = vmax.f32 %v1981_v35, 0.0  ;;  %v2004_v3 = vmax.f32 %v1995_v54, 0.0  ;;  %v11549_v35 = vld [vmem:[#allocation5 + $0x158] sm:$0xf]  ;;  %v14264_v54 = vld [vmem:[#allocation5 + $0x160] sm:$0xf0] }
 0x55c   : > { %v1982_v40 = vpop.f32.mrf.mxu2  ;;  %v1996_v41 = vpop.f32.mrf.mxu3 }
 0x55d   : > { %v1983_v57 = vadd.f32 %v1982_v40, %v1667_v63  ;;  %v1997_v0 = vadd.f32 %v1996_v41, %v1668_v60  ;;  %v11542_v63 = vor.u32 %v14263_v58, %v11541_v52  ;;  %v11543_v60 = vld [vmem:[#allocation5 + $0x15c] sm:$0xf0]  ;;  %v11550_v41 = vor.u32 %v14264_v54, %v11549_v35  ;;  %v11477_v52 = vld [vmem:[#allocation5 + $0xc8] sm:$0xf]  ;;  %v14246_v58 = vld [vmem:[#allocation5 + $0xd0] sm:$0xf0] }
 0x55e   : > { %v11546_v40 = vor.u32 %v14262_v62, %v11543_v60  ;;  %v11470_v62 = vor.u32 %v14245_v46, %v11469_v42  ;;  %v11474_v60 = vor.u32 %v14244_v50, %v11471_v55  ;;  %v11478_v35 = vor.u32 %v14246_v58, %v11477_v52  ;;  %v15311_v55 = vld [vmem:[#allocation2 + $0x88] sm:$0xff] }
 0x55f   : > { %v2009_v4 = vmax.f32 %v1983_v57, 0.0  ;;  %v2010_v5 = vmax.f32 %v1997_v0, 0.0  ;;  %2717 = vmatpush.bf16.msra.mxu2 %v11542_v63  ;;  %2745 = vmatpush.bf16.msra.mxu0 %v11550_v41  ;;  %v11529_v57 = vld [vmem:[#allocation5 + $0x138] sm:$0xf]  ;;  %v14260_v0 = vld [vmem:[#allocation5 + $0x140] sm:$0xf0] }
 0x560   : > { %2731 = vmatpush.bf16.msra.mxu3 %v11546_v40 }
 0x561   : > { %v2015_v6 = vpack.c.bf16 %v2009_v4, %v2003_v1  ;;  %v2016_v7 = vpack.c.bf16 %v2010_v5, %v2004_v3  ;;  %v14259_v1 = vld [vmem:[#allocation5 + $0x13c] sm:$0xf]  ;;  %v11530_v3 = vor.u32 %v14260_v0, %v11529_v57  ;;  %v11531_v4 = vld [vmem:[#allocation5 + $0x144] sm:$0xf0]  ;;  %v11537_v5 = vld [vmem:[#allocation5 + $0x140] sm:$0xf] }
 0x563   : > { %2469 = vmatmul.bf16.vlgmr.msrb.gmra.mxu0 %v2015_v6  ;;  %2483 = vmatmul.bf16.vlgmr.msrb.gmra.mxu1 %v2016_v7  ;;  %v14261_v6 = vld [vmem:[#allocation5 + $0x148] sm:$0xf0]  ;;  %v11534_v7 = vor.u32 %v14259_v1, %v11531_v4 }
 0x564   : > { %2718 = vmatpush.bf16.msra.mxu2 %v11530_v3 }
 0x565   : > { %2732 = vmatpush.bf16.msra.mxu3 %v11534_v7 }
 0x5d0   : > { %v2414_v8 = vpop.f32.mrf.mxu0  ;;  %v2428_v9 = vpop.f32.mrf.mxu1 }
 0x5d1   : > { %v2415_v10 = vadd.f32 %v15148_v51, %v2414_v8  ;;  %v2442_v13 = vpop.f32.mrf.mxu2  ;;  %v2456_v19 = vpop.f32.mrf.mxu3  ;;  %v11517_v8 = vld [vmem:[#allocation5 + $0x120] sm:$0xf] }
 0x5d3   : > { %v2429_v12 = vadd.f32 %v2428_v9, %v2415_v10  ;;  %v14257_v9 = vld [vmem:[#allocation5 + $0x128] sm:$0xf0]  ;;  %v14256_v10 = vld [vmem:[#allocation5 + $0x124] sm:$0xf] }
 0x5d5   : > { %v2443_v17 = vadd.f32 %v2442_v13, %v2429_v12  ;;  %v11518_v12 = vor.u32 %v14257_v9, %v11517_v8  ;;  %v11519_v13 = vld [vmem:[#allocation5 + $0x12c] sm:$0xf0] }
 0x5d7   : > { %v2457_v22 = vadd.f32 %v2456_v19, %v2443_v17  ;;  %v11522_v17 = vor.u32 %v14256_v10, %v11519_v13  ;;  %2719 = vmatpush.bf16.msra.mxu2 %v11518_v12  ;;  %v11505_v19 = vld [vmem:[#allocation5 + $0x108] sm:$0xf]  ;;  %v15149_v12 = vld [vmem:[#allocation20] ss:$0 sm:$0xff] }
 0x5d8   : > { %v2416_v15 = vpop.f32.mrf.mxu0  ;;  %v2430_v16 = vpop.f32.mrf.mxu1 }
 0x5d9   : > { %v2417_v18 = vadd.f32 %v15148_v51, %v2416_v15  ;;  %v2444_v28 = vpop.f32.mrf.mxu2  ;;  %v2458_v32 = vpop.f32.mrf.mxu3  ;;  %v11538_v51 = vor.u32 %v14261_v6, %v11537_v5  ;;  %v11525_v15 = vld [vmem:[#allocation5 + $0x128] sm:$0xf]  ;;  %2733 = vmatpush.bf16.msra.mxu3 %v11522_v17 }
 0x5db   : > { %v2431_v23 = vadd.f32 %v2430_v16, %v2417_v18  ;;  %2746 = vmatpush.bf16.msra.mxu0 %v11538_v51  ;;  %v14258_v16 = vld [vmem:[#allocation5 + $0x130] sm:$0xf0] }
 0x5dc   : > { %v11526_v18 = vor.u32 %v14258_v16, %v11525_v15 }
 0x5dd   : > { %v2445_v29 = vadd.f32 %v2444_v28, %v2431_v23  ;;  %v14253_v23 = vld [vmem:[#allocation5 + $0x10c] sm:$0xf]  ;;  %v14255_v28 = vld [vmem:[#allocation5 + $0x118] sm:$0xf0] }
 0x5df   : > { %v2459_v2 = vadd.f32 %v2458_v32, %v2445_v29  ;;  %2747 = vmatpush.bf16.msra.mxu0 %v11526_v18  ;;  %v15150_v18 = vld [vmem:[#allocation22] ss:$0 sm:$0xff] }
 0x5e0   : > { %v2470_v24 = vpop.f32.mrf.mxu0  ;;  %v2484_v25 = vpop.f32.mrf.mxu1 }
 0x5e1   : > { %v2471_v26 = vadd.f32 %v2470_v24, %v2457_v22  ;;  %v14254_v22 = vld [vmem:[#allocation5 + $0x110] sm:$0xf0] }
 0x5e2   : > { %v11506_v24 = vor.u32 %v14254_v22, %v11505_v19 }
 0x5e3   : > { %v2485_v20 = vadd.f32 %v2484_v25, %v2471_v26  ;;  %v11507_v25 = vld [vmem:[#allocation5 + $0x114] sm:$0xf0]  ;;  %v11513_v26 = vld [vmem:[#allocation5 + $0x110] sm:$0xf] }
 0x5e4   : > { %2720 = vmatpush.bf16.msra.mxu2 %v11506_v24 }
 0x5e5   : > { %v2489_v30 = vadd.f32 %v2485_v20, %v16698_v56  ;;  %v11510_v20 = vor.u32 %v14253_v23, %v11507_v25 }
 0x5e7   : > { %2493 = vadd.xlane.f32.xlu1 %v2489_v30  ;;  %2734 = vmatpush.bf16.msra.mxu3 %v11510_v20 }
 0x5e8   : > { %v2472_v14 = vpop.f32.mrf.mxu0  ;;  %v2486_v37 = vpop.f32.mrf.mxu1 }
 0x5e9   : > { %v2473_v34 = vadd.f32 %v2472_v14, %v2459_v2  ;;  %v11493_v2 = vld [vmem:[#allocation5 + $0xf0] sm:$0xf]  ;;  %v14251_v14 = vld [vmem:[#allocation5 + $0xf8] sm:$0xf0] }
 0x5eb   : > { %v2487_v38 = vadd.f32 %v2486_v37, %v2473_v34  ;;  %v14250_v34 = vld [vmem:[#allocation5 + $0xf4] sm:$0xf]  ;;  %v11494_v37 = vor.u32 %v14251_v14, %v11493_v2 }
 0x5ed   : > { %v2490_v43 = vadd.f32 %v2487_v38, %v16700_v33  ;;  %v11495_v38 = vld [vmem:[#allocation5 + $0xfc] sm:$0xf0]  ;;  %2721 = vmatpush.bf16.msra.mxu2 %v11494_v37 }
 0x5ef   : > { %v2495_v21 = vsel %vm1166_vm6, %v2490_v43, 0.0 }
 0x5f0   : > { %2496 = vadd.xlane.f32.xlu0 %v2495_v21  ;;  %v14252_v21 = vld [vmem:[#allocation5 + $0x100] sm:$0xf0] }
 0x65a   : > { %v2494_v27 = vpop.xlane.xlu1 %2493 }
 0x65b   : > { %v2498_v47 = vmul.f32 %v2494_v27, %v16670_v48 }
 0x65d   : > { %v16708_v49 = vsub.f32 %v2489_v30, %v2498_v47  ;;  %v11514_v30 = vor.u32 %v14255_v28, %v11513_v26  ;;  %v11498_v47 = vor.u32 %v14250_v34, %v11495_v38 }
 0x65f   : > { %v2502_v56 = vmul.f32 %v16708_v49, %v16708_v49  ;;  %2748 = vmatpush.bf16.msra.mxu0 %v11514_v30  ;;  %2735 = vmatpush.bf16.msra.mxu3 %v11498_v47 }
 0x661   : > { %2504 = vadd.xlane.f32.xlu2 %v2502_v56 }
 0x663   : > { %v2497_v31 = vpop.xlane.xlu0 %2496 }
 0x664   : > { %v2499_v53 = vmul.f32 %v2497_v31, %v16670_v48  ;;  %v11481_v31 = vld [vmem:[#allocation5 + $0xd8] sm:$0xf] }
 0x666   : > { %v16713_v45 = vsub.f32 %v2490_v43, %v2499_v53  ;;  %v11501_v43 = vld [vmem:[#allocation5 + $0xf8] sm:$0xf]  ;;  %v14248_v53 = vld [vmem:[#allocation5 + $0xe0] sm:$0xf0] }
 0x667   : > { %v11502_v56 = vor.u32 %v14252_v21, %v11501_v43  ;;  %v11482_v11 = vor.u32 %v14248_v53, %v11481_v31 }
 0x668   : > { %v2503_v33 = vmul.f32 %v16713_v45, %v16713_v45 }
 0x669   : > { %2749 = vmatpush.bf16.msra.mxu0 %v11502_v56  ;;  %2722 = vmatpush.bf16.msra.mxu2 %v11482_v11 }
 0x66a   : > { %v2506_v61 = vsel %vm1166_vm6, %v2503_v33, 0.0  ;;  %v14247_v33 = vld [vmem:[#allocation5 + $0xdc] sm:$0xf] }
 0x66b   : > { %2507 = vadd.xlane.f32.xlu0 %v2506_v61  ;;  %v11483_v61 = vld [vmem:[#allocation5 + $0xe4] sm:$0xf0] }
 0x66c   : > { %v11486_v44 = vor.u32 %v14247_v33, %v11483_v61 }
 0x66d   : > { %2750 = vmatpush.bf16.msra.mxu0 %v11490_v39  ;;  %2723 = vmatpush.bf16.msra.mxu2 %v11470_v62 }
 0x66e   : > { %2736 = vmatpush.bf16.msra.mxu3 %v11486_v44 }
 0x671   : > { %2751 = vmatpush.bf16.msra.mxu0 %v11478_v35  ;;  %v15313_v35 = vld [vmem:[#allocation2 + $0x80] sm:$0xff] }
 0x672   : > { %2737 = vmatpush.bf16.msra.mxu3 %v11474_v60 }
 0x6d4   : > { %v2505_v29 = vpop.xlane.xlu2 %2504 }
 0x6d5   : > { %v2509_v32 = vmul.f32 %v2505_v29, %v16670_v48 }
 0x6d7   : > { %v2511_v27 = vadd.f32 1e-05, %v2509_v32 }
 0x6d9   : > { %15199 = vrsqrt.f32 %v2511_v27  ;;  %vm2519_vm10 = vweird.f32 %v2511_v27 }
 0x6de   : > { %v2508_v63 = vpop.xlane.xlu0 %2507 }
 0x6df   : > { %v15200_v54 = vpop.eup %15199  ;;  %v2510_v40 = vmul.f32 %v2508_v63, %v16670_v48  ;;  %v16769_v63 = vld [vmem:[#allocation2 + $0x78] sm:$0xff] }
 0x6e0   : > { %v2514_v41 = vmul.f32 %v15200_v54, %v2511_v27  ;;  %vm2520_vm9 = vweird.f32 %v15200_v54 }
 0x6e1   : > { %v2512_v57 = vadd.f32 1e-05, %v2510_v40  ;;  %vm2521_vm11 = vmor %vm2519_vm10, %vm2520_vm9 }
 0x6e2   : > { %v2515_v0 = vmul.f32 %v15200_v54, %v2514_v41 }
 0x6e3   : > { %15201 = vrsqrt.f32 %v2512_v57  ;;  %vm2529_vm13 = vweird.f32 %v2512_v57 }
 0x6e4   : > { %v2516_v1 = vmul.f32 0.5, %v2515_v0 }
 0x6e6   : > { %v2517_v3 = vsub.f32 1.5, %v2516_v1 }
 0x6e8   : > { %v2518_v5 = vmul.f32 %v15200_v54, %v2517_v3 }
 0x6e9   : > { %v15202_v4 = vpop.eup %15201 }
 0x6ea   : > { %v2524_v6 = vmul.f32 %v15202_v4, %v2512_v57  ;;  %v2522_v51 = vsel %vm2521_vm11, %v15200_v54, %v2518_v5  ;;  %vm2530_vm12 = vweird.f32 %v15202_v4 }
 0x6eb   : > { %v2533_v10 = vmul.f32 %v2522_v51, %v16708_v49  ;;  %vm2531_vm14 = vmor %vm2529_vm13, %vm2530_vm12  ;;  %v16728_v49 = vld [vmem:[#allocation7 + $0x3] sm:$0x7] }
 0x6ec   : > { %v2525_v7 = vmul.f32 %v15202_v4, %v2524_v6  ;;  %v2584_v25 = vperm.slane %v16728_v49, 2 }
 0x6ed   : > { %v2538_v17 = vmul.f32 %v15149_v12, %v2533_v10 }
 0x6ee   : > { %v2526_v8 = vmul.f32 0.5, %v2525_v7 }
 0x6ef   : > { %v16722_v22 = vadd.f32 %v15150_v18, %v2538_v17 }
 0x6f0   : > { %v2527_v9 = vsub.f32 1.5, %v2526_v8 }
 0x6f2   : > { %v2528_v13 = vmul.f32 %v15202_v4, %v2527_v9 }
 0x6f4   : > { %v2532_v15 = vsel %vm2531_vm14, %v15202_v4, %v2528_v13  ;;  %v16784_v4 = vld [vmem:[#allocation2 + $0x70] sm:$0xff] }
 0x6f5   : > { %v2534_v16 = vmul.f32 %v2532_v15, %v16713_v45  ;;  %v2583_v45 = vperm.slane %v16728_v49, 1 }
 0x6f7   : > { %v2539_v19 = vmul.f32 %v15149_v12, %v2534_v16  ;;  %v16802_v12 = vld [vmem:[#allocation2 + $0x68] sm:$0xff] }
 0x6f9   : > { %v16724_v23 = vadd.f32 %v15150_v18, %v2539_v19 }
 0x6fb   : > { %v2545_v24 = vpack.c.bf16 %v16724_v23, %v16722_v22 }
 0x6fd   : > { %2724 = vmatmul.bf16.vlgmr.msra.gmra.mxu2 %v2545_v24  ;;  %2738 = vmatmul.bf16.vlgmr.msra.gmra.mxu3 %v2545_v24 }
 0x6fe   : > { %2752 = vmatmul.bf16.vlgmr.msra.gmra.mxu0 %v2545_v24 }
 0x77b   : > { %v2753_v26 = vpop.f32.mrf.mxu0 }
 0x77c   : > { %v16732_v28 = vadd.f32 %v2753_v26, %v2584_v25 }
 0x77e   : > { %v2852_v32 = vrot.slane %v16732_v28, 1  ;;  %v2842_v14 = vrot.slane %v16732_v28, 3  ;;  %v2847_v34 = vrot.slane %v16732_v28, 2  ;;  %v2837_v37 = vrot.slane %v16732_v28, 4 }
 0x77f   : > { %v2832_v38 = vrot.slane %v16732_v28, 5  ;;  %v2827_v21 = vrot.slane %v16732_v28, 6  ;;  %v2822_v27 = vrot.slane %v16732_v28, 7 }
 0x780   : > { %v2739_v29 = vpop.f32.mrf.mxu3  ;;  %v2725_v26 = vpop.f32.mrf.mxu2 }
 0x781   : > { %v16734_v20 = vadd.f32 %v2739_v29, %v2583_v45 }
 0x783   : > { %v2755_v30 = vpop.f32.mrf.mxu0  ;;  %v2790_v43 = vrot.slane %v16734_v20, 1  ;;  %v2780_v61 = vrot.slane %v16734_v20, 3  ;;  %v2785_v3 = vrot.slane %v16734_v20, 2  ;;  %v2775_v17 = vrot.slane %v16734_v20, 4 }
 0x784   : > { %v16737_v2 = vadd.f32 %v2755_v30, %v2584_v25 }
 0x786   : > { %v2853_v47 = vrot.slane %v16737_v2, 1  ;;  %v2843_v56 = vrot.slane %v16737_v2, 3  ;;  %v2848_v31 = vrot.slane %v16737_v2, 2  ;;  %v2838_v53 = vrot.slane %v16737_v2, 4 }
 0x787   : > { %v2833_v33 = vrot.slane %v16737_v2, 5  ;;  %v2828_v36 = vrot.slane %v16737_v2, 6  ;;  %v2823_v11 = vrot.slane %v16737_v2, 7 }
 0x788   : > { %v2741_v59 = vpop.f32.mrf.mxu3  ;;  %v16755_v44 = vsel %vm1202_vm0, %v2852_v32, %v2853_v47  ;;  %v2844_v39 = vsel %vm1190_vm1, %v2842_v14, %v2843_v56  ;;  %v2849_v42 = vsel %vm1196_vm2, %v2847_v34, %v2848_v31  ;;  %v2839_v46 = vsel %vm1184_vm3, %v2837_v37, %v2838_v53  ;;  %v15318_v53 = vld [vmem:[#allocation2 + $0x50] sm:$0xff] }
 0x789   : > { %v16760_v50 = vadd.f32 %v2741_v59, %v2583_v45  ;;  %v2881_v52 = vmul.f32 %v15311_v55, %v16755_v44  ;;  %v16764_v58 = vsel %vm1196_vm2, %v2844_v39, %v2847_v34  ;;  %v16767_v62 = vsel %vm1202_vm0, %v2849_v42, %v2852_v32  ;;  %v16818_v45 = vld [vmem:[#allocation2 + $0x60] sm:$0xff]  ;;  %v15319_v39 = vld [vmem:[#allocation2 + $0x48] sm:$0xff] }
 0x78a   : > { %v2879_v60 = vmul.f32 %v16769_v63, %v16764_v58  ;;  %v2880_v54 = vmul.f32 %v15313_v35, %v16767_v62  ;;  %v16775_v40 = vsel %vm1190_vm1, %v2839_v46, %v2842_v14  ;;  %v2834_v41 = vsel %vm1178_vm4, %v2832_v38, %v2833_v33 }
 0x78b   : > { %2992 = vmatpush.msrb.mxu0 %v2881_v52  ;;  %v16779_v57 = vsel %vm1184_vm3, %v2834_v41, %v2837_v37  ;;  %v2791_v0 = vrot.slane %v16760_v50, 1  ;;  %v2781_v1 = vrot.slane %v16760_v50, 3  ;;  %v2878_v5 = vmul.f32 %v16784_v4, %v16775_v40  ;;  %v15320_v52 = vld [vmem:[#allocation2 + $0x40] sm:$0xff]  ;;  %v2727_v41 = vpop.f32.mrf.mxu2 }
 0x78c   : > { %2955 = vmatpush.msrb.mxu3 %v2879_v60  ;;  %v2829_v6 = vsel %vm1172_vm5, %v2827_v21, %v2828_v36  ;;  %v2824_v7 = vsel %vm1166_vm6, %v2822_v27, %v2823_v11  ;;  %v2786_v51 = vrot.slane %v16760_v50, 2  ;;  %v2877_v13 = vmul.f32 %v16802_v12, %v16779_v57 }
 0x78d   : > { %2993 = vmatpush.msrb.mxu0 %v2880_v54  ;;  %v16794_v8 = vsel %vm1202_vm0, %v2790_v43, %v2791_v0  ;;  %v2782_v9 = vsel %vm1190_vm1, %v2780_v61, %v2781_v1  ;;  %v16800_v10 = vsel %vm1178_vm4, %v2829_v6, %v2832_v38  ;;  %v16814_v19 = vsel %vm1172_vm5, %v2824_v7, %v2827_v21  ;;  %v15321_v0 = vld [vmem:[#allocation2 + $0x38] sm:$0xff] }
 0x78e   : > { %2956 = vmatpush.msrb.mxu3 %v2878_v5  ;;  %v2819_v15 = vmul.f32 %v15311_v55, %v16794_v8  ;;  %v16808_v16 = vsel %vm1196_vm2, %v2782_v9, %v2785_v3  ;;  %v2787_v24 = vsel %vm1196_vm2, %v2785_v3, %v2786_v51  ;;  %v2776_v25 = vrot.slane %v16760_v50, 4  ;;  %v15324_v9 = vld [vmem:[#allocation2 + $0x20] sm:$0xff] }
 0x78f   : > { %v2817_v18 = vmul.f32 %v16769_v63, %v16808_v16  ;;  %3038 = vmatpush.msra.mxu0 %v15311_v55  ;;  %v2876_v29 = vmul.f32 %v16818_v45, %v16800_v10  ;;  %v16823_v30 = vsel %vm1202_vm0, %v2787_v24, %v2790_v43  ;;  %v2770_v32 = vrot.slane %v16734_v20, 5  ;;  %v15317_v43 = vld [vmem:[#allocation2 + $0x58] sm:$0xff]  ;;  %v15328_v24 = vld [vmem:[#allocation2] sm:$0xff] }
 0x790   : > { %2957 = vmatpush.msrb.mxu3 %v2877_v13  ;;  %2919 = vmatpush.xpose.msrb.mxu2 %v2819_v15  ;;  %v2771_v14 = vrot.slane %v16760_v50, 5  ;;  %v2582_v34 = vperm.slane %v16728_v49, 0  ;;  %v2777_v37 = vsel %vm1184_vm3, %v2775_v17, %v2776_v25  ;;  %v16833_v38 = vsel %vm1166_vm6, %v16737_v2, %v2822_v27 }
 0x791   : > { %2882 = vmatpush.xpose.msra.mxu1 %v2817_v18  ;;  %v2766_v21 = vrot.slane %v16760_v50, 6  ;;  %3039 = vmatpush.msra.mxu0 %v15313_v35  ;;  %v2875_v47 = vmul.f32 %v15317_v43, %v16814_v19  ;;  %v2818_v56 = vmul.f32 %v15313_v35, %v16823_v30  ;;  %v16841_v49 = vsel %vm1190_vm1, %v2777_v37, %v2780_v61 }
 0x792   : > { %2958 = vmatpush.msrb.mxu3 %v2876_v29  ;;  %v2772_v31 = vsel %vm1178_vm4, %v2770_v32, %v2771_v14  ;;  %v2816_v2 = vmul.f32 %v16784_v4, %v16841_v49  ;;  %v2765_v27 = vrot.slane %v16734_v20, 6  ;;  %v2874_v33 = vmul.f32 %v15318_v53, %v16833_v38 }
 0x793   : > { %v16849_v36 = vsel %vm1184_vm3, %v2772_v31, %v2775_v17  ;;  %v16851_v11 = vadd.f32 %v2725_v26, %v2582_v34  ;;  %v2761_v59 = vrot.slane %v16760_v50, 7  ;;  %v2873_v42 = vmul.f32 %v15319_v39, %v16732_v28 }
 0x794   : > { %2959 = vmatpush.msrb.mxu3 %v2875_v47  ;;  %2920 = vmatpush.xpose.msrb.mxu2 %v2818_v56  ;;  %v2767_v61 = vsel %vm1172_vm5, %v2765_v27, %v2766_v21  ;;  %v2815_v46 = vmul.f32 %v16802_v12, %v16849_v36  ;;  %v2760_v55 = vrot.slane %v16734_v20, 7  ;;  %v2872_v60 = vmul.f32 %v15320_v52, %v16755_v44  ;;  %v15322_v44 = vld [vmem:[#allocation2 + $0x30] sm:$0xff] }
 0x795   : > { %2883 = vmatpush.xpose.msra.mxu1 %v2816_v2  ;;  %v16862_v35 = vsel %vm1178_vm4, %v2767_v61, %v2770_v32  ;;  %v2871_v1 = vmul.f32 %v15321_v0, %v16767_v62  ;;  %v2870_v5 = vmul.f32 %v15322_v44, %v16764_v58  ;;  %v2728_v7 = vadd.f32 %v2727_v41, %v2582_v34  ;;  %v15325_v58 = vld [vmem:[#allocation2 + $0x18] sm:$0xff] }
 0x796   : > { %2960 = vmatpush.msrb.mxu3 %v2874_v33  ;;  %v2762_v54 = vsel %vm1166_vm6, %v2760_v55, %v2761_v59  ;;  %v2814_v3 = vmul.f32 %v16818_v45, %v16862_v35  ;;  %v2795_v13 = vsel %vm1166_vm6, %v16760_v50, %v2760_v55  ;;  %v2811_v50 = vmul.f32 %v15319_v39, %v16734_v20  ;;  %v14275_v55 = vld [vmem:[#allocation8 + $0x78] sm:$0xff] }
 0x797   : > { %2921 = vmatmul.f32.vlgmr.msrb.gmra.mxu2 %v16851_v11  ;;  %v2796_v6 = vsel %vm1172_vm5, %v2762_v54, %v2765_v27  ;;  %v2812_v15 = vmul.f32 %v15318_v53, %v2795_v13  ;;  %v2864_v25 = vmul.f32 %v15328_v24, %v16732_v28  ;;  %v2808_v26 = vmul.f32 %v15322_v44, %v16808_v16  ;;  %v14271_v54 = vld [vmem:[#allocation8 + $0x58] sm:$0xff] }
 0x798   : > { %2961 = vmatpush.msrb.mxu3 %v2873_v42  ;;  %3001 = vmatpush.msra.mxu2 %v16769_v63  ;;  %v15323_v63 = vld [vmem:[#allocation2 + $0x28] sm:$0xff]  ;;  %v2813_v62 = vmul.f32 %v15317_v43, %v2796_v6  ;;  %v2802_v32 = vmul.f32 %v15328_v24, %v16734_v20 }
 0x799   : > { %2884 = vmatpush.xpose.msra.mxu1 %v2815_v46  ;;  %v2869_v51 = vmul.f32 %v15323_v63, %v16775_v40  ;;  %v15326_v40 = vld [vmem:[#allocation2 + $0x10] sm:$0xff]  ;;  %v2807_v28 = vmul.f32 %v15323_v63, %v16841_v49 }
 0x79a   : > { %2962 = vmatpush.msrb.mxu3 %v2872_v60  ;;  %3002 = vmatpush.msra.mxu2 %v16784_v4  ;;  %v2868_v4 = vmul.f32 %v15324_v9, %v16779_v57  ;;  %v2866_v17 = vmul.f32 %v15326_v40, %v16814_v19  ;;  %v15327_v57 = vld [vmem:[#allocation2 + $0x8] sm:$0xff]  ;;  %v2809_v19 = vmul.f32 %v15321_v0, %v16823_v30 }
 0x79b   : > { %v2865_v18 = vmul.f32 %v15327_v57, %v16833_v38  ;;  %v2804_v29 = vmul.f32 %v15326_v40, %v2796_v6  ;;  %v2803_v30 = vmul.f32 %v15327_v57, %v2795_v13  ;;  %v14273_v60 = vld [vmem:[#allocation8 + $0x68] sm:$0xff] }
 0x79c   : > { %2963 = vmatpush.msrb.mxu3 %v2871_v1  ;;  %3003 = vmatpush.msra.mxu2 %v16802_v12  ;;  %v2867_v12 = vmul.f32 %v15325_v58, %v16800_v10  ;;  %v2810_v10 = vmul.f32 %v15320_v52, %v16794_v8  ;;  %v2805_v8 = vmul.f32 %v15325_v58, %v16862_v35  ;;  %v14272_v35 = vld [vmem:[#allocation8 + $0x60] sm:$0xff]  ;;  %v14269_v1 = vld [vmem:[#allocation8 + $0x48] sm:$0xff] }
 0x79d   : > { %2885 = vmatpush.xpose.msra.mxu1 %v2814_v3 }
 0x79e   : > { %2964 = vmatpush.msrb.mxu3 %v2870_v5  ;;  %3004 = vmatpush.msra.mxu2 %v16818_v45  ;;  %v2806_v45 = vmul.f32 %v15324_v9, %v16849_v36 }
 0x79f   : > { %2924 = vmatmul.f32.gmra.mxu2 %v2728_v7 }
 0x7a0   : > { %2965 = vmatpush.msrb.mxu3 %v2869_v51  ;;  %3005 = vmatpush.msra.mxu2 %v15317_v43 }
 0x7a1   : > { %2886 = vmatpush.xpose.msra.mxu1 %v2813_v62 }
 0x7a2   : > { %2966 = vmatpush.msrb.mxu3 %v2868_v4  ;;  %3006 = vmatpush.msra.mxu2 %v15318_v53 }
 0x7a4   : > { %2967 = vmatpush.msrb.mxu3 %v2867_v12  ;;  %3007 = vmatpush.msra.mxu2 %v15319_v39 }
 0x7a5   : > { %2887 = vmatpush.xpose.msra.mxu1 %v2812_v15 }
 0x7a6   : > { %2968 = vmatpush.msrb.mxu3 %v2866_v17  ;;  %3008 = vmatpush.msra.mxu2 %v15320_v52  ;;  %v14274_v52 = vld [vmem:[#allocation8 + $0x70] sm:$0xff] }
 0x7a8   : > { %2969 = vmatpush.msrb.mxu3 %v2865_v18  ;;  %3009 = vmatpush.msra.mxu2 %v15321_v0  ;;  %v14270_v0 = vld [vmem:[#allocation8 + $0x50] sm:$0xff]  ;;  %v15151_v18 = vld [vmem:[#allocation10 + $0x1] ss:$0 sm:$0xff] }
 0x7a9   : > { %2888 = vmatpush.xpose.msra.mxu1 %v2811_v50 }
 0x7aa   : > { %2970 = vmatpush.msrb.mxu3 %v2864_v25  ;;  %3010 = vmatpush.msra.mxu2 %v15322_v44  ;;  %v14268_v44 = vld [vmem:[#allocation8 + $0x40] sm:$0xff] }
 0x7ac   : > { %3011 = vmatpush.msra.mxu2 %v15323_v63  ;;  %3122 = vmatpush.bf16.msra.mxu3 %v14275_v55 }
 0x7ad   : > { %2889 = vmatpush.xpose.msra.mxu1 %v2810_v10 }
 0x7ae   : > { %3012 = vmatpush.msra.mxu2 %v15324_v9 }
 0x7b0   : > { %3013 = vmatpush.msra.mxu2 %v15325_v58  ;;  %3123 = vmatpush.bf16.msra.mxu3 %v14274_v52  ;;  %v11699_v52 = vld [vmem:[#allocation14 + $0x258] sm:$0xf0] }
 0x7b1   : > { %2890 = vmatpush.xpose.msra.mxu1 %v2809_v19 }
 0x7b2   : > { %3014 = vmatpush.msra.mxu2 %v15326_v40 }
 0x7b4   : > { %3015 = vmatpush.msra.mxu2 %v15327_v57  ;;  %3124 = vmatpush.bf16.msra.mxu3 %v14273_v60  ;;  %v11777_v60 = vld [vmem:[#allocation14 + $0x2d8] sm:$0xf] }
 0x7b5   : > { %2891 = vmatpush.xpose.msra.mxu1 %v2808_v26 }
 0x7b6   : > { %3016 = vmatpush.msra.mxu2 %v15328_v24 }
 0x7b8   : > { %3125 = vmatpush.bf16.msra.mxu3 %v14272_v35  ;;  %v14322_v35 = vld [vmem:[#allocation14 + $0x2ec] sm:$0xf0] }
 0x7b9   : > { %2892 = vmatpush.xpose.msra.mxu1 %v2807_v28 }
 0x7bc   : > { %3126 = vmatpush.bf16.msra.mxu3 %v14271_v54 }
 0x7bd   : > { %2893 = vmatpush.xpose.msra.mxu1 %v2806_v45  ;;  %v11769_v45 = vld [vmem:[#allocation14 + $0x2d0] sm:$0xf] }
 0x7c0   : > { %3127 = vmatpush.bf16.msra.mxu3 %v14270_v0  ;;  %v14319_v0 = vld [vmem:[#allocation14 + $0x2dc] sm:$0xf] }
 0x7c1   : > { %2894 = vmatpush.xpose.msra.mxu1 %v2805_v8  ;;  %v14321_v8 = vld [vmem:[#allocation14 + $0x2e4] sm:$0xf0] }
 0x7c4   : > { %3128 = vmatpush.bf16.msra.mxu3 %v14269_v1  ;;  %v11779_v1 = vld [vmem:[#allocation14 + $0x2f0] sm:$0xf0] }
 0x7c5   : > { %2895 = vmatpush.xpose.msra.mxu1 %v2804_v29  ;;  %v14318_v29 = vld [vmem:[#allocation14 + $0x2d4] sm:$0xf] }
 0x7c8   : > { %3129 = vmatpush.bf16.msra.mxu3 %v14268_v44  ;;  %v11673_v44 = vld [vmem:[#allocation14 + $0x210] sm:$0xf] }
 0x7c9   : > { %2896 = vmatpush.xpose.msra.mxu1 %v2803_v30  ;;  %v11770_v30 = vor.u32 %v14321_v8, %v11769_v45 }
 0x7cd   : > { %2897 = vmatpush.xpose.msra.mxu1 %v2802_v32  ;;  %v11771_v32 = vld [vmem:[#allocation14 + $0x2e8] sm:$0xf0] }
 0x7d0   : > { %2898 = vmatmul.f32.vlgmr.msra.gmra.mxu1 %v16851_v11 }
 0x7d8   : > { %2901 = vmatmul.f32.gmra.mxu1 %v2728_v7 }
 0x81a   : > { %v2922_v16 = vpop.f32.mrf.mxu2 }
 0x81b   : > { %v2928_v14 = vsel %vm1341_vm7, %v2922_v16, -inf }
 0x822   : > { %v2925_v38 = vpop.f32.mrf.mxu2 }
 0x823   : > { %v2933_v47 = vsel %vm1347_vm8, %v2925_v38, -inf }
 0x84d   : > { %v2899_v34 = vpop.f32.mrf.mxu1 }
 0x84e   : > { %v2929_v37 = vmax.f32 %v2899_v34, %v2928_v14 }
 0x850   : > { %2930 = vmax.xlane.f32.xlu1 %v2929_v37 }
 0x855   : > { %v2902_v21 = vpop.f32.mrf.mxu1 }
 0x856   : > { %v2932_v43 = vsel %vm1166_vm6, %v2902_v21, -inf }
 0x857   : > { %v2934_v56 = vmax.f32 %v2932_v43, %v2933_v47 }
 0x859   : > { %2935 = vmax.xlane.f32.xlu2 %v2934_v56  ;;  %v11745_v56 = vld [vmem:[#allocation14 + $0x2a0] sm:$0xf] }
 0x8c3   : > { %v2931_v49 = vpop.xlane.xlu1 %2930 }
 0x8c4   : > { %v2937_v20 = vsub.f32 %v2899_v34, %v2931_v49  ;;  %v2938_v31 = vsub.f32 %v2922_v16, %v2931_v49  ;;  %v11774_v16 = vor.u32 %v14318_v29, %v11771_v32  ;;  %v14315_v49 = vld [vmem:[#allocation14 + $0x2b4] sm:$0xf0]  ;;  %v11625_v29 = vld [vmem:[#allocation14 + $0x1b0] sm:$0xf]  ;;  %v14282_v32 = vld [vmem:[#allocation14 + $0x1b4] sm:$0xf] }
 0x8c6   : > { %v2941_v2 = vmul.f32 1.442695, %v2937_v20  ;;  %v2943_v27 = vmul.f32 1.442695, %v2938_v31  ;;  %3513 = vmatpush.bf16.msrb.mxu2 %v11774_v16  ;;  %v14312_v20 = vld [vmem:[#allocation14 + $0x2a4] sm:$0xf]  ;;  %v11746_v31 = vor.u32 %v14315_v49, %v11745_v56 }
 0x8c7   : > { %v11707_v56 = vld [vmem:[#allocation14 + $0x260] sm:$0xf0] }
 0x8c8   : > { %15203 = vpow2.f32 %v2941_v2  ;;  %v11747_v2 = vld [vmem:[#allocation14 + $0x2b8] sm:$0xf0] }
 0x8c9   : > { %15205 = vpow2.f32 %v2943_v27  ;;  %v11750_v27 = vor.u32 %v14312_v20, %v11747_v2  ;;  %v11601_v20 = vld [vmem:[#allocation14 + $0x180] sm:$0xf]  ;;  %v14276_v2 = vld [vmem:[#allocation14 + $0x184] sm:$0xf] }
 0x8cb   : > { %3514 = vmatpush.bf16.msrb.mxu2 %v11750_v27 }
 0x8cc   : > { %v2936_v53 = vpop.xlane.xlu2 %2935 }
 0x8cd   : > { %v2939_v33 = vsub.f32 %v2902_v21, %v2936_v53  ;;  %v2940_v36 = vsub.f32 %v2925_v38, %v2936_v53  ;;  %v11721_v53 = vld [vmem:[#allocation14 + $0x270] sm:$0xf] }
 0x8ce   : > { %v15204_v11 = vpop.eup %15203 }
 0x8cf   : > { %v15206_v61 = vpop.eup %15205  ;;  %v2945_v59 = vmul.f32 1.442695, %v2939_v33  ;;  %v2947_v39 = vmul.f32 1.442695, %v2940_v36  ;;  %2971 = vmatmul.f32.vlgmr.msrb.gmra.mxu3 %v15204_v11  ;;  %3017 = vmatmul.f32.vlgmr.msra.gmra.mxu2 %v15204_v11  ;;  %v14309_v33 = vld [vmem:[#allocation14 + $0x284] sm:$0xf0] }
 0x8d0   : > { %11563 = vmatmul.msk.f32.vlgmr.msrb.gmra.mxu0 %vm1341_vm7, %v15206_v61  ;;  %v14306_v36 = vld [vmem:[#allocation14 + $0x274] sm:$0xf]  ;;  %v11722_v11 = vor.u32 %v14309_v33, %v11721_v53  ;;  %v11603_v53 = vld [vmem:[#allocation14 + $0x198] sm:$0xf0]  ;;  %v11681_v33 = vld [vmem:[#allocation14 + $0x218] sm:$0xf] }
 0x8d1   : > { %15207 = vpow2.f32 %v2945_v59  ;;  %3499 = vmatpush.bf16.msrb.mxu0 %v11770_v30  ;;  %v14285_v30 = vld [vmem:[#allocation14 + $0x1c4] sm:$0xf0] }
 0x8d2   : > { %15209 = vpow2.f32 %v2947_v39  ;;  %v11697_v39 = vld [vmem:[#allocation14 + $0x240] sm:$0xf]  ;;  %v11626_v16 = vor.u32 %v14285_v30, %v11625_v29 }
 0x8d3   : > { %v14280_v30 = vld [vmem:[#allocation14 + $0x19c] sm:$0xf0] }
 0x8d5   : > { %3500 = vmatpush.bf16.msrb.mxu0 %v11746_v31  ;;  %v14279_v31 = vld [vmem:[#allocation14 + $0x194] sm:$0xf0] }
 0x8d6   : > { %v11602_v27 = vor.u32 %v14279_v31, %v11601_v20 }
 0x8d7   : > { %v15208_v42 = vpop.eup %15207 }
 0x8d8   : > { %v15210_v46 = vpop.eup %15209  ;;  %2974 = vmatmul.f32.gmra.mxu3 %v15208_v42  ;;  %3020 = vmatmul.f32.gmra.mxu2 %v15208_v42  ;;  %v14303_v42 = vld [vmem:[#allocation14 + $0x254] sm:$0xf0] }
 0x8d9   : > { %11564 = vmatmul.msk.f32.gmra.mxu0 %vm1341_vm7, %v15210_v46  ;;  %v11698_v55 = vor.u32 %v14303_v42, %v11697_v39  ;;  %v11683_v39 = vld [vmem:[#allocation14 + $0x230] sm:$0xf0]  ;;  %v11785_v42 = vld [vmem:[#allocation14 + $0x2e0] sm:$0xf] }
 0x8da   : > { %3501 = vmatpush.bf16.msrb.mxu0 %v11722_v11  ;;  %v11606_v11 = vor.u32 %v14276_v2, %v11603_v53  ;;  %v11689_v2 = vld [vmem:[#allocation14 + $0x220] sm:$0xf]  ;;  %v14296_v53 = vld [vmem:[#allocation14 + $0x224] sm:$0xf] }
 0x8de   : > { %3502 = vmatpush.bf16.msrb.mxu0 %v11698_v55  ;;  %v14323_v55 = vld [vmem:[#allocation14 + $0x2f4] sm:$0xf0] }
 0x8e1   : > { %11565 = vmatmul.msk.f32.vlgmr.msra.gmra.mxu0 %vm1341_vm7, %v15206_v61  ;;  %v11723_v61 = vld [vmem:[#allocation14 + $0x288] sm:$0xf0] }
 0x8e2   : > { %v11726_v59 = vor.u32 %v14306_v36, %v11723_v61  ;;  %v14298_v36 = vld [vmem:[#allocation14 + $0x22c] sm:$0xf0] }
 0x8e3   : > { %v11682_v61 = vor.u32 %v14298_v36, %v11681_v33  ;;  %v11691_v33 = vld [vmem:[#allocation14 + $0x238] sm:$0xf0] }
 0x8e4   : > { %3515 = vmatpush.bf16.msrb.mxu2 %v11726_v59  ;;  %v14295_v59 = vld [vmem:[#allocation14 + $0x21c] sm:$0xf] }
 0x8e9   : > { %11566 = vmatmul.msk.f32.gmra.mxu0 %vm1341_vm7, %v15210_v46  ;;  %v14300_v46 = vld [vmem:[#allocation14 + $0x244] sm:$0xf] }
 0x8ea   : > { %v11702_v54 = vor.u32 %v14300_v46, %v11699_v52  ;;  %v11686_v46 = vor.u32 %v14295_v59, %v11683_v39  ;;  %v14320_v52 = vld [vmem:[#allocation14 + $0x2e4] sm:$0xf]  ;;  %v11694_v39 = vor.u32 %v14296_v53, %v11691_v33  ;;  %v14363_v53 = vld [vmem:[#allocation17 + $0x2b8] sm:$0xff]  ;;  %v14333_v33 = vld [vmem:[#allocation17 + $0x1c8] sm:$0xff] }
 0x8ec   : > { %3516 = vmatpush.bf16.msrb.mxu2 %v11702_v54 }
 0x94d   : > { %v2995_v41 = vpop.f32.mrf.mxu0 }
 0x952   : > { %v3018_v5 = vpop.f32.mrf.mxu2  ;;  %v2972_v7 = vpop.f32.mrf.mxu3 }
 0x953   : > { %v2996_v58 = vadd.f32 %v2995_v41, %v2972_v7  ;;  %v11778_v41 = vor.u32 %v14322_v35, %v11777_v60  ;;  %v11787_v60 = vld [vmem:[#allocation14 + $0x2f8] sm:$0xf0]  ;;  %v11786_v35 = vor.u32 %v14323_v55, %v11785_v42  ;;  %v11665_v42 = vld [vmem:[#allocation14 + $0x1f0] sm:$0xf]  ;;  %v14293_v55 = vld [vmem:[#allocation14 + $0x204] sm:$0xf0] }
 0x954   : > { %v11790_v54 = vor.u32 %v14320_v52, %v11787_v60  ;;  %v14290_v52 = vld [vmem:[#allocation14 + $0x1f4] sm:$0xf]  ;;  %v11667_v60 = vld [vmem:[#allocation14 + $0x208] sm:$0xf0] }
 0x955   : > { %3527 = vmatpush.bf16.msrb.mxu1 %v11778_v41  ;;  %v11657_v41 = vld [vmem:[#allocation14 + $0x1e8] sm:$0xf] }
 0x956   : > { %v2998_v3 = vpop.f32.mrf.mxu0 }
 0x95b   : > { %v3021_v51 = vpop.f32.mrf.mxu2  ;;  %v2975_v4 = vpop.f32.mrf.mxu3 }
 0x95c   : > { %v2999_v12 = vadd.f32 %v2998_v3, %v2975_v4  ;;  %v11782_v3 = vor.u32 %v14319_v0, %v11779_v1  ;;  %v14292_v0 = vld [vmem:[#allocation14 + $0x1fc] sm:$0xf0]  ;;  %v14289_v1 = vld [vmem:[#allocation14 + $0x1ec] sm:$0xf] }
 0x95e   : > { %v3041_v6 = vpop.f32.mrf.mxu0  ;;  %3541 = vmatpush.bf16.msrb.mxu3 %v11782_v3 }
 0x95f   : > { %v3042_v63 = vadd.f32 %v3041_v6, %v3018_v5  ;;  %v14297_v5 = vld [vmem:[#allocation14 + $0x224] sm:$0xf0]  ;;  %v14294_v6 = vld [vmem:[#allocation14 + $0x214] sm:$0xf] }
 0x960   : > { %v11674_v7 = vor.u32 %v14297_v5, %v11673_v44  ;;  %v11658_v44 = vor.u32 %v14292_v0, %v11657_v41  ;;  %v11659_v5 = vld [vmem:[#allocation14 + $0x200] sm:$0xf0]  ;;  %v14339_v41 = vld [vmem:[#allocation17 + $0x1f8] sm:$0xff] }
 0x961   : > { %15211 = vrcp.f32 %v3042_v63  ;;  %v11675_v63 = vld [vmem:[#allocation14 + $0x228] sm:$0xf0] }
 0x962   : > { %3503 = vmatpush.bf16.msrb.mxu0 %v11674_v7  ;;  %v14317_v7 = vld [vmem:[#allocation14 + $0x2c4] sm:$0xf0] }
 0x966   : > { %v3044_v62 = vpop.f32.mrf.mxu0 }
 0x967   : > { %v3045_v9 = vadd.f32 %v3044_v62, %v3021_v51  ;;  %v15212_v13 = vpop.eup %15211  ;;  %v11753_v51 = vld [vmem:[#allocation14 + $0x2a8] sm:$0xf]  ;;  %v14316_v62 = vld [vmem:[#allocation14 + $0x2bc] sm:$0xf0] }
 0x968   : > { %v3049_v40 = vmul.f32 %v15212_v13, %v2996_v58  ;;  %v11754_v4 = vor.u32 %v14316_v62, %v11753_v51  ;;  %v14313_v13 = vld [vmem:[#allocation14 + $0x2ac] sm:$0xf]  ;;  %v11755_v58 = vld [vmem:[#allocation14 + $0x2c0] sm:$0xf0]  ;;  %v11662_v62 = vor.u32 %v14289_v1, %v11659_v5  ;;  %v14287_v5 = vld [vmem:[#allocation14 + $0x1d4] sm:$0xf0] }
 0x969   : > { %15213 = vrcp.f32 %v3045_v9  ;;  %v11678_v9 = vor.u32 %v14294_v6, %v11675_v63  ;;  %v11761_v6 = vld [vmem:[#allocation14 + $0x2b0] sm:$0xf] }
 0x96a   : > { %3528 = vmatpush.bf16.msrb.mxu1 %v11754_v4  ;;  %v14314_v4 = vld [vmem:[#allocation14 + $0x2b4] sm:$0xf] }
 0x96b   : > { %3517 = vmatpush.bf16.msrb.mxu2 %v11678_v9  ;;  %v11762_v9 = vor.u32 %v14317_v7, %v11761_v6  ;;  %v14284_v6 = vld [vmem:[#allocation14 + $0x1c4] sm:$0xf] }
 0x96f   : > { %v15214_v15 = vpop.eup %15213 }
 0x970   : > { %v3050_v17 = vmul.f32 %v15214_v15, %v2999_v12  ;;  %v11758_v12 = vor.u32 %v14313_v13, %v11755_v58  ;;  %v11649_v15 = vld [vmem:[#allocation14 + $0x1e0] sm:$0xf]  ;;  %v11763_v13 = vld [vmem:[#allocation14 + $0x2c8] sm:$0xf0]  ;;  %v11633_v58 = vld [vmem:[#allocation14 + $0x1b8] sm:$0xf] }
 0x972   : > { %v3051_v57 = vpack.c.bf16 %v3050_v17, %v3049_v40  ;;  %v14291_v40 = vld [vmem:[#allocation14 + $0x1f4] sm:$0xf0]  ;;  %v14288_v17 = vld [vmem:[#allocation14 + $0x1e4] sm:$0xf]  ;;  %3542 = vmatpush.bf16.msrb.mxu3 %v11758_v12 }
 0x974   : > { %3130 = vmatmul.bf16.vlgmr.msra.gmra.mxu3 %v3051_v57  ;;  %v11650_v57 = vor.u32 %v14291_v40, %v11649_v15  ;;  %v11766_v15 = vor.u32 %v14314_v4, %v11763_v13  ;;  %v14286_v40 = vld [vmem:[#allocation14 + $0x1cc] sm:$0xf0]  ;;  %v15152_v4 = vld [vmem:[#allocation11 + $0x1] ss:$0 sm:$0xff] }
 0x976   : > { %3504 = vmatpush.bf16.msrb.mxu0 %v11650_v57  ;;  %v11635_v57 = vld [vmem:[#allocation14 + $0x1d0] sm:$0xf0] }
 0x97a   : > { %3505 = vmatpush.bf16.msrb.mxu0 %v11626_v16  ;;  %v11611_v16 = vld [vmem:[#allocation14 + $0x1a0] sm:$0xf0] }
 0x97e   : > { %3506 = vmatpush.bf16.msrb.mxu0 %v11602_v27  ;;  %v14299_v27 = vld [vmem:[#allocation14 + $0x234] sm:$0xf0] }
 0x97f   : > { %v11690_v59 = vor.u32 %v14299_v27, %v11689_v2  ;;  %v14324_v2 = vld [vmem:[#allocation17 + $0x180] sm:$0xff]  ;;  %v14343_v27 = vld [vmem:[#allocation17 + $0x218] sm:$0xff] }
 0x982   : > { %3555 = vmatpush.bf16.msra.mxu0 %v11786_v35  ;;  %v14340_v35 = vld [vmem:[#allocation17 + $0x200] sm:$0xff] }
 0x986   : > { %3556 = vmatpush.bf16.msra.mxu0 %v11762_v9  ;;  %v14338_v9 = vld [vmem:[#allocation17 + $0x1f0] sm:$0xff] }
 0x9f7   : > { %v3131_v50 = vpop.f32.mrf.mxu3 }
 0x9f8   : > { %v3132_v24 = vadd.f32 %v15151_v18, %v3131_v50  ;;  %v11729_v50 = vld [vmem:[#allocation14 + $0x278] sm:$0xf] }
 0x9fa   : > { %v3136_v25 = vadd.f32 %v3132_v24, %v16722_v22  ;;  %v14310_v24 = vld [vmem:[#allocation14 + $0x28c] sm:$0xf0] }
 0x9fc   : > { %3142 = vadd.xlane.f32.xlu1 %v3136_v25 }
 0x9ff   : > { %v3133_v10 = vpop.f32.mrf.mxu3 }
 0xa00   : > { %v3134_v19 = vadd.f32 %v15151_v18, %v3133_v10  ;;  %v11651_v18 = vld [vmem:[#allocation14 + $0x1f8] sm:$0xf0]  ;;  %v11730_v10 = vor.u32 %v14310_v24, %v11729_v50  ;;  %v11634_v50 = vor.u32 %v14286_v40, %v11633_v58  ;;  %v11737_v24 = vld [vmem:[#allocation14 + $0x280] sm:$0xf]  ;;  %v14281_v40 = vld [vmem:[#allocation14 + $0x1a4] sm:$0xf0] }
 0xa02   : > { %v3137_v26 = vadd.f32 %v3134_v19, %v16724_v23  ;;  %v14307_v19 = vld [vmem:[#allocation14 + $0x27c] sm:$0xf]  ;;  %3529 = vmatpush.bf16.msrb.mxu1 %v11730_v10 }
 0xa04   : > { %v3144_v28 = vsel %vm1166_vm6, %v3137_v26, 0.0 }
 0xa05   : > { %3145 = vadd.xlane.f32.xlu0 %v3144_v28 }
 0xa6f   : > { %v3143_v14 = vpop.xlane.xlu1 %3142 }
 0xa70   : > { %v3147_v34 = vmul.f32 %v3143_v14, %v16670_v48  ;;  %v11627_v14 = vld [vmem:[#allocation14 + $0x1c8] sm:$0xf0] }
 0xa72   : > { %v16902_v22 = vsub.f32 %v3136_v25, %v3147_v34  ;;  %v11654_v25 = vor.u32 %v14288_v17, %v11651_v18  ;;  %v11705_v34 = vld [vmem:[#allocation14 + $0x248] sm:$0xf]  ;;  %v14283_v17 = vld [vmem:[#allocation14 + $0x1bc] sm:$0xf] }
 0xa74   : > { %v3151_v37 = vmul.f32 %v16902_v22, %v16902_v22  ;;  %3518 = vmatpush.bf16.msrb.mxu2 %v11654_v25  ;;  %v14311_v25 = vld [vmem:[#allocation14 + $0x294] sm:$0xf0] }
 0xa76   : > { %3153 = vadd.xlane.f32.xlu2 %v3151_v37  ;;  %v14304_v37 = vld [vmem:[#allocation14 + $0x25c] sm:$0xf0] }
 0xa78   : > { %v3146_v23 = vpop.xlane.xlu0 %3145 }
 0xa79   : > { %v3148_v38 = vmul.f32 %v3146_v23, %v16670_v48 }
 0xa7b   : > { %v16907_v21 = vsub.f32 %v3137_v26, %v3148_v38  ;;  %v11731_v26 = vld [vmem:[#allocation14 + $0x290] sm:$0xf0]  ;;  %v11630_v38 = vor.u32 %v14282_v32, %v11627_v14  ;;  %v14277_v32 = vld [vmem:[#allocation14 + $0x18c] sm:$0xf] }
 0xa7c   : > { %v11734_v45 = vor.u32 %v14307_v19, %v11731_v26  ;;  %v11638_v19 = vor.u32 %v14283_v17, %v11635_v57  ;;  %v14308_v26 = vld [vmem:[#allocation14 + $0x284] sm:$0xf]  ;;  %v14278_v17 = vld [vmem:[#allocation14 + $0x194] sm:$0xf] }
 0xa7d   : > { %v3152_v43 = vmul.f32 %v16907_v21, %v16907_v21  ;;  %3519 = vmatpush.bf16.msrb.mxu2 %v11630_v38 }
 0xa7e   : > { %3543 = vmatpush.bf16.msrb.mxu3 %v11734_v45  ;;  %v11609_v45 = vld [vmem:[#allocation14 + $0x188] sm:$0xf] }
 0xa7f   : > { %v3155_v47 = vsel %vm1166_vm6, %v3152_v43, 0.0  ;;  %v11706_v43 = vor.u32 %v14304_v37, %v11705_v34  ;;  %v11713_v34 = vld [vmem:[#allocation14 + $0x250] sm:$0xf]  ;;  %v14305_v37 = vld [vmem:[#allocation14 + $0x264] sm:$0xf0]  ;;  %v11610_v38 = vor.u32 %v14280_v30, %v11609_v45 }
 0xa80   : > { %3156 = vadd.xlane.f32.xlu0 %v3155_v47  ;;  %v14301_v47 = vld [vmem:[#allocation14 + $0x24c] sm:$0xf]  ;;  %v11714_v20 = vor.u32 %v14305_v37, %v11713_v34  ;;  %v14328_v45 = vld [vmem:[#allocation17 + $0x1a0] sm:$0xff]  ;;  %v14335_v34 = vld [vmem:[#allocation17 + $0x1d8] sm:$0xff] }
 0xa81   : > { %v11710_v49 = vor.u32 %v14301_v47, %v11707_v56  ;;  %3530 = vmatpush.bf16.msrb.mxu1 %v11706_v43  ;;  %3520 = vmatpush.bf16.msrb.mxu2 %v11606_v11  ;;  %v14302_v43 = vld [vmem:[#allocation14 + $0x254] sm:$0xf]  ;;  %v11715_v47 = vld [vmem:[#allocation14 + $0x268] sm:$0xf0] }
 0xa82   : > { %v11718_v31 = vor.u32 %v14302_v43, %v11715_v47  ;;  %v14346_v37 = vld [vmem:[#allocation17 + $0x230] sm:$0xff] }
 0xa83   : > { %3544 = vmatpush.bf16.msrb.mxu3 %v11710_v49  ;;  %v11614_v49 = vor.u32 %v14277_v32, %v11611_v16  ;;  %v14347_v16 = vld [vmem:[#allocation17 + $0x238] sm:$0xff]  ;;  %v14326_v43 = vld [vmem:[#allocation17 + $0x190] sm:$0xff] }
 0xa84   : > { %v14334_v47 = vld [vmem:[#allocation17 + $0x1d0] sm:$0xff] }
 0xa85   : > { %3531 = vmatpush.bf16.msrb.mxu1 %v11682_v61  ;;  %3569 = vmatpush.bf16.msra.mxu2 %v11790_v54  ;;  %v14331_v54 = vld [vmem:[#allocation17 + $0x1b8] sm:$0xff] }
 0xa87   : > { %3545 = vmatpush.bf16.msrb.mxu3 %v11686_v46 }
 0xa89   : > { %3532 = vmatpush.bf16.msrb.mxu1 %v11658_v44  ;;  %3570 = vmatpush.bf16.msra.mxu2 %v11766_v15  ;;  %v11670_v44 = vor.u32 %v14290_v52, %v11667_v60  ;;  %v14350_v52 = vld [vmem:[#allocation17 + $0x250] sm:$0xff] }
 0xa8a   : > { %v14370_v60 = vld [vmem:[#allocation17 + $0x2f0] sm:$0xff] }
 0xa8b   : > { %3546 = vmatpush.bf16.msrb.mxu3 %v11662_v62  ;;  %v14330_v62 = vld [vmem:[#allocation17 + $0x1b0] sm:$0xff] }
 0xa8d   : > { %3533 = vmatpush.bf16.msrb.mxu1 %v11634_v50  ;;  %v11619_v50 = vld [vmem:[#allocation14 + $0x1a8] sm:$0xf0] }
 0xa8f   : > { %3547 = vmatpush.bf16.msrb.mxu3 %v11638_v19 }
 0xa91   : > { %3534 = vmatpush.bf16.msrb.mxu1 %v11610_v38  ;;  %v14354_v38 = vld [vmem:[#allocation17 + $0x270] sm:$0xff] }
 0xa93   : > { %3548 = vmatpush.bf16.msrb.mxu3 %v11614_v49  ;;  %v14353_v49 = vld [vmem:[#allocation17 + $0x268] sm:$0xff] }
 0xa95   : > { %3991 = vmatpush.bf16.msra.mxu1 %v14331_v54  ;;  %v14360_v54 = vld [vmem:[#allocation17 + $0x2a0] sm:$0xff] }
 0xa97   : > { %4005 = vmatpush.bf16.msra.mxu3 %v14339_v41  ;;  %v14349_v41 = vld [vmem:[#allocation17 + $0x248] sm:$0xff] }
 0xa99   : > { %3992 = vmatpush.bf16.msra.mxu1 %v14330_v62 }
 0xa9b   : > { %4006 = vmatpush.bf16.msra.mxu3 %v14338_v9  ;;  %v14356_v9 = vld [vmem:[#allocation17 + $0x280] sm:$0xff] }
 0xae9   : > { %v3154_v28 = vpop.xlane.xlu2 %3153 }
 0xaea   : > { %v3158_v8 = vmul.f32 %v3154_v28, %v16670_v48  ;;  %v11739_v28 = vld [vmem:[#allocation14 + $0x298] sm:$0xf0] }
 0xaeb   : > { %v11742_v29 = vor.u32 %v14308_v26, %v11739_v28  ;;  %v11622_v28 = vor.u32 %v14278_v17, %v11619_v50 }
 0xaec   : > { %v16913_v23 = vadd.f32 1e-05, %v3158_v8  ;;  %v11738_v8 = vor.u32 %v14311_v25, %v11737_v24  ;;  %v14329_v24 = vld [vmem:[#allocation17 + $0x1a8] sm:$0xff] }
 0xaed   : > { %3571 = vmatpush.bf16.msra.mxu2 %v11742_v29  ;;  %v14337_v25 = vld [vmem:[#allocation17 + $0x1e8] sm:$0xff]  ;;  %3993 = vmatpush.bf16.msra.mxu1 %v14329_v24 }
 0xaee   : > { %15215 = vrsqrt.f32 %v16913_v23  ;;  %3557 = vmatpush.bf16.msra.mxu0 %v11738_v8  ;;  %vm3168_vm9 = vweird.f32 %v16913_v23  ;;  %4007 = vmatpush.bf16.msra.mxu3 %v14337_v25  ;;  %v14336_v8 = vld [vmem:[#allocation17 + $0x1e0] sm:$0xff] }
 0xaf1   : > { %3572 = vmatpush.bf16.msra.mxu2 %v11718_v31  ;;  %3994 = vmatpush.bf16.msra.mxu1 %v14328_v45  ;;  %v14344_v31 = vld [vmem:[#allocation17 + $0x220] sm:$0xff] }
 0xaf2   : > { %3558 = vmatpush.bf16.msra.mxu0 %v11714_v20  ;;  %4008 = vmatpush.bf16.msra.mxu3 %v14336_v8  ;;  %v14325_v20 = vld [vmem:[#allocation17 + $0x188] sm:$0xff] }
 0xaf3   : > { %v3157_v3 = vpop.xlane.xlu0 %3156 }
 0xaf4   : > { %v16916_v63 = vpop.eup %15215  ;;  %v3159_v51 = vmul.f32 %v3157_v3, %v16670_v48  ;;  %v11666_v3 = vor.u32 %v14293_v55, %v11665_v42  ;;  %v14371_v42 = vld [vmem:[#allocation17 + $0x2f8] sm:$0xff]  ;;  %v14361_v55 = vld [vmem:[#allocation17 + $0x2a8] sm:$0xff] }
 0xaf5   : > { %v3163_v12 = vmul.f32 %v16916_v63, %v16913_v23  ;;  %vm3169_vm15 = vweird.f32 %v16916_v63  ;;  %3573 = vmatpush.bf16.msra.mxu2 %v11694_v39  ;;  %v11641_v23 = vld [vmem:[#allocation14 + $0x1c0] sm:$0xf] }
 0xaf6   : > { %v16921_v18 = vadd.f32 1e-05, %v3159_v51  ;;  %vm16929_vm10 = vmor %vm3168_vm9, %vm3169_vm15  ;;  %3559 = vmatpush.bf16.msra.mxu0 %v11690_v59  ;;  %v11643_v51 = vld [vmem:[#allocation14 + $0x1d8] sm:$0xf0]  ;;  %4009 = vmatpush.bf16.msra.mxu3 %v14335_v34  ;;  %v14332_v59 = vld [vmem:[#allocation17 + $0x1c0] sm:$0xff] }
 0xaf7   : > { %v3164_v10 = vmul.f32 %v16916_v63, %v3163_v12  ;;  %v11642_v12 = vor.u32 %v14287_v5, %v11641_v23  ;;  %v11646_v15 = vor.u32 %v14284_v6, %v11643_v51  ;;  %v14351_v39 = vld [vmem:[#allocation17 + $0x258] sm:$0xff]  ;;  %v14358_v23 = vld [vmem:[#allocation17 + $0x290] sm:$0xff]  ;;  %v14357_v6 = vld [vmem:[#allocation17 + $0x288] sm:$0xff] }
 0xaf8   : > { %15217 = vrsqrt.f32 %v16921_v18  ;;  %vm3178_vm12 = vweird.f32 %v16921_v18  ;;  %v14367_v5 = vld [vmem:[#allocation17 + $0x2d8] sm:$0xff]  ;;  %v3245_v51 = vld [vmem:[#allocation16 + $0x6] sm:$0x3f] }
 0xaf9   : > { %v3165_v14 = vmul.f32 0.5, %v3164_v10  ;;  %3574 = vmatpush.bf16.msra.mxu2 %v11670_v44  ;;  %v15153_v10 = vld [vmem:[#allocation13 + $0x1] ss:$0 sm:$0xff]  ;;  %v14368_v44 = vld [vmem:[#allocation17 + $0x2e0] sm:$0xff]  ;;  %v3248_v24 = vperm.slane %v3245_v51, 1 }
 0xafa   : > { %3560 = vmatpush.bf16.msra.mxu0 %v11666_v3  ;;  %4010 = vmatpush.bf16.msra.mxu3 %v14334_v47  ;;  %v14348_v3 = vld [vmem:[#allocation17 + $0x240] sm:$0xff] }
 0xafb   : > { %v3166_v56 = vsub.f32 1.5, %v3165_v14  ;;  %v14327_v14 = vld [vmem:[#allocation17 + $0x198] sm:$0xff] }
 0xafc   : > { %3995 = vmatpush.bf16.msra.mxu1 %v14327_v14 }
 0xafd   : > { %v3167_v11 = vmul.f32 %v16916_v63, %v3166_v56  ;;  %3575 = vmatpush.bf16.msra.mxu2 %v11646_v15  ;;  %v14345_v56 = vld [vmem:[#allocation17 + $0x228] sm:$0xff]  ;;  %v14364_v15 = vld [vmem:[#allocation17 + $0x2c0] sm:$0xff] }
 0xafe   : > { %v15218_v36 = vpop.eup %15217  ;;  %3561 = vmatpush.bf16.msra.mxu0 %v11642_v12  ;;  %4011 = vmatpush.bf16.msra.mxu3 %v14333_v33 }
 0xaff   : > { %v3173_v61 = vmul.f32 %v15218_v36, %v16921_v18  ;;  %v3171_v0 = vsel %vm16929_vm10, %v16916_v63, %v3167_v11  ;;  %vm3179_vm11 = vweird.f32 %v15218_v36  ;;  %v11617_v63 = vld [vmem:[#allocation14 + $0x190] sm:$0xf]  ;;  %v14342_v11 = vld [vmem:[#allocation17 + $0x210] sm:$0xff] }
 0xb00   : > { %v3182_v13 = vmul.f32 %v3171_v0, %v16902_v22  ;;  %vm3180_vm13 = vmor %vm3178_vm12, %vm3179_vm11  ;;  %v11618_v18 = vor.u32 %v14281_v40, %v11617_v63  ;;  %3996 = vmatpush.bf16.msra.mxu1 %v14326_v43  ;;  %v14369_v0 = vld [vmem:[#allocation17 + $0x2e8] sm:$0xff]  ;;  %v3249_v63 = vperm.slane %v3245_v51, 2 }
 0xb01   : > { %v3174_v46 = vmul.f32 %v15218_v36, %v3173_v61  ;;  %3576 = vmatpush.bf16.msra.mxu2 %v11622_v28  ;;  %v14362_v61 = vld [vmem:[#allocation17 + $0x2b0] sm:$0xff] }
 0xb02   : > { %v3187_v19 = vmul.f32 %v15152_v4, %v3182_v13  ;;  %3562 = vmatpush.bf16.msra.mxu0 %v11618_v18  ;;  %4012 = vmatpush.bf16.msra.mxu3 %v14332_v59  ;;  %v3247_v13 = vperm.slane %v3245_v51, 0 }
 0xb03   : > { %v3175_v1 = vmul.f32 0.5, %v3174_v46  ;;  %v14341_v46 = vld [vmem:[#allocation17 + $0x208] sm:$0xff] }
 0xb04   : > { %v16939_v29 = vadd.f32 %v15153_v10, %v3187_v19  ;;  %3997 = vmatpush.bf16.msra.mxu1 %v14325_v20  ;;  %v3250_v19 = vperm.slane %v3245_v51, 3 }
 0xb05   : > { %v3176_v7 = vsub.f32 1.5, %v3175_v1  ;;  %v14359_v1 = vld [vmem:[#allocation17 + $0x298] sm:$0xff] }
 0xb07   : > { %v3177_v58 = vmul.f32 %v15218_v36, %v3176_v7  ;;  %v14366_v7 = vld [vmem:[#allocation17 + $0x2d0] sm:$0xff] }
 0xb08   : > { %3998 = vmatpush.bf16.msra.mxu1 %v14324_v2  ;;  %v3251_v2 = vperm.slane %v3245_v51, 4 }
 0xb09   : > { %v3181_v57 = vsel %vm3180_vm13, %v15218_v36, %v3177_v58  ;;  %v14352_v36 = vld [vmem:[#allocation17 + $0x260] sm:$0xff]  ;;  %v14365_v58 = vld [vmem:[#allocation17 + $0x2c8] sm:$0xff] }
 0xb0a   : > { %v3183_v22 = vmul.f32 %v3181_v57, %v16907_v21  ;;  %v14355_v21 = vld [vmem:[#allocation17 + $0x278] sm:$0xff] }
 0xb0c   : > { %v3188_v26 = vmul.f32 %v15152_v4, %v3183_v22 }
 0xb0e   : > { %v16941_v30 = vadd.f32 %v15153_v10, %v3188_v26 }
 0xb10   : > { %v3194_v32 = vpack.c.bf16 %v16941_v30, %v16939_v29 }
 0xb12   : > { %3507 = vmatmul.bf16.vlgmr.msrb.gmra.mxu0 %v3194_v32  ;;  %3521 = vmatmul.bf16.vlgmr.msrb.gmra.mxu2 %v3194_v32 }
 0xb13   : > { %3535 = vmatmul.bf16.vlgmr.msrb.gmra.mxu1 %v3194_v32  ;;  %3549 = vmatmul.bf16.vlgmr.msrb.gmra.mxu3 %v3194_v32 }
 0xb14   : > { %4019 = vmatpush.bf16.msrb.mxu0 %v14347_v16  ;;  %4033 = vmatpush.bf16.msrb.mxu2 %v14355_v21 }
 0xb15   : > { %4047 = vmatpush.bf16.msrb.mxu1 %v14363_v53  ;;  %4061 = vmatpush.bf16.msrb.mxu3 %v14371_v42 }
 0xb18   : > { %4020 = vmatpush.bf16.msrb.mxu0 %v14346_v37  ;;  %4034 = vmatpush.bf16.msrb.mxu2 %v14354_v38 }
 0xb19   : > { %4048 = vmatpush.bf16.msrb.mxu1 %v14362_v61  ;;  %4062 = vmatpush.bf16.msrb.mxu3 %v14370_v60 }
 0xb1c   : > { %4021 = vmatpush.bf16.msrb.mxu0 %v14345_v56  ;;  %4035 = vmatpush.bf16.msrb.mxu2 %v14353_v49 }
 0xb1d   : > { %4049 = vmatpush.bf16.msrb.mxu1 %v14361_v55  ;;  %4063 = vmatpush.bf16.msrb.mxu3 %v14369_v0  ;;  %v15154_v0 = vld [vmem:[#allocation19 + $0x1] ss:$0 sm:$0xff] }
 0xb20   : > { %4022 = vmatpush.bf16.msrb.mxu0 %v14344_v31  ;;  %4036 = vmatpush.bf16.msrb.mxu2 %v14352_v36 }
 0xb21   : > { %4050 = vmatpush.bf16.msrb.mxu1 %v14360_v54  ;;  %4064 = vmatpush.bf16.msrb.mxu3 %v14368_v44 }
 0xb22   : > { %3563 = vmatmul.bf16.vlgmr.msra.gmra.mxu0 %v3194_v32  ;;  %3577 = vmatmul.bf16.vlgmr.msra.gmra.mxu2 %v3194_v32 }
 0xb24   : > { %4023 = vmatpush.bf16.msrb.mxu0 %v14343_v27  ;;  %4037 = vmatpush.bf16.msrb.mxu2 %v14351_v39 }
 0xb25   : > { %4051 = vmatpush.bf16.msrb.mxu1 %v14359_v1  ;;  %4065 = vmatpush.bf16.msrb.mxu3 %v14367_v5 }
 0xb28   : > { %4024 = vmatpush.bf16.msrb.mxu0 %v14342_v11  ;;  %4038 = vmatpush.bf16.msrb.mxu2 %v14350_v52  ;;  %v3252_v11 = vperm.slane %v3245_v51, 5 }
 0xb29   : > { %4052 = vmatpush.bf16.msrb.mxu1 %v14358_v23  ;;  %4066 = vmatpush.bf16.msrb.mxu3 %v14366_v7 }
 0xb2c   : > { %4025 = vmatpush.bf16.msrb.mxu0 %v14341_v46  ;;  %4039 = vmatpush.bf16.msrb.mxu2 %v14349_v41 }
 0xb2d   : > { %4053 = vmatpush.bf16.msrb.mxu1 %v14357_v6  ;;  %4067 = vmatpush.bf16.msrb.mxu3 %v14365_v58 }
 0xb30   : > { %4026 = vmatpush.bf16.msrb.mxu0 %v14340_v35  ;;  %4040 = vmatpush.bf16.msrb.mxu2 %v14348_v3 }
 0xb31   : > { %4054 = vmatpush.bf16.msrb.mxu1 %v14356_v9  ;;  %4068 = vmatpush.bf16.msrb.mxu3 %v14364_v15 }
 0xb8f   : > { %v3508_v62 = vpop.f32.mrf.mxu0 }
 0xb90   : > { %v3536_v4 = vpop.f32.mrf.mxu1  ;;  %v3509_v40 = vadd.f32 %v3508_v62, %v3247_v13 }
 0xb91   : > { %v3537_v57 = vadd.f32 %v3536_v4, %v3249_v63 }
 0xb92   : > { %v3583_v26 = vmax.f32 %v3509_v40, 0.0 }
 0xb93   : > { %v3585_v28 = vmax.f32 %v3537_v57, 0.0 }
 0xb95   : > { %v3522_v12 = vpop.f32.mrf.mxu2 }
 0xb96   : > { %v3550_v17 = vpop.f32.mrf.mxu3  ;;  %v3523_v8 = vadd.f32 %v3522_v12, %v3248_v24 }
 0xb97   : > { %v3510_v50 = vpop.f32.mrf.mxu0  ;;  %v3551_v16 = vadd.f32 %v3550_v17, %v3250_v19 }
 0xb98   : > { %v3511_v25 = vadd.f32 %v3510_v50, %v3247_v13  ;;  %v3538_v10 = vpop.f32.mrf.mxu1  ;;  %v3584_v47 = vmax.f32 %v3523_v8, 0.0 }
 0xb99   : > { %v3539_v22 = vadd.f32 %v3538_v10, %v3249_v63  ;;  %v3586_v49 = vmax.f32 %v3551_v16, 0.0 }
 0xb9a   : > { %v3589_v18 = vmax.f32 %v3511_v25, 0.0 }
 0xb9b   : > { %v3591_v45 = vmax.f32 %v3539_v22, 0.0 }
 0xb9c   : > { %v3595_v32 = vpack.c.bf16 %v3589_v18, %v3583_v26 }
 0xb9d   : > { %v3597_v21 = vpack.c.bf16 %v3591_v45, %v3585_v28  ;;  %v3524_v14 = vpop.f32.mrf.mxu2 }
 0xb9e   : > { %v3525_v34 = vadd.f32 %v3524_v14, %v3248_v24  ;;  %v3552_v37 = vpop.f32.mrf.mxu3  ;;  %3999 = vmatmul.bf16.vlgmr.msra.gmra.mxu1 %v3595_v32  ;;  %v12069_v14 = vld [vmem:[#allocation5 + $0x228] sm:$0xf] }
 0xb9f   : > { %v3553_v38 = vadd.f32 %v3552_v37, %v3250_v19  ;;  %4027 = vmatmul.bf16.vlgmr.msrb.gmra.mxu0 %v3597_v21  ;;  %v3564_v43 = vpop.f32.mrf.mxu0  ;;  %v14393_v37 = vld [vmem:[#allocation5 + $0x22c] sm:$0xf] }
 0xba0   : > { %v3590_v56 = vmax.f32 %v3525_v34, 0.0  ;;  %v3565_v33 = vadd.f32 %v3564_v43, %v3251_v2  ;;  %v14394_v34 = vld [vmem:[#allocation5 + $0x230] sm:$0xf0]  ;;  %v12071_v43 = vld [vmem:[#allocation5 + $0x234] sm:$0xf0] }
 0xba1   : > { %v3592_v20 = vmax.f32 %v3553_v38, 0.0  ;;  %v12070_v38 = vor.u32 %v14394_v34, %v12069_v14  ;;  %v14375_v34 = vld [vmem:[#allocation5 + $0x19c] sm:$0xf] }
 0xba2   : > { %v3596_v31 = vpack.c.bf16 %v3590_v56, %v3584_v47  ;;  %v3587_v59 = vmax.f32 %v3565_v33, 0.0  ;;  %v12077_v47 = vld [vmem:[#allocation5 + $0x230] sm:$0xf]  ;;  %v14395_v56 = vld [vmem:[#allocation5 + $0x238] sm:$0xf0] }
 0xba3   : > { %v3598_v27 = vpack.c.bf16 %v3592_v20, %v3586_v49  ;;  %v12074_v49 = vor.u32 %v14393_v37, %v12071_v43  ;;  %v12078_v20 = vor.u32 %v14395_v56, %v12077_v47  ;;  %4304 = vmatpush.bf16.msra.mxu0 %v12070_v38  ;;  %v12059_v33 = vld [vmem:[#allocation5 + $0x21c] sm:$0xf0]  ;;  %v11999_v37 = vld [vmem:[#allocation5 + $0x1a4] sm:$0xf0]  ;;  %v14377_v47 = vld [vmem:[#allocation5 + $0x1a8] sm:$0xf0] }
 0xba4   : > { %4013 = vmatmul.bf16.vlgmr.msra.gmra.mxu3 %v3596_v31  ;;  %v12057_v31 = vld [vmem:[#allocation5 + $0x210] sm:$0xf]  ;;  %v12005_v43 = vld [vmem:[#allocation5 + $0x1a0] sm:$0xf] }
 0xba5   : > { %4041 = vmatmul.bf16.vlgmr.msrb.gmra.mxu2 %v3598_v27  ;;  %v3578_v53 = vpop.f32.mrf.mxu2  ;;  %4332 = vmatpush.bf16.msra.mxu1 %v12078_v20  ;;  %v14390_v27 = vld [vmem:[#allocation5 + $0x214] sm:$0xf] }
 0xba6   : > { %v3579_v42 = vadd.f32 %v3578_v53, %v3252_v11  ;;  %4318 = vmatpush.bf16.msra.mxu2 %v12074_v49 }
 0xba7   : > { %v3566_v36 = vpop.f32.mrf.mxu0 }
 0xba8   : > { %v3567_v61 = vadd.f32 %v3566_v36, %v3251_v2  ;;  %v3588_v60 = vmax.f32 %v3579_v42, 0.0  ;;  %v14391_v2 = vld [vmem:[#allocation5 + $0x218] sm:$0xf0]  ;;  %v12065_v36 = vld [vmem:[#allocation5 + $0x218] sm:$0xf] }
 0xba9   : > { %v12058_v53 = vor.u32 %v14391_v2, %v12057_v31  ;;  %v14388_v42 = vld [vmem:[#allocation5 + $0x200] sm:$0xf0]  ;;  %v12002_v31 = vor.u32 %v14375_v34, %v11999_v37  ;;  %v11985_v2 = vld [vmem:[#allocation5 + $0x180] sm:$0xf] }
 0xbaa   : > { %v3593_v39 = vmax.f32 %v3567_v61, 0.0  ;;  %v12062_v61 = vor.u32 %v14390_v27, %v12059_v33  ;;  %v14373_v27 = vld [vmem:[#allocation5 + $0x188] sm:$0xf0]  ;;  %v14372_v33 = vld [vmem:[#allocation5 + $0x184] sm:$0xf] }
 0xbab   : > { %4305 = vmatpush.bf16.msra.mxu0 %v12058_v53  ;;  %v12006_v53 = vor.u32 %v14377_v47, %v12005_v43 }
 0xbac   : > { %v3599_v46 = vpack.c.bf16 %v3593_v39, %v3587_v59  ;;  %4319 = vmatpush.bf16.msra.mxu2 %v12062_v61  ;;  %v12045_v39 = vld [vmem:[#allocation5 + $0x1f8] sm:$0xf]  ;;  %v11993_v61 = vld [vmem:[#allocation5 + $0x188] sm:$0xf] }
 0xbad   : > { %v3580_v55 = vpop.f32.mrf.mxu2 }
 0xbae   : > { %v3581_v52 = vadd.f32 %v3580_v55, %v3252_v11  ;;  %4055 = vmatmul.bf16.vlgmr.msrb.gmra.mxu1 %v3599_v46  ;;  %v14392_v11 = vld [vmem:[#allocation5 + $0x220] sm:$0xf0]  ;;  %v14387_v46 = vld [vmem:[#allocation5 + $0x1fc] sm:$0xf]  ;;  %v12046_v55 = vor.u32 %v14388_v42, %v12045_v39  ;;  %v11986_v39 = vor.u32 %v14373_v27, %v11985_v2 }
 0xbaf   : > { %v12066_v59 = vor.u32 %v14392_v11, %v12065_v36  ;;  %v11987_v36 = vld [vmem:[#allocation5 + $0x18c] sm:$0xf0] }
 0xbb0   : > { %v3594_v35 = vmax.f32 %v3581_v52, 0.0  ;;  %v12047_v52 = vld [vmem:[#allocation5 + $0x204] sm:$0xf0]  ;;  %4306 = vmatpush.bf16.msra.mxu0 %v12046_v55 }
 0xbb1   : > { %4333 = vmatpush.bf16.msra.mxu1 %v12066_v59  ;;  %v14374_v59 = vld [vmem:[#allocation5 + $0x190] sm:$0xf0] }
 0xbb2   : > { %v3600_v54 = vpack.c.bf16 %v3594_v35, %v3588_v60  ;;  %v12053_v60 = vld [vmem:[#allocation5 + $0x200] sm:$0xf]  ;;  %v14389_v35 = vld [vmem:[#allocation5 + $0x208] sm:$0xf0]  ;;  %v11994_v55 = vor.u32 %v14374_v59, %v11993_v61 }
 0xbb4   : > { %4069 = vmatmul.bf16.vlgmr.msrb.gmra.mxu3 %v3600_v54 }
 0xc1b   : > { %v4000_v41 = vpop.f32.mrf.mxu1 }
 0xc1c   : > { %v4001_v3 = vadd.f32 %v15154_v0, %v4000_v41  ;;  %v4028_v5 = vpop.f32.mrf.mxu0  ;;  %v12050_v41 = vor.u32 %v14387_v46, %v12047_v52  ;;  %v11990_v46 = vor.u32 %v14372_v33, %v11987_v36 }
 0xc1e   : > { %4320 = vmatpush.bf16.msra.mxu2 %v12050_v41  ;;  %v16966_v41 = vld [vmem:[#allocation2 + $0x78] sm:$0xff] }
 0xc23   : > { %v4002_v44 = vpop.f32.mrf.mxu1 }
 0xc24   : > { %v4003_v62 = vadd.f32 %v15154_v0, %v4002_v44  ;;  %v4030_v58 = vpop.f32.mrf.mxu0  ;;  %v12054_v0 = vor.u32 %v14389_v35, %v12053_v60  ;;  %v14385_v44 = vld [vmem:[#allocation5 + $0x1e8] sm:$0xf0] }
 0xc26   : > { %4334 = vmatpush.bf16.msra.mxu1 %v12054_v0 }
 0xc27   : > { %v4014_v1 = vpop.f32.mrf.mxu3 }
 0xc28   : > { %v4015_v23 = vadd.f32 %v4014_v1, %v4001_v3  ;;  %v4042_v7 = vpop.f32.mrf.mxu2  ;;  %v12033_v3 = vld [vmem:[#allocation5 + $0x1e0] sm:$0xf] }
 0xc2a   : > { %v4029_v6 = vadd.f32 %v4028_v5, %v4015_v23  ;;  %v14384_v23 = vld [vmem:[#allocation5 + $0x1e4] sm:$0xf] }
 0xc2b   : > { %v4056_v13 = vpop.f32.mrf.mxu1 }
 0xc2c   : > { %v4043_v9 = vadd.f32 %v4042_v7, %v4029_v6  ;;  %v12034_v6 = vor.u32 %v14385_v44, %v12033_v3  ;;  %v12035_v7 = vld [vmem:[#allocation5 + $0x1ec] sm:$0xf0]  ;;  %v16969_v3 = vld [vmem:[#allocation2 + $0x70] sm:$0xff] }
 0xc2e   : > { %v4057_v63 = vadd.f32 %v4056_v13, %v4043_v9  ;;  %v14386_v9 = vld [vmem:[#allocation5 + $0x1f0] sm:$0xf0]  ;;  %4307 = vmatpush.bf16.msra.mxu0 %v12034_v6  ;;  %v12021_v13 = vld [vmem:[#allocation5 + $0x1c8] sm:$0xf]  ;;  %v15155_v6 = vld [vmem:[#allocation20 + $0x1] ss:$0 sm:$0xff] }
 0xc2f   : > { %v4016_v51 = vpop.f32.mrf.mxu3 }
 0xc30   : > { %v4017_v4 = vadd.f32 %v4016_v51, %v4003_v62  ;;  %v4044_v17 = vpop.f32.mrf.mxu2  ;;  %v12041_v51 = vld [vmem:[#allocation5 + $0x1e8] sm:$0xf]  ;;  %v12038_v62 = vor.u32 %v14384_v23, %v12035_v7  ;;  %v16972_v23 = vld [vmem:[#allocation2 + $0x68] sm:$0xff] }
 0xc32   : > { %v4031_v12 = vadd.f32 %v4030_v58, %v4017_v4  ;;  %v12042_v4 = vor.u32 %v14386_v9, %v12041_v51  ;;  %v14382_v58 = vld [vmem:[#allocation5 + $0x1d0] sm:$0xf0]  ;;  %4321 = vmatpush.bf16.msra.mxu2 %v12038_v62  ;;  %v16979_v9 = vld [vmem:[#allocation2 + $0x58] sm:$0xff] }
 0xc33   : > { %v4058_v24 = vpop.f32.mrf.mxu1  ;;  %v16976_v51 = vld [vmem:[#allocation2 + $0x60] sm:$0xff] }
 0xc34   : > { %v4045_v57 = vadd.f32 %v4044_v17, %v4031_v12  ;;  %v12022_v12 = vor.u32 %v14382_v58, %v12021_v13  ;;  %v14383_v17 = vld [vmem:[#allocation5 + $0x1d8] sm:$0xf0]  ;;  %4335 = vmatpush.bf16.msra.mxu1 %v12042_v4  ;;  %v15156_v4 = vld [vmem:[#allocation22 + $0x1] ss:$0 sm:$0xff] }
 0xc36   : > { %v4059_v25 = vadd.f32 %v4058_v24, %v4045_v57  ;;  %v12009_v24 = vld [vmem:[#allocation5 + $0x1b0] sm:$0xf]  ;;  %4308 = vmatpush.bf16.msra.mxu0 %v12022_v12  ;;  %v16986_v12 = vld [vmem:[#allocation2 + $0x48] sm:$0xff] }
 0xc37   : > { %v4070_v15 = vpop.f32.mrf.mxu3 }
 0xc38   : > { %v4071_v40 = vadd.f32 %v4070_v15, %v4057_v63  ;;  %v14381_v63 = vld [vmem:[#allocation5 + $0x1cc] sm:$0xf]  ;;  %v12023_v15 = vld [vmem:[#allocation5 + $0x1d4] sm:$0xf0] }
 0xc39   : > { %v12026_v57 = vor.u32 %v14381_v63, %v12023_v15  ;;  %v16983_v63 = vld [vmem:[#allocation2 + $0x50] sm:$0xff] }
 0xc3a   : > { %v4075_v50 = vadd.f32 %v4071_v40, %v16939_v29  ;;  %v12029_v40 = vld [vmem:[#allocation5 + $0x1d0] sm:$0xf] }
 0xc3b   : > { %4322 = vmatpush.bf16.msra.mxu2 %v12026_v57  ;;  %v16998_v57 = vld [vmem:[#allocation2 + $0x38] sm:$0xff] }
 0xc3c   : > { %4081 = vadd.xlane.f32.xlu2 %v4075_v50 }
 0xc3f   : > { %v4072_v10 = vpop.f32.mrf.mxu3 }
 0xc40   : > { %v4073_v19 = vadd.f32 %v4072_v10, %v4059_v25  ;;  %v14379_v25 = vld [vmem:[#allocation5 + $0x1b8] sm:$0xf0]  ;;  %v14378_v10 = vld [vmem:[#allocation5 + $0x1b4] sm:$0xf] }
 0xc42   : > { %v4076_v22 = vadd.f32 %v4073_v19, %v16941_v30  ;;  %v12011_v19 = vld [vmem:[#allocation5 + $0x1bc] sm:$0xf0] }
 0xc44   : > { %v4083_v26 = vsel %vm1166_vm6, %v4076_v22, 0.0 }
 0xc45   : > { %4084 = vadd.xlane.f32.xlu1 %v4083_v26  ;;  %v14380_v26 = vld [vmem:[#allocation5 + $0x1c0] sm:$0xf0] }
 0xcaf   : > { %v4082_v18 = vpop.xlane.xlu2 %4081 }
 0xcb0   : > { %v4086_v28 = vmul.f32 %v4082_v18, %v16670_v48  ;;  %v12010_v18 = vor.u32 %v14379_v25, %v12009_v24  ;;  %v17004_v24 = vld [vmem:[#allocation2 + $0x28] sm:$0xff]  ;;  %v17007_v25 = vld [vmem:[#allocation2 + $0x20] sm:$0xff] }
 0xcb2   : > { %v16949_v45 = vsub.f32 %v4075_v50, %v4086_v28  ;;  %v12030_v50 = vor.u32 %v14383_v17, %v12029_v40  ;;  %4309 = vmatpush.bf16.msra.mxu0 %v12010_v18  ;;  %v16993_v17 = vld [vmem:[#allocation2 + $0x40] sm:$0xff]  ;;  %v17022_v18 = vld [vmem:[#allocation7 + $0x6] sm:$0x7] }
 0xcb4   : > { %v4090_v8 = vmul.f32 %v16949_v45, %v16949_v45  ;;  %4336 = vmatpush.bf16.msra.mxu1 %v12030_v50  ;;  %v17001_v50 = vld [vmem:[#allocation2 + $0x30] sm:$0xff] }
 0xcb6   : > { %4092 = vadd.xlane.f32.xlu0 %v4090_v8  ;;  %v12014_v8 = vor.u32 %v14378_v10, %v12011_v19  ;;  %v17010_v10 = vld [vmem:[#allocation2 + $0x18] sm:$0xff]  ;;  %v17013_v19 = vld [vmem:[#allocation2 + $0x10] sm:$0xff] }
 0xcb8   : > { %v4085_v29 = vpop.xlane.xlu1 %4084  ;;  %4323 = vmatpush.bf16.msra.mxu2 %v12014_v8  ;;  %v4172_v8 = vperm.slane %v17022_v18, 2 }
 0xcb9   : > { %v4087_v32 = vmul.f32 %v4085_v29, %v16670_v48  ;;  %v11997_v29 = vld [vmem:[#allocation5 + $0x198] sm:$0xf] }
 0xcbb   : > { %v16954_v16 = vsub.f32 %v4076_v22, %v4087_v32  ;;  %v12017_v22 = vld [vmem:[#allocation5 + $0x1b8] sm:$0xf]  ;;  %v14376_v32 = vld [vmem:[#allocation5 + $0x1a0] sm:$0xf0] }
 0xcbc   : > { %v12018_v14 = vor.u32 %v14380_v26, %v12017_v22  ;;  %v11998_v49 = vor.u32 %v14376_v32, %v11997_v29  ;;  %4324 = vmatpush.bf16.msra.mxu2 %v12002_v31  ;;  %v17016_v22 = vld [vmem:[#allocation2 + $0x8] sm:$0xff]  ;;  %v17019_v26 = vld [vmem:[#allocation2] sm:$0xff]  ;;  %v4171_v29 = vperm.slane %v17022_v18, 1 }
 0xcbd   : > { %v4091_v30 = vmul.f32 %v16954_v16, %v16954_v16 }
 0xcbe   : > { %4337 = vmatpush.bf16.msra.mxu1 %v12018_v14  ;;  %4310 = vmatpush.bf16.msra.mxu0 %v11998_v49 }
 0xcbf   : > { %v4094_v21 = vsel %vm1166_vm6, %v4091_v30, 0.0 }
 0xcc0   : > { %4095 = vadd.xlane.f32.xlu1 %v4094_v21  ;;  %4325 = vmatpush.bf16.msra.mxu2 %v11990_v46 }
 0xcc2   : > { %4338 = vmatpush.bf16.msra.mxu1 %v12006_v53  ;;  %4311 = vmatpush.bf16.msra.mxu0 %v11986_v39 }
 0xcc6   : > { %4339 = vmatpush.bf16.msra.mxu1 %v11994_v55 }
 0xcca   : > { %4589 = vmatpush.msrb.mxu1 %v16966_v41 }
 0xccc   : > { %4590 = vmatpush.msrb.mxu1 %v16969_v3 }
 0xcce   : > { %4591 = vmatpush.msrb.mxu1 %v16972_v23 }
 0xcd0   : > { %4592 = vmatpush.msrb.mxu1 %v16976_v51 }
 0xcd2   : > { %4593 = vmatpush.msrb.mxu1 %v16979_v9 }
 0xcd4   : > { %4594 = vmatpush.msrb.mxu1 %v16983_v63 }
 0xcd6   : > { %4595 = vmatpush.msrb.mxu1 %v16986_v12 }
 0xcd8   : > { %4596 = vmatpush.msrb.mxu1 %v16993_v17 }
 0xcda   : > { %4597 = vmatpush.msrb.mxu1 %v16998_v57 }
 0xcdc   : > { %4598 = vmatpush.msrb.mxu1 %v17001_v50 }
 0xcde   : > { %4599 = vmatpush.msrb.mxu1 %v17004_v24 }
 0xce0   : > { %4600 = vmatpush.msrb.mxu1 %v17007_v25 }
 0xce2   : > { %4601 = vmatpush.msrb.mxu1 %v17010_v10 }
 0xce4   : > { %4602 = vmatpush.msrb.mxu1 %v17013_v19 }
 0xce6   : > { %4603 = vmatpush.msrb.mxu1 %v17016_v22 }
 0xce8   : > { %4604 = vmatpush.msrb.mxu1 %v17019_v26 }
 0xd29   : > { %v4093_v54 = vpop.xlane.xlu0 %4092 }
 0xd2a   : > { %v4097_v1 = vmul.f32 %v4093_v54, %v16670_v48 }
 0xd2c   : > { %v16960_v5 = vadd.f32 1e-05, %v4097_v1 }
 0xd2e   : > { %15219 = vrsqrt.f32 %v16960_v5  ;;  %vm4107_vm15 = vweird.f32 %v16960_v5 }
 0xd33   : > { %v4096_v28 = vpop.xlane.xlu1 %4095 }
 0xd34   : > { %v15220_v30 = vpop.eup %15219  ;;  %v4098_v21 = vmul.f32 %v4096_v28, %v16670_v48 }
 0xd35   : > { %v4102_v38 = vmul.f32 %v15220_v30, %v16960_v5  ;;  %vm4108_vm14 = vweird.f32 %v15220_v30 }
 0xd36   : > { %v4100_v56 = vadd.f32 1e-05, %v4098_v21  ;;  %vm4109_vm9 = vmor %vm4107_vm15, %vm4108_vm14 }
 0xd37   : > { %v4103_v20 = vmul.f32 %v15220_v30, %v4102_v38 }
 0xd38   : > { %15221 = vrsqrt.f32 %v4100_v56  ;;  %vm4117_vm11 = vweird.f32 %v4100_v56 }
 0xd39   : > { %v4104_v11 = vmul.f32 0.5, %v4103_v20 }
 0xd3b   : > { %v4105_v42 = vsub.f32 1.5, %v4104_v11 }
 0xd3d   : > { %v4106_v60 = vmul.f32 %v15220_v30, %v4105_v42 }
 0xd3e   : > { %v15222_v52 = vpop.eup %15221 }
 0xd3f   : > { %v4112_v35 = vmul.f32 %v15222_v52, %v4100_v56  ;;  %v4110_v0 = vsel %vm4109_vm9, %v15220_v30, %v4106_v60  ;;  %vm4118_vm10 = vweird.f32 %v15222_v52 }
 0xd40   : > { %v4121_v5 = vmul.f32 %v4110_v0, %v16949_v45  ;;  %vm4119_vm12 = vmor %vm4117_vm11, %vm4118_vm10 }
 0xd41   : > { %v4113_v54 = vmul.f32 %v15222_v52, %v4112_v35 }
 0xd42   : > { %v4126_v13 = vmul.f32 %v15155_v6, %v4121_v5 }
 0xd43   : > { %v4114_v1 = vmul.f32 0.5, %v4113_v54 }
 0xd44   : > { %v16989_v15 = vadd.f32 %v15156_v4, %v4126_v13 }
 0xd45   : > { %v4115_v44 = vsub.f32 1.5, %v4114_v1 }
 0xd47   : > { %v4116_v7 = vmul.f32 %v15222_v52, %v4115_v44 }
 0xd49   : > { %v4120_v62 = vsel %vm4119_vm12, %v15222_v52, %v4116_v7 }
 0xd4a   : > { %v4122_v58 = vmul.f32 %v4120_v62, %v16954_v16 }
 0xd4c   : > { %v4127_v45 = vmul.f32 %v15155_v6, %v4122_v58 }
 0xd4e   : > { %v16991_v40 = vadd.f32 %v15156_v4, %v4127_v45 }
 0xd50   : > { %v4133_v16 = vpack.c.bf16 %v16991_v40, %v16989_v15 }
 0xd52   : > { %4312 = vmatmul.bf16.vlgmr.msra.gmra.mxu0 %v4133_v16  ;;  %4326 = vmatmul.bf16.vlgmr.msra.gmra.mxu2 %v4133_v16 }
 0xd53   : > { %4340 = vmatmul.bf16.vlgmr.msra.gmra.mxu1 %v4133_v16 }
 0xdd0   : > { %v4341_v28 = vpop.f32.mrf.mxu1 }
 0xdd1   : > { %v17026_v32 = vadd.f32 %v4341_v28, %v4172_v8 }
 0xdd3   : > { %v4430_v37 = vrot.slane %v17026_v32, 3  ;;  %v4435_v38 = vrot.slane %v17026_v32, 2  ;;  %v4425_v43 = vrot.slane %v17026_v32, 4  ;;  %v4420_v47 = vrot.slane %v17026_v32, 5 }
 0xdd4   : > { %v4415_v56 = vrot.slane %v17026_v32, 6  ;;  %v4410_v49 = vrot.slane %v17026_v32, 7  ;;  %v4440_v11 = vrot.slane %v17026_v32, 1 }
 0xdd5   : > { %v4327_v30 = vpop.f32.mrf.mxu2 }
 0xdd6   : > { %v17028_v21 = vadd.f32 %v4327_v30, %v4171_v29  ;;  %v15345_v30 = vld [vmem:[#allocation2 + $0x88] sm:$0xff] }
 0xdd8   : > { %v4343_v14 = vpop.f32.mrf.mxu1  ;;  %v4378_v53 = vrot.slane %v17028_v21, 1  ;;  %v4368_v33 = vrot.slane %v17028_v21, 3  ;;  %v4373_v36 = vrot.slane %v17028_v21, 2  ;;  %v4363_v1 = vrot.slane %v17028_v21, 4 }
 0xdd9   : > { %v4344_v34 = vadd.f32 %v4343_v14, %v4172_v8 }
 0xddb   : > { %v4431_v20 = vrot.slane %v4344_v34, 3  ;;  %v4426_v31 = vrot.slane %v4344_v34, 4  ;;  %v4421_v2 = vrot.slane %v4344_v34, 5  ;;  %v4416_v27 = vrot.slane %v4344_v34, 6 }
 0xddc   : > { %v4411_v46 = vrot.slane %v4344_v34, 7  ;;  %v4441_v44 = vrot.slane %v4344_v34, 1  ;;  %v4436_v62 = vrot.slane %v4344_v34, 2 }
 0xddd   : > { %v4329_v61 = vpop.f32.mrf.mxu2  ;;  %v4432_v59 = vsel %vm1190_vm1, %v4430_v37, %v4431_v20  ;;  %v4427_v39 = vsel %vm1184_vm3, %v4425_v43, %v4426_v31  ;;  %v4422_v42 = vsel %vm1178_vm4, %v4420_v47, %v4421_v2  ;;  %v4417_v35 = vsel %vm1172_vm5, %v4415_v56, %v4416_v27 }
 0xdde   : > { %v17043_v55 = vadd.f32 %v4329_v61, %v4171_v29  ;;  %v17046_v52 = vsel %vm1196_vm2, %v4432_v59, %v4435_v38  ;;  %v17049_v60 = vsel %vm1190_vm1, %v4427_v39, %v4430_v37  ;;  %v17055_v0 = vsel %vm1184_vm3, %v4422_v42, %v4425_v43  ;;  %v4313_v61 = vpop.f32.mrf.mxu0 }
 0xddf   : > { %v4467_v54 = vmul.f32 %v16966_v41, %v17046_v52  ;;  %v4466_v6 = vmul.f32 %v16969_v3, %v17049_v60  ;;  %v17063_v4 = vsel %vm1178_vm4, %v4417_v35, %v4420_v47  ;;  %v4412_v13 = vsel %vm1166_vm6, %v4410_v49, %v4411_v46  ;;  %v15346_v35 = vld [vmem:[#allocation2 + $0x80] sm:$0xff] }
 0xde0   : > { %v4379_v5 = vrot.slane %v17043_v55, 1  ;;  %v4369_v7 = vrot.slane %v17043_v55, 3  ;;  %v4374_v58 = vrot.slane %v17043_v55, 2  ;;  %v4364_v45 = vrot.slane %v17043_v55, 4 }
 0xde1   : > { %4543 = vmatpush.msrb.mxu2 %v4467_v54  ;;  %v4465_v16 = vmul.f32 %v16972_v23, %v17055_v0  ;;  %v4358_v29 = vrot.slane %v17028_v21, 5  ;;  %v4464_v31 = vmul.f32 %v16976_v51, %v17063_v4  ;;  %v17086_v2 = vsel %vm1172_vm5, %v4412_v13, %v4415_v56 }
 0xde2   : > { %v17071_v28 = vsel %vm1202_vm0, %v4378_v53, %v4379_v5  ;;  %v4370_v8 = vsel %vm1190_vm1, %v4368_v33, %v4369_v7  ;;  %v4375_v43 = vsel %vm1196_vm2, %v4373_v36, %v4374_v58  ;;  %v4365_v47 = vsel %vm1184_vm3, %v4363_v1, %v4364_v45 }
 0xde3   : > { %4544 = vmatpush.msrb.mxu2 %v4466_v6  ;;  %v4407_v14 = vmul.f32 %v15345_v30, %v17071_v28  ;;  %v17077_v37 = vsel %vm1196_vm2, %v4370_v8, %v4373_v36  ;;  %v17089_v27 = vsel %vm1202_vm0, %v4375_v43, %v4378_v53  ;;  %v17092_v59 = vsel %vm1190_vm1, %v4365_v47, %v4368_v33 }
 0xde4   : > { %v4405_v20 = vmul.f32 %v16966_v41, %v17077_v37  ;;  %v4442_v36 = vsel %vm1202_vm0, %v4440_v11, %v4441_v44  ;;  %v4437_v39 = vsel %vm1196_vm2, %v4435_v38, %v4436_v62  ;;  %v4359_v41 = vrot.slane %v17043_v55, 5 }
 0xde5   : > { %4545 = vmatpush.msrb.mxu2 %v4465_v16  ;;  %4507 = vmatpush.xpose.msrb.mxu0 %v4407_v14  ;;  %v4170_v42 = vperm.slane %v17022_v18, 0  ;;  %v4445_v56 = vsel %vm1166_vm6, %v4344_v34, %v4410_v49  ;;  %v4354_v53 = vrot.slane %v17043_v55, 6  ;;  %v4463_v46 = vmul.f32 %v16979_v9, %v17086_v2 }
 0xde6   : > { %4470 = vmatpush.xpose.msra.mxu3 %v4405_v20  ;;  %v4406_v33 = vmul.f32 %v15346_v35, %v17089_v27  ;;  %v4360_v54 = vsel %vm1178_vm4, %v4358_v29, %v4359_v41  ;;  %v4404_v38 = vmul.f32 %v16969_v3, %v17092_v59  ;;  %v4469_v44 = vmul.f32 %v15345_v30, %v4442_v36  ;;  %v4315_v8 = vpop.f32.mrf.mxu0 }
 0xde7   : > { %4546 = vmatpush.msrb.mxu2 %v4464_v31  ;;  %v4451_v18 = vsel %vm1202_vm0, %v4437_v39, %v4440_v11  ;;  %v4353_v6 = vrot.slane %v17028_v21, 6  ;;  %v4462_v34 = vmul.f32 %v16983_v63, %v4445_v56  ;;  %v4386_v49 = vsel %vm1184_vm3, %v4360_v54, %v4363_v1 }
 0xde8   : > { %v17110_v5 = vadd.f32 %v4313_v61, %v4170_v42  ;;  %v4349_v62 = vrot.slane %v17043_v55, 7  ;;  %v4461_v3 = vmul.f32 %v16986_v12, %v17026_v32  ;;  %v4468_v11 = vmul.f32 %v15346_v35, %v4451_v18 }
 0xde9   : > { %4547 = vmatpush.msrb.mxu2 %v4463_v46  ;;  %4508 = vmatpush.xpose.msrb.mxu0 %v4406_v33  ;;  %v4355_v7 = vsel %vm1172_vm5, %v4353_v6, %v4354_v53  ;;  %v4403_v13 = vmul.f32 %v16972_v23, %v4386_v49  ;;  %v4348_v58 = vrot.slane %v17028_v21, 7  ;;  %v4460_v1 = vmul.f32 %v16993_v17, %v4442_v36 }
 0xdea   : > { %4471 = vmatpush.xpose.msra.mxu3 %v4404_v38  ;;  %v4385_v45 = vsel %vm1178_vm4, %v4355_v7, %v4358_v29  ;;  %v4459_v14 = vmul.f32 %v16998_v57, %v4451_v18  ;;  %v4458_v23 = vmul.f32 %v17001_v50, %v17046_v52  ;;  %v4316_v20 = vadd.f32 %v4315_v8, %v4170_v42  ;;  %v14399_v7 = vld [vmem:[#allocation8 + $0x98] sm:$0xff] }
 0xdeb   : > { %4548 = vmatpush.msrb.mxu2 %v4462_v34  ;;  %v4350_v16 = vsel %vm1166_vm6, %v4348_v58, %v4349_v62  ;;  %v4402_v43 = vmul.f32 %v16976_v51, %v4385_v45  ;;  %v4457_v29 = vmul.f32 %v17004_v24, %v17049_v60  ;;  %v4456_v51 = vmul.f32 %v17007_v25, %v17055_v0  ;;  %v14402_v34 = vld [vmem:[#allocation8 + $0xb0] sm:$0xff] }
 0xdec   : > { %4509 = vmatmul.f32.vlgmr.msrb.gmra.mxu0 %v17110_v5  ;;  %v4384_v47 = vsel %vm1172_vm5, %v4350_v16, %v4353_v6  ;;  %v4383_v31 = vsel %vm1166_vm6, %v17043_v55, %v4348_v58  ;;  %v4455_v52 = vmul.f32 %v17010_v10, %v17063_v4  ;;  %v4454_v60 = vmul.f32 %v17013_v19, %v17086_v2  ;;  %v14403_v6 = vld [vmem:[#allocation8 + $0xb8] sm:$0xff]  ;;  %v14396_v58 = vld [vmem:[#allocation8 + $0x80] sm:$0xff] }
 0xded   : > { %4580 = vmatpush.msra.mxu0 %v4469_v44  ;;  %4549 = vmatpush.msrb.mxu2 %v4461_v3  ;;  %v4400_v61 = vmul.f32 %v16983_v63, %v4383_v31  ;;  %v4399_v0 = vmul.f32 %v16986_v12, %v17028_v21  ;;  %v4452_v55 = vmul.f32 %v17019_v26, %v17026_v32  ;;  %v14398_v3 = vld [vmem:[#allocation8 + $0x90] sm:$0xff] }
 0xdee   : > { %4472 = vmatpush.xpose.msra.mxu3 %v4403_v13  ;;  %v4398_v63 = vmul.f32 %v16993_v17, %v17071_v28  ;;  %v4397_v4 = vmul.f32 %v16998_v57, %v17089_v27  ;;  %v4396_v2 = vmul.f32 %v17001_v50, %v17077_v37  ;;  %v4395_v12 = vmul.f32 %v17004_v24, %v17092_v59 }
 0xdef   : > { %4581 = vmatpush.msra.mxu0 %v4468_v11  ;;  %4550 = vmatpush.msrb.mxu2 %v4460_v1  ;;  %v4394_v32 = vmul.f32 %v17007_v25, %v4386_v49  ;;  %v4393_v36 = vmul.f32 %v17010_v10, %v4385_v45  ;;  %v4392_v17 = vmul.f32 %v17013_v19, %v4384_v47  ;;  %v14401_v49 = vld [vmem:[#allocation8 + $0xa8] sm:$0xff] }
 0xdf0   : > { %v4391_v57 = vmul.f32 %v17016_v22, %v4383_v31  ;;  %v4390_v50 = vmul.f32 %v17019_v26, %v17028_v21  ;;  %v14397_v11 = vld [vmem:[#allocation8 + $0x88] sm:$0xff] }
 0xdf1   : > { %4626 = vmatpush.msrb.mxu0 %v15345_v30  ;;  %4551 = vmatpush.msrb.mxu2 %v4459_v14  ;;  %v4401_v30 = vmul.f32 %v16979_v9, %v4384_v47  ;;  %v4453_v9 = vmul.f32 %v17016_v22, %v4445_v56 }
 0xdf2   : > { %4473 = vmatpush.xpose.msra.mxu3 %v4402_v43 }
 0xdf3   : > { %4627 = vmatpush.msrb.mxu0 %v15346_v35  ;;  %4552 = vmatpush.msrb.mxu2 %v4458_v23 }
 0xdf4   : > { %4512 = vmatmul.f32.gmra.mxu0 %v4316_v20 }
 0xdf5   : > { %4553 = vmatpush.msrb.mxu2 %v4457_v29 }
 0xdf6   : > { %4474 = vmatpush.xpose.msra.mxu3 %v4401_v30 }
 0xdf7   : > { %4554 = vmatpush.msrb.mxu2 %v4456_v51 }
 0xdf9   : > { %4555 = vmatpush.msrb.mxu2 %v4455_v52 }
 0xdfa   : > { %4475 = vmatpush.xpose.msra.mxu3 %v4400_v61 }
 0xdfb   : > { %4556 = vmatpush.msrb.mxu2 %v4454_v60  ;;  %v15157_v60 = vld [vmem:[#allocation10 + $0x2] ss:$0 sm:$0xff] }
 0xdfd   : > { %4557 = vmatpush.msrb.mxu2 %v4453_v9 }
 0xdfe   : > { %4476 = vmatpush.xpose.msra.mxu3 %v4399_v0 }
 0xdff   : > { %4558 = vmatpush.msrb.mxu2 %v4452_v55 }
 0xe01   : > { %4710 = vmatpush.bf16.msra.mxu2 %v14403_v6 }
 0xe02   : > { %4477 = vmatpush.xpose.msra.mxu3 %v4398_v63 }
 0xe05   : > { %4711 = vmatpush.bf16.msra.mxu2 %v14402_v34  ;;  %v12215_v34 = vld [vmem:[#allocation14 + $0x3d8] sm:$0xf0] }
 0xe06   : > { %4478 = vmatpush.xpose.msra.mxu3 %v4397_v4 }
 0xe09   : > { %4712 = vmatpush.bf16.msra.mxu2 %v14401_v49  ;;  %v12293_v49 = vld [vmem:[#allocation14 + $0x458] sm:$0xf] }
 0xe0a   : > { %4479 = vmatpush.xpose.msra.mxu3 %v4396_v2 }
 0xe0e   : > { %4480 = vmatpush.xpose.msra.mxu3 %v4395_v12 }
 0xe12   : > { %4481 = vmatpush.xpose.msra.mxu3 %v4394_v32  ;;  %v12285_v32 = vld [vmem:[#allocation14 + $0x450] sm:$0xf] }
 0xe16   : > { %4482 = vmatpush.xpose.msra.mxu3 %v4393_v36  ;;  %v14449_v36 = vld [vmem:[#allocation14 + $0x464] sm:$0xf0] }
 0xe1a   : > { %4483 = vmatpush.xpose.msra.mxu3 %v4392_v17  ;;  %v14446_v17 = vld [vmem:[#allocation14 + $0x454] sm:$0xf] }
 0xe1e   : > { %4484 = vmatpush.xpose.msra.mxu3 %v4391_v57  ;;  %v12286_v57 = vor.u32 %v14449_v36, %v12285_v32 }
 0xe22   : > { %4485 = vmatpush.xpose.msra.mxu3 %v4390_v50  ;;  %v12287_v50 = vld [vmem:[#allocation14 + $0x468] sm:$0xf0] }
 0xe25   : > { %4486 = vmatmul.f32.vlgmr.msra.gmra.mxu3 %v17110_v5  ;;  %v14400_v5 = vld [vmem:[#allocation8 + $0xa0] sm:$0xff] }
 0xe26   : > { %4713 = vmatpush.bf16.msra.mxu2 %v14400_v5  ;;  %v14450_v5 = vld [vmem:[#allocation14 + $0x46c] sm:$0xf0] }
 0xe2a   : > { %4714 = vmatpush.bf16.msra.mxu2 %v14399_v7 }
 0xe2d   : > { %4489 = vmatmul.f32.gmra.mxu3 %v4316_v20 }
 0xe2e   : > { %4715 = vmatpush.bf16.msra.mxu2 %v14398_v3  ;;  %v14447_v3 = vld [vmem:[#allocation14 + $0x45c] sm:$0xf] }
 0xe32   : > { %4716 = vmatpush.bf16.msra.mxu2 %v14397_v11  ;;  %v12295_v11 = vld [vmem:[#allocation14 + $0x470] sm:$0xf0] }
 0xe36   : > { %4717 = vmatpush.bf16.msra.mxu2 %v14396_v58  ;;  %v12189_v58 = vld [vmem:[#allocation14 + $0x390] sm:$0xf] }
 0xe69   : > { %v4510_v24 = vpop.f32.mrf.mxu0 }
 0xe6a   : > { %v4516_v25 = vsel %vm1341_vm7, %v4510_v24, -inf }
 0xe71   : > { %v4513_v10 = vpop.f32.mrf.mxu0 }
 0xe72   : > { %v4521_v22 = vsel %vm1347_vm8, %v4513_v10, -inf }
 0xea8   : > { %v4487_v28 = vpop.f32.mrf.mxu3 }
 0xea9   : > { %v4517_v37 = vmax.f32 %v4487_v28, %v4516_v25 }
 0xeab   : > { %4518 = vmax.xlane.f32.xlu2 %v4517_v37 }
 0xeb0   : > { %v4490_v27 = vpop.f32.mrf.mxu3 }
 0xeb1   : > { %v4520_v19 = vsel %vm1166_vm6, %v4490_v27, -inf }
 0xeb2   : > { %v4522_v59 = vmax.f32 %v4520_v19, %v4521_v22 }
 0xeb4   : > { %4523 = vmax.xlane.f32.xlu0 %v4522_v59  ;;  %v12261_v59 = vld [vmem:[#allocation14 + $0x420] sm:$0xf] }
 0xf1e   : > { %v4519_v39 = vpop.xlane.xlu2 %4518 }
 0xf1f   : > { %v4525_v26 = vsub.f32 %v4487_v28, %v4519_v39  ;;  %v4526_v21 = vsub.f32 %v4510_v24, %v4519_v39  ;;  %v12290_v24 = vor.u32 %v14446_v17, %v12287_v50  ;;  %v14443_v39 = vld [vmem:[#allocation14 + $0x434] sm:$0xf0]  ;;  %v12141_v17 = vld [vmem:[#allocation14 + $0x330] sm:$0xf]  ;;  %v14410_v50 = vld [vmem:[#allocation14 + $0x334] sm:$0xf] }
 0xf21   : > { %v4529_v41 = vmul.f32 1.442695, %v4525_v26  ;;  %v4531_v42 = vmul.f32 1.442695, %v4526_v21  ;;  %5101 = vmatpush.bf16.msra.mxu1 %v12290_v24  ;;  %v14440_v26 = vld [vmem:[#allocation14 + $0x424] sm:$0xf]  ;;  %v12262_v21 = vor.u32 %v14443_v39, %v12261_v59 }
 0xf22   : > { %v12223_v59 = vld [vmem:[#allocation14 + $0x3e0] sm:$0xf0] }
 0xf23   : > { %15223 = vpow2.f32 %v4529_v41  ;;  %v12263_v41 = vld [vmem:[#allocation14 + $0x438] sm:$0xf0] }
 0xf24   : > { %15225 = vpow2.f32 %v4531_v42  ;;  %v12266_v42 = vor.u32 %v14440_v26, %v12263_v41  ;;  %v12117_v26 = vld [vmem:[#allocation14 + $0x300] sm:$0xf]  ;;  %v14404_v41 = vld [vmem:[#allocation14 + $0x304] sm:$0xf] }
 0xf26   : > { %5102 = vmatpush.bf16.msra.mxu1 %v12266_v42 }
 0xf27   : > { %v4524_v56 = vpop.xlane.xlu0 %4523 }
 0xf28   : > { %v4527_v53 = vsub.f32 %v4490_v27, %v4524_v56  ;;  %v4528_v46 = vsub.f32 %v4513_v10, %v4524_v56  ;;  %v12237_v56 = vld [vmem:[#allocation14 + $0x3f0] sm:$0xf] }
 0xf29   : > { %v15224_v35 = vpop.eup %15223 }
 0xf2a   : > { %v15226_v33 = vpop.eup %15225  ;;  %v4533_v54 = vmul.f32 1.442695, %v4527_v53  ;;  %v4535_v38 = vmul.f32 1.442695, %v4528_v46  ;;  %4559 = vmatmul.f32.vlgmr.msrb.gmra.mxu2 %v15224_v35  ;;  %4605 = vmatmul.f32.vlgmr.msrb.gmra.mxu1 %v15224_v35  ;;  %v14437_v53 = vld [vmem:[#allocation14 + $0x404] sm:$0xf0] }
 0xf2b   : > { %12079 = vmatmul.msk.f32.vlgmr.msra.gmra.mxu0 %vm1341_vm7, %v15226_v33  ;;  %v14434_v46 = vld [vmem:[#allocation14 + $0x3f4] sm:$0xf]  ;;  %v12238_v35 = vor.u32 %v14437_v53, %v12237_v56  ;;  %v12119_v56 = vld [vmem:[#allocation14 + $0x318] sm:$0xf0]  ;;  %v12197_v53 = vld [vmem:[#allocation14 + $0x398] sm:$0xf] }
 0xf2c   : > { %15227 = vpow2.f32 %v4533_v54  ;;  %5087 = vmatpush.bf16.msra.mxu0 %v12286_v57  ;;  %v14413_v57 = vld [vmem:[#allocation14 + $0x344] sm:$0xf0] }
 0xf2d   : > { %15229 = vpow2.f32 %v4535_v38  ;;  %v12213_v38 = vld [vmem:[#allocation14 + $0x3c0] sm:$0xf]  ;;  %v12142_v24 = vor.u32 %v14413_v57, %v12141_v17 }
 0xf2e   : > { %v14408_v57 = vld [vmem:[#allocation14 + $0x31c] sm:$0xf0] }
 0xf30   : > { %5088 = vmatpush.bf16.msra.mxu0 %v12262_v21  ;;  %v14407_v21 = vld [vmem:[#allocation14 + $0x314] sm:$0xf0] }
 0xf31   : > { %v12118_v42 = vor.u32 %v14407_v21, %v12117_v26 }
 0xf32   : > { %v15228_v44 = vpop.eup %15227 }
 0xf33   : > { %v15230_v18 = vpop.eup %15229  ;;  %4562 = vmatmul.f32.gmra.mxu2 %v15228_v44  ;;  %4608 = vmatmul.f32.gmra.mxu1 %v15228_v44  ;;  %v14431_v44 = vld [vmem:[#allocation14 + $0x3d4] sm:$0xf0] }
 0xf34   : > { %12080 = vmatmul.msk.f32.gmra.mxu0 %vm1341_vm7, %v15230_v18  ;;  %v12214_v6 = vor.u32 %v14431_v44, %v12213_v38  ;;  %v12199_v38 = vld [vmem:[#allocation14 + $0x3b0] sm:$0xf0]  ;;  %v12301_v44 = vld [vmem:[#allocation14 + $0x460] sm:$0xf] }
 0xf35   : > { %5089 = vmatpush.bf16.msra.mxu0 %v12238_v35  ;;  %v12122_v35 = vor.u32 %v14404_v41, %v12119_v56  ;;  %v12205_v41 = vld [vmem:[#allocation14 + $0x3a0] sm:$0xf]  ;;  %v14424_v56 = vld [vmem:[#allocation14 + $0x3a4] sm:$0xf] }
 0xf39   : > { %5090 = vmatpush.bf16.msra.mxu0 %v12214_v6  ;;  %v14451_v6 = vld [vmem:[#allocation14 + $0x474] sm:$0xf0] }
 0xf3c   : > { %12081 = vmatmul.msk.f32.vlgmr.msrb.gmra.mxu0 %vm1341_vm7, %v15226_v33  ;;  %v12239_v33 = vld [vmem:[#allocation14 + $0x408] sm:$0xf0] }
 0xf3d   : > { %v12242_v54 = vor.u32 %v14434_v46, %v12239_v33  ;;  %v14426_v46 = vld [vmem:[#allocation14 + $0x3ac] sm:$0xf0] }
 0xf3e   : > { %v12198_v33 = vor.u32 %v14426_v46, %v12197_v53  ;;  %v12207_v53 = vld [vmem:[#allocation14 + $0x3b8] sm:$0xf0] }
 0xf3f   : > { %5103 = vmatpush.bf16.msra.mxu1 %v12242_v54  ;;  %v14423_v54 = vld [vmem:[#allocation14 + $0x39c] sm:$0xf] }
 0xf44   : > { %12082 = vmatmul.msk.f32.gmra.mxu0 %vm1341_vm7, %v15230_v18  ;;  %v14428_v18 = vld [vmem:[#allocation14 + $0x3c4] sm:$0xf] }
 0xf45   : > { %v12218_v7 = vor.u32 %v14428_v18, %v12215_v34  ;;  %v12202_v18 = vor.u32 %v14423_v54, %v12199_v38  ;;  %v14448_v34 = vld [vmem:[#allocation14 + $0x464] sm:$0xf]  ;;  %v12210_v38 = vor.u32 %v14424_v56, %v12207_v53  ;;  %v14491_v56 = vld [vmem:[#allocation17 + $0x438] sm:$0xff] }
 0xf46   : > { %v14499_v53 = vld [vmem:[#allocation17 + $0x478] sm:$0xff] }
 0xf47   : > { %5104 = vmatpush.bf16.msra.mxu1 %v12218_v7 }
 0xfa7   : > { %v4606_v1 = vpop.f32.mrf.mxu1 }
 0xfa8   : > { %v4583_v62 = vpop.f32.mrf.mxu0 }
 0xfad   : > { %v4560_v16 = vpop.f32.mrf.mxu2 }
 0xfae   : > { %v4584_v29 = vadd.f32 %v4583_v62, %v4560_v16  ;;  %v12294_v62 = vor.u32 %v14450_v5, %v12293_v49  ;;  %v12303_v49 = vld [vmem:[#allocation14 + $0x478] sm:$0xf0]  ;;  %v12302_v5 = vor.u32 %v14451_v6, %v12301_v44  ;;  %v12181_v44 = vld [vmem:[#allocation14 + $0x370] sm:$0xf]  ;;  %v14421_v6 = vld [vmem:[#allocation14 + $0x384] sm:$0xf0] }
 0xfaf   : > { %v12306_v7 = vor.u32 %v14448_v34, %v12303_v49  ;;  %v14418_v34 = vld [vmem:[#allocation14 + $0x374] sm:$0xf]  ;;  %v12183_v49 = vld [vmem:[#allocation14 + $0x388] sm:$0xf0] }
 0xfb0   : > { %v4609_v14 = vpop.f32.mrf.mxu1  ;;  %5115 = vmatpush.bf16.msrb.mxu3 %v12294_v62  ;;  %v12173_v62 = vld [vmem:[#allocation14 + $0x368] sm:$0xf] }
 0xfb1   : > { %v4586_v13 = vpop.f32.mrf.mxu0 }
 0xfb6   : > { %v4563_v47 = vpop.f32.mrf.mxu2 }
 0xfb7   : > { %v4587_v30 = vadd.f32 %v4586_v13, %v4563_v47  ;;  %v12298_v13 = vor.u32 %v14447_v3, %v12295_v11  ;;  %v14420_v3 = vld [vmem:[#allocation14 + $0x37c] sm:$0xf0]  ;;  %v14417_v11 = vld [vmem:[#allocation14 + $0x36c] sm:$0xf] }
 0xfb9   : > { %v4629_v45 = vpop.f32.mrf.mxu0  ;;  %5129 = vmatpush.bf16.msrb.mxu2 %v12298_v13 }
 0xfba   : > { %v4630_v8 = vadd.f32 %v4629_v45, %v4606_v1  ;;  %v14425_v1 = vld [vmem:[#allocation14 + $0x3a4] sm:$0xf0]  ;;  %v14422_v45 = vld [vmem:[#allocation14 + $0x394] sm:$0xf] }
 0xfbb   : > { %v12190_v16 = vor.u32 %v14425_v1, %v12189_v58  ;;  %v12174_v58 = vor.u32 %v14420_v3, %v12173_v62  ;;  %v12175_v1 = vld [vmem:[#allocation14 + $0x380] sm:$0xf0]  ;;  %v14467_v62 = vld [vmem:[#allocation17 + $0x378] sm:$0xff] }
 0xfbc   : > { %15231 = vrcp.f32 %v4630_v8  ;;  %v12191_v8 = vld [vmem:[#allocation14 + $0x3a8] sm:$0xf0] }
 0xfbd   : > { %5091 = vmatpush.bf16.msra.mxu0 %v12190_v16  ;;  %v14445_v16 = vld [vmem:[#allocation14 + $0x444] sm:$0xf0] }
 0xfc1   : > { %v4632_v43 = vpop.f32.mrf.mxu0 }
 0xfc2   : > { %v4633_v23 = vadd.f32 %v4632_v43, %v4609_v14  ;;  %v15232_v20 = vpop.eup %15231  ;;  %v12269_v14 = vld [vmem:[#allocation14 + $0x428] sm:$0xf]  ;;  %v14444_v43 = vld [vmem:[#allocation14 + $0x43c] sm:$0xf0] }
 0xfc3   : > { %v4637_v31 = vmul.f32 %v15232_v20, %v4584_v29  ;;  %v12270_v47 = vor.u32 %v14444_v43, %v12269_v14  ;;  %v14441_v20 = vld [vmem:[#allocation14 + $0x42c] sm:$0xf]  ;;  %v12271_v29 = vld [vmem:[#allocation14 + $0x440] sm:$0xf0]  ;;  %v12178_v43 = vor.u32 %v14417_v11, %v12175_v1  ;;  %v14415_v1 = vld [vmem:[#allocation14 + $0x354] sm:$0xf0] }
 0xfc4   : > { %15233 = vrcp.f32 %v4633_v23  ;;  %v12194_v23 = vor.u32 %v14422_v45, %v12191_v8  ;;  %v12277_v45 = vld [vmem:[#allocation14 + $0x430] sm:$0xf] }
 0xfc5   : > { %5116 = vmatpush.bf16.msrb.mxu3 %v12270_v47  ;;  %v14442_v47 = vld [vmem:[#allocation14 + $0x434] sm:$0xf] }
 0xfc6   : > { %5105 = vmatpush.bf16.msra.mxu1 %v12194_v23  ;;  %v12278_v23 = vor.u32 %v14445_v16, %v12277_v45  ;;  %v14412_v45 = vld [vmem:[#allocation14 + $0x344] sm:$0xf] }
 0xfca   : > { %v15234_v51 = vpop.eup %15233 }
 0xfcb   : > { %v4638_v52 = vmul.f32 %v15234_v51, %v4587_v30  ;;  %v12274_v30 = vor.u32 %v14441_v20, %v12271_v29  ;;  %v12165_v51 = vld [vmem:[#allocation14 + $0x360] sm:$0xf]  ;;  %v12279_v20 = vld [vmem:[#allocation14 + $0x448] sm:$0xf0]  ;;  %v12149_v29 = vld [vmem:[#allocation14 + $0x338] sm:$0xf] }
 0xfcd   : > { %v4639_v61 = vpack.c.bf16 %v4638_v52, %v4637_v31  ;;  %v14419_v31 = vld [vmem:[#allocation14 + $0x374] sm:$0xf0]  ;;  %v14416_v52 = vld [vmem:[#allocation14 + $0x364] sm:$0xf]  ;;  %5130 = vmatpush.bf16.msrb.mxu2 %v12274_v30 }
 0xfcf   : > { %4718 = vmatmul.bf16.vlgmr.msra.gmra.mxu2 %v4639_v61  ;;  %v12166_v61 = vor.u32 %v14419_v31, %v12165_v51  ;;  %v12282_v51 = vor.u32 %v14442_v47, %v12279_v20  ;;  %v14414_v31 = vld [vmem:[#allocation14 + $0x34c] sm:$0xf0]  ;;  %v15158_v47 = vld [vmem:[#allocation11 + $0x2] ss:$0 sm:$0xff] }
 0xfd1   : > { %5092 = vmatpush.bf16.msra.mxu0 %v12166_v61  ;;  %v12151_v61 = vld [vmem:[#allocation14 + $0x350] sm:$0xf0] }
 0xfd5   : > { %5093 = vmatpush.bf16.msra.mxu0 %v12142_v24  ;;  %v12127_v24 = vld [vmem:[#allocation14 + $0x320] sm:$0xf0] }
 0xfd9   : > { %5094 = vmatpush.bf16.msra.mxu0 %v12118_v42  ;;  %v14427_v42 = vld [vmem:[#allocation14 + $0x3b4] sm:$0xf0] }
 0xfda   : > { %v12206_v54 = vor.u32 %v14427_v42, %v12205_v41  ;;  %v14452_v41 = vld [vmem:[#allocation17 + $0x300] sm:$0xff] }
 0xfdb   : > { %v14460_v42 = vld [vmem:[#allocation17 + $0x340] sm:$0xff] }
 0xfdd   : > { %5143 = vmatpush.bf16.msrb.mxu0 %v12302_v5  ;;  %v14488_v5 = vld [vmem:[#allocation17 + $0x420] sm:$0xff] }
 0xfe1   : > { %5144 = vmatpush.bf16.msrb.mxu0 %v12278_v23  ;;  %v14466_v23 = vld [vmem:[#allocation17 + $0x370] sm:$0xff] }
0x1052   : > { %v4719_v9 = vpop.f32.mrf.mxu2 }
0x1053   : > { %v4720_v0 = vadd.f32 %v15157_v60, %v4719_v9  ;;  %v12245_v9 = vld [vmem:[#allocation14 + $0x3f8] sm:$0xf] }
0x1055   : > { %v4724_v55 = vadd.f32 %v4720_v0, %v16989_v15  ;;  %v14438_v0 = vld [vmem:[#allocation14 + $0x40c] sm:$0xf0] }
0x1057   : > { %4730 = vadd.xlane.f32.xlu2 %v4724_v55 }
0x105a   : > { %v4721_v63 = vpop.f32.mrf.mxu2 }
0x105b   : > { %v4722_v4 = vadd.f32 %v15157_v60, %v4721_v63  ;;  %v12167_v60 = vld [vmem:[#allocation14 + $0x378] sm:$0xf0]  ;;  %v12246_v63 = vor.u32 %v14438_v0, %v12245_v9  ;;  %v12150_v9 = vor.u32 %v14414_v31, %v12149_v29  ;;  %v12253_v0 = vld [vmem:[#allocation14 + $0x400] sm:$0xf]  ;;  %v14409_v31 = vld [vmem:[#allocation14 + $0x324] sm:$0xf0] }
0x105d   : > { %v4725_v2 = vadd.f32 %v4722_v4, %v16991_v40  ;;  %v14435_v4 = vld [vmem:[#allocation14 + $0x3fc] sm:$0xf]  ;;  %5117 = vmatpush.bf16.msrb.mxu3 %v12246_v63 }
0x105f   : > { %v4732_v12 = vsel %vm1166_vm6, %v4725_v2, 0.0 }
0x1060   : > { %4733 = vadd.xlane.f32.xlu1 %v4732_v12 }
0x10ca   : > { %v4731_v25 = vpop.xlane.xlu2 %4730 }
0x10cb   : > { %v4735_v28 = vmul.f32 %v4731_v25, %v16670_v48  ;;  %v12143_v25 = vld [vmem:[#allocation14 + $0x348] sm:$0xf0] }
0x10cd   : > { %v17170_v15 = vsub.f32 %v4724_v55, %v4735_v28  ;;  %v12170_v55 = vor.u32 %v14416_v52, %v12167_v60  ;;  %v12221_v28 = vld [vmem:[#allocation14 + $0x3c8] sm:$0xf]  ;;  %v14411_v52 = vld [vmem:[#allocation14 + $0x33c] sm:$0xf] }
0x10cf   : > { %v4739_v37 = vmul.f32 %v17170_v15, %v17170_v15  ;;  %5106 = vmatpush.bf16.msra.mxu1 %v12170_v55  ;;  %v14439_v55 = vld [vmem:[#allocation14 + $0x414] sm:$0xf0] }
0x10d1   : > { %4741 = vadd.xlane.f32.xlu0 %v4739_v37  ;;  %v14432_v37 = vld [vmem:[#allocation14 + $0x3dc] sm:$0xf0] }
0x10d3   : > { %v4734_v40 = vpop.xlane.xlu1 %4733 }
0x10d4   : > { %v4736_v10 = vmul.f32 %v4734_v40, %v16670_v48 }
0x10d6   : > { %v17175_v27 = vsub.f32 %v4725_v2, %v4736_v10  ;;  %v12247_v2 = vld [vmem:[#allocation14 + $0x410] sm:$0xf0]  ;;  %v12146_v10 = vor.u32 %v14410_v50, %v12143_v25  ;;  %v14405_v50 = vld [vmem:[#allocation14 + $0x30c] sm:$0xf] }
0x10d7   : > { %v12250_v32 = vor.u32 %v14435_v4, %v12247_v2  ;;  %v12154_v4 = vor.u32 %v14411_v52, %v12151_v61  ;;  %v14436_v2 = vld [vmem:[#allocation14 + $0x404] sm:$0xf]  ;;  %v14406_v52 = vld [vmem:[#allocation14 + $0x314] sm:$0xf] }
0x10d8   : > { %v4740_v19 = vmul.f32 %v17175_v27, %v17175_v27  ;;  %5107 = vmatpush.bf16.msra.mxu1 %v12146_v10 }
0x10d9   : > { %5131 = vmatpush.bf16.msrb.mxu2 %v12250_v32  ;;  %v12125_v32 = vld [vmem:[#allocation14 + $0x308] sm:$0xf] }
0x10da   : > { %v4743_v22 = vsel %vm1166_vm6, %v4740_v19, 0.0  ;;  %v12222_v19 = vor.u32 %v14432_v37, %v12221_v28  ;;  %v12229_v28 = vld [vmem:[#allocation14 + $0x3d0] sm:$0xf]  ;;  %v14433_v37 = vld [vmem:[#allocation14 + $0x3e4] sm:$0xf0]  ;;  %v12126_v10 = vor.u32 %v14408_v57, %v12125_v32 }
0x10db   : > { %4744 = vadd.xlane.f32.xlu1 %v4743_v22  ;;  %v14429_v22 = vld [vmem:[#allocation14 + $0x3cc] sm:$0xf]  ;;  %v12230_v26 = vor.u32 %v14433_v37, %v12229_v28  ;;  %v14456_v32 = vld [vmem:[#allocation17 + $0x320] sm:$0xff]  ;;  %v14463_v28 = vld [vmem:[#allocation17 + $0x358] sm:$0xff] }
0x10dc   : > { %v12226_v39 = vor.u32 %v14429_v22, %v12223_v59  ;;  %5118 = vmatpush.bf16.msrb.mxu3 %v12222_v19  ;;  %5108 = vmatpush.bf16.msra.mxu1 %v12122_v35  ;;  %v14430_v19 = vld [vmem:[#allocation14 + $0x3d4] sm:$0xf]  ;;  %v12231_v22 = vld [vmem:[#allocation14 + $0x3e8] sm:$0xf0] }
0x10dd   : > { %v12234_v21 = vor.u32 %v14430_v19, %v12231_v22  ;;  %v14474_v37 = vld [vmem:[#allocation17 + $0x3b0] sm:$0xff] }
0x10de   : > { %5132 = vmatpush.bf16.msrb.mxu2 %v12226_v39  ;;  %v12130_v39 = vor.u32 %v14405_v50, %v12127_v24  ;;  %v14475_v24 = vld [vmem:[#allocation17 + $0x3b8] sm:$0xff]  ;;  %v14454_v19 = vld [vmem:[#allocation17 + $0x310] sm:$0xff] }
0x10df   : > { %v14462_v22 = vld [vmem:[#allocation17 + $0x350] sm:$0xff] }
0x10e0   : > { %5119 = vmatpush.bf16.msrb.mxu3 %v12198_v33  ;;  %5157 = vmatpush.bf16.msrb.mxu1 %v12306_v7  ;;  %v14459_v7 = vld [vmem:[#allocation17 + $0x338] sm:$0xff] }
0x10e2   : > { %5133 = vmatpush.bf16.msrb.mxu2 %v12202_v18 }
0x10e4   : > { %5120 = vmatpush.bf16.msrb.mxu3 %v12174_v58  ;;  %5158 = vmatpush.bf16.msrb.mxu1 %v12282_v51  ;;  %v12186_v58 = vor.u32 %v14418_v34, %v12183_v49  ;;  %v14470_v34 = vld [vmem:[#allocation17 + $0x390] sm:$0xff] }
0x10e5   : > { %v14478_v49 = vld [vmem:[#allocation17 + $0x3d0] sm:$0xff] }
0x10e6   : > { %5134 = vmatpush.bf16.msrb.mxu2 %v12178_v43  ;;  %v14458_v43 = vld [vmem:[#allocation17 + $0x330] sm:$0xff] }
0x10e8   : > { %5121 = vmatpush.bf16.msrb.mxu3 %v12150_v9  ;;  %v12135_v9 = vld [vmem:[#allocation14 + $0x328] sm:$0xf0] }
0x10ea   : > { %5135 = vmatpush.bf16.msrb.mxu2 %v12154_v4 }
0x10ec   : > { %5122 = vmatpush.bf16.msrb.mxu3 %v12126_v10  ;;  %v14482_v10 = vld [vmem:[#allocation17 + $0x3f0] sm:$0xff] }
0x10ee   : > { %5136 = vmatpush.bf16.msrb.mxu2 %v12130_v39  ;;  %v14481_v39 = vld [vmem:[#allocation17 + $0x3e8] sm:$0xff] }
0x10f0   : > { %5579 = vmatpush.bf16.msra.mxu3 %v14459_v7  ;;  %v14496_v7 = vld [vmem:[#allocation17 + $0x460] sm:$0xff] }
0x10f2   : > { %5593 = vmatpush.bf16.msra.mxu2 %v14467_v62  ;;  %v14469_v62 = vld [vmem:[#allocation17 + $0x388] sm:$0xff] }
0x10f4   : > { %5580 = vmatpush.bf16.msra.mxu3 %v14458_v43  ;;  %v14484_v43 = vld [vmem:[#allocation17 + $0x400] sm:$0xff] }
0x10f6   : > { %5594 = vmatpush.bf16.msra.mxu2 %v14466_v23  ;;  %v14492_v23 = vld [vmem:[#allocation17 + $0x440] sm:$0xff] }
0x1144   : > { %v4742_v12 = vpop.xlane.xlu0 %4741 }
0x1145   : > { %v4746_v36 = vmul.f32 %v4742_v12, %v16670_v48  ;;  %v12255_v12 = vld [vmem:[#allocation14 + $0x418] sm:$0xf0] }
0x1146   : > { %v12258_v17 = vor.u32 %v14436_v2, %v12255_v12  ;;  %v12138_v12 = vor.u32 %v14406_v52, %v12135_v9 }
0x1147   : > { %v17181_v40 = vadd.f32 1e-05, %v4746_v36  ;;  %v12254_v36 = vor.u32 %v14439_v55, %v12253_v0  ;;  %v14457_v0 = vld [vmem:[#allocation17 + $0x328] sm:$0xff] }
0x1148   : > { %5159 = vmatpush.bf16.msrb.mxu1 %v12258_v17  ;;  %v14465_v55 = vld [vmem:[#allocation17 + $0x368] sm:$0xff]  ;;  %5581 = vmatpush.bf16.msra.mxu3 %v14457_v0 }
0x1149   : > { %15235 = vrsqrt.f32 %v17181_v40  ;;  %5145 = vmatpush.bf16.msrb.mxu0 %v12254_v36  ;;  %vm4756_vm14 = vweird.f32 %v17181_v40  ;;  %5595 = vmatpush.bf16.msra.mxu2 %v14465_v55  ;;  %v14464_v36 = vld [vmem:[#allocation17 + $0x360] sm:$0xff] }
0x114c   : > { %5160 = vmatpush.bf16.msrb.mxu1 %v12234_v21  ;;  %5582 = vmatpush.bf16.msra.mxu3 %v14456_v32  ;;  %v14461_v21 = vld [vmem:[#allocation17 + $0x348] sm:$0xff] }
0x114d   : > { %5146 = vmatpush.bf16.msrb.mxu0 %v12230_v26  ;;  %5596 = vmatpush.bf16.msra.mxu2 %v14464_v36  ;;  %v14453_v26 = vld [vmem:[#allocation17 + $0x308] sm:$0xff] }
0x114e   : > { %v4745_v13 = vpop.xlane.xlu1 %4744 }
0x114f   : > { %v17184_v8 = vpop.eup %15235  ;;  %v4747_v14 = vmul.f32 %v4745_v13, %v16670_v48  ;;  %v12182_v13 = vor.u32 %v14421_v6, %v12181_v44  ;;  %v14479_v44 = vld [vmem:[#allocation17 + $0x3d8] sm:$0xff]  ;;  %v14497_v6 = vld [vmem:[#allocation17 + $0x468] sm:$0xff] }
0x1150   : > { %v4751_v30 = vmul.f32 %v17184_v8, %v17181_v40  ;;  %vm4757_vm13 = vweird.f32 %v17184_v8  ;;  %5161 = vmatpush.bf16.msrb.mxu1 %v12210_v38  ;;  %v12157_v40 = vld [vmem:[#allocation14 + $0x340] sm:$0xf] }
0x1151   : > { %v17189_v60 = vadd.f32 1e-05, %v4747_v14  ;;  %vm17197_vm15 = vmor %vm4756_vm14, %vm4757_vm13  ;;  %5147 = vmatpush.bf16.msrb.mxu0 %v12206_v54  ;;  %v12159_v14 = vld [vmem:[#allocation14 + $0x358] sm:$0xf0]  ;;  %5597 = vmatpush.bf16.msra.mxu2 %v14463_v28  ;;  %v14498_v54 = vld [vmem:[#allocation17 + $0x470] sm:$0xff] }
0x1152   : > { %v4752_v63 = vmul.f32 %v17184_v8, %v4751_v30  ;;  %v12158_v30 = vor.u32 %v14415_v1, %v12157_v40  ;;  %v12162_v51 = vor.u32 %v14412_v45, %v12159_v14  ;;  %v14471_v38 = vld [vmem:[#allocation17 + $0x398] sm:$0xff]  ;;  %v14476_v40 = vld [vmem:[#allocation17 + $0x3c0] sm:$0xff]  ;;  %v14486_v1 = vld [vmem:[#allocation17 + $0x410] sm:$0xff] }
0x1153   : > { %15237 = vrsqrt.f32 %v17189_v60  ;;  %vm4766_vm10 = vweird.f32 %v17189_v60  ;;  %v14494_v45 = vld [vmem:[#allocation17 + $0x450] sm:$0xff]  ;;  %v14493_v14 = vld [vmem:[#allocation17 + $0x448] sm:$0xff] }
0x1154   : > { %v4753_v25 = vmul.f32 0.5, %v4752_v63  ;;  %5162 = vmatpush.bf16.msrb.mxu1 %v12186_v58  ;;  %v15159_v63 = vld [vmem:[#allocation13 + $0x2] ss:$0 sm:$0xff]  ;;  %v14468_v58 = vld [vmem:[#allocation17 + $0x380] sm:$0xff] }
0x1155   : > { %5148 = vmatpush.bf16.msrb.mxu0 %v12182_v13  ;;  %5598 = vmatpush.bf16.msra.mxu2 %v14462_v22  ;;  %v14495_v13 = vld [vmem:[#allocation17 + $0x458] sm:$0xff] }
0x1156   : > { %v4754_v59 = vsub.f32 1.5, %v4753_v25  ;;  %v14455_v25 = vld [vmem:[#allocation17 + $0x318] sm:$0xff] }
0x1157   : > { %5583 = vmatpush.bf16.msra.mxu3 %v14455_v25 }
0x1158   : > { %v4755_v35 = vmul.f32 %v17184_v8, %v4754_v59  ;;  %5163 = vmatpush.bf16.msrb.mxu1 %v12162_v51  ;;  %v14473_v59 = vld [vmem:[#allocation17 + $0x3a8] sm:$0xff] }
0x1159   : > { %v15238_v46 = vpop.eup %15237  ;;  %5149 = vmatpush.bf16.msrb.mxu0 %v12158_v30  ;;  %5599 = vmatpush.bf16.msra.mxu2 %v14461_v21 }
0x115a   : > { %v4761_v33 = vmul.f32 %v15238_v46, %v17189_v60  ;;  %v4759_v3 = vsel %vm17197_vm15, %v17184_v8, %v4755_v35  ;;  %vm4767_vm9 = vweird.f32 %v15238_v46  ;;  %v12133_v8 = vld [vmem:[#allocation14 + $0x310] sm:$0xf]  ;;  %v14480_v35 = vld [vmem:[#allocation17 + $0x3e0] sm:$0xff] }
0x115b   : > { %v4770_v20 = vmul.f32 %v4759_v3, %v17170_v15  ;;  %vm4768_vm11 = vmor %vm4766_vm10, %vm4767_vm9  ;;  %v12134_v60 = vor.u32 %v14409_v31, %v12133_v8  ;;  %5584 = vmatpush.bf16.msra.mxu3 %v14454_v19  ;;  %v14477_v3 = vld [vmem:[#allocation17 + $0x3c8] sm:$0xff] }
0x115c   : > { %v4762_v18 = vmul.f32 %v15238_v46, %v4761_v33  ;;  %5164 = vmatpush.bf16.msrb.mxu1 %v12138_v12  ;;  %v14490_v33 = vld [vmem:[#allocation17 + $0x430] sm:$0xff] }
0x115d   : > { %v4775_v4 = vmul.f32 %v15158_v47, %v4770_v20  ;;  %5150 = vmatpush.bf16.msrb.mxu0 %v12134_v60  ;;  %5600 = vmatpush.bf16.msra.mxu2 %v14460_v42 }
0x115e   : > { %v4763_v11 = vmul.f32 0.5, %v4762_v18  ;;  %v14489_v18 = vld [vmem:[#allocation17 + $0x428] sm:$0xff] }
0x115f   : > { %v17207_v17 = vadd.f32 %v15159_v63, %v4775_v4  ;;  %5585 = vmatpush.bf16.msra.mxu3 %v14453_v26 }
0x1160   : > { %v4764_v16 = vsub.f32 1.5, %v4763_v11  ;;  %v14487_v11 = vld [vmem:[#allocation17 + $0x418] sm:$0xff] }
0x1162   : > { %v4765_v29 = vmul.f32 %v15238_v46, %v4764_v16  ;;  %v14485_v16 = vld [vmem:[#allocation17 + $0x408] sm:$0xff] }
0x1163   : > { %5586 = vmatpush.bf16.msra.mxu3 %v14452_v41 }
0x1164   : > { %v4769_v61 = vsel %vm4768_vm11, %v15238_v46, %v4765_v29  ;;  %v14472_v46 = vld [vmem:[#allocation17 + $0x3a0] sm:$0xff] }
0x1165   : > { %v4771_v15 = vmul.f32 %v4769_v61, %v17175_v27  ;;  %v14483_v27 = vld [vmem:[#allocation17 + $0x3f8] sm:$0xff] }
0x1167   : > { %v4776_v2 = vmul.f32 %v15158_v47, %v4771_v15  ;;  %v4833_v47 = vld [vmem:[#allocation16 + $0xc] sm:$0x3f] }
0x1168   : > { %v4835_v8 = vperm.slane %v4833_v47, 0  ;;  %v4836_v30 = vperm.slane %v4833_v47, 1  ;;  %v4837_v4 = vperm.slane %v4833_v47, 2  ;;  %v4838_v15 = vperm.slane %v4833_v47, 3 }
0x1169   : > { %v17209_v57 = vadd.f32 %v15159_v63, %v4776_v2  ;;  %v4839_v41 = vperm.slane %v4833_v47, 4  ;;  %v4840_v42 = vperm.slane %v4833_v47, 5 }
0x116b   : > { %v4782_v50 = vpack.c.bf16 %v17209_v57, %v17207_v17 }
0x116d   : > { %5095 = vmatmul.bf16.vlgmr.msra.gmra.mxu0 %v4782_v50  ;;  %5109 = vmatmul.bf16.vlgmr.msra.gmra.mxu1 %v4782_v50 }
0x116e   : > { %5123 = vmatmul.bf16.vlgmr.msrb.gmra.mxu3 %v4782_v50  ;;  %5137 = vmatmul.bf16.vlgmr.msrb.gmra.mxu2 %v4782_v50 }
0x116f   : > { %5607 = vmatpush.bf16.msra.mxu0 %v14475_v24  ;;  %5621 = vmatpush.bf16.msra.mxu1 %v14483_v27 }
0x1170   : > { %5635 = vmatpush.bf16.msrb.mxu3 %v14491_v56  ;;  %5649 = vmatpush.bf16.msrb.mxu2 %v14499_v53 }
0x1173   : > { %5608 = vmatpush.bf16.msra.mxu0 %v14474_v37  ;;  %5622 = vmatpush.bf16.msra.mxu1 %v14482_v10 }
0x1174   : > { %5636 = vmatpush.bf16.msrb.mxu3 %v14490_v33  ;;  %5650 = vmatpush.bf16.msrb.mxu2 %v14498_v54 }
0x1177   : > { %5609 = vmatpush.bf16.msra.mxu0 %v14473_v59  ;;  %5623 = vmatpush.bf16.msra.mxu1 %v14481_v39 }
0x1178   : > { %5637 = vmatpush.bf16.msrb.mxu3 %v14489_v18  ;;  %5651 = vmatpush.bf16.msrb.mxu2 %v14497_v6 }
0x117b   : > { %5610 = vmatpush.bf16.msra.mxu0 %v14472_v46  ;;  %5624 = vmatpush.bf16.msra.mxu1 %v14480_v35 }
0x117c   : > { %5638 = vmatpush.bf16.msrb.mxu3 %v14488_v5  ;;  %5652 = vmatpush.bf16.msrb.mxu2 %v14496_v7 }
0x117d   : > { %5151 = vmatmul.bf16.vlgmr.msrb.gmra.mxu0 %v4782_v50  ;;  %5165 = vmatmul.bf16.vlgmr.msrb.gmra.mxu1 %v4782_v50 }
0x117f   : > { %5611 = vmatpush.bf16.msra.mxu0 %v14471_v38  ;;  %5625 = vmatpush.bf16.msra.mxu1 %v14479_v44 }
0x1180   : > { %5639 = vmatpush.bf16.msrb.mxu3 %v14487_v11  ;;  %5653 = vmatpush.bf16.msrb.mxu2 %v14495_v13 }
0x1183   : > { %5612 = vmatpush.bf16.msra.mxu0 %v14470_v34  ;;  %5626 = vmatpush.bf16.msra.mxu1 %v14478_v49 }
0x1184   : > { %5640 = vmatpush.bf16.msrb.mxu3 %v14486_v1  ;;  %5654 = vmatpush.bf16.msrb.mxu2 %v14494_v45 }
0x1187   : > { %5613 = vmatpush.bf16.msra.mxu0 %v14469_v62  ;;  %5627 = vmatpush.bf16.msra.mxu1 %v14477_v3  ;;  %v15160_v62 = vld [vmem:[#allocation19 + $0x2] ss:$0 sm:$0xff] }
0x1188   : > { %5641 = vmatpush.bf16.msrb.mxu3 %v14485_v16  ;;  %5655 = vmatpush.bf16.msrb.mxu2 %v14493_v14 }
0x118b   : > { %5614 = vmatpush.bf16.msra.mxu0 %v14468_v58  ;;  %5628 = vmatpush.bf16.msra.mxu1 %v14476_v40 }
0x118c   : > { %5642 = vmatpush.bf16.msrb.mxu3 %v14484_v43  ;;  %5656 = vmatpush.bf16.msrb.mxu2 %v14492_v23 }
0x11ea   : > { %v5096_v20 = vpop.f32.mrf.mxu0  ;;  %v5110_v29 = vpop.f32.mrf.mxu1 }
0x11eb   : > { %v5097_v51 = vadd.f32 %v5096_v20, %v4835_v8  ;;  %v5111_v31 = vadd.f32 %v5110_v29, %v4836_v30 }
0x11ed   : > { %v5171_v2 = vmax.f32 %v5097_v51, 0.0  ;;  %v5172_v60 = vmax.f32 %v5111_v31, 0.0 }
0x11f1   : > { %v5124_v52 = vpop.f32.mrf.mxu3  ;;  %v5138_v61 = vpop.f32.mrf.mxu2 }
0x11f2   : > { %v5098_v9 = vpop.f32.mrf.mxu0  ;;  %v5112_v0 = vpop.f32.mrf.mxu1  ;;  %v5125_v24 = vadd.f32 %v5124_v52, %v4837_v4  ;;  %v5139_v27 = vadd.f32 %v5138_v61, %v4838_v15 }
0x11f3   : > { %v5099_v55 = vadd.f32 %v5098_v9, %v4835_v8  ;;  %v5113_v63 = vadd.f32 %v5112_v0, %v4836_v30 }
0x11f4   : > { %v5173_v59 = vmax.f32 %v5125_v24, 0.0  ;;  %v5174_v39 = vmax.f32 %v5139_v27, 0.0 }
0x11f5   : > { %v5177_v12 = vmax.f32 %v5099_v55, 0.0  ;;  %v5178_v32 = vmax.f32 %v5113_v63, 0.0 }
0x11f7   : > { %v5183_v36 = vpack.c.bf16 %v5177_v12, %v5171_v2  ;;  %v5184_v50 = vpack.c.bf16 %v5178_v32, %v5172_v60 }
0x11f9   : > { %v5126_v25 = vpop.f32.mrf.mxu3  ;;  %v5140_v28 = vpop.f32.mrf.mxu2  ;;  %5587 = vmatmul.bf16.vlgmr.msra.gmra.mxu3 %v5183_v36  ;;  %5601 = vmatmul.bf16.vlgmr.msra.gmra.mxu2 %v5184_v50 }
0x11fa   : > { %v5127_v37 = vadd.f32 %v5126_v25, %v4837_v4  ;;  %v5141_v10 = vadd.f32 %v5140_v28, %v4838_v15  ;;  %v5152_v19 = vpop.f32.mrf.mxu0  ;;  %v5166_v22 = vpop.f32.mrf.mxu1  ;;  %v12585_v25 = vld [vmem:[#allocation5 + $0x2e8] sm:$0xf]  ;;  %v14522_v28 = vld [vmem:[#allocation5 + $0x2f0] sm:$0xf0] }
0x11fb   : > { %v5153_v46 = vadd.f32 %v5152_v19, %v4839_v41  ;;  %v5167_v35 = vadd.f32 %v5166_v22, %v4840_v42  ;;  %v12587_v19 = vld [vmem:[#allocation5 + $0x2f4] sm:$0xf0]  ;;  %v12593_v22 = vld [vmem:[#allocation5 + $0x2f0] sm:$0xf] }
0x11fc   : > { %v5179_v26 = vmax.f32 %v5127_v37, 0.0  ;;  %v5180_v21 = vmax.f32 %v5141_v10, 0.0  ;;  %v14521_v37 = vld [vmem:[#allocation5 + $0x2ec] sm:$0xf]  ;;  %v12586_v10 = vor.u32 %v14522_v28, %v12585_v25  ;;  %v14503_v28 = vld [vmem:[#allocation5 + $0x25c] sm:$0xf] }
0x11fd   : > { %v5175_v18 = vmax.f32 %v5153_v46, 0.0  ;;  %v5176_v6 = vmax.f32 %v5167_v35, 0.0  ;;  %v12581_v46 = vld [vmem:[#allocation5 + $0x2d8] sm:$0xf]  ;;  %v14520_v35 = vld [vmem:[#allocation5 + $0x2e0] sm:$0xf0] }
0x11fe   : > { %v5185_v56 = vpack.c.bf16 %v5179_v26, %v5173_v59  ;;  %v5186_v53 = vpack.c.bf16 %v5180_v21, %v5174_v39  ;;  %v14523_v59 = vld [vmem:[#allocation5 + $0x2f8] sm:$0xf0]  ;;  %v12590_v39 = vor.u32 %v14521_v37, %v12587_v19  ;;  %5892 = vmatpush.bf16.msrb.mxu0 %v12586_v10  ;;  %v12573_v21 = vld [vmem:[#allocation5 + $0x2d0] sm:$0xf]  ;;  %v12515_v37 = vld [vmem:[#allocation5 + $0x264] sm:$0xf0] }
0x11ff   : > { %v12594_v26 = vor.u32 %v14523_v59, %v12593_v22  ;;  %v12521_v19 = vld [vmem:[#allocation5 + $0x260] sm:$0xf]  ;;  %v14505_v22 = vld [vmem:[#allocation5 + $0x268] sm:$0xf0] }
0x1200   : > { %5615 = vmatmul.bf16.vlgmr.msra.gmra.mxu0 %v5185_v56  ;;  %5629 = vmatmul.bf16.vlgmr.msra.gmra.mxu1 %v5186_v53  ;;  %v12575_v53 = vld [vmem:[#allocation5 + $0x2dc] sm:$0xf0] }
0x1201   : > { %5906 = vmatpush.bf16.msrb.mxu1 %v12590_v39  ;;  %5920 = vmatpush.bf16.msra.mxu3 %v12594_v26 }
0x1202   : > { %v5154_v33 = vpop.f32.mrf.mxu0  ;;  %v5168_v54 = vpop.f32.mrf.mxu1 }
0x1203   : > { %v5155_v38 = vadd.f32 %v5154_v33, %v4839_v41  ;;  %v5169_v44 = vadd.f32 %v5168_v54, %v4840_v42  ;;  %v14519_v41 = vld [vmem:[#allocation5 + $0x2d8] sm:$0xf0]  ;;  %v14518_v42 = vld [vmem:[#allocation5 + $0x2d4] sm:$0xf]  ;;  %v12582_v54 = vor.u32 %v14520_v35, %v12581_v46  ;;  %v12503_v46 = vld [vmem:[#allocation5 + $0x24c] sm:$0xf0] }
0x1204   : > { %v12574_v56 = vor.u32 %v14519_v41, %v12573_v21  ;;  %v12578_v33 = vor.u32 %v14518_v42, %v12575_v53  ;;  %v12518_v21 = vor.u32 %v14503_v28, %v12515_v37  ;;  %v12501_v41 = vld [vmem:[#allocation5 + $0x240] sm:$0xf]  ;;  %v14501_v42 = vld [vmem:[#allocation5 + $0x248] sm:$0xf0]  ;;  %v14500_v53 = vld [vmem:[#allocation5 + $0x244] sm:$0xf] }
0x1205   : > { %v5181_v34 = vmax.f32 %v5155_v38, 0.0  ;;  %v5182_v49 = vmax.f32 %v5169_v44, 0.0  ;;  %5921 = vmatpush.bf16.msra.mxu3 %v12582_v54  ;;  %v12561_v38 = vld [vmem:[#allocation5 + $0x2b8] sm:$0xf]  ;;  %v14516_v44 = vld [vmem:[#allocation5 + $0x2c0] sm:$0xf0] }
0x1206   : > { %5893 = vmatpush.bf16.msrb.mxu0 %v12574_v56  ;;  %5907 = vmatpush.bf16.msrb.mxu1 %v12578_v33  ;;  %v12522_v56 = vor.u32 %v14505_v22, %v12521_v19  ;;  %v12509_v33 = vld [vmem:[#allocation5 + $0x248] sm:$0xf]  ;;  %v14502_v54 = vld [vmem:[#allocation5 + $0x250] sm:$0xf0] }
0x1207   : > { %v5187_v5 = vpack.c.bf16 %v5181_v34, %v5175_v18  ;;  %v5188_v7 = vpack.c.bf16 %v5182_v49, %v5176_v6  ;;  %v14515_v18 = vld [vmem:[#allocation5 + $0x2bc] sm:$0xf]  ;;  %v12562_v6 = vor.u32 %v14516_v44, %v12561_v38  ;;  %v12563_v34 = vld [vmem:[#allocation5 + $0x2c4] sm:$0xf0]  ;;  %v12569_v49 = vld [vmem:[#allocation5 + $0x2c0] sm:$0xf]  ;;  %v12502_v38 = vor.u32 %v14501_v42, %v12501_v41 }
0x1209   : > { %5643 = vmatmul.bf16.vlgmr.msrb.gmra.mxu3 %v5187_v5  ;;  %5657 = vmatmul.bf16.vlgmr.msrb.gmra.mxu2 %v5188_v7  ;;  %v14517_v5 = vld [vmem:[#allocation5 + $0x2c8] sm:$0xf0] }
0x120a   : > { %5894 = vmatpush.bf16.msrb.mxu0 %v12562_v6  ;;  %v12510_v6 = vor.u32 %v14502_v54, %v12509_v33 }
0x127c   : > { %v5588_v3 = vpop.f32.mrf.mxu3  ;;  %v5602_v11 = vpop.f32.mrf.mxu2 }
0x127d   : > { %v5589_v13 = vadd.f32 %v15160_v62, %v5588_v3  ;;  %v5616_v40 = vpop.f32.mrf.mxu0  ;;  %v5630_v43 = vpop.f32.mrf.mxu1  ;;  %v12570_v3 = vor.u32 %v14517_v5, %v12569_v49 }
0x127f   : > { %v5603_v58 = vadd.f32 %v5602_v11, %v5589_v13  ;;  %5922 = vmatpush.bf16.msra.mxu3 %v12570_v3  ;;  %v12549_v13 = vld [vmem:[#allocation5 + $0x2a0] sm:$0xf] }
0x1281   : > { %v5617_v16 = vadd.f32 %v5616_v40, %v5603_v58  ;;  %v14513_v58 = vld [vmem:[#allocation5 + $0x2a8] sm:$0xf0]  ;;  %v14512_v40 = vld [vmem:[#allocation5 + $0x2a4] sm:$0xf] }
0x1283   : > { %v5631_v23 = vadd.f32 %v5630_v43, %v5617_v16  ;;  %v12551_v16 = vld [vmem:[#allocation5 + $0x2ac] sm:$0xf0] }
0x1284   : > { %v5590_v1 = vpop.f32.mrf.mxu3  ;;  %v5604_v45 = vpop.f32.mrf.mxu2  ;;  %v12554_v43 = vor.u32 %v14512_v40, %v12551_v16  ;;  %v15162_v16 = vld [vmem:[#allocation22 + $0x2] ss:$0 sm:$0xff] }
0x1285   : > { %v5591_v14 = vadd.f32 %v15160_v62, %v5590_v1  ;;  %v5618_v30 = vpop.f32.mrf.mxu0  ;;  %v5632_v61 = vpop.f32.mrf.mxu1  ;;  %v12566_v62 = vor.u32 %v14515_v18, %v12563_v34  ;;  %v12506_v18 = vor.u32 %v14500_v53, %v12503_v46 }
0x1287   : > { %v5605_v47 = vadd.f32 %v5604_v45, %v5591_v14  ;;  %5908 = vmatpush.bf16.msrb.mxu1 %v12566_v62  ;;  %v12550_v45 = vor.u32 %v14513_v58, %v12549_v13  ;;  %v12557_v14 = vld [vmem:[#allocation5 + $0x2a8] sm:$0xf]  ;;  %v15161_v13 = vld [vmem:[#allocation20 + $0x2] ss:$0 sm:$0xff] }
0x1289   : > { %v5619_v51 = vadd.f32 %v5618_v30, %v5605_v47  ;;  %5895 = vmatpush.bf16.msrb.mxu0 %v12550_v45 }
0x128b   : > { %v5633_v9 = vadd.f32 %v5632_v61, %v5619_v51  ;;  %5909 = vmatpush.bf16.msrb.mxu1 %v12554_v43  ;;  %v12539_v51 = vld [vmem:[#allocation5 + $0x294] sm:$0xf0] }
0x128c   : > { %v5644_v20 = vpop.f32.mrf.mxu3  ;;  %v5658_v29 = vpop.f32.mrf.mxu2 }
0x128d   : > { %v5645_v8 = vadd.f32 %v5644_v20, %v5631_v23  ;;  %v14514_v23 = vld [vmem:[#allocation5 + $0x2b0] sm:$0xf0]  ;;  %v12537_v20 = vld [vmem:[#allocation5 + $0x288] sm:$0xf] }
0x128e   : > { %v12558_v47 = vor.u32 %v14514_v23, %v12557_v14 }
0x128f   : > { %v5659_v31 = vadd.f32 %v5658_v29, %v5645_v8  ;;  %v14510_v29 = vld [vmem:[#allocation5 + $0x290] sm:$0xf0]  ;;  %v14509_v8 = vld [vmem:[#allocation5 + $0x28c] sm:$0xf] }
0x1290   : > { %v12538_v30 = vor.u32 %v14510_v29, %v12537_v20  ;;  %5923 = vmatpush.bf16.msra.mxu3 %v12558_v47  ;;  %v12542_v61 = vor.u32 %v14509_v8, %v12539_v51 }
0x1291   : > { %v5663_v52 = vadd.f32 %v5659_v31, %v17207_v17  ;;  %v12545_v31 = vld [vmem:[#allocation5 + $0x290] sm:$0xf] }
0x1292   : > { %5896 = vmatpush.bf16.msrb.mxu0 %v12538_v30  ;;  %5910 = vmatpush.bf16.msrb.mxu1 %v12542_v61 }
0x1293   : > { %5669 = vadd.xlane.f32.xlu0 %v5663_v52 }
0x1294   : > { %v5646_v0 = vpop.f32.mrf.mxu3  ;;  %v5660_v63 = vpop.f32.mrf.mxu2 }
0x1295   : > { %v5647_v55 = vadd.f32 %v5646_v0, %v5633_v9  ;;  %v12525_v0 = vld [vmem:[#allocation5 + $0x270] sm:$0xf] }
0x1297   : > { %v5661_v4 = vadd.f32 %v5660_v63, %v5647_v55  ;;  %v14507_v55 = vld [vmem:[#allocation5 + $0x278] sm:$0xf0]  ;;  %v14506_v63 = vld [vmem:[#allocation5 + $0x274] sm:$0xf] }
0x1299   : > { %v5664_v15 = vadd.f32 %v5661_v4, %v17209_v57  ;;  %v12527_v4 = vld [vmem:[#allocation5 + $0x27c] sm:$0xf0] }
0x129b   : > { %v5671_v2 = vsel %vm1166_vm6, %v5664_v15, 0.0 }
0x129c   : > { %5672 = vadd.xlane.f32.xlu2 %v5671_v2  ;;  %v14508_v2 = vld [vmem:[#allocation5 + $0x280] sm:$0xf0] }
0x1306   : > { %v5670_v60 = vpop.xlane.xlu0 %5669 }
0x1307   : > { %v5674_v12 = vmul.f32 %v5670_v60, %v16670_v48  ;;  %v12526_v60 = vor.u32 %v14507_v55, %v12525_v0 }
0x1309   : > { %v17217_v32 = vsub.f32 %v5663_v52, %v5674_v12  ;;  %v14511_v52 = vld [vmem:[#allocation5 + $0x298] sm:$0xf0]  ;;  %5897 = vmatpush.bf16.msrb.mxu0 %v12526_v60 }
0x130a   : > { %v12546_v9 = vor.u32 %v14511_v52, %v12545_v31 }
0x130b   : > { %v5678_v17 = vmul.f32 %v17217_v32, %v17217_v32 }
0x130c   : > { %5924 = vmatpush.bf16.msra.mxu3 %v12546_v9 }
0x130d   : > { %5680 = vadd.xlane.f32.xlu1 %v5678_v17  ;;  %v12530_v17 = vor.u32 %v14506_v63, %v12527_v4 }
0x130f   : > { %v5673_v36 = vpop.xlane.xlu2 %5672  ;;  %5911 = vmatpush.bf16.msrb.mxu1 %v12530_v17 }
0x1310   : > { %v5675_v50 = vmul.f32 %v5673_v36, %v16670_v48  ;;  %v12513_v36 = vld [vmem:[#allocation5 + $0x258] sm:$0xf] }
0x1312   : > { %v17222_v24 = vsub.f32 %v5664_v15, %v5675_v50  ;;  %v12533_v15 = vld [vmem:[#allocation5 + $0x278] sm:$0xf]  ;;  %v14504_v50 = vld [vmem:[#allocation5 + $0x260] sm:$0xf0] }
0x1313   : > { %v12534_v25 = vor.u32 %v14508_v2, %v12533_v15  ;;  %v12514_v39 = vor.u32 %v14504_v50, %v12513_v36  ;;  %5912 = vmatpush.bf16.msrb.mxu1 %v12518_v21 }
0x1314   : > { %v5679_v57 = vmul.f32 %v17222_v24, %v17222_v24 }
0x1315   : > { %5925 = vmatpush.bf16.msra.mxu3 %v12534_v25  ;;  %5898 = vmatpush.bf16.msrb.mxu0 %v12514_v39 }
0x1316   : > { %v5682_v27 = vsel %vm1166_vm6, %v5679_v57, 0.0 }
0x1317   : > { %5683 = vadd.xlane.f32.xlu2 %v5682_v27  ;;  %5913 = vmatpush.bf16.msrb.mxu1 %v12506_v18 }
0x1319   : > { %5926 = vmatpush.bf16.msra.mxu3 %v12522_v56  ;;  %5899 = vmatpush.bf16.msrb.mxu0 %v12502_v38  ;;  %v15348_v56 = vld [vmem:[#allocation2 + $0x78] sm:$0xff] }
0x131d   : > { %5927 = vmatpush.bf16.msra.mxu3 %v12510_v6  ;;  %v17300_v6 = vld [vmem:[#allocation2 + $0x80] sm:$0xff] }
0x1380   : > { %v5681_v7 = vpop.xlane.xlu1 %5680 }
0x1381   : > { %v5685_v11 = vmul.f32 %v5681_v7, %v16670_v48 }
0x1383   : > { %v17228_v1 = vadd.f32 1e-05, %v5685_v11 }
0x1385   : > { %15239 = vrsqrt.f32 %v17228_v1  ;;  %vm5695_vm13 = vweird.f32 %v17228_v1 }
0x138a   : > { %v5684_v12 = vpop.xlane.xlu2 %5683 }
0x138b   : > { %v15240_v57 = vpop.eup %15239  ;;  %v5686_v27 = vmul.f32 %v5684_v12, %v16670_v48 }
0x138c   : > { %v5690_v10 = vmul.f32 %v15240_v57, %v17228_v1  ;;  %vm5696_vm12 = vweird.f32 %v15240_v57 }
0x138d   : > { %v5688_v59 = vadd.f32 1e-05, %v5686_v27  ;;  %vm5697_vm14 = vmor %vm5695_vm13, %vm5696_vm12 }
0x138e   : > { %v5691_v26 = vmul.f32 %v15240_v57, %v5690_v10 }
0x138f   : > { %15241 = vrsqrt.f32 %v5688_v59  ;;  %vm5705_vm9 = vweird.f32 %v5688_v59 }
0x1390   : > { %v5692_v35 = vmul.f32 0.5, %v5691_v26 }
0x1392   : > { %v5693_v44 = vsub.f32 1.5, %v5692_v35 }
0x1394   : > { %v5694_v49 = vmul.f32 %v15240_v57, %v5693_v44 }
0x1395   : > { %v15242_v34 = vpop.eup %15241 }
0x1396   : > { %v5700_v5 = vmul.f32 %v15242_v34, %v5688_v59  ;;  %v5698_v62 = vsel %vm5697_vm14, %v15240_v57, %v5694_v49  ;;  %vm5706_vm15 = vweird.f32 %v15242_v34  ;;  %v17276_v59 = vld [vmem:[#allocation2 + $0x88] sm:$0xff]  ;;  %v15350_v49 = vld [vmem:[#allocation2 + $0x70] sm:$0xff] }
0x1397   : > { %v5709_v58 = vmul.f32 %v5698_v62, %v17217_v32  ;;  %vm5707_vm10 = vmor %vm5705_vm9, %vm5706_vm15  ;;  %v17242_v32 = vld [vmem:[#allocation7 + $0x9] sm:$0x7] }
0x1398   : > { %v5701_v7 = vmul.f32 %v15242_v34, %v5700_v5  ;;  %v5759_v8 = vperm.slane %v17242_v32, 1  ;;  %v5760_v30 = vperm.slane %v17242_v32, 2 }
0x1399   : > { %v5714_v14 = vmul.f32 %v15161_v13, %v5709_v58 }
0x139a   : > { %v5702_v3 = vmul.f32 0.5, %v5701_v7 }
0x139b   : > { %v17236_v47 = vadd.f32 %v15162_v16, %v5714_v14 }
0x139c   : > { %v5703_v11 = vsub.f32 1.5, %v5702_v3 }
0x139e   : > { %v5704_v40 = vmul.f32 %v15242_v34, %v5703_v11 }
0x13a0   : > { %v5708_v45 = vsel %vm5707_vm10, %v15242_v34, %v5704_v40 }
0x13a1   : > { %v5710_v43 = vmul.f32 %v5708_v45, %v17222_v24  ;;  %v5758_v24 = vperm.slane %v17242_v32, 0 }
0x13a3   : > { %v5715_v23 = vmul.f32 %v15161_v13, %v5710_v43 }
0x13a5   : > { %v17238_v1 = vadd.f32 %v15162_v16, %v5715_v23 }
0x13a7   : > { %v5721_v20 = vpack.c.bf16 %v17238_v1, %v17236_v47 }
0x13a9   : > { %5900 = vmatmul.bf16.vlgmr.msrb.gmra.mxu0 %v5721_v20  ;;  %5914 = vmatmul.bf16.vlgmr.msrb.gmra.mxu1 %v5721_v20 }
0x13aa   : > { %5928 = vmatmul.bf16.vlgmr.msra.gmra.mxu3 %v5721_v20 }
0x1426   : > { %v5915_v29 = vpop.f32.mrf.mxu1  ;;  %v5901_v31 = vpop.f32.mrf.mxu0 }
0x1427   : > { %v17247_v51 = vadd.f32 %v5915_v29, %v5759_v8  ;;  %v17253_v0 = vadd.f32 %v5901_v31, %v5758_v24 }
0x1429   : > { %v5966_v63 = vrot.slane %v17247_v51, 1  ;;  %v5956_v4 = vrot.slane %v17247_v51, 3  ;;  %v5961_v15 = vrot.slane %v17247_v51, 2  ;;  %v5951_v2 = vrot.slane %v17247_v51, 4 }
0x142a   : > { %v5946_v60 = vrot.slane %v17247_v51, 5  ;;  %v5941_v25 = vrot.slane %v17247_v51, 6 }
0x142d   : > { %v5929_v52 = vpop.f32.mrf.mxu3 }
0x142e   : > { %v17249_v61 = vadd.f32 %v5929_v52, %v5760_v30  ;;  %v5917_v9 = vpop.f32.mrf.mxu1 }
0x142f   : > { %v17255_v55 = vadd.f32 %v5917_v9, %v5759_v8 }
0x1430   : > { %v6028_v57 = vrot.slane %v17249_v61, 1  ;;  %v6018_v46 = vrot.slane %v17249_v61, 3  ;;  %v6023_v35 = vrot.slane %v17249_v61, 2  ;;  %v6013_v38 = vrot.slane %v17249_v61, 4 }
0x1431   : > { %v5967_v12 = vrot.slane %v17255_v55, 1  ;;  %v5957_v17 = vrot.slane %v17255_v55, 3  ;;  %v5962_v36 = vrot.slane %v17255_v55, 2  ;;  %v5952_v50 = vrot.slane %v17255_v55, 4 }
0x1432   : > { %v5947_v27 = vrot.slane %v17255_v55, 5  ;;  %v5942_v28 = vrot.slane %v17255_v55, 6  ;;  %v6008_v44 = vrot.slane %v17249_v61, 5  ;;  %v6003_v18 = vrot.slane %v17249_v61, 6 }
0x1433   : > { %v17271_v37 = vsel %vm1202_vm0, %v5966_v63, %v5967_v12  ;;  %v5958_v10 = vsel %vm1190_vm1, %v5956_v4, %v5957_v17  ;;  %v5963_v19 = vsel %vm1196_vm2, %v5961_v15, %v5962_v36  ;;  %v5953_v22 = vsel %vm1184_vm3, %v5951_v2, %v5952_v50 }
0x1434   : > { %v5995_v39 = vmul.f32 %v17276_v59, %v17271_v37  ;;  %v17281_v26 = vsel %vm1196_vm2, %v5958_v10, %v5961_v15  ;;  %v17284_v21 = vsel %vm1202_vm0, %v5963_v19, %v5966_v63  ;;  %v17287_v41 = vsel %vm1190_vm1, %v5953_v22, %v5956_v4  ;;  %v5903_v22 = vpop.f32.mrf.mxu0 }
0x1435   : > { %v5931_v42 = vpop.f32.mrf.mxu3  ;;  %v5993_v53 = vmul.f32 %v15348_v56, %v17281_v26  ;;  %v5948_v33 = vsel %vm1178_vm4, %v5946_v60, %v5947_v27  ;;  %v5994_v34 = vmul.f32 %v17300_v6, %v17284_v21  ;;  %v5992_v5 = vmul.f32 %v15350_v49, %v17287_v41 }
0x1436   : > { %v17295_v54 = vadd.f32 %v5931_v42, %v5760_v30  ;;  %6095 = vmatpush.xpose.msra.mxu0 %v5995_v39  ;;  %v17306_v7 = vsel %vm1184_vm3, %v5948_v33, %v5951_v2  ;;  %v5943_v62 = vsel %vm1172_vm5, %v5941_v25, %v5942_v28  ;;  %v5937_v14 = vrot.slane %v17255_v55, 7  ;;  %v15351_v2 = vld [vmem:[#allocation2 + $0x68] sm:$0xff]  ;;  %v15352_v42 = vld [vmem:[#allocation2 + $0x60] sm:$0xff] }
0x1437   : > { %6058 = vmatpush.xpose.msra.mxu2 %v5993_v53  ;;  %v5998_v15 = vrot.slane %v17249_v61, 7  ;;  %v5991_v12 = vmul.f32 %v15351_v2, %v17306_v7  ;;  %v5936_v50 = vrot.slane %v17247_v51, 7  ;;  %v17346_v27 = vsel %vm1178_vm4, %v5943_v62, %v5946_v60  ;;  %v15357_v62 = vld [vmem:[#allocation2 + $0x38] sm:$0xff] }
0x1438   : > { %v6029_v3 = vrot.slane %v17295_v54, 1  ;;  %v6019_v11 = vrot.slane %v17295_v54, 3  ;;  %v6024_v13 = vrot.slane %v17295_v54, 2  ;;  %v6014_v58 = vrot.slane %v17295_v54, 4 }
0x1439   : > { %v6009_v40 = vrot.slane %v17295_v54, 5  ;;  %v6004_v45 = vrot.slane %v17295_v54, 6  ;;  %v5999_v16 = vrot.slane %v17295_v54, 7  ;;  %v5938_v19 = vsel %vm1166_vm6, %v5936_v50, %v5937_v14  ;;  %v15361_v14 = vld [vmem:[#allocation2 + $0x18] sm:$0xff] }
0x143a   : > { %6096 = vmatpush.xpose.msra.mxu0 %v5994_v34  ;;  %v6030_v43 = vsel %vm1202_vm0, %v6028_v57, %v6029_v3  ;;  %v6020_v23 = vsel %vm1190_vm1, %v6018_v46, %v6019_v11  ;;  %v6025_v20 = vsel %vm1196_vm2, %v6023_v35, %v6024_v13  ;;  %v6015_v29 = vsel %vm1184_vm3, %v6013_v38, %v6014_v58  ;;  %v15359_v13 = vld [vmem:[#allocation2 + $0x28] sm:$0xff] }
0x143b   : > { %6059 = vmatpush.xpose.msra.mxu2 %v5992_v5  ;;  %v6057_v8 = vmul.f32 %v17276_v59, %v6030_v43  ;;  %v17325_v30 = vsel %vm1196_vm2, %v6020_v23, %v6023_v35  ;;  %v6039_v31 = vsel %vm1202_vm0, %v6025_v20, %v6028_v57  ;;  %v17329_v52 = vsel %vm1190_vm1, %v6015_v29, %v6018_v46  ;;  %v15362_v20 = vld [vmem:[#allocation2 + $0x10] sm:$0xff] }
0x143c   : > { %v6055_v9 = vmul.f32 %v15348_v56, %v17325_v30  ;;  %v6056_v63 = vmul.f32 %v17300_v6, %v6039_v31  ;;  %v6010_v4 = vsel %vm1178_vm4, %v6008_v44, %v6009_v40  ;;  %v6005_v36 = vsel %vm1172_vm5, %v6003_v18, %v6004_v45  ;;  %v15360_v45 = vld [vmem:[#allocation2 + $0x20] sm:$0xff] }
0x143d   : > { %6168 = vmatpush.msrb.mxu3 %v6057_v8  ;;  %6097 = vmatmul.f32.vlgmr.msra.gmra.mxu0 %v17253_v0  ;;  %v17338_v17 = vsel %vm1184_vm3, %v6010_v4, %v6013_v38  ;;  %v6054_v57 = vmul.f32 %v15350_v49, %v17329_v52  ;;  %v6000_v28 = vsel %vm1166_vm6, %v5998_v15, %v5999_v16  ;;  %v15353_v38 = vld [vmem:[#allocation2 + $0x58] sm:$0xff]  ;;  %v15363_v8 = vld [vmem:[#allocation2 + $0x8] sm:$0xff] }
0x143e   : > { %6177 = vmatpush.msrb.mxu0 %v15348_v56  ;;  %6131 = vmatpush.msra.mxu1 %v6055_v9  ;;  %v6035_v10 = vsel %vm1178_vm4, %v6005_v36, %v6008_v44  ;;  %v6053_v39 = vmul.f32 %v15351_v2, %v17338_v17  ;;  %v5990_v56 = vmul.f32 %v15352_v42, %v17346_v27 }
0x143f   : > { %6169 = vmatpush.msrb.mxu3 %v6056_v63  ;;  %6060 = vmatpush.xpose.msra.mxu2 %v5991_v12  ;;  %v6034_v53 = vsel %vm1172_vm5, %v6000_v28, %v6003_v18  ;;  %v6052_v60 = vmul.f32 %v15352_v42, %v6035_v10  ;;  %v17357_v46 = vsel %vm1172_vm5, %v5938_v19, %v5941_v25  ;;  %v15354_v25 = vld [vmem:[#allocation2 + $0x50] sm:$0xff] }
0x1440   : > { %6132 = vmatpush.msra.mxu1 %v6054_v57  ;;  %6178 = vmatpush.msrb.mxu0 %v15350_v49  ;;  %v17361_v35 = vadd.f32 %v5903_v22, %v5758_v24  ;;  %v6033_v33 = vsel %vm1166_vm6, %v17295_v54, %v5998_v15  ;;  %v6051_v44 = vmul.f32 %v15353_v38, %v6034_v53  ;;  %v15355_v24 = vld [vmem:[#allocation2 + $0x48] sm:$0xff] }
0x1441   : > { %v5989_v18 = vmul.f32 %v15353_v38, %v17357_v46  ;;  %6214 = vmatpush.msra.mxu3 %v17276_v59  ;;  %v6050_v34 = vmul.f32 %v15354_v25, %v6033_v33  ;;  %v17370_v32 = vsel %vm1166_vm6, %v17255_v55, %v5936_v50  ;;  %v6049_v54 = vmul.f32 %v15355_v24, %v17249_v61  ;;  %v15356_v59 = vld [vmem:[#allocation2 + $0x40] sm:$0xff] }
0x1442   : > { %6133 = vmatpush.msra.mxu1 %v6053_v39  ;;  %6179 = vmatpush.msrb.mxu0 %v15351_v2  ;;  %v5988_v49 = vmul.f32 %v15354_v25, %v17370_v32  ;;  %v6048_v5 = vmul.f32 %v15356_v59, %v6030_v43  ;;  %v6047_v55 = vmul.f32 %v15357_v62, %v6039_v31  ;;  %v15364_v31 = vld [vmem:[#allocation2] sm:$0xff] }
0x1443   : > { %6061 = vmatpush.xpose.msra.mxu2 %v5990_v56  ;;  %6215 = vmatpush.msra.mxu3 %v17300_v6  ;;  %v5987_v3 = vmul.f32 %v15355_v24, %v17247_v51  ;;  %v15358_v6 = vld [vmem:[#allocation2 + $0x30] sm:$0xff]  ;;  %v6045_v58 = vmul.f32 %v15359_v13, %v17329_v52  ;;  %v5986_v40 = vmul.f32 %v15356_v59, %v17271_v37 }
0x1444   : > { %6134 = vmatpush.msra.mxu1 %v6052_v60  ;;  %6180 = vmatpush.msrb.mxu0 %v15352_v42  ;;  %v6046_v11 = vmul.f32 %v15358_v6, %v17325_v30  ;;  %v6044_v16 = vmul.f32 %v15360_v45, %v17338_v17  ;;  %v6043_v43 = vmul.f32 %v15361_v14, %v6035_v10 }
0x1445   : > { %6100 = vmatmul.f32.gmra.mxu0 %v17361_v35  ;;  %v5985_v23 = vmul.f32 %v15357_v62, %v17284_v21  ;;  %v6042_v29 = vmul.f32 %v15362_v20, %v6034_v53  ;;  %v6041_v37 = vmul.f32 %v15363_v8, %v6033_v33  ;;  %v5984_v30 = vmul.f32 %v15358_v6, %v17281_v26  ;;  %v14531_v33 = vld [vmem:[#allocation8 + $0xf8] sm:$0xff] }
0x1446   : > { %6135 = vmatpush.msra.mxu1 %v6051_v44  ;;  %6181 = vmatpush.msrb.mxu0 %v15353_v38  ;;  %v6040_v52 = vmul.f32 %v15364_v31, %v17249_v61  ;;  %v5983_v21 = vmul.f32 %v15359_v13, %v17287_v41  ;;  %v5982_v9 = vmul.f32 %v15360_v45, %v17306_v7  ;;  %v14530_v38 = vld [vmem:[#allocation8 + $0xf0] sm:$0xff]  ;;  %v14529_v44 = vld [vmem:[#allocation8 + $0xe8] sm:$0xff] }
0x1447   : > { %6062 = vmatpush.xpose.msra.mxu2 %v5989_v18  ;;  %v5981_v63 = vmul.f32 %v15361_v14, %v17346_v27  ;;  %v5980_v26 = vmul.f32 %v15362_v20, %v17357_v46  ;;  %v5979_v61 = vmul.f32 %v15363_v8, %v17370_v32  ;;  %v5978_v4 = vmul.f32 %v15364_v31, %v17247_v51  ;;  %v14528_v18 = vld [vmem:[#allocation8 + $0xe0] sm:$0xff]  ;;  %v14526_v32 = vld [vmem:[#allocation8 + $0xd0] sm:$0xff] }
0x1448   : > { %6136 = vmatpush.msra.mxu1 %v6050_v34  ;;  %6182 = vmatpush.msrb.mxu0 %v15354_v25  ;;  %v14527_v25 = vld [vmem:[#allocation8 + $0xd8] sm:$0xff] }
0x144a   : > { %6137 = vmatpush.msra.mxu1 %v6049_v54  ;;  %6183 = vmatpush.msrb.mxu0 %v15355_v24  ;;  %v14525_v24 = vld [vmem:[#allocation8 + $0xc8] sm:$0xff] }
0x144b   : > { %6063 = vmatpush.xpose.msra.mxu2 %v5988_v49  ;;  %v14524_v49 = vld [vmem:[#allocation8 + $0xc0] sm:$0xff] }
0x144c   : > { %6138 = vmatpush.msra.mxu1 %v6048_v5  ;;  %6184 = vmatpush.msrb.mxu0 %v15356_v59 }
0x144e   : > { %6139 = vmatpush.msra.mxu1 %v6047_v55  ;;  %6185 = vmatpush.msrb.mxu0 %v15357_v62 }
0x144f   : > { %6064 = vmatpush.xpose.msra.mxu2 %v5987_v3 }
0x1450   : > { %6140 = vmatpush.msra.mxu1 %v6046_v11  ;;  %6186 = vmatpush.msrb.mxu0 %v15358_v6 }
0x1452   : > { %6141 = vmatpush.msra.mxu1 %v6045_v58  ;;  %6187 = vmatpush.msrb.mxu0 %v15359_v13 }
0x1453   : > { %6065 = vmatpush.xpose.msra.mxu2 %v5986_v40 }
0x1454   : > { %6142 = vmatpush.msra.mxu1 %v6044_v16  ;;  %6188 = vmatpush.msrb.mxu0 %v15360_v45 }
0x1456   : > { %6143 = vmatpush.msra.mxu1 %v6043_v43  ;;  %6189 = vmatpush.msrb.mxu0 %v15361_v14 }
0x1457   : > { %6066 = vmatpush.xpose.msra.mxu2 %v5985_v23 }
0x1458   : > { %6144 = vmatpush.msra.mxu1 %v6042_v29  ;;  %6190 = vmatpush.msrb.mxu0 %v15362_v20  ;;  %v15163_v20 = vld [vmem:[#allocation10 + $0x3] ss:$0 sm:$0xff] }
0x145a   : > { %6145 = vmatpush.msra.mxu1 %v6041_v37  ;;  %6191 = vmatpush.msrb.mxu0 %v15363_v8 }
0x145b   : > { %6067 = vmatpush.xpose.msra.mxu2 %v5984_v30 }
0x145c   : > { %6146 = vmatpush.msra.mxu1 %v6040_v52  ;;  %6192 = vmatpush.msrb.mxu0 %v15364_v31 }
0x145e   : > { %6298 = vmatpush.bf16.msrb.mxu1 %v14531_v33 }
0x145f   : > { %6068 = vmatpush.xpose.msra.mxu2 %v5983_v21 }
0x1462   : > { %6299 = vmatpush.bf16.msrb.mxu1 %v14530_v38  ;;  %v12731_v38 = vld [vmem:[#allocation14 + $0x558] sm:$0xf0] }
0x1463   : > { %6069 = vmatpush.xpose.msra.mxu2 %v5982_v9  ;;  %v12801_v9 = vld [vmem:[#allocation14 + $0x5d0] sm:$0xf] }
0x1466   : > { %6300 = vmatpush.bf16.msrb.mxu1 %v14529_v44  ;;  %v12809_v44 = vld [vmem:[#allocation14 + $0x5d8] sm:$0xf] }
0x1467   : > { %6070 = vmatpush.xpose.msra.mxu2 %v5981_v63  ;;  %v14577_v63 = vld [vmem:[#allocation14 + $0x5e4] sm:$0xf0] }
0x146a   : > { %6301 = vmatpush.bf16.msrb.mxu1 %v14528_v18  ;;  %v14578_v18 = vld [vmem:[#allocation14 + $0x5ec] sm:$0xf0] }
0x146b   : > { %6071 = vmatpush.xpose.msra.mxu2 %v5980_v26  ;;  %v14574_v26 = vld [vmem:[#allocation14 + $0x5d4] sm:$0xf] }
0x146e   : > { %6302 = vmatpush.bf16.msrb.mxu1 %v14527_v25 }
0x146f   : > { %6072 = vmatpush.xpose.msra.mxu2 %v5979_v61  ;;  %v12802_v61 = vor.u32 %v14577_v63, %v12801_v9  ;;  %v12763_v9 = vld [vmem:[#allocation14 + $0x590] sm:$0xf0] }
0x1472   : > { %6303 = vmatpush.bf16.msrb.mxu1 %v14526_v32  ;;  %v14575_v32 = vld [vmem:[#allocation14 + $0x5dc] sm:$0xf] }
0x1473   : > { %6073 = vmatpush.xpose.msra.mxu2 %v5978_v4  ;;  %v12803_v4 = vld [vmem:[#allocation14 + $0x5e8] sm:$0xf0] }
0x1476   : > { %6074 = vmatmul.f32.vlgmr.msra.gmra.mxu2 %v17253_v0  ;;  %6304 = vmatpush.bf16.msrb.mxu1 %v14525_v24  ;;  %v12811_v24 = vld [vmem:[#allocation14 + $0x5f0] sm:$0xf0] }
0x147a   : > { %6305 = vmatpush.bf16.msrb.mxu1 %v14524_v49  ;;  %v12705_v49 = vld [vmem:[#allocation14 + $0x510] sm:$0xf] }
0x147e   : > { %6077 = vmatmul.f32.gmra.mxu2 %v17361_v35 }
0x14ba   : > { %v6098_v41 = vpop.f32.mrf.mxu0 }
0x14bb   : > { %v6104_v7 = vsel %vm1341_vm7, %v6098_v41, -inf }
0x14c2   : > { %v6101_v12 = vpop.f32.mrf.mxu0 }
0x14c3   : > { %v6109_v50 = vsel %vm1347_vm8, %v6101_v12, -inf }
0x14f9   : > { %v6075_v15 = vpop.f32.mrf.mxu2 }
0x14fa   : > { %v6105_v2 = vmax.f32 %v6075_v15, %v6104_v7 }
0x14fc   : > { %6106 = vmax.xlane.f32.xlu0 %v6105_v2 }
0x1501   : > { %v6078_v17 = vpop.f32.mrf.mxu2 }
0x1502   : > { %v6108_v36 = vsel %vm1166_vm6, %v6078_v17, -inf }
0x1503   : > { %v6110_v57 = vmax.f32 %v6108_v36, %v6109_v50 }
0x1505   : > { %6111 = vmax.xlane.f32.xlu1 %v6110_v57  ;;  %v12777_v57 = vld [vmem:[#allocation14 + $0x5a0] sm:$0xf] }
0x156f   : > { %v6107_v51 = vpop.xlane.xlu0 %6106 }
0x1570   : > { %v6113_v27 = vsub.f32 %v6075_v15, %v6107_v51  ;;  %v6114_v28 = vsub.f32 %v6098_v41, %v6107_v51  ;;  %v12806_v41 = vor.u32 %v14574_v26, %v12803_v4  ;;  %v14571_v51 = vld [vmem:[#allocation14 + $0x5b4] sm:$0xf0]  ;;  %v14541_v4 = vld [vmem:[#allocation14 + $0x4c4] sm:$0xf0] }
0x1572   : > { %v6117_v0 = vmul.f32 1.442695, %v6113_v27  ;;  %v6119_v10 = vmul.f32 1.442695, %v6114_v28  ;;  %6689 = vmatpush.bf16.msra.mxu0 %v12806_v41  ;;  %v14568_v27 = vld [vmem:[#allocation14 + $0x5a4] sm:$0xf]  ;;  %v12778_v28 = vor.u32 %v14571_v51, %v12777_v57 }
0x1573   : > { %v14538_v41 = vld [vmem:[#allocation14 + $0x4b4] sm:$0xf]  ;;  %v12739_v57 = vld [vmem:[#allocation14 + $0x560] sm:$0xf0]  ;;  %v12633_v51 = vld [vmem:[#allocation14 + $0x480] sm:$0xf] }
0x1574   : > { %15243 = vpow2.f32 %v6117_v0  ;;  %v12779_v0 = vld [vmem:[#allocation14 + $0x5b8] sm:$0xf0] }
0x1575   : > { %15245 = vpow2.f32 %v6119_v10  ;;  %v12782_v10 = vor.u32 %v14568_v27, %v12779_v0  ;;  %v14532_v0 = vld [vmem:[#allocation14 + $0x484] sm:$0xf] }
0x1577   : > { %6690 = vmatpush.bf16.msra.mxu0 %v12782_v10  ;;  %v12635_v10 = vld [vmem:[#allocation14 + $0x498] sm:$0xf0] }
0x1578   : > { %v6112_v19 = vpop.xlane.xlu1 %6111 }
0x1579   : > { %v6115_v22 = vsub.f32 %v6078_v17, %v6112_v19  ;;  %v6116_v39 = vsub.f32 %v6101_v12, %v6112_v19  ;;  %v12753_v19 = vld [vmem:[#allocation14 + $0x570] sm:$0xf] }
0x157a   : > { %v15244_v42 = vpop.eup %15243 }
0x157b   : > { %v15246_v56 = vpop.eup %15245  ;;  %v6121_v53 = vmul.f32 1.442695, %v6115_v22  ;;  %v6123_v60 = vmul.f32 1.442695, %v6116_v39  ;;  %6147 = vmatmul.f32.vlgmr.msra.gmra.mxu1 %v15244_v42  ;;  %6193 = vmatmul.f32.vlgmr.msrb.gmra.mxu0 %v15244_v42  ;;  %v14565_v22 = vld [vmem:[#allocation14 + $0x584] sm:$0xf0] }
0x157c   : > { %12595 = vmatmul.msk.f32.vlgmr.msrb.gmra.mxu3 %vm1341_vm7, %v15246_v56  ;;  %v14562_v39 = vld [vmem:[#allocation14 + $0x574] sm:$0xf]  ;;  %v12754_v42 = vor.u32 %v14565_v22, %v12753_v19 }
0x157d   : > { %15247 = vpow2.f32 %v6121_v53  ;;  %6675 = vmatpush.bf16.msrb.mxu3 %v12802_v61  ;;  %v12657_v61 = vld [vmem:[#allocation14 + $0x4b0] sm:$0xf] }
0x157e   : > { %15249 = vpow2.f32 %v6123_v60  ;;  %v12729_v60 = vld [vmem:[#allocation14 + $0x540] sm:$0xf] }
0x1581   : > { %6676 = vmatpush.bf16.msrb.mxu3 %v12778_v28  ;;  %v14535_v28 = vld [vmem:[#allocation14 + $0x494] sm:$0xf0] }
0x1582   : > { %v12634_v22 = vor.u32 %v14535_v28, %v12633_v51 }
0x1583   : > { %v15248_v46 = vpop.eup %15247 }
0x1584   : > { %v15250_v35 = vpop.eup %15249  ;;  %6150 = vmatmul.f32.gmra.mxu1 %v15248_v46  ;;  %6196 = vmatmul.f32.gmra.mxu0 %v15248_v46  ;;  %v14559_v46 = vld [vmem:[#allocation14 + $0x554] sm:$0xf0] }
0x1585   : > { %12596 = vmatmul.msk.f32.gmra.mxu3 %vm1341_vm7, %v15250_v35  ;;  %v12730_v33 = vor.u32 %v14559_v46, %v12729_v60 }
0x1586   : > { %6677 = vmatpush.bf16.msrb.mxu3 %v12754_v42  ;;  %v12713_v42 = vld [vmem:[#allocation14 + $0x518] sm:$0xf] }
0x158a   : > { %6678 = vmatpush.bf16.msrb.mxu3 %v12730_v33  ;;  %v12715_v33 = vld [vmem:[#allocation14 + $0x530] sm:$0xf0] }
0x158d   : > { %12597 = vmatmul.msk.f32.vlgmr.msra.gmra.mxu3 %vm1341_vm7, %v15246_v56  ;;  %v12755_v56 = vld [vmem:[#allocation14 + $0x588] sm:$0xf0] }
0x158e   : > { %v12758_v53 = vor.u32 %v14562_v39, %v12755_v56  ;;  %v12638_v39 = vor.u32 %v14532_v0, %v12635_v10  ;;  %v14554_v56 = vld [vmem:[#allocation14 + $0x52c] sm:$0xf0] }
0x1590   : > { %6691 = vmatpush.bf16.msra.mxu0 %v12758_v53  ;;  %v14551_v53 = vld [vmem:[#allocation14 + $0x51c] sm:$0xf] }
0x1595   : > { %12598 = vmatmul.msk.f32.gmra.mxu3 %vm1341_vm7, %v15250_v35  ;;  %v14556_v35 = vld [vmem:[#allocation14 + $0x544] sm:$0xf] }
0x1596   : > { %v12734_v25 = vor.u32 %v14556_v35, %v12731_v38  ;;  %v12714_v35 = vor.u32 %v14554_v56, %v12713_v42  ;;  %v12817_v38 = vld [vmem:[#allocation14 + $0x5e0] sm:$0xf]  ;;  %v14626_v56 = vld [vmem:[#allocation17 + $0x5f0] sm:$0xff] }
0x1598   : > { %6692 = vmatpush.bf16.msra.mxu0 %v12734_v25  ;;  %v12718_v25 = vor.u32 %v14551_v53, %v12715_v33  ;;  %v14552_v53 = vld [vmem:[#allocation14 + $0x524] sm:$0xf] }
0x15f8   : > { %v6194_v59 = vpop.f32.mrf.mxu0  ;;  %v6148_v62 = vpop.f32.mrf.mxu1 }
0x15ff   : > { %v6171_v34 = vpop.f32.mrf.mxu3 }
0x1600   : > { %v6172_v40 = vadd.f32 %v6171_v34, %v6148_v62  ;;  %v12810_v34 = vor.u32 %v14578_v18, %v12809_v44  ;;  %v14579_v44 = vld [vmem:[#allocation14 + $0x5f4] sm:$0xf0] }
0x1601   : > { %v6197_v3 = vpop.f32.mrf.mxu0  ;;  %v6151_v58 = vpop.f32.mrf.mxu1 }
0x1602   : > { %6703 = vmatpush.bf16.msrb.mxu2 %v12810_v34  ;;  %v12818_v34 = vor.u32 %v14579_v44, %v12817_v38  ;;  %v14595_v44 = vld [vmem:[#allocation17 + $0x4f8] sm:$0xff] }
0x1608   : > { %v6174_v54 = vpop.f32.mrf.mxu3 }
0x1609   : > { %v6175_v45 = vadd.f32 %v6174_v54, %v6151_v58  ;;  %v12814_v54 = vor.u32 %v14575_v32, %v12811_v24  ;;  %v14576_v32 = vld [vmem:[#allocation14 + $0x5e4] sm:$0xf]  ;;  %v12819_v24 = vld [vmem:[#allocation14 + $0x5f8] sm:$0xf0] }
0x160b   : > { %6717 = vmatpush.bf16.msra.mxu1 %v12814_v54  ;;  %v12689_v54 = vld [vmem:[#allocation14 + $0x4e8] sm:$0xf] }
0x1610   : > { %v6217_v5 = vpop.f32.mrf.mxu3 }
0x1611   : > { %v6218_v55 = vadd.f32 %v6217_v5, %v6194_v59  ;;  %v14553_v59 = vld [vmem:[#allocation14 + $0x524] sm:$0xf0]  ;;  %v14550_v5 = vld [vmem:[#allocation14 + $0x514] sm:$0xf] }
0x1612   : > { %v12706_v62 = vor.u32 %v14553_v59, %v12705_v49  ;;  %v12822_v59 = vor.u32 %v14576_v32, %v12819_v24  ;;  %v14594_v32 = vld [vmem:[#allocation17 + $0x4f0] sm:$0xff]  ;;  %v14587_v24 = vld [vmem:[#allocation17 + $0x4b8] sm:$0xff] }
0x1613   : > { %15251 = vrcp.f32 %v6218_v55  ;;  %v12707_v55 = vld [vmem:[#allocation14 + $0x528] sm:$0xf0] }
0x1614   : > { %6679 = vmatpush.bf16.msrb.mxu3 %v12706_v62  ;;  %v14545_v62 = vld [vmem:[#allocation14 + $0x4ec] sm:$0xf] }
0x1618   : > { %v6220_v6 = vpop.f32.mrf.mxu3 }
0x1619   : > { %v6221_v11 = vadd.f32 %v6220_v6, %v6197_v3  ;;  %v15252_v13 = vpop.eup %15251  ;;  %v12785_v3 = vld [vmem:[#allocation14 + $0x5a8] sm:$0xf]  ;;  %v14572_v6 = vld [vmem:[#allocation14 + $0x5bc] sm:$0xf0] }
0x161a   : > { %v6225_v14 = vmul.f32 %v15252_v13, %v6172_v40  ;;  %v12710_v13 = vor.u32 %v14550_v5, %v12707_v55  ;;  %v12786_v58 = vor.u32 %v14572_v6, %v12785_v3  ;;  %v14569_v40 = vld [vmem:[#allocation14 + $0x5ac] sm:$0xf]  ;;  %v14548_v5 = vld [vmem:[#allocation14 + $0x4fc] sm:$0xf0]  ;;  %v12691_v3 = vld [vmem:[#allocation14 + $0x500] sm:$0xf0] }
0x161b   : > { %15253 = vrcp.f32 %v6221_v11  ;;  %v12793_v6 = vld [vmem:[#allocation14 + $0x5b0] sm:$0xf] }
0x161c   : > { %6693 = vmatpush.bf16.msra.mxu0 %v12710_v13  ;;  %6704 = vmatpush.bf16.msrb.mxu2 %v12786_v58  ;;  %v12690_v13 = vor.u32 %v14548_v5, %v12689_v54  ;;  %v12694_v58 = vor.u32 %v14545_v62, %v12691_v3  ;;  %v15164_v54 = vld [vmem:[#allocation11 + $0x3] ss:$0 sm:$0xff] }
0x161d   : > { %v14546_v5 = vld [vmem:[#allocation14 + $0x4f4] sm:$0xf] }
0x161e   : > { %v14586_v3 = vld [vmem:[#allocation17 + $0x4b0] sm:$0xff] }
0x1621   : > { %v15254_v16 = vpop.eup %15253 }
0x1622   : > { %v6226_v43 = vmul.f32 %v15254_v16, %v6175_v45  ;;  %v12787_v45 = vld [vmem:[#allocation14 + $0x5c0] sm:$0xf0] }
0x1624   : > { %v6227_v23 = vpack.c.bf16 %v6226_v43, %v6225_v14  ;;  %v12790_v14 = vor.u32 %v14569_v40, %v12787_v45  ;;  %v12681_v43 = vld [vmem:[#allocation14 + $0x4e0] sm:$0xf]  ;;  %v14570_v45 = vld [vmem:[#allocation14 + $0x5b4] sm:$0xf] }
0x1626   : > { %6306 = vmatmul.bf16.vlgmr.msrb.gmra.mxu1 %v6227_v23  ;;  %v14547_v23 = vld [vmem:[#allocation14 + $0x4f4] sm:$0xf0] }
0x1627   : > { %6718 = vmatpush.bf16.msra.mxu1 %v12790_v14  ;;  %v12665_v14 = vld [vmem:[#allocation14 + $0x4b8] sm:$0xf] }
0x16a3   : > { %v6307_v29 = vpop.f32.mrf.mxu1 }
0x16a4   : > { %v6308_v8 = vadd.f32 %v15163_v20, %v6307_v29 }
0x16a6   : > { %v6312_v37 = vadd.f32 %v6308_v8, %v17236_v47  ;;  %v12682_v8 = vor.u32 %v14547_v23, %v12681_v43 }
0x16a8   : > { %6318 = vadd.xlane.f32.xlu0 %v6312_v37  ;;  %6680 = vmatpush.bf16.msrb.mxu3 %v12682_v8  ;;  %v14539_v8 = vld [vmem:[#allocation14 + $0x4bc] sm:$0xf] }
0x16ab   : > { %v6309_v30 = vpop.f32.mrf.mxu1 }
0x16ac   : > { %v6310_v31 = vadd.f32 %v15163_v20, %v6309_v30  ;;  %v14544_v20 = vld [vmem:[#allocation14 + $0x4e4] sm:$0xf]  ;;  %v12761_v30 = vld [vmem:[#allocation14 + $0x578] sm:$0xf] }
0x16ae   : > { %v6313_v52 = vadd.f32 %v6310_v31, %v17238_v1 }
0x16b0   : > { %v6320_v21 = vsel %vm1166_vm6, %v6313_v52, 0.0 }
0x16b1   : > { %6321 = vadd.xlane.f32.xlu2 %v6320_v21  ;;  %v14563_v21 = vld [vmem:[#allocation14 + $0x57c] sm:$0xf] }
0x16b2   : > { %v12766_v26 = vor.u32 %v14563_v21, %v12763_v9  ;;  %v14564_v9 = vld [vmem:[#allocation14 + $0x584] sm:$0xf] }
0x16b4   : > { %6719 = vmatpush.bf16.msra.mxu1 %v12766_v26 }
0x171b   : > { %v6319_v7 = vpop.xlane.xlu0 %6318 }
0x171c   : > { %v6323_v15 = vmul.f32 %v6319_v7, %v16670_v48  ;;  %v12658_v7 = vor.u32 %v14541_v4, %v12657_v61  ;;  %v12641_v4 = vld [vmem:[#allocation14 + $0x488] sm:$0xf] }
0x171e   : > { %v17402_v47 = vsub.f32 %v6312_v37, %v6323_v15  ;;  %v12683_v37 = vld [vmem:[#allocation14 + $0x4f8] sm:$0xf0]  ;;  %v12659_v15 = vld [vmem:[#allocation14 + $0x4c8] sm:$0xf0]  ;;  %6681 = vmatpush.bf16.msrb.mxu3 %v12658_v7 }
0x171f   : > { %v12686_v31 = vor.u32 %v14544_v20, %v12683_v37  ;;  %v14542_v20 = vld [vmem:[#allocation14 + $0x4cc] sm:$0xf0]  ;;  %v12667_v37 = vld [vmem:[#allocation14 + $0x4d0] sm:$0xf0]  ;;  %v14533_v7 = vld [vmem:[#allocation14 + $0x48c] sm:$0xf] }
0x1720   : > { %v6327_v2 = vmul.f32 %v17402_v47, %v17402_v47  ;;  %v12666_v26 = vor.u32 %v14542_v20, %v12665_v14  ;;  %v12670_v61 = vor.u32 %v14539_v8, %v12667_v37  ;;  %v14540_v14 = vld [vmem:[#allocation14 + $0x4c4] sm:$0xf]  ;;  %v12649_v37 = vld [vmem:[#allocation14 + $0x490] sm:$0xf] }
0x1721   : > { %6694 = vmatpush.bf16.msra.mxu0 %v12686_v31  ;;  %v14567_v31 = vld [vmem:[#allocation14 + $0x594] sm:$0xf0] }
0x1722   : > { %6329 = vadd.xlane.f32.xlu1 %v6327_v2  ;;  %v12737_v2 = vld [vmem:[#allocation14 + $0x548] sm:$0xf]  ;;  %6682 = vmatpush.bf16.msrb.mxu3 %v12634_v22  ;;  %v14555_v22 = vld [vmem:[#allocation14 + $0x534] sm:$0xf0] }
0x1724   : > { %v6322_v1 = vpop.xlane.xlu2 %6321 }
0x1725   : > { %v6324_v12 = vmul.f32 %v6322_v1, %v16670_v48  ;;  %v14560_v1 = vld [vmem:[#allocation14 + $0x55c] sm:$0xf0] }
0x1726   : > { %6731 = vmatpush.bf16.msra.mxu3 %v12818_v34 }
0x1727   : > { %v17407_v17 = vsub.f32 %v6313_v52, %v6324_v12  ;;  %v14566_v52 = vld [vmem:[#allocation14 + $0x58c] sm:$0xf0]  ;;  %v12662_v12 = vor.u32 %v14538_v41, %v12659_v15  ;;  %v14536_v41 = vld [vmem:[#allocation14 + $0x49c] sm:$0xf0] }
0x1728   : > { %v12762_v63 = vor.u32 %v14566_v52, %v12761_v30  ;;  %v12769_v30 = vld [vmem:[#allocation14 + $0x580] sm:$0xf]  ;;  %v12642_v0 = vor.u32 %v14536_v41, %v12641_v4 }
0x1729   : > { %v6328_v36 = vmul.f32 %v17407_v17, %v17407_v17  ;;  %6695 = vmatpush.bf16.msra.mxu0 %v12662_v12  ;;  %v12770_v21 = vor.u32 %v14567_v31, %v12769_v30  ;;  %v14561_v12 = vld [vmem:[#allocation14 + $0x564] sm:$0xf0]  ;;  %v14591_v41 = vld [vmem:[#allocation17 + $0x4d8] sm:$0xff] }
0x172a   : > { %6705 = vmatpush.bf16.msrb.mxu2 %v12762_v63  ;;  %v12771_v63 = vld [vmem:[#allocation14 + $0x598] sm:$0xf0]  ;;  %v14537_v30 = vld [vmem:[#allocation14 + $0x4a4] sm:$0xf0] }
0x172b   : > { %v6331_v50 = vsel %vm1166_vm6, %v6328_v36, 0.0  ;;  %v12738_v36 = vor.u32 %v14560_v1, %v12737_v2  ;;  %v12774_v15 = vor.u32 %v14564_v9, %v12771_v63  ;;  %v12643_v2 = vld [vmem:[#allocation14 + $0x4a0] sm:$0xf0]  ;;  %v12745_v1 = vld [vmem:[#allocation14 + $0x550] sm:$0xf] }
0x172c   : > { %6332 = vadd.xlane.f32.xlu2 %v6331_v50  ;;  %v14557_v50 = vld [vmem:[#allocation14 + $0x54c] sm:$0xf]  ;;  %v12746_v28 = vor.u32 %v14561_v12, %v12745_v1  ;;  %v12646_v10 = vor.u32 %v14533_v7, %v12643_v2  ;;  %v14592_v31 = vld [vmem:[#allocation17 + $0x4e0] sm:$0xff]  ;;  %v14534_v9 = vld [vmem:[#allocation14 + $0x494] sm:$0xf] }
0x172d   : > { %v12742_v27 = vor.u32 %v14557_v50, %v12739_v57  ;;  %6696 = vmatpush.bf16.msra.mxu0 %v12638_v39  ;;  %v14558_v50 = vld [vmem:[#allocation14 + $0x554] sm:$0xf]  ;;  %v12747_v57 = vld [vmem:[#allocation14 + $0x568] sm:$0xf0]  ;;  %v14611_v7 = vld [vmem:[#allocation17 + $0x578] sm:$0xff] }
0x172e   : > { %6706 = vmatpush.bf16.msrb.mxu2 %v12738_v36  ;;  %v12750_v42 = vor.u32 %v14558_v50, %v12747_v57  ;;  %v12651_v63 = vld [vmem:[#allocation14 + $0x4a8] sm:$0xf0]  ;;  %v14583_v2 = vld [vmem:[#allocation17 + $0x498] sm:$0xff]  ;;  %v14590_v1 = vld [vmem:[#allocation17 + $0x4d0] sm:$0xff] }
0x172f   : > { %6720 = vmatpush.bf16.msra.mxu1 %v12742_v27  ;;  %v12654_v4 = vor.u32 %v14534_v9, %v12651_v63  ;;  %v14610_v12 = vld [vmem:[#allocation17 + $0x570] sm:$0xff]  ;;  %v14589_v57 = vld [vmem:[#allocation17 + $0x4c8] sm:$0xff] }
0x1730   : > { %v14582_v50 = vld [vmem:[#allocation17 + $0x490] sm:$0xff] }
0x1731   : > { %6745 = vmatpush.bf16.msrb.mxu0 %v12822_v59 }
0x1732   : > { %6707 = vmatpush.bf16.msrb.mxu2 %v12714_v35 }
0x1733   : > { %6721 = vmatpush.bf16.msra.mxu1 %v12718_v25 }
0x1736   : > { %6708 = vmatpush.bf16.msrb.mxu2 %v12690_v13 }
0x1737   : > { %6722 = vmatpush.bf16.msra.mxu1 %v12694_v58 }
0x173a   : > { %6709 = vmatpush.bf16.msrb.mxu2 %v12666_v26  ;;  %v12650_v26 = vor.u32 %v14537_v30, %v12649_v37 }
0x173b   : > { %6723 = vmatpush.bf16.msra.mxu1 %v12670_v61  ;;  %v14584_v61 = vld [vmem:[#allocation17 + $0x4a0] sm:$0xff] }
0x173e   : > { %6710 = vmatpush.bf16.msrb.mxu2 %v12642_v0  ;;  %v14608_v0 = vld [vmem:[#allocation17 + $0x560] sm:$0xff] }
0x173f   : > { %6724 = vmatpush.bf16.msra.mxu1 %v12646_v10  ;;  %v14607_v10 = vld [vmem:[#allocation17 + $0x558] sm:$0xff] }
0x1742   : > { %7167 = vmatpush.bf16.msra.mxu2 %v14587_v24  ;;  %v14623_v24 = vld [vmem:[#allocation17 + $0x5d8] sm:$0xff] }
0x1743   : > { %7181 = vmatpush.bf16.msrb.mxu1 %v14595_v44  ;;  %v14598_v44 = vld [vmem:[#allocation17 + $0x510] sm:$0xff] }
0x1746   : > { %7168 = vmatpush.bf16.msra.mxu2 %v14586_v3  ;;  %v6421_v3 = vld [vmem:[#allocation16 + $0x12] sm:$0x3f] }
0x1747   : > { %7182 = vmatpush.bf16.msrb.mxu1 %v14594_v32  ;;  %v14617_v32 = vld [vmem:[#allocation17 + $0x5a8] sm:$0xff]  ;;  %v6425_v30 = vperm.slane %v6421_v3, 2 }
0x1795   : > { %v6330_v11 = vpop.xlane.xlu1 %6329 }
0x1796   : > { %v6334_v16 = vmul.f32 %v6330_v11, %v16670_v48  ;;  %v14573_v11 = vld [vmem:[#allocation14 + $0x5c4] sm:$0xf0] }
0x1797   : > { %v12794_v40 = vor.u32 %v14573_v11, %v12793_v6  ;;  %v12673_v6 = vld [vmem:[#allocation14 + $0x4c0] sm:$0xf]  ;;  %v14543_v11 = vld [vmem:[#allocation14 + $0x4d4] sm:$0xf0] }
0x1798   : > { %v17413_v29 = vadd.f32 1e-05, %v6334_v16  ;;  %v12795_v16 = vld [vmem:[#allocation14 + $0x5c8] sm:$0xf0] }
0x1799   : > { %v12798_v23 = vor.u32 %v14570_v45, %v12795_v16  ;;  %6732 = vmatpush.bf16.msra.mxu3 %v12794_v40  ;;  %v14593_v40 = vld [vmem:[#allocation17 + $0x4e8] sm:$0xff]  ;;  %v15165_v45 = vld [vmem:[#allocation13 + $0x3] ss:$0 sm:$0xff] }
0x179a   : > { %15255 = vrsqrt.f32 %v17413_v29  ;;  %vm6344_vm12 = vweird.f32 %v17413_v29  ;;  %7183 = vmatpush.bf16.msrb.mxu1 %v14593_v40  ;;  %v14613_v40 = vld [vmem:[#allocation17 + $0x588] sm:$0xff] }
0x179b   : > { %6746 = vmatpush.bf16.msrb.mxu0 %v12798_v23  ;;  %v14585_v23 = vld [vmem:[#allocation17 + $0x4a8] sm:$0xff] }
0x179c   : > { %7169 = vmatpush.bf16.msra.mxu2 %v14585_v23 }
0x179d   : > { %6733 = vmatpush.bf16.msra.mxu3 %v12770_v21 }
0x179e   : > { %7184 = vmatpush.bf16.msrb.mxu1 %v14592_v31 }
0x179f   : > { %v6333_v19 = vpop.xlane.xlu2 %6332  ;;  %6747 = vmatpush.bf16.msrb.mxu0 %v12774_v15  ;;  %v14603_v15 = vld [vmem:[#allocation17 + $0x538] sm:$0xff] }
0x17a0   : > { %v17416_v60 = vpop.eup %15255  ;;  %v6335_v46 = vmul.f32 %v6333_v19, %v16670_v48  ;;  %v12721_v19 = vld [vmem:[#allocation14 + $0x520] sm:$0xf]  ;;  %7170 = vmatpush.bf16.msra.mxu2 %v14584_v61 }
0x17a1   : > { %v6339_v18 = vmul.f32 %v17416_v60, %v17413_v29  ;;  %vm6345_vm11 = vweird.f32 %v17416_v60  ;;  %6734 = vmatpush.bf16.msra.mxu3 %v12746_v28  ;;  %v12722_v38 = vor.u32 %v14555_v22, %v12721_v19  ;;  %v12697_v29 = vld [vmem:[#allocation14 + $0x4f0] sm:$0xf]  ;;  %v14588_v28 = vld [vmem:[#allocation17 + $0x4c0] sm:$0xff]  ;;  %v14627_v19 = vld [vmem:[#allocation17 + $0x5f8] sm:$0xff] }
0x17a2   : > { %v17421_v49 = vadd.f32 1e-05, %v6335_v46  ;;  %vm17429_vm13 = vmor %vm6344_vm12, %vm6345_vm11  ;;  %v12723_v46 = vld [vmem:[#allocation14 + $0x538] sm:$0xf0]  ;;  %7185 = vmatpush.bf16.msrb.mxu1 %v14591_v41  ;;  %v14581_v22 = vld [vmem:[#allocation17 + $0x488] sm:$0xff] }
0x17a3   : > { %v6340_v55 = vmul.f32 %v17416_v60, %v6339_v18  ;;  %v14549_v18 = vld [vmem:[#allocation14 + $0x504] sm:$0xf0]  ;;  %6748 = vmatpush.bf16.msrb.mxu0 %v12750_v42  ;;  %v12726_v34 = vor.u32 %v14552_v53, %v12723_v46  ;;  %v14606_v42 = vld [vmem:[#allocation17 + $0x550] sm:$0xff]  ;;  %v14599_v46 = vld [vmem:[#allocation17 + $0x518] sm:$0xff] }
0x17a4   : > { %15257 = vrsqrt.f32 %v17421_v49  ;;  %vm6354_vm15 = vweird.f32 %v17421_v49  ;;  %7171 = vmatpush.bf16.msra.mxu2 %v14583_v2  ;;  %v14580_v53 = vld [vmem:[#allocation17 + $0x480] sm:$0xff] }
0x17a5   : > { %v6341_v43 = vmul.f32 0.5, %v6340_v55  ;;  %6735 = vmatpush.bf16.msra.mxu3 %v12722_v38  ;;  %v12698_v55 = vor.u32 %v14549_v18, %v12697_v29  ;;  %v14625_v38 = vld [vmem:[#allocation17 + $0x5e8] sm:$0xff]  ;;  %v14618_v29 = vld [vmem:[#allocation17 + $0x5b0] sm:$0xff]  ;;  %v14604_v18 = vld [vmem:[#allocation17 + $0x540] sm:$0xff] }
0x17a6   : > { %7186 = vmatpush.bf16.msrb.mxu1 %v14590_v1 }
0x17a7   : > { %v6342_v52 = vsub.f32 1.5, %v6341_v43  ;;  %6749 = vmatpush.bf16.msrb.mxu0 %v12726_v34  ;;  %v12675_v43 = vld [vmem:[#allocation14 + $0x4d8] sm:$0xf0]  ;;  %v14597_v34 = vld [vmem:[#allocation17 + $0x508] sm:$0xff] }
0x17a8   : > { %v12678_v8 = vor.u32 %v14540_v14, %v12675_v43  ;;  %7172 = vmatpush.bf16.msra.mxu2 %v14582_v50 }
0x17a9   : > { %v6343_v51 = vmul.f32 %v17416_v60, %v6342_v52  ;;  %6736 = vmatpush.bf16.msra.mxu3 %v12698_v55  ;;  %v14614_v55 = vld [vmem:[#allocation17 + $0x590] sm:$0xff] }
0x17aa   : > { %v15258_v36 = vpop.eup %15257  ;;  %7187 = vmatpush.bf16.msrb.mxu1 %v14589_v57 }
0x17ab   : > { %v6349_v27 = vmul.f32 %v15258_v36, %v17421_v49  ;;  %v6347_v35 = vsel %vm17429_vm13, %v17416_v60, %v6343_v51  ;;  %vm6355_vm14 = vweird.f32 %v15258_v36  ;;  %v12699_v60 = vld [vmem:[#allocation14 + $0x508] sm:$0xf0]  ;;  %v12674_v49 = vor.u32 %v14543_v11, %v12673_v6  ;;  %v14620_v11 = vld [vmem:[#allocation17 + $0x5c0] sm:$0xff] }
0x17ac   : > { %v6358_v59 = vmul.f32 %v6347_v35, %v17402_v47  ;;  %vm6356_vm9 = vmor %vm6354_vm15, %vm6355_vm14  ;;  %v12702_v58 = vor.u32 %v14546_v5, %v12699_v60  ;;  %v14609_v51 = vld [vmem:[#allocation17 + $0x568] sm:$0xff]  ;;  %7173 = vmatpush.bf16.msra.mxu2 %v14581_v22  ;;  %v14619_v35 = vld [vmem:[#allocation17 + $0x5b8] sm:$0xff] }
0x17ad   : > { %v6350_v39 = vmul.f32 %v15258_v36, %v6349_v27  ;;  %6737 = vmatpush.bf16.msra.mxu3 %v12674_v49  ;;  %v14601_v27 = vld [vmem:[#allocation17 + $0x528] sm:$0xff]  ;;  %v14622_v5 = vld [vmem:[#allocation17 + $0x5d0] sm:$0xff]  ;;  %v14615_v60 = vld [vmem:[#allocation17 + $0x598] sm:$0xff] }
0x17ae   : > { %v6363_v47 = vmul.f32 %v15164_v54, %v6358_v59  ;;  %6750 = vmatpush.bf16.msrb.mxu0 %v12702_v58  ;;  %7188 = vmatpush.bf16.msrb.mxu1 %v14588_v28  ;;  %v14616_v59 = vld [vmem:[#allocation17 + $0x5a0] sm:$0xff]  ;;  %v6424_v58 = vperm.slane %v6421_v3, 1 }
0x17af   : > { %v6351_v33 = vmul.f32 0.5, %v6350_v39  ;;  %v14600_v39 = vld [vmem:[#allocation17 + $0x520] sm:$0xff] }
0x17b0   : > { %v17440_v52 = vadd.f32 %v15165_v45, %v6363_v47  ;;  %7174 = vmatpush.bf16.msra.mxu2 %v14580_v53 }
0x17b1   : > { %v6352_v25 = vsub.f32 1.5, %v6351_v33  ;;  %6738 = vmatpush.bf16.msra.mxu3 %v12650_v26  ;;  %v14605_v33 = vld [vmem:[#allocation17 + $0x548] sm:$0xff] }
0x17b2   : > { %6751 = vmatpush.bf16.msrb.mxu0 %v12678_v8 }
0x17b3   : > { %v6353_v62 = vmul.f32 %v15258_v36, %v6352_v25  ;;  %v14624_v25 = vld [vmem:[#allocation17 + $0x5e0] sm:$0xff] }
0x17b5   : > { %v6357_v13 = vsel %vm6356_vm9, %v15258_v36, %v6353_v62  ;;  %v14602_v36 = vld [vmem:[#allocation17 + $0x530] sm:$0xff]  ;;  %v14621_v62 = vld [vmem:[#allocation17 + $0x5c8] sm:$0xff] }
0x17b6   : > { %v6359_v16 = vmul.f32 %v6357_v13, %v17407_v17  ;;  %6752 = vmatpush.bf16.msrb.mxu0 %v12654_v4 }
0x17b8   : > { %v6364_v20 = vmul.f32 %v15164_v54, %v6359_v16  ;;  %v14596_v54 = vld [vmem:[#allocation17 + $0x500] sm:$0xff] }
0x17b9   : > { %v14612_v16 = vld [vmem:[#allocation17 + $0x580] sm:$0xff] }
0x17ba   : > { %v17442_v21 = vadd.f32 %v15165_v45, %v6364_v20  ;;  %v6426_v45 = vperm.slane %v6421_v3, 3  ;;  %v6423_v20 = vperm.slane %v6421_v3, 0 }
0x17bc   : > { %v6370_v17 = vpack.c.bf16 %v17442_v21, %v17440_v52 }
0x17be   : > { %6683 = vmatmul.bf16.vlgmr.msrb.gmra.mxu3 %v6370_v17  ;;  %6697 = vmatmul.bf16.vlgmr.msra.gmra.mxu0 %v6370_v17 }
0x17bf   : > { %6711 = vmatmul.bf16.vlgmr.msrb.gmra.mxu2 %v6370_v17  ;;  %6725 = vmatmul.bf16.vlgmr.msra.gmra.mxu1 %v6370_v17 }
0x17c0   : > { %7209 = vmatpush.bf16.msra.mxu0 %v14611_v7  ;;  %7195 = vmatpush.bf16.msrb.mxu3 %v14603_v15 }
0x17c1   : > { %7237 = vmatpush.bf16.msra.mxu1 %v14627_v19  ;;  %7223 = vmatpush.bf16.msrb.mxu2 %v14619_v35 }
0x17c4   : > { %7210 = vmatpush.bf16.msra.mxu0 %v14610_v12  ;;  %7196 = vmatpush.bf16.msrb.mxu3 %v14602_v36 }
0x17c5   : > { %7238 = vmatpush.bf16.msra.mxu1 %v14626_v56  ;;  %7224 = vmatpush.bf16.msrb.mxu2 %v14618_v29 }
0x17c8   : > { %7211 = vmatpush.bf16.msra.mxu0 %v14609_v51  ;;  %7197 = vmatpush.bf16.msrb.mxu3 %v14601_v27 }
0x17c9   : > { %7239 = vmatpush.bf16.msra.mxu1 %v14625_v38  ;;  %7225 = vmatpush.bf16.msrb.mxu2 %v14617_v32  ;;  %v15166_v32 = vld [vmem:[#allocation19 + $0x3] ss:$0 sm:$0xff] }
0x17cc   : > { %7212 = vmatpush.bf16.msra.mxu0 %v14608_v0  ;;  %7198 = vmatpush.bf16.msrb.mxu3 %v14600_v39  ;;  %v6428_v0 = vperm.slane %v6421_v3, 5 }
0x17cd   : > { %7240 = vmatpush.bf16.msra.mxu1 %v14624_v25  ;;  %7226 = vmatpush.bf16.msrb.mxu2 %v14616_v59 }
0x17ce   : > { %6739 = vmatmul.bf16.vlgmr.msra.gmra.mxu3 %v6370_v17  ;;  %6753 = vmatmul.bf16.vlgmr.msrb.gmra.mxu0 %v6370_v17 }
0x17d0   : > { %7213 = vmatpush.bf16.msra.mxu0 %v14607_v10  ;;  %7199 = vmatpush.bf16.msrb.mxu3 %v14599_v46 }
0x17d1   : > { %7241 = vmatpush.bf16.msra.mxu1 %v14623_v24  ;;  %7227 = vmatpush.bf16.msrb.mxu2 %v14615_v60 }
0x17d4   : > { %7214 = vmatpush.bf16.msra.mxu0 %v14606_v42  ;;  %7200 = vmatpush.bf16.msrb.mxu3 %v14598_v44  ;;  %v6427_v42 = vperm.slane %v6421_v3, 4 }
0x17d5   : > { %7242 = vmatpush.bf16.msra.mxu1 %v14622_v5  ;;  %7228 = vmatpush.bf16.msrb.mxu2 %v14614_v55 }
0x17d8   : > { %7215 = vmatpush.bf16.msra.mxu0 %v14605_v33  ;;  %7201 = vmatpush.bf16.msrb.mxu3 %v14597_v34 }
0x17d9   : > { %7243 = vmatpush.bf16.msra.mxu1 %v14621_v62  ;;  %7229 = vmatpush.bf16.msrb.mxu2 %v14613_v40 }
0x17dc   : > { %7216 = vmatpush.bf16.msra.mxu0 %v14604_v18  ;;  %7202 = vmatpush.bf16.msrb.mxu3 %v14596_v54 }
0x17dd   : > { %7244 = vmatpush.bf16.msra.mxu1 %v14620_v11  ;;  %7230 = vmatpush.bf16.msrb.mxu2 %v14612_v16 }
0x183b   : > { %v6698_v6 = vpop.f32.mrf.mxu0 }
0x183c   : > { %v6726_v13 = vpop.f32.mrf.mxu1  ;;  %v6699_v14 = vadd.f32 %v6698_v6, %v6424_v58 }
0x183d   : > { %v6727_v49 = vadd.f32 %v6726_v13, %v6426_v45 }
0x183e   : > { %v6760_v9 = vmax.f32 %v6699_v14, 0.0 }
0x183f   : > { %v6762_v17 = vmax.f32 %v6727_v49, 0.0 }
0x1841   : > { %v6684_v47 = vpop.f32.mrf.mxu3 }
0x1842   : > { %v6712_v43 = vpop.f32.mrf.mxu2  ;;  %v6685_v61 = vadd.f32 %v6684_v47, %v6423_v20 }
0x1843   : > { %v6700_v23 = vpop.f32.mrf.mxu0  ;;  %v6713_v41 = vadd.f32 %v6712_v43, %v6425_v30 }
0x1844   : > { %v6701_v8 = vadd.f32 %v6700_v23, %v6424_v58  ;;  %v6728_v37 = vpop.f32.mrf.mxu1  ;;  %v6759_v50 = vmax.f32 %v6685_v61, 0.0 }
0x1845   : > { %v6729_v31 = vadd.f32 %v6728_v37, %v6426_v45  ;;  %v6761_v51 = vmax.f32 %v6713_v41, 0.0 }
0x1846   : > { %v6766_v63 = vmax.f32 %v6701_v8, 0.0 }
0x1847   : > { %v6768_v26 = vmax.f32 %v6729_v31, 0.0 }
0x1848   : > { %v6772_v4 = vpack.c.bf16 %v6766_v63, %v6760_v9 }
0x1849   : > { %v6774_v7 = vpack.c.bf16 %v6768_v26, %v6762_v17  ;;  %v6686_v15 = vpop.f32.mrf.mxu3 }
0x184a   : > { %v6687_v2 = vadd.f32 %v6686_v15, %v6423_v20  ;;  %v6714_v1 = vpop.f32.mrf.mxu2  ;;  %7189 = vmatmul.bf16.vlgmr.msrb.gmra.mxu1 %v6772_v4  ;;  %v13101_v15 = vld [vmem:[#allocation5 + $0x3a8] sm:$0xf] }
0x184b   : > { %v6715_v12 = vadd.f32 %v6714_v1, %v6425_v30  ;;  %7217 = vmatmul.bf16.vlgmr.msra.gmra.mxu0 %v6774_v7  ;;  %v6754_v36 = vpop.f32.mrf.mxu0  ;;  %v14649_v1 = vld [vmem:[#allocation5 + $0x3ac] sm:$0xf] }
0x184c   : > { %v6765_v57 = vmax.f32 %v6687_v2, 0.0  ;;  %v6755_v22 = vadd.f32 %v6754_v36, %v6428_v0  ;;  %v14650_v2 = vld [vmem:[#allocation5 + $0x3b0] sm:$0xf0]  ;;  %v13103_v36 = vld [vmem:[#allocation5 + $0x3b4] sm:$0xf0] }
0x184d   : > { %v6767_v27 = vmax.f32 %v6715_v12, 0.0  ;;  %v13102_v12 = vor.u32 %v14650_v2, %v13101_v15  ;;  %v13029_v2 = vld [vmem:[#allocation5 + $0x318] sm:$0xf] }
0x184e   : > { %v6771_v28 = vpack.c.bf16 %v6765_v57, %v6759_v50  ;;  %v6764_v53 = vmax.f32 %v6755_v22, 0.0  ;;  %v13109_v50 = vld [vmem:[#allocation5 + $0x3b0] sm:$0xf]  ;;  %v14651_v57 = vld [vmem:[#allocation5 + $0x3b8] sm:$0xf0] }
0x184f   : > { %v6773_v10 = vpack.c.bf16 %v6767_v27, %v6761_v51  ;;  %v13106_v51 = vor.u32 %v14649_v1, %v13103_v36  ;;  %v13110_v27 = vor.u32 %v14651_v57, %v13109_v50  ;;  %7480 = vmatpush.bf16.msra.mxu3 %v13102_v12  ;;  %v14632_v1 = vld [vmem:[#allocation5 + $0x320] sm:$0xf0]  ;;  %v14631_v50 = vld [vmem:[#allocation5 + $0x31c] sm:$0xf]  ;;  %v13031_v57 = vld [vmem:[#allocation5 + $0x324] sm:$0xf0] }
0x1850   : > { %7175 = vmatmul.bf16.vlgmr.msra.gmra.mxu2 %v6771_v28  ;;  %v13089_v28 = vld [vmem:[#allocation5 + $0x390] sm:$0xf] }
0x1851   : > { %7203 = vmatmul.bf16.vlgmr.msrb.gmra.mxu3 %v6773_v10  ;;  %v6740_v19 = vpop.f32.mrf.mxu3  ;;  %7494 = vmatpush.bf16.msrb.mxu0 %v13106_v51  ;;  %v14646_v10 = vld [vmem:[#allocation5 + $0x394] sm:$0xf]  ;;  %v13037_v51 = vld [vmem:[#allocation5 + $0x320] sm:$0xf] }
0x1852   : > { %v6741_v35 = vadd.f32 %v6740_v19, %v6427_v42  ;;  %7508 = vmatpush.bf16.msra.mxu2 %v13110_v27  ;;  %v14633_v27 = vld [vmem:[#allocation5 + $0x328] sm:$0xf0] }
0x1853   : > { %v6756_v39 = vpop.f32.mrf.mxu0 }
0x1854   : > { %v6757_v56 = vadd.f32 %v6756_v39, %v6428_v0  ;;  %v6763_v29 = vmax.f32 %v6741_v35, 0.0  ;;  %v14647_v0 = vld [vmem:[#allocation5 + $0x398] sm:$0xf0]  ;;  %v13091_v39 = vld [vmem:[#allocation5 + $0x39c] sm:$0xf0] }
0x1855   : > { %v13090_v22 = vor.u32 %v14647_v0, %v13089_v28  ;;  %v13030_v0 = vor.u32 %v14632_v1, %v13029_v2 }
0x1856   : > { %v6770_v46 = vmax.f32 %v6757_v56, 0.0  ;;  %v14648_v56 = vld [vmem:[#allocation5 + $0x3a0] sm:$0xf0] }
0x1857   : > { %7481 = vmatpush.bf16.msra.mxu3 %v13090_v22  ;;  %v14629_v22 = vld [vmem:[#allocation5 + $0x308] sm:$0xf0] }
0x1858   : > { %v6776_v33 = vpack.c.bf16 %v6770_v46, %v6764_v53  ;;  %v13094_v46 = vor.u32 %v14646_v10, %v13091_v39  ;;  %v13034_v10 = vor.u32 %v14631_v50, %v13031_v57  ;;  %v13038_v39 = vor.u32 %v14633_v27, %v13037_v51  ;;  %v17516_v57 = vld [vmem:[#allocation2 + $0x88] sm:$0xff] }
0x1859   : > { %v6742_v38 = vpop.f32.mrf.mxu3 }
0x185a   : > { %v6743_v44 = vadd.f32 %v6742_v38, %v6427_v42  ;;  %7245 = vmatmul.bf16.vlgmr.msra.gmra.mxu1 %v6776_v33  ;;  %v13097_v42 = vld [vmem:[#allocation5 + $0x398] sm:$0xf]  ;;  %7495 = vmatpush.bf16.msrb.mxu0 %v13094_v46  ;;  %v13025_v46 = vld [vmem:[#allocation5 + $0x308] sm:$0xf] }
0x185b   : > { %v13098_v35 = vor.u32 %v14648_v56, %v13097_v42  ;;  %v13077_v38 = vld [vmem:[#allocation5 + $0x378] sm:$0xf]  ;;  %v14628_v42 = vld [vmem:[#allocation5 + $0x304] sm:$0xf]  ;;  %v13019_v56 = vld [vmem:[#allocation5 + $0x30c] sm:$0xf0] }
0x185c   : > { %v6769_v18 = vmax.f32 %v6743_v44, 0.0  ;;  %v14644_v44 = vld [vmem:[#allocation5 + $0x380] sm:$0xf0] }
0x185d   : > { %7509 = vmatpush.bf16.msra.mxu2 %v13098_v35  ;;  %v14630_v35 = vld [vmem:[#allocation5 + $0x310] sm:$0xf0] }
0x185e   : > { %v6775_v25 = vpack.c.bf16 %v6769_v18, %v6763_v29  ;;  %v13078_v29 = vor.u32 %v14644_v44, %v13077_v38  ;;  %v14643_v18 = vld [vmem:[#allocation5 + $0x37c] sm:$0xf] }
0x1860   : > { %7231 = vmatmul.bf16.vlgmr.msrb.gmra.mxu2 %v6775_v25  ;;  %v13079_v25 = vld [vmem:[#allocation5 + $0x384] sm:$0xf0]  ;;  %7482 = vmatpush.bf16.msra.mxu3 %v13078_v29 }
0x18c7   : > { %v7190_v34 = vpop.f32.mrf.mxu1 }
0x18c8   : > { %v7218_v6 = vpop.f32.mrf.mxu0 }
0x18cf   : > { %v7192_v59 = vpop.f32.mrf.mxu1 }
0x18d0   : > { %v7220_v49 = vpop.f32.mrf.mxu0 }
0x18d3   : > { %v7176_v24 = vpop.f32.mrf.mxu2 }
0x18d4   : > { %v7177_v54 = vadd.f32 %v15166_v32, %v7176_v24  ;;  %v7204_v60 = vpop.f32.mrf.mxu3  ;;  %v14645_v24 = vld [vmem:[#allocation5 + $0x388] sm:$0xf0] }
0x18d6   : > { %v7191_v5 = vadd.f32 %v7190_v34, %v7177_v54  ;;  %v13085_v34 = vld [vmem:[#allocation5 + $0x380] sm:$0xf] }
0x18d7   : > { %v7246_v58 = vpop.f32.mrf.mxu1  ;;  %v13065_v54 = vld [vmem:[#allocation5 + $0x360] sm:$0xf] }
0x18d8   : > { %v7205_v55 = vadd.f32 %v7204_v60, %v7191_v5  ;;  %v13086_v5 = vor.u32 %v14645_v24, %v13085_v34  ;;  %v13026_v34 = vor.u32 %v14630_v35, %v13025_v46 }
0x18da   : > { %v7219_v13 = vadd.f32 %v7218_v6, %v7205_v55  ;;  %v13067_v55 = vld [vmem:[#allocation5 + $0x36c] sm:$0xf0]  ;;  %7510 = vmatpush.bf16.msra.mxu2 %v13086_v5 }
0x18db   : > { %v7178_v62 = vpop.f32.mrf.mxu2 }
0x18dc   : > { %v7179_v3 = vadd.f32 %v15166_v32, %v7178_v62  ;;  %v7206_v47 = vpop.f32.mrf.mxu3  ;;  %v13082_v32 = vor.u32 %v14643_v18, %v13079_v25  ;;  %v14640_v62 = vld [vmem:[#allocation5 + $0x364] sm:$0xf]  ;;  %v13022_v18 = vor.u32 %v14628_v42, %v13019_v56 }
0x18dd   : > { %v13070_v6 = vor.u32 %v14640_v62, %v13067_v55 }
0x18de   : > { %v7193_v11 = vadd.f32 %v7192_v59, %v7179_v3  ;;  %v14641_v59 = vld [vmem:[#allocation5 + $0x368] sm:$0xf0]  ;;  %v13073_v3 = vld [vmem:[#allocation5 + $0x368] sm:$0xf]  ;;  %7496 = vmatpush.bf16.msrb.mxu0 %v13082_v32 }
0x18df   : > { %v7248_v37 = vpop.f32.mrf.mxu1  ;;  %v13066_v60 = vor.u32 %v14641_v59, %v13065_v54  ;;  %v15167_v59 = vld [vmem:[#allocation20 + $0x3] ss:$0 sm:$0xff] }
0x18e0   : > { %v7207_v16 = vadd.f32 %v7206_v47, %v7193_v11  ;;  %v14642_v11 = vld [vmem:[#allocation5 + $0x370] sm:$0xf0]  ;;  %v13055_v47 = vld [vmem:[#allocation5 + $0x354] sm:$0xf0] }
0x18e1   : > { %7483 = vmatpush.bf16.msra.mxu3 %v13066_v60 }
0x18e2   : > { %v7221_v23 = vadd.f32 %v7220_v49, %v7207_v16  ;;  %v13061_v16 = vld [vmem:[#allocation5 + $0x350] sm:$0xf]  ;;  %7497 = vmatpush.bf16.msrb.mxu0 %v13070_v6 }
0x18e3   : > { %v7232_v40 = vpop.f32.mrf.mxu2 }
0x18e4   : > { %v7233_v45 = vadd.f32 %v7232_v40, %v7219_v13  ;;  %v13053_v13 = vld [vmem:[#allocation5 + $0x348] sm:$0xf]  ;;  %v13074_v40 = vor.u32 %v14642_v11, %v13073_v3 }
0x18e6   : > { %v7247_v14 = vadd.f32 %v7246_v58, %v7233_v45  ;;  %v14638_v58 = vld [vmem:[#allocation5 + $0x350] sm:$0xf0]  ;;  %v14637_v45 = vld [vmem:[#allocation5 + $0x34c] sm:$0xf]  ;;  %7511 = vmatpush.bf16.msra.mxu2 %v13074_v40 }
0x18e7   : > { %v13054_v49 = vor.u32 %v14638_v58, %v13053_v13 }
0x18e8   : > { %v7251_v43 = vadd.f32 %v7247_v14, %v17440_v52  ;;  %v14639_v14 = vld [vmem:[#allocation5 + $0x358] sm:$0xf0] }
0x18e9   : > { %7484 = vmatpush.bf16.msra.mxu3 %v13054_v49 }
0x18ea   : > { %7257 = vadd.xlane.f32.xlu1 %v7251_v43 }
0x18eb   : > { %v7234_v20 = vpop.f32.mrf.mxu2 }
0x18ec   : > { %v7235_v8 = vadd.f32 %v7234_v20, %v7221_v23 }
0x18ee   : > { %v7249_v30 = vadd.f32 %v7248_v37, %v7235_v8  ;;  %v13058_v8 = vor.u32 %v14637_v45, %v13055_v47  ;;  %v13041_v37 = vld [vmem:[#allocation5 + $0x330] sm:$0xf] }
0x18f0   : > { %v7252_v31 = vadd.f32 %v7249_v30, %v17442_v21  ;;  %v14635_v30 = vld [vmem:[#allocation5 + $0x338] sm:$0xf0]  ;;  %7498 = vmatpush.bf16.msrb.mxu0 %v13058_v8 }
0x18f2   : > { %v7259_v9 = vsel %vm1166_vm6, %v7252_v31, 0.0 }
0x18f3   : > { %7260 = vadd.xlane.f32.xlu0 %v7259_v9  ;;  %v13062_v9 = vor.u32 %v14639_v14, %v13061_v16 }
0x18f5   : > { %7512 = vmatpush.bf16.msra.mxu2 %v13062_v9 }
0x195d   : > { %v7258_v63 = vpop.xlane.xlu1 %7257 }
0x195e   : > { %v7262_v17 = vmul.f32 %v7258_v63, %v16670_v48  ;;  %v14634_v63 = vld [vmem:[#allocation5 + $0x334] sm:$0xf] }
0x1960   : > { %v17450_v26 = vsub.f32 %v7251_v43, %v7262_v17  ;;  %v13043_v17 = vld [vmem:[#allocation5 + $0x33c] sm:$0xf0] }
0x1961   : > { %v13046_v15 = vor.u32 %v14634_v63, %v13043_v17 }
0x1962   : > { %v7266_v52 = vmul.f32 %v17450_v26, %v17450_v26 }
0x1963   : > { %7499 = vmatpush.bf16.msrb.mxu0 %v13046_v15 }
0x1964   : > { %7268 = vadd.xlane.f32.xlu2 %v7266_v52 }
0x1966   : > { %v7261_v61 = vpop.xlane.xlu0 %7260 }
0x1967   : > { %v7263_v4 = vmul.f32 %v7261_v61, %v16670_v48  ;;  %v13049_v61 = vld [vmem:[#allocation5 + $0x338] sm:$0xf]  ;;  %7500 = vmatpush.bf16.msrb.mxu0 %v13034_v10 }
0x1969   : > { %v17455_v41 = vsub.f32 %v7252_v31, %v7263_v4  ;;  %v14636_v4 = vld [vmem:[#allocation5 + $0x340] sm:$0xf0] }
0x196a   : > { %v13050_v36 = vor.u32 %v14636_v4, %v13049_v61 }
0x196b   : > { %v7267_v21 = vmul.f32 %v17455_v41, %v17455_v41  ;;  %7501 = vmatpush.bf16.msrb.mxu0 %v13022_v18  ;;  %v15368_v18 = vld [vmem:[#allocation2 + $0x70] sm:$0xff] }
0x196c   : > { %7513 = vmatpush.bf16.msra.mxu2 %v13050_v36 }
0x196d   : > { %v7270_v7 = vsel %vm1166_vm6, %v7267_v21, 0.0 }
0x196e   : > { %7271 = vadd.xlane.f32.xlu0 %v7270_v7  ;;  %v13042_v7 = vor.u32 %v14635_v30, %v13041_v37 }
0x1970   : > { %7485 = vmatpush.bf16.msra.mxu3 %v13042_v7  ;;  %7514 = vmatpush.bf16.msra.mxu2 %v13038_v39 }
0x1974   : > { %7486 = vmatpush.bf16.msra.mxu3 %v13030_v0  ;;  %7515 = vmatpush.bf16.msra.mxu2 %v13026_v34 }
0x19d7   : > { %v7269_v19 = vpop.xlane.xlu2 %7268 }
0x19d8   : > { %v7273_v53 = vmul.f32 %v7269_v19, %v16670_v48  ;;  %v13017_v19 = vld [vmem:[#allocation5 + $0x300] sm:$0xf] }
0x19d9   : > { %v13018_v29 = vor.u32 %v14629_v22, %v13017_v19  ;;  %v15366_v19 = vld [vmem:[#allocation2 + $0x78] sm:$0xff] }
0x19da   : > { %v17461_v33 = vadd.f32 1e-05, %v7273_v53 }
0x19db   : > { %7487 = vmatpush.bf16.msra.mxu3 %v13018_v29 }
0x19dc   : > { %15259 = vrsqrt.f32 %v17461_v33  ;;  %vm7283_vm11 = vweird.f32 %v17461_v33 }
0x19e1   : > { %v7272_v43 = vpop.xlane.xlu0 %7271 }
0x19e2   : > { %v17464_v23 = vpop.eup %15259  ;;  %v7274_v20 = vmul.f32 %v7272_v43, %v16670_v48 }
0x19e3   : > { %v7278_v31 = vmul.f32 %v17464_v23, %v17461_v33  ;;  %vm7284_vm10 = vweird.f32 %v17464_v23  ;;  %v15168_v33 = vld [vmem:[#allocation22 + $0x3] ss:$0 sm:$0xff] }
0x19e4   : > { %v7276_v52 = vadd.f32 1e-05, %v7274_v20  ;;  %vm7285_vm12 = vmor %vm7283_vm11, %vm7284_vm10 }
0x19e5   : > { %v7279_v21 = vmul.f32 %v17464_v23, %v7278_v31 }
0x19e6   : > { %15261 = vrsqrt.f32 %v7276_v52  ;;  %vm7293_vm14 = vweird.f32 %v7276_v52 }
0x19e7   : > { %v7280_v12 = vmul.f32 0.5, %v7279_v21 }
0x19e9   : > { %v7281_v28 = vsub.f32 1.5, %v7280_v12 }
0x19eb   : > { %v7282_v38 = vmul.f32 %v17464_v23, %v7281_v28 }
0x19ec   : > { %v15262_v53 = vpop.eup %15261 }
0x19ed   : > { %v7288_v44 = vmul.f32 %v15262_v53, %v7276_v52  ;;  %v7286_v32 = vsel %vm7285_vm12, %v17464_v23, %v7282_v38  ;;  %vm7294_vm13 = vweird.f32 %v15262_v53 }
0x19ee   : > { %v7297_v5 = vmul.f32 %v7286_v32, %v17450_v26  ;;  %vm7295_vm15 = vmor %vm7293_vm14, %vm7294_vm13  ;;  %v17482_v26 = vld [vmem:[#allocation7 + $0xc] sm:$0x7] }
0x19ef   : > { %v7289_v25 = vmul.f32 %v15262_v53, %v7288_v44  ;;  %v7347_v45 = vperm.slane %v17482_v26, 1  ;;  %v7348_v47 = vperm.slane %v17482_v26, 2  ;;  %v7346_v14 = vperm.slane %v17482_v26, 0  ;;  %v17540_v44 = vld [vmem:[#allocation2 + $0x80] sm:$0xff] }
0x19f0   : > { %v7302_v55 = vmul.f32 %v15167_v59, %v7297_v5 }
0x19f1   : > { %v7290_v24 = vmul.f32 0.5, %v7289_v25 }
0x19f2   : > { %v17476_v11 = vadd.f32 %v15168_v33, %v7302_v55 }
0x19f3   : > { %v7291_v54 = vsub.f32 1.5, %v7290_v24 }
0x19f5   : > { %v7292_v60 = vmul.f32 %v15262_v53, %v7291_v54 }
0x19f7   : > { %v7296_v62 = vsel %vm7295_vm15, %v15262_v53, %v7292_v60 }
0x19f8   : > { %v7298_v3 = vmul.f32 %v7296_v62, %v17455_v41 }
0x19fa   : > { %v7303_v6 = vmul.f32 %v15167_v59, %v7298_v3 }
0x19fc   : > { %v17478_v13 = vadd.f32 %v15168_v33, %v7303_v6 }
0x19fe   : > { %v7309_v58 = vpack.c.bf16 %v17478_v13, %v17476_v11 }
0x1a00   : > { %7488 = vmatmul.bf16.vlgmr.msra.gmra.mxu3 %v7309_v58  ;;  %7502 = vmatmul.bf16.vlgmr.msrb.gmra.mxu0 %v7309_v58 }
0x1a01   : > { %7516 = vmatmul.bf16.vlgmr.msra.gmra.mxu2 %v7309_v58 }
0x1a7d   : > { %v7503_v40 = vpop.f32.mrf.mxu0 }
0x1a7e   : > { %v17486_v16 = vadd.f32 %v7503_v40, %v7347_v45 }
0x1a80   : > { %v7554_v8 = vrot.slane %v17486_v16, 1  ;;  %v7544_v37 = vrot.slane %v17486_v16, 3  ;;  %v7549_v30 = vrot.slane %v17486_v16, 2  ;;  %v7539_v31 = vrot.slane %v17486_v16, 4 }
0x1a81   : > { %v7534_v9 = vrot.slane %v17486_v16, 5  ;;  %v7529_v63 = vrot.slane %v17486_v16, 6 }
0x1a83   : > { %v7489_v23 = vpop.f32.mrf.mxu3 }
0x1a84   : > { %v7517_v41 = vpop.f32.mrf.mxu2  ;;  %v17505_v21 = vadd.f32 %v7489_v23, %v7346_v14 }
0x1a85   : > { %v17489_v43 = vadd.f32 %v7517_v41, %v7348_v47  ;;  %v7505_v49 = vpop.f32.mrf.mxu0 }
0x1a86   : > { %v17491_v20 = vadd.f32 %v7505_v49, %v7347_v45 }
0x1a87   : > { %v7616_v7 = vrot.slane %v17489_v43, 1  ;;  %v7606_v39 = vrot.slane %v17489_v43, 3  ;;  %v7611_v42 = vrot.slane %v17489_v43, 2  ;;  %v7601_v56 = vrot.slane %v17489_v43, 4 }
0x1a88   : > { %v7555_v17 = vrot.slane %v17491_v20, 1  ;;  %v7545_v52 = vrot.slane %v17491_v20, 3  ;;  %v7550_v61 = vrot.slane %v17491_v20, 2  ;;  %v7540_v4 = vrot.slane %v17491_v20, 4 }
0x1a89   : > { %v7535_v15 = vrot.slane %v17491_v20, 5  ;;  %v7530_v2 = vrot.slane %v17491_v20, 6  ;;  %v7596_v35 = vrot.slane %v17489_v43, 5  ;;  %v7591_v38 = vrot.slane %v17489_v43, 6 }
0x1a8a   : > { %v17511_v1 = vsel %vm1202_vm0, %v7554_v8, %v7555_v17  ;;  %v7546_v12 = vsel %vm1190_vm1, %v7544_v37, %v7545_v52  ;;  %v7551_v36 = vsel %vm1196_vm2, %v7549_v30, %v7550_v61  ;;  %v7541_v50 = vsel %vm1184_vm3, %v7539_v31, %v7540_v4 }
0x1a8b   : > { %v7583_v51 = vmul.f32 %v17516_v57, %v17511_v1  ;;  %v17521_v27 = vsel %vm1196_vm2, %v7546_v12, %v7549_v30  ;;  %v17524_v28 = vsel %vm1202_vm0, %v7551_v36, %v7554_v8  ;;  %v17527_v0 = vsel %vm1190_vm1, %v7541_v50, %v7544_v37  ;;  %v7491_v50 = vpop.f32.mrf.mxu3 }
0x1a8c   : > { %v7519_v10 = vpop.f32.mrf.mxu2  ;;  %v7581_v22 = vmul.f32 %v15366_v19, %v17521_v27  ;;  %v7536_v46 = vsel %vm1178_vm4, %v7534_v9, %v7535_v15  ;;  %v7582_v29 = vmul.f32 %v17540_v44, %v17524_v28  ;;  %v7580_v25 = vmul.f32 %v15368_v18, %v17527_v0 }
0x1a8d   : > { %v17533_v53 = vadd.f32 %v7519_v10, %v7348_v47  ;;  %7683 = vmatpush.xpose.msrb.mxu3 %v7583_v51  ;;  %v7531_v34 = vsel %vm1172_vm5, %v7529_v63, %v7530_v2  ;;  %v7586_v32 = vrot.slane %v17489_v43, 7  ;;  %v17553_v5 = vsel %vm1184_vm3, %v7536_v46, %v7539_v31  ;;  %v15369_v31 = vld [vmem:[#allocation2 + $0x68] sm:$0xff]  ;;  %v15370_v10 = vld [vmem:[#allocation2 + $0x60] sm:$0xff]  ;;  %v15371_v46 = vld [vmem:[#allocation2 + $0x58] sm:$0xff] }
0x1a8e   : > { %7646 = vmatpush.xpose.msrb.mxu1 %v7581_v22  ;;  %v7525_v55 = vrot.slane %v17491_v20, 7  ;;  %v7579_v17 = vmul.f32 %v15369_v31, %v17553_v5  ;;  %v7524_v4 = vrot.slane %v17486_v16, 7  ;;  %v17586_v15 = vsel %vm1178_vm4, %v7531_v34, %v7534_v9  ;;  %v15375_v34 = vld [vmem:[#allocation2 + $0x38] sm:$0xff] }
0x1a8f   : > { %v7617_v24 = vrot.slane %v17533_v53, 1  ;;  %v7607_v54 = vrot.slane %v17533_v53, 3  ;;  %v7612_v59 = vrot.slane %v17533_v53, 2  ;;  %v7602_v60 = vrot.slane %v17533_v53, 4 }
0x1a90   : > { %v7597_v62 = vrot.slane %v17533_v53, 5  ;;  %v7592_v33 = vrot.slane %v17533_v53, 6  ;;  %v7587_v40 = vrot.slane %v17533_v53, 7  ;;  %v7526_v36 = vsel %vm1166_vm6, %v7524_v4, %v7525_v55  ;;  %v15379_v55 = vld [vmem:[#allocation2 + $0x18] sm:$0xff] }
0x1a91   : > { %7684 = vmatpush.xpose.msrb.mxu3 %v7582_v29  ;;  %v7618_v3 = vsel %vm1202_vm0, %v7616_v7, %v7617_v24  ;;  %v7608_v6 = vsel %vm1190_vm1, %v7606_v39, %v7607_v54  ;;  %v7613_v58 = vsel %vm1196_vm2, %v7611_v42, %v7612_v59  ;;  %v7603_v49 = vsel %vm1184_vm3, %v7601_v56, %v7602_v60  ;;  %v15377_v54 = vld [vmem:[#allocation2 + $0x28] sm:$0xff] }
0x1a92   : > { %7647 = vmatpush.xpose.msrb.mxu1 %v7580_v25  ;;  %v7645_v45 = vmul.f32 %v17516_v57, %v7618_v3  ;;  %v17565_v47 = vsel %vm1196_vm2, %v7608_v6, %v7611_v42  ;;  %v7627_v41 = vsel %vm1202_vm0, %v7613_v58, %v7616_v7  ;;  %v17572_v37 = vsel %vm1190_vm1, %v7603_v49, %v7606_v39  ;;  %v15380_v58 = vld [vmem:[#allocation2 + $0x10] sm:$0xff] }
0x1a93   : > { %v7643_v23 = vmul.f32 %v15366_v19, %v17565_v47  ;;  %v7644_v8 = vmul.f32 %v17540_v44, %v7627_v41  ;;  %v7598_v30 = vsel %vm1178_vm4, %v7596_v35, %v7597_v62  ;;  %v7593_v61 = vsel %vm1172_vm5, %v7591_v38, %v7592_v33  ;;  %v15378_v62 = vld [vmem:[#allocation2 + $0x20] sm:$0xff] }
0x1a94   : > { %7756 = vmatpush.msrb.mxu2 %v7645_v45  ;;  %7685 = vmatmul.f32.vlgmr.msrb.gmra.mxu3 %v17505_v21  ;;  %v17578_v52 = vsel %vm1184_vm3, %v7598_v30, %v7601_v56  ;;  %v7642_v7 = vmul.f32 %v15368_v18, %v17572_v37  ;;  %v7588_v2 = vsel %vm1166_vm6, %v7586_v32, %v7587_v40  ;;  %v15381_v45 = vld [vmem:[#allocation2 + $0x8] sm:$0xff] }
0x1a95   : > { %7765 = vmatpush.msra.mxu3 %v15366_v19  ;;  %7719 = vmatpush.msra.mxu0 %v7643_v23  ;;  %v7623_v12 = vsel %vm1178_vm4, %v7593_v61, %v7596_v35  ;;  %v7641_v51 = vmul.f32 %v15369_v31, %v17578_v52  ;;  %v7578_v19 = vmul.f32 %v15370_v10, %v17586_v15 }
0x1a96   : > { %7757 = vmatpush.msrb.mxu2 %v7644_v8  ;;  %7648 = vmatpush.xpose.msrb.mxu1 %v7579_v17  ;;  %v7622_v22 = vsel %vm1172_vm5, %v7588_v2, %v7591_v38  ;;  %v7640_v9 = vmul.f32 %v15370_v10, %v7623_v12  ;;  %v17597_v39 = vsel %vm1172_vm5, %v7526_v36, %v7529_v63  ;;  %v15372_v63 = vld [vmem:[#allocation2 + $0x50] sm:$0xff] }
0x1a97   : > { %7720 = vmatpush.msra.mxu0 %v7642_v7  ;;  %7766 = vmatpush.msra.mxu3 %v15368_v18  ;;  %v17601_v42 = vadd.f32 %v7491_v50, %v7346_v14  ;;  %v7621_v56 = vsel %vm1166_vm6, %v17533_v53, %v7586_v32  ;;  %v7639_v35 = vmul.f32 %v15371_v46, %v7622_v22  ;;  %v15373_v14 = vld [vmem:[#allocation2 + $0x48] sm:$0xff] }
0x1a98   : > { %v7577_v38 = vmul.f32 %v15371_v46, %v17597_v39  ;;  %7802 = vmatpush.msra.mxu2 %v17516_v57  ;;  %v7638_v29 = vmul.f32 %v15372_v63, %v7621_v56  ;;  %v17610_v26 = vsel %vm1166_vm6, %v17491_v20, %v7524_v4  ;;  %v7637_v53 = vmul.f32 %v15373_v14, %v17489_v43  ;;  %v15374_v57 = vld [vmem:[#allocation2 + $0x40] sm:$0xff] }
0x1a99   : > { %7721 = vmatpush.msra.mxu0 %v7641_v51  ;;  %7767 = vmatpush.msra.mxu3 %v15369_v31  ;;  %v7576_v18 = vmul.f32 %v15372_v63, %v17610_v26  ;;  %v7636_v25 = vmul.f32 %v15374_v57, %v7618_v3  ;;  %v7635_v20 = vmul.f32 %v15375_v34, %v7627_v41  ;;  %v15382_v41 = vld [vmem:[#allocation2] sm:$0xff] }
0x1a9a   : > { %7649 = vmatpush.xpose.msrb.mxu1 %v7578_v19  ;;  %7803 = vmatpush.msra.mxu2 %v17540_v44  ;;  %v7575_v32 = vmul.f32 %v15373_v14, %v17486_v16  ;;  %v15376_v44 = vld [vmem:[#allocation2 + $0x30] sm:$0xff]  ;;  %v7633_v59 = vmul.f32 %v15377_v54, %v17572_v37  ;;  %v7574_v60 = vmul.f32 %v15374_v57, %v17511_v1 }
0x1a9b   : > { %7722 = vmatpush.msra.mxu0 %v7640_v9  ;;  %7768 = vmatpush.msra.mxu3 %v15370_v10  ;;  %v7634_v24 = vmul.f32 %v15376_v44, %v17565_v47  ;;  %v7632_v33 = vmul.f32 %v15378_v62, %v17578_v52  ;;  %v7631_v3 = vmul.f32 %v15379_v55, %v7623_v12 }
0x1a9c   : > { %7688 = vmatmul.f32.gmra.mxu3 %v17601_v42  ;;  %v7573_v6 = vmul.f32 %v15375_v34, %v17524_v28  ;;  %v7630_v40 = vmul.f32 %v15380_v58, %v7622_v22  ;;  %v7629_v1 = vmul.f32 %v15381_v45, %v7621_v56  ;;  %v7572_v47 = vmul.f32 %v15376_v44, %v17521_v27  ;;  %v14659_v56 = vld [vmem:[#allocation8 + $0x138] sm:$0xff] }
0x1a9d   : > { %7723 = vmatpush.msra.mxu0 %v7639_v35  ;;  %7769 = vmatpush.msra.mxu3 %v15371_v46  ;;  %v7628_v49 = vmul.f32 %v15382_v41, %v17489_v43  ;;  %v7571_v28 = vmul.f32 %v15377_v54, %v17527_v0  ;;  %v7570_v23 = vmul.f32 %v15378_v62, %v17553_v5  ;;  %v14658_v46 = vld [vmem:[#allocation8 + $0x130] sm:$0xff]  ;;  %v14657_v35 = vld [vmem:[#allocation8 + $0x128] sm:$0xff] }
0x1a9e   : > { %7650 = vmatpush.xpose.msrb.mxu1 %v7577_v38  ;;  %v7569_v8 = vmul.f32 %v15379_v55, %v17586_v15  ;;  %v7568_v27 = vmul.f32 %v15380_v58, %v17597_v39  ;;  %v7567_v43 = vmul.f32 %v15381_v45, %v17610_v26  ;;  %v7566_v37 = vmul.f32 %v15382_v41, %v17486_v16  ;;  %v14656_v38 = vld [vmem:[#allocation8 + $0x120] sm:$0xff]  ;;  %v14654_v26 = vld [vmem:[#allocation8 + $0x110] sm:$0xff] }
0x1a9f   : > { %7724 = vmatpush.msra.mxu0 %v7638_v29  ;;  %7770 = vmatpush.msra.mxu3 %v15372_v63  ;;  %v14655_v63 = vld [vmem:[#allocation8 + $0x118] sm:$0xff] }
0x1aa1   : > { %7725 = vmatpush.msra.mxu0 %v7637_v53  ;;  %7771 = vmatpush.msra.mxu3 %v15373_v14  ;;  %v14653_v14 = vld [vmem:[#allocation8 + $0x108] sm:$0xff] }
0x1aa2   : > { %7651 = vmatpush.xpose.msrb.mxu1 %v7576_v18  ;;  %v14652_v18 = vld [vmem:[#allocation8 + $0x100] sm:$0xff] }
0x1aa3   : > { %7726 = vmatpush.msra.mxu0 %v7636_v25  ;;  %7772 = vmatpush.msra.mxu3 %v15374_v57 }
0x1aa5   : > { %7727 = vmatpush.msra.mxu0 %v7635_v20  ;;  %7773 = vmatpush.msra.mxu3 %v15375_v34 }
0x1aa6   : > { %7652 = vmatpush.xpose.msrb.mxu1 %v7575_v32 }
0x1aa7   : > { %7728 = vmatpush.msra.mxu0 %v7634_v24  ;;  %7774 = vmatpush.msra.mxu3 %v15376_v44 }
0x1aa9   : > { %7729 = vmatpush.msra.mxu0 %v7633_v59  ;;  %7775 = vmatpush.msra.mxu3 %v15377_v54 }
0x1aaa   : > { %7653 = vmatpush.xpose.msrb.mxu1 %v7574_v60 }
0x1aab   : > { %7730 = vmatpush.msra.mxu0 %v7632_v33  ;;  %7776 = vmatpush.msra.mxu3 %v15378_v62 }
0x1aad   : > { %7731 = vmatpush.msra.mxu0 %v7631_v3  ;;  %7777 = vmatpush.msra.mxu3 %v15379_v55 }
0x1aae   : > { %7654 = vmatpush.xpose.msrb.mxu1 %v7573_v6 }
0x1aaf   : > { %7732 = vmatpush.msra.mxu0 %v7630_v40  ;;  %7778 = vmatpush.msra.mxu3 %v15380_v58  ;;  %v15169_v58 = vld [vmem:[#allocation10 + $0x4] ss:$0 sm:$0xff] }
0x1ab1   : > { %7733 = vmatpush.msra.mxu0 %v7629_v1  ;;  %7779 = vmatpush.msra.mxu3 %v15381_v45 }
0x1ab2   : > { %7655 = vmatpush.xpose.msrb.mxu1 %v7572_v47 }
0x1ab3   : > { %7734 = vmatpush.msra.mxu0 %v7628_v49  ;;  %7780 = vmatpush.msra.mxu3 %v15382_v41 }
0x1ab5   : > { %7886 = vmatpush.bf16.msrb.mxu0 %v14659_v56 }
0x1ab6   : > { %7656 = vmatpush.xpose.msrb.mxu1 %v7571_v28 }
0x1ab9   : > { %7887 = vmatpush.bf16.msrb.mxu0 %v14658_v46  ;;  %v13247_v46 = vld [vmem:[#allocation14 + $0x6d8] sm:$0xf0] }
0x1aba   : > { %7657 = vmatpush.xpose.msrb.mxu1 %v7570_v23  ;;  %v13317_v23 = vld [vmem:[#allocation14 + $0x750] sm:$0xf] }
0x1abd   : > { %7888 = vmatpush.bf16.msrb.mxu0 %v14657_v35  ;;  %v13325_v35 = vld [vmem:[#allocation14 + $0x758] sm:$0xf] }
0x1abe   : > { %7658 = vmatpush.xpose.msrb.mxu1 %v7569_v8  ;;  %v14705_v8 = vld [vmem:[#allocation14 + $0x764] sm:$0xf0] }
0x1ac1   : > { %7889 = vmatpush.bf16.msrb.mxu0 %v14656_v38  ;;  %v14706_v38 = vld [vmem:[#allocation14 + $0x76c] sm:$0xf0] }
0x1ac2   : > { %7659 = vmatpush.xpose.msrb.mxu1 %v7568_v27  ;;  %v14702_v27 = vld [vmem:[#allocation14 + $0x754] sm:$0xf] }
0x1ac5   : > { %7890 = vmatpush.bf16.msrb.mxu0 %v14655_v63 }
0x1ac6   : > { %7660 = vmatpush.xpose.msrb.mxu1 %v7567_v43  ;;  %v13318_v43 = vor.u32 %v14705_v8, %v13317_v23  ;;  %v13279_v23 = vld [vmem:[#allocation14 + $0x710] sm:$0xf0] }
0x1ac9   : > { %7891 = vmatpush.bf16.msrb.mxu0 %v14654_v26  ;;  %v14703_v26 = vld [vmem:[#allocation14 + $0x75c] sm:$0xf] }
0x1aca   : > { %7661 = vmatpush.xpose.msrb.mxu1 %v7566_v37  ;;  %v13319_v37 = vld [vmem:[#allocation14 + $0x768] sm:$0xf0] }
0x1acd   : > { %7662 = vmatmul.f32.vlgmr.msrb.gmra.mxu1 %v17505_v21  ;;  %7892 = vmatpush.bf16.msrb.mxu0 %v14653_v14  ;;  %v13327_v14 = vld [vmem:[#allocation14 + $0x770] sm:$0xf0] }
0x1ad1   : > { %7893 = vmatpush.bf16.msrb.mxu0 %v14652_v18  ;;  %v13221_v18 = vld [vmem:[#allocation14 + $0x690] sm:$0xf] }
0x1ad5   : > { %7665 = vmatmul.f32.gmra.mxu1 %v17601_v42 }
0x1b17   : > { %v7686_v0 = vpop.f32.mrf.mxu3 }
0x1b18   : > { %v7692_v5 = vsel %vm1341_vm7, %v7686_v0, -inf }
0x1b1f   : > { %v7689_v17 = vpop.f32.mrf.mxu3 }
0x1b20   : > { %v7697_v61 = vsel %vm1347_vm8, %v7689_v17, -inf }
0x1b4a   : > { %v7663_v30 = vpop.f32.mrf.mxu1 }
0x1b4b   : > { %v7693_v31 = vmax.f32 %v7663_v30, %v7692_v5 }
0x1b4d   : > { %7694 = vmax.xlane.f32.xlu1 %v7693_v31 }
0x1b52   : > { %v7666_v52 = vpop.f32.mrf.mxu1 }
0x1b53   : > { %v7696_v4 = vsel %vm1166_vm6, %v7666_v52, -inf }
0x1b54   : > { %v7698_v7 = vmax.f32 %v7696_v4, %v7697_v61 }
0x1b56   : > { %7699 = vmax.xlane.f32.xlu2 %v7698_v7  ;;  %v13293_v7 = vld [vmem:[#allocation14 + $0x720] sm:$0xf] }
0x1bc0   : > { %v7695_v16 = vpop.xlane.xlu1 %7694 }
0x1bc1   : > { %v7701_v15 = vsub.f32 %v7663_v30, %v7695_v16  ;;  %v7702_v2 = vsub.f32 %v7686_v0, %v7695_v16  ;;  %v13322_v0 = vor.u32 %v14702_v27, %v13319_v37  ;;  %v14699_v16 = vld [vmem:[#allocation14 + $0x734] sm:$0xf0]  ;;  %v14669_v37 = vld [vmem:[#allocation14 + $0x644] sm:$0xf0] }
0x1bc3   : > { %v7705_v21 = vmul.f32 1.442695, %v7701_v15  ;;  %v7707_v12 = vmul.f32 1.442695, %v7702_v2  ;;  %8277 = vmatpush.bf16.msrb.mxu3 %v13322_v0  ;;  %v14696_v15 = vld [vmem:[#allocation14 + $0x724] sm:$0xf]  ;;  %v13294_v2 = vor.u32 %v14699_v16, %v13293_v7 }
0x1bc4   : > { %v14666_v0 = vld [vmem:[#allocation14 + $0x634] sm:$0xf]  ;;  %v13255_v7 = vld [vmem:[#allocation14 + $0x6e0] sm:$0xf0]  ;;  %v13149_v16 = vld [vmem:[#allocation14 + $0x600] sm:$0xf] }
0x1bc5   : > { %15263 = vpow2.f32 %v7705_v21  ;;  %v13295_v21 = vld [vmem:[#allocation14 + $0x738] sm:$0xf0] }
0x1bc6   : > { %15265 = vpow2.f32 %v7707_v12  ;;  %v13298_v12 = vor.u32 %v14696_v15, %v13295_v21  ;;  %v14660_v21 = vld [vmem:[#allocation14 + $0x604] sm:$0xf] }
0x1bc8   : > { %8278 = vmatpush.bf16.msrb.mxu3 %v13298_v12  ;;  %v13151_v12 = vld [vmem:[#allocation14 + $0x618] sm:$0xf0] }
0x1bc9   : > { %v7700_v36 = vpop.xlane.xlu2 %7699 }
0x1bca   : > { %v7703_v50 = vsub.f32 %v7666_v52, %v7700_v36  ;;  %v7704_v51 = vsub.f32 %v7689_v17, %v7700_v36  ;;  %v13269_v36 = vld [vmem:[#allocation14 + $0x6f0] sm:$0xf] }
0x1bcb   : > { %v15264_v10 = vpop.eup %15263 }
0x1bcc   : > { %v15266_v19 = vpop.eup %15265  ;;  %v7709_v22 = vmul.f32 1.442695, %v7703_v50  ;;  %v7711_v9 = vmul.f32 1.442695, %v7704_v51  ;;  %7735 = vmatmul.f32.vlgmr.msra.gmra.mxu0 %v15264_v10  ;;  %7781 = vmatmul.f32.vlgmr.msra.gmra.mxu3 %v15264_v10  ;;  %v14693_v50 = vld [vmem:[#allocation14 + $0x704] sm:$0xf0] }
0x1bcd   : > { %13111 = vmatmul.msk.f32.vlgmr.msrb.gmra.mxu2 %vm1341_vm7, %v15266_v19  ;;  %v14690_v51 = vld [vmem:[#allocation14 + $0x6f4] sm:$0xf]  ;;  %v13270_v10 = vor.u32 %v14693_v50, %v13269_v36 }
0x1bce   : > { %15267 = vpow2.f32 %v7709_v22  ;;  %8263 = vmatpush.bf16.msrb.mxu2 %v13318_v43  ;;  %v13173_v43 = vld [vmem:[#allocation14 + $0x630] sm:$0xf] }
0x1bcf   : > { %15269 = vpow2.f32 %v7711_v9  ;;  %v13245_v9 = vld [vmem:[#allocation14 + $0x6c0] sm:$0xf] }
0x1bd2   : > { %8264 = vmatpush.bf16.msrb.mxu2 %v13294_v2  ;;  %v14663_v2 = vld [vmem:[#allocation14 + $0x614] sm:$0xf0] }
0x1bd3   : > { %v13150_v50 = vor.u32 %v14663_v2, %v13149_v16 }
0x1bd4   : > { %v15268_v39 = vpop.eup %15267 }
0x1bd5   : > { %v15270_v42 = vpop.eup %15269  ;;  %7738 = vmatmul.f32.gmra.mxu0 %v15268_v39  ;;  %7784 = vmatmul.f32.gmra.mxu3 %v15268_v39  ;;  %v14687_v39 = vld [vmem:[#allocation14 + $0x6d4] sm:$0xf0] }
0x1bd6   : > { %13112 = vmatmul.msk.f32.gmra.mxu2 %vm1341_vm7, %v15270_v42  ;;  %v13246_v56 = vor.u32 %v14687_v39, %v13245_v9 }
0x1bd7   : > { %8265 = vmatpush.bf16.msrb.mxu2 %v13270_v10  ;;  %v13229_v10 = vld [vmem:[#allocation14 + $0x698] sm:$0xf] }
0x1bdb   : > { %8266 = vmatpush.bf16.msrb.mxu2 %v13246_v56  ;;  %v13231_v56 = vld [vmem:[#allocation14 + $0x6b0] sm:$0xf0] }
0x1bde   : > { %13113 = vmatmul.msk.f32.vlgmr.msra.gmra.mxu2 %vm1341_vm7, %v15266_v19  ;;  %v13271_v19 = vld [vmem:[#allocation14 + $0x708] sm:$0xf0] }
0x1bdf   : > { %v13274_v22 = vor.u32 %v14690_v51, %v13271_v19  ;;  %v13154_v51 = vor.u32 %v14660_v21, %v13151_v12  ;;  %v14682_v19 = vld [vmem:[#allocation14 + $0x6ac] sm:$0xf0] }
0x1be1   : > { %8279 = vmatpush.bf16.msrb.mxu3 %v13274_v22  ;;  %v14679_v22 = vld [vmem:[#allocation14 + $0x69c] sm:$0xf] }
0x1be6   : > { %13114 = vmatmul.msk.f32.gmra.mxu2 %vm1341_vm7, %v15270_v42  ;;  %v14684_v42 = vld [vmem:[#allocation14 + $0x6c4] sm:$0xf] }
0x1be7   : > { %v13250_v63 = vor.u32 %v14684_v42, %v13247_v46  ;;  %v13230_v42 = vor.u32 %v14682_v19, %v13229_v10  ;;  %v13333_v46 = vld [vmem:[#allocation14 + $0x760] sm:$0xf]  ;;  %v14708_v19 = vld [vmem:[#allocation17 + $0x600] sm:$0xff] }
0x1be9   : > { %8280 = vmatpush.bf16.msrb.mxu3 %v13250_v63  ;;  %v13234_v63 = vor.u32 %v14679_v22, %v13231_v56  ;;  %v14680_v22 = vld [vmem:[#allocation14 + $0x6a4] sm:$0xf] }
0x1c49   : > { %v7736_v34 = vpop.f32.mrf.mxu0 }
0x1c4f   : > { %v7782_v57 = vpop.f32.mrf.mxu3 }
0x1c50   : > { %v7759_v29 = vpop.f32.mrf.mxu2 }
0x1c51   : > { %v7760_v60 = vadd.f32 %v7759_v29, %v7736_v34  ;;  %v13326_v29 = vor.u32 %v14706_v38, %v13325_v35  ;;  %v14707_v35 = vld [vmem:[#allocation14 + $0x774] sm:$0xf0] }
0x1c52   : > { %v7739_v59 = vpop.f32.mrf.mxu0 }
0x1c53   : > { %8291 = vmatpush.bf16.msra.mxu1 %v13326_v29  ;;  %v13334_v29 = vor.u32 %v14707_v35, %v13333_v46  ;;  %v14715_v35 = vld [vmem:[#allocation17 + $0x638] sm:$0xff] }
0x1c58   : > { %v7785_v32 = vpop.f32.mrf.mxu3 }
0x1c59   : > { %v7762_v53 = vpop.f32.mrf.mxu2 }
0x1c5a   : > { %v7763_v62 = vadd.f32 %v7762_v53, %v7739_v59  ;;  %v13330_v53 = vor.u32 %v14703_v26, %v13327_v14  ;;  %v14704_v26 = vld [vmem:[#allocation14 + $0x764] sm:$0xf]  ;;  %v13335_v14 = vld [vmem:[#allocation14 + $0x778] sm:$0xf0] }
0x1c5c   : > { %8305 = vmatpush.bf16.msra.mxu0 %v13330_v53  ;;  %v13205_v53 = vld [vmem:[#allocation14 + $0x668] sm:$0xf] }
0x1c61   : > { %v7805_v25 = vpop.f32.mrf.mxu2 }
0x1c62   : > { %v7806_v20 = vadd.f32 %v7805_v25, %v7782_v57  ;;  %v14681_v57 = vld [vmem:[#allocation14 + $0x6a4] sm:$0xf0]  ;;  %v14678_v25 = vld [vmem:[#allocation14 + $0x694] sm:$0xf] }
0x1c63   : > { %v13222_v34 = vor.u32 %v14681_v57, %v13221_v18  ;;  %v13338_v57 = vor.u32 %v14704_v26, %v13335_v14 }
0x1c64   : > { %15271 = vrcp.f32 %v7806_v20  ;;  %v13223_v20 = vld [vmem:[#allocation14 + $0x6a8] sm:$0xf0] }
0x1c65   : > { %8267 = vmatpush.bf16.msrb.mxu2 %v13222_v34  ;;  %v14673_v34 = vld [vmem:[#allocation14 + $0x66c] sm:$0xf] }
0x1c69   : > { %v7808_v44 = vpop.f32.mrf.mxu2 }
0x1c6a   : > { %v7809_v24 = vadd.f32 %v7808_v44, %v7785_v32  ;;  %v15272_v54 = vpop.eup %15271  ;;  %v13301_v32 = vld [vmem:[#allocation14 + $0x728] sm:$0xf]  ;;  %v14700_v44 = vld [vmem:[#allocation14 + $0x73c] sm:$0xf0] }
0x1c6b   : > { %v7813_v55 = vmul.f32 %v15272_v54, %v7760_v60  ;;  %v13226_v54 = vor.u32 %v14678_v25, %v13223_v20  ;;  %v13302_v59 = vor.u32 %v14700_v44, %v13301_v32  ;;  %v14697_v60 = vld [vmem:[#allocation14 + $0x72c] sm:$0xf]  ;;  %v14676_v25 = vld [vmem:[#allocation14 + $0x67c] sm:$0xf0]  ;;  %v13207_v32 = vld [vmem:[#allocation14 + $0x680] sm:$0xf0] }
0x1c6c   : > { %15273 = vrcp.f32 %v7809_v24  ;;  %v13309_v44 = vld [vmem:[#allocation14 + $0x730] sm:$0xf] }
0x1c6d   : > { %8281 = vmatpush.bf16.msrb.mxu3 %v13226_v54  ;;  %8292 = vmatpush.bf16.msra.mxu1 %v13302_v59  ;;  %v13206_v54 = vor.u32 %v14676_v25, %v13205_v53  ;;  %v13210_v59 = vor.u32 %v14673_v34, %v13207_v32  ;;  %v14714_v53 = vld [vmem:[#allocation17 + $0x630] sm:$0xff] }
0x1c6e   : > { %v14674_v25 = vld [vmem:[#allocation14 + $0x674] sm:$0xf] }
0x1c6f   : > { %v14722_v34 = vld [vmem:[#allocation17 + $0x670] sm:$0xff] }
0x1c72   : > { %v15274_v33 = vpop.eup %15273 }
0x1c73   : > { %v7814_v3 = vmul.f32 %v15274_v33, %v7763_v62  ;;  %v13303_v62 = vld [vmem:[#allocation14 + $0x740] sm:$0xf0] }
0x1c75   : > { %v7815_v6 = vpack.c.bf16 %v7814_v3, %v7813_v55  ;;  %v13306_v55 = vor.u32 %v14697_v60, %v13303_v62  ;;  %v13197_v3 = vld [vmem:[#allocation14 + $0x660] sm:$0xf]  ;;  %v14698_v62 = vld [vmem:[#allocation14 + $0x734] sm:$0xf] }
0x1c77   : > { %7894 = vmatmul.bf16.vlgmr.msrb.gmra.mxu0 %v7815_v6  ;;  %v14675_v6 = vld [vmem:[#allocation14 + $0x674] sm:$0xf0] }
0x1c78   : > { %8306 = vmatpush.bf16.msra.mxu0 %v13306_v55  ;;  %v13181_v55 = vld [vmem:[#allocation14 + $0x638] sm:$0xf] }
0x1cf4   : > { %v7895_v40 = vpop.f32.mrf.mxu0 }
0x1cf5   : > { %v7896_v45 = vadd.f32 %v15169_v58, %v7895_v40 }
0x1cf7   : > { %v7900_v1 = vadd.f32 %v7896_v45, %v17476_v11  ;;  %v13198_v45 = vor.u32 %v14675_v6, %v13197_v3 }
0x1cf9   : > { %7906 = vadd.xlane.f32.xlu1 %v7900_v1  ;;  %8268 = vmatpush.bf16.msrb.mxu2 %v13198_v45  ;;  %v14667_v45 = vld [vmem:[#allocation14 + $0x63c] sm:$0xf] }
0x1cfc   : > { %v7897_v47 = vpop.f32.mrf.mxu0 }
0x1cfd   : > { %v7898_v41 = vadd.f32 %v15169_v58, %v7897_v47  ;;  %v14672_v58 = vld [vmem:[#allocation14 + $0x664] sm:$0xf]  ;;  %v13277_v47 = vld [vmem:[#allocation14 + $0x6f8] sm:$0xf] }
0x1cff   : > { %v7901_v49 = vadd.f32 %v7898_v41, %v17478_v13 }
0x1d01   : > { %v7908_v28 = vsel %vm1166_vm6, %v7901_v49, 0.0 }
0x1d02   : > { %7909 = vadd.xlane.f32.xlu0 %v7908_v28  ;;  %v14691_v28 = vld [vmem:[#allocation14 + $0x6fc] sm:$0xf] }
0x1d03   : > { %v13282_v27 = vor.u32 %v14691_v28, %v13279_v23  ;;  %v14692_v23 = vld [vmem:[#allocation14 + $0x704] sm:$0xf] }
0x1d05   : > { %8307 = vmatpush.bf16.msra.mxu0 %v13282_v27 }
0x1d6c   : > { %v7907_v5 = vpop.xlane.xlu1 %7906 }
0x1d6d   : > { %v7911_v30 = vmul.f32 %v7907_v5, %v16670_v48  ;;  %v13174_v5 = vor.u32 %v14669_v37, %v13173_v43  ;;  %v13157_v37 = vld [vmem:[#allocation14 + $0x608] sm:$0xf] }
0x1d6f   : > { %v17642_v11 = vsub.f32 %v7900_v1, %v7911_v30  ;;  %v13199_v1 = vld [vmem:[#allocation14 + $0x678] sm:$0xf0]  ;;  %v13175_v30 = vld [vmem:[#allocation14 + $0x648] sm:$0xf0]  ;;  %8269 = vmatpush.bf16.msrb.mxu2 %v13174_v5 }
0x1d70   : > { %v13202_v41 = vor.u32 %v14672_v58, %v13199_v1  ;;  %v14670_v58 = vld [vmem:[#allocation14 + $0x64c] sm:$0xf0]  ;;  %v13183_v1 = vld [vmem:[#allocation14 + $0x650] sm:$0xf0]  ;;  %v14661_v5 = vld [vmem:[#allocation14 + $0x60c] sm:$0xf] }
0x1d71   : > { %v7915_v31 = vmul.f32 %v17642_v11, %v17642_v11  ;;  %v13182_v27 = vor.u32 %v14670_v58, %v13181_v55  ;;  %v13186_v43 = vor.u32 %v14667_v45, %v13183_v1  ;;  %v14668_v55 = vld [vmem:[#allocation14 + $0x644] sm:$0xf]  ;;  %v13165_v1 = vld [vmem:[#allocation14 + $0x610] sm:$0xf] }
0x1d72   : > { %8282 = vmatpush.bf16.msrb.mxu3 %v13202_v41  ;;  %v14695_v41 = vld [vmem:[#allocation14 + $0x714] sm:$0xf0] }
0x1d73   : > { %7917 = vadd.xlane.f32.xlu2 %v7915_v31  ;;  %v13253_v31 = vld [vmem:[#allocation14 + $0x6c8] sm:$0xf]  ;;  %8270 = vmatpush.bf16.msrb.mxu2 %v13150_v50  ;;  %v14683_v50 = vld [vmem:[#allocation14 + $0x6b4] sm:$0xf0] }
0x1d75   : > { %v7910_v13 = vpop.xlane.xlu0 %7909 }
0x1d76   : > { %v7912_v17 = vmul.f32 %v7910_v13, %v16670_v48  ;;  %v14688_v13 = vld [vmem:[#allocation14 + $0x6dc] sm:$0xf0] }
0x1d77   : > { %8319 = vmatpush.bf16.msra.mxu2 %v13334_v29  ;;  %v15170_v29 = vld [vmem:[#allocation11 + $0x4] ss:$0 sm:$0xff] }
0x1d78   : > { %v17647_v52 = vsub.f32 %v7901_v49, %v7912_v17  ;;  %v14694_v49 = vld [vmem:[#allocation14 + $0x70c] sm:$0xf0]  ;;  %v13178_v17 = vor.u32 %v14666_v0, %v13175_v30  ;;  %v14664_v0 = vld [vmem:[#allocation14 + $0x61c] sm:$0xf0] }
0x1d79   : > { %v13278_v8 = vor.u32 %v14694_v49, %v13277_v47  ;;  %v13285_v47 = vld [vmem:[#allocation14 + $0x700] sm:$0xf]  ;;  %v13158_v21 = vor.u32 %v14664_v0, %v13157_v37 }
0x1d7a   : > { %v7916_v61 = vmul.f32 %v17647_v52, %v17647_v52  ;;  %8283 = vmatpush.bf16.msrb.mxu3 %v13178_v17  ;;  %v13286_v28 = vor.u32 %v14695_v41, %v13285_v47  ;;  %v14689_v17 = vld [vmem:[#allocation14 + $0x6e4] sm:$0xf0]  ;;  %v14731_v0 = vld [vmem:[#allocation17 + $0x6b8] sm:$0xff] }
0x1d7b   : > { %8293 = vmatpush.bf16.msra.mxu1 %v13278_v8  ;;  %v13287_v8 = vld [vmem:[#allocation14 + $0x718] sm:$0xf0]  ;;  %v14665_v47 = vld [vmem:[#allocation14 + $0x624] sm:$0xf0] }
0x1d7c   : > { %v7919_v4 = vsel %vm1166_vm6, %v7916_v61, 0.0  ;;  %v13254_v61 = vor.u32 %v14688_v13, %v13253_v31  ;;  %v13290_v30 = vor.u32 %v14692_v23, %v13287_v8  ;;  %v13159_v31 = vld [vmem:[#allocation14 + $0x620] sm:$0xf0]  ;;  %v13261_v13 = vld [vmem:[#allocation14 + $0x6d0] sm:$0xf] }
0x1d7d   : > { %7920 = vadd.xlane.f32.xlu0 %v7919_v4  ;;  %v14685_v4 = vld [vmem:[#allocation14 + $0x6cc] sm:$0xf]  ;;  %v13262_v2 = vor.u32 %v14689_v17, %v13261_v13  ;;  %v13162_v12 = vor.u32 %v14661_v5, %v13159_v31  ;;  %v14712_v41 = vld [vmem:[#allocation17 + $0x620] sm:$0xff]  ;;  %v14662_v23 = vld [vmem:[#allocation14 + $0x614] sm:$0xf] }
0x1d7e   : > { %v13258_v15 = vor.u32 %v14685_v4, %v13255_v7  ;;  %8284 = vmatpush.bf16.msrb.mxu3 %v13154_v51  ;;  %v14686_v4 = vld [vmem:[#allocation14 + $0x6d4] sm:$0xf]  ;;  %v13263_v7 = vld [vmem:[#allocation14 + $0x6e8] sm:$0xf0]  ;;  %v14739_v5 = vld [vmem:[#allocation17 + $0x6f8] sm:$0xff] }
0x1d7f   : > { %8294 = vmatpush.bf16.msra.mxu1 %v13254_v61  ;;  %v13266_v10 = vor.u32 %v14686_v4, %v13263_v7  ;;  %v13167_v8 = vld [vmem:[#allocation14 + $0x628] sm:$0xf0]  ;;  %v14719_v31 = vld [vmem:[#allocation17 + $0x658] sm:$0xff]  ;;  %v14730_v13 = vld [vmem:[#allocation17 + $0x6b0] sm:$0xff] }
0x1d80   : > { %8308 = vmatpush.bf16.msra.mxu0 %v13258_v15  ;;  %v13170_v37 = vor.u32 %v14662_v23, %v13167_v8  ;;  %v14738_v17 = vld [vmem:[#allocation17 + $0x6f0] sm:$0xff]  ;;  %v14729_v7 = vld [vmem:[#allocation17 + $0x6a8] sm:$0xff] }
0x1d81   : > { %v14718_v4 = vld [vmem:[#allocation17 + $0x650] sm:$0xff] }
0x1d82   : > { %8333 = vmatpush.bf16.msra.mxu3 %v13338_v57 }
0x1d83   : > { %8295 = vmatpush.bf16.msra.mxu1 %v13230_v42 }
0x1d84   : > { %8309 = vmatpush.bf16.msra.mxu0 %v13234_v63  ;;  %v14723_v63 = vld [vmem:[#allocation17 + $0x678] sm:$0xff] }
0x1d87   : > { %8296 = vmatpush.bf16.msra.mxu1 %v13206_v54  ;;  %v15171_v54 = vld [vmem:[#allocation13 + $0x4] ss:$0 sm:$0xff] }
0x1d88   : > { %8310 = vmatpush.bf16.msra.mxu0 %v13210_v59 }
0x1d8b   : > { %8297 = vmatpush.bf16.msra.mxu1 %v13182_v27  ;;  %v13166_v27 = vor.u32 %v14665_v47, %v13165_v1 }
0x1d8c   : > { %8311 = vmatpush.bf16.msra.mxu0 %v13186_v43  ;;  %v14720_v43 = vld [vmem:[#allocation17 + $0x660] sm:$0xff] }
0x1d8f   : > { %8298 = vmatpush.bf16.msra.mxu1 %v13158_v21  ;;  %v14727_v21 = vld [vmem:[#allocation17 + $0x698] sm:$0xff] }
0x1d90   : > { %8312 = vmatpush.bf16.msra.mxu0 %v13162_v12  ;;  %v14735_v12 = vld [vmem:[#allocation17 + $0x6d8] sm:$0xff] }
0x1d93   : > { %8755 = vmatpush.bf16.msrb.mxu1 %v14715_v35  ;;  %v14746_v35 = vld [vmem:[#allocation17 + $0x730] sm:$0xff] }
0x1d94   : > { %8769 = vmatpush.bf16.msrb.mxu0 %v14723_v63  ;;  %v14732_v63 = vld [vmem:[#allocation17 + $0x6c0] sm:$0xff] }
0x1d97   : > { %8756 = vmatpush.bf16.msrb.mxu1 %v14714_v53  ;;  %v14752_v53 = vld [vmem:[#allocation17 + $0x760] sm:$0xff] }
0x1d98   : > { %8770 = vmatpush.bf16.msrb.mxu0 %v14722_v34  ;;  %v14750_v34 = vld [vmem:[#allocation17 + $0x750] sm:$0xff] }
0x1de6   : > { %v7918_v24 = vpop.xlane.xlu2 %7917 }
0x1de7   : > { %v7922_v33 = vmul.f32 %v7918_v24, %v16670_v48  ;;  %v14701_v24 = vld [vmem:[#allocation14 + $0x744] sm:$0xf0] }
0x1de8   : > { %v13310_v60 = vor.u32 %v14701_v24, %v13309_v44  ;;  %v13189_v44 = vld [vmem:[#allocation14 + $0x640] sm:$0xf]  ;;  %v14671_v24 = vld [vmem:[#allocation14 + $0x654] sm:$0xf0] }
0x1de9   : > { %v17653_v40 = vadd.f32 1e-05, %v7922_v33  ;;  %v13311_v33 = vld [vmem:[#allocation14 + $0x748] sm:$0xf0] }
0x1dea   : > { %v13314_v6 = vor.u32 %v14698_v62, %v13311_v33  ;;  %8320 = vmatpush.bf16.msra.mxu2 %v13310_v60  ;;  %v14713_v62 = vld [vmem:[#allocation17 + $0x628] sm:$0xff] }
0x1deb   : > { %15275 = vrsqrt.f32 %v17653_v40  ;;  %vm7932_vm10 = vweird.f32 %v17653_v40  ;;  %8757 = vmatpush.bf16.msrb.mxu1 %v14713_v62  ;;  %v14740_v62 = vld [vmem:[#allocation17 + $0x700] sm:$0xff] }
0x1dec   : > { %8334 = vmatpush.bf16.msra.mxu3 %v13314_v6  ;;  %v14721_v6 = vld [vmem:[#allocation17 + $0x668] sm:$0xff] }
0x1ded   : > { %8771 = vmatpush.bf16.msrb.mxu0 %v14721_v6 }
0x1dee   : > { %8321 = vmatpush.bf16.msra.mxu2 %v13286_v28 }
0x1def   : > { %8758 = vmatpush.bf16.msrb.mxu1 %v14712_v41 }
0x1df0   : > { %v7921_v36 = vpop.xlane.xlu0 %7920  ;;  %8335 = vmatpush.bf16.msra.mxu3 %v13290_v30  ;;  %v14711_v30 = vld [vmem:[#allocation17 + $0x618] sm:$0xff] }
0x1df1   : > { %v17656_v9 = vpop.eup %15275  ;;  %v7923_v39 = vmul.f32 %v7921_v36, %v16670_v48  ;;  %v13237_v36 = vld [vmem:[#allocation14 + $0x6a0] sm:$0xf]  ;;  %8772 = vmatpush.bf16.msrb.mxu0 %v14720_v43 }
0x1df2   : > { %v7927_v38 = vmul.f32 %v17656_v9, %v17653_v40  ;;  %vm7933_vm9 = vweird.f32 %v17656_v9  ;;  %8322 = vmatpush.bf16.msra.mxu2 %v13262_v2  ;;  %v13238_v46 = vor.u32 %v14683_v50, %v13237_v36  ;;  %v13213_v40 = vld [vmem:[#allocation14 + $0x670] sm:$0xf]  ;;  %v14736_v2 = vld [vmem:[#allocation17 + $0x6e0] sm:$0xff] }
0x1df3   : > { %v17661_v18 = vadd.f32 1e-05, %v7923_v39  ;;  %vm17669_vm11 = vmor %vm7932_vm10, %vm7933_vm9  ;;  %v13239_v39 = vld [vmem:[#allocation14 + $0x6b8] sm:$0xf0]  ;;  %8759 = vmatpush.bf16.msrb.mxu1 %v14711_v30  ;;  %v14709_v36 = vld [vmem:[#allocation17 + $0x608] sm:$0xff] }
0x1df4   : > { %v7928_v20 = vmul.f32 %v17656_v9, %v7927_v38  ;;  %v14677_v38 = vld [vmem:[#allocation14 + $0x684] sm:$0xf0]  ;;  %8336 = vmatpush.bf16.msra.mxu3 %v13266_v10  ;;  %v13242_v14 = vor.u32 %v14680_v22, %v13239_v39  ;;  %v14717_v50 = vld [vmem:[#allocation17 + $0x648] sm:$0xff]  ;;  %v14734_v10 = vld [vmem:[#allocation17 + $0x6d0] sm:$0xff] }
0x1df5   : > { %15277 = vrsqrt.f32 %v17661_v18  ;;  %vm7942_vm13 = vweird.f32 %v17661_v18  ;;  %v13214_v32 = vor.u32 %v14677_v38, %v13213_v40  ;;  %8773 = vmatpush.bf16.msrb.mxu0 %v14719_v31  ;;  %v14716_v22 = vld [vmem:[#allocation17 + $0x640] sm:$0xff]  ;;  %v14747_v39 = vld [vmem:[#allocation17 + $0x738] sm:$0xff]  ;;  %v14754_v40 = vld [vmem:[#allocation17 + $0x770] sm:$0xff] }
0x1df6   : > { %v7929_v3 = vmul.f32 0.5, %v7928_v20  ;;  %8323 = vmatpush.bf16.msra.mxu2 %v13238_v46  ;;  %v14733_v46 = vld [vmem:[#allocation17 + $0x6c8] sm:$0xff]  ;;  %v14724_v38 = vld [vmem:[#allocation17 + $0x680] sm:$0xff] }
0x1df8   : > { %v7930_v49 = vsub.f32 1.5, %v7929_v3  ;;  %8337 = vmatpush.bf16.msra.mxu3 %v13242_v14  ;;  %v13191_v3 = vld [vmem:[#allocation14 + $0x658] sm:$0xf0]  ;;  %v14744_v14 = vld [vmem:[#allocation17 + $0x720] sm:$0xff] }
0x1df9   : > { %v13194_v45 = vor.u32 %v14668_v55, %v13191_v3  ;;  %8774 = vmatpush.bf16.msrb.mxu0 %v14718_v4 }
0x1dfa   : > { %v7931_v16 = vmul.f32 %v17656_v9, %v7930_v49  ;;  %8324 = vmatpush.bf16.msra.mxu2 %v13214_v32 }
0x1dfb   : > { %v15278_v61 = vpop.eup %15277 }
0x1dfc   : > { %v7937_v15 = vmul.f32 %v15278_v61, %v17661_v18  ;;  %v7935_v42 = vsel %vm17669_vm11, %v17656_v9, %v7931_v16  ;;  %vm7943_vm12 = vweird.f32 %v15278_v61  ;;  %v13215_v9 = vld [vmem:[#allocation14 + $0x688] sm:$0xf0]  ;;  %v13190_v18 = vor.u32 %v14671_v24, %v13189_v44 }
0x1dfd   : > { %v7946_v57 = vmul.f32 %v7935_v42, %v17642_v11  ;;  %vm7944_vm14 = vmor %vm7942_vm13, %vm7943_vm12  ;;  %v13218_v60 = vor.u32 %v14674_v25, %v13215_v9  ;;  %v14737_v16 = vld [vmem:[#allocation17 + $0x6e8] sm:$0xff]  ;;  %8775 = vmatpush.bf16.msrb.mxu0 %v14717_v50  ;;  %v14755_v42 = vld [vmem:[#allocation17 + $0x778] sm:$0xff] }
0x1dfe   : > { %v7938_v51 = vmul.f32 %v15278_v61, %v7937_v15  ;;  %8325 = vmatpush.bf16.msra.mxu2 %v13190_v18  ;;  %v14728_v15 = vld [vmem:[#allocation17 + $0x6a0] sm:$0xff]  ;;  %v14751_v25 = vld [vmem:[#allocation17 + $0x758] sm:$0xff]  ;;  %v14742_v9 = vld [vmem:[#allocation17 + $0x710] sm:$0xff] }
0x1dff   : > { %v7951_v33 = vmul.f32 %v15170_v29, %v7946_v57  ;;  %8338 = vmatpush.bf16.msra.mxu3 %v13218_v60  ;;  %v14743_v57 = vld [vmem:[#allocation17 + $0x718] sm:$0xff]  ;;  %v14741_v24 = vld [vmem:[#allocation17 + $0x708] sm:$0xff] }
0x1e00   : > { %v7939_v56 = vmul.f32 0.5, %v7938_v51  ;;  %v14726_v51 = vld [vmem:[#allocation17 + $0x690] sm:$0xff] }
0x1e01   : > { %v17679_v49 = vadd.f32 %v15171_v54, %v7951_v33  ;;  %8776 = vmatpush.bf16.msrb.mxu0 %v14716_v22  ;;  %v14748_v33 = vld [vmem:[#allocation17 + $0x740] sm:$0xff] }
0x1e02   : > { %v7940_v26 = vsub.f32 1.5, %v7939_v56  ;;  %8326 = vmatpush.bf16.msra.mxu2 %v13166_v27  ;;  %v14725_v56 = vld [vmem:[#allocation17 + $0x688] sm:$0xff] }
0x1e03   : > { %8339 = vmatpush.bf16.msra.mxu3 %v13194_v45 }
0x1e04   : > { %v7941_v20 = vmul.f32 %v15278_v61, %v7940_v26  ;;  %v14753_v26 = vld [vmem:[#allocation17 + $0x768] sm:$0xff] }
0x1e06   : > { %v7945_v59 = vsel %vm7944_vm14, %v15278_v61, %v7941_v20  ;;  %v14710_v61 = vld [vmem:[#allocation17 + $0x610] sm:$0xff] }
0x1e07   : > { %v7947_v11 = vmul.f32 %v7945_v59, %v17647_v52  ;;  %8340 = vmatpush.bf16.msra.mxu3 %v13170_v37  ;;  %8760 = vmatpush.bf16.msrb.mxu1 %v14710_v61  ;;  %v8009_v20 = vld [vmem:[#allocation16 + $0x18] sm:$0x3f] }
0x1e08   : > { %v8013_v59 = vperm.slane %v8009_v20, 2  ;;  %v8014_v60 = vperm.slane %v8009_v20, 3  ;;  %v8011_v18 = vperm.slane %v8009_v20, 0  ;;  %v8016_v50 = vperm.slane %v8009_v20, 5 }
0x1e09   : > { %v7952_v58 = vmul.f32 %v15170_v29, %v7947_v11  ;;  %v14745_v29 = vld [vmem:[#allocation17 + $0x728] sm:$0xff] }
0x1e0b   : > { %v17681_v28 = vadd.f32 %v15171_v54, %v7952_v58  ;;  %8761 = vmatpush.bf16.msrb.mxu1 %v14709_v36  ;;  %v14749_v54 = vld [vmem:[#allocation17 + $0x748] sm:$0xff]  ;;  %v8012_v58 = vperm.slane %v8009_v20, 1  ;;  %v8015_v36 = vperm.slane %v8009_v20, 4 }
0x1e0d   : > { %v7958_v52 = vpack.c.bf16 %v17681_v28, %v17679_v49 }
0x1e0f   : > { %8271 = vmatmul.bf16.vlgmr.msrb.gmra.mxu2 %v7958_v52  ;;  %8285 = vmatmul.bf16.vlgmr.msrb.gmra.mxu3 %v7958_v52 }
0x1e10   : > { %8299 = vmatmul.bf16.vlgmr.msra.gmra.mxu1 %v7958_v52  ;;  %8313 = vmatmul.bf16.vlgmr.msra.gmra.mxu0 %v7958_v52 }
0x1e11   : > { %8783 = vmatpush.bf16.msrb.mxu2 %v14731_v0  ;;  %8797 = vmatpush.bf16.msrb.mxu3 %v14739_v5 }
0x1e12   : > { %8762 = vmatpush.bf16.msrb.mxu1 %v14708_v19  ;;  %8825 = vmatpush.bf16.msra.mxu0 %v14755_v42 }
0x1e15   : > { %8784 = vmatpush.bf16.msrb.mxu2 %v14730_v13  ;;  %8798 = vmatpush.bf16.msrb.mxu3 %v14738_v17 }
0x1e16   : > { %8811 = vmatpush.bf16.msra.mxu1 %v14747_v39  ;;  %8826 = vmatpush.bf16.msra.mxu0 %v14754_v40 }
0x1e19   : > { %8785 = vmatpush.bf16.msrb.mxu2 %v14729_v7  ;;  %8799 = vmatpush.bf16.msrb.mxu3 %v14737_v16 }
0x1e1a   : > { %8812 = vmatpush.bf16.msra.mxu1 %v14746_v35  ;;  %8827 = vmatpush.bf16.msra.mxu0 %v14753_v26 }
0x1e1d   : > { %8786 = vmatpush.bf16.msrb.mxu2 %v14728_v15  ;;  %8800 = vmatpush.bf16.msrb.mxu3 %v14736_v2 }
0x1e1e   : > { %8813 = vmatpush.bf16.msra.mxu1 %v14745_v29  ;;  %8828 = vmatpush.bf16.msra.mxu0 %v14752_v53  ;;  %v15172_v29 = vld [vmem:[#allocation19 + $0x4] ss:$0 sm:$0xff] }
0x1e1f   : > { %8327 = vmatmul.bf16.vlgmr.msra.gmra.mxu2 %v7958_v52  ;;  %8341 = vmatmul.bf16.vlgmr.msra.gmra.mxu3 %v7958_v52 }
0x1e21   : > { %8787 = vmatpush.bf16.msrb.mxu2 %v14727_v21  ;;  %8801 = vmatpush.bf16.msrb.mxu3 %v14735_v12 }
0x1e22   : > { %8814 = vmatpush.bf16.msra.mxu1 %v14744_v14  ;;  %8829 = vmatpush.bf16.msra.mxu0 %v14751_v25 }
0x1e25   : > { %8788 = vmatpush.bf16.msrb.mxu2 %v14726_v51  ;;  %8802 = vmatpush.bf16.msrb.mxu3 %v14734_v10 }
0x1e26   : > { %8815 = vmatpush.bf16.msra.mxu1 %v14743_v57  ;;  %8830 = vmatpush.bf16.msra.mxu0 %v14750_v34 }
0x1e29   : > { %8789 = vmatpush.bf16.msrb.mxu2 %v14725_v56  ;;  %8803 = vmatpush.bf16.msrb.mxu3 %v14733_v46 }
0x1e2a   : > { %8816 = vmatpush.bf16.msra.mxu1 %v14742_v9  ;;  %8831 = vmatpush.bf16.msra.mxu0 %v14749_v54 }
0x1e2d   : > { %8790 = vmatpush.bf16.msrb.mxu2 %v14724_v38  ;;  %8804 = vmatpush.bf16.msrb.mxu3 %v14732_v63 }
0x1e2e   : > { %8817 = vmatpush.bf16.msra.mxu1 %v14741_v24  ;;  %8832 = vmatpush.bf16.msra.mxu0 %v14748_v33 }
0x1e32   : > { %8818 = vmatpush.bf16.msra.mxu1 %v14740_v62 }
0x1e8d   : > { %v8300_v32 = vpop.f32.mrf.mxu1  ;;  %v8314_v44 = vpop.f32.mrf.mxu0 }
0x1e8e   : > { %v8301_v3 = vadd.f32 %v8300_v32, %v8013_v59  ;;  %v8315_v6 = vadd.f32 %v8314_v44, %v8014_v60 }
0x1e90   : > { %v8349_v23 = vmax.f32 %v8301_v3, 0.0  ;;  %v8350_v8 = vmax.f32 %v8315_v6, 0.0 }
0x1e92   : > { %v8272_v11 = vpop.f32.mrf.mxu2  ;;  %v8286_v55 = vpop.f32.mrf.mxu3 }
0x1e93   : > { %v8273_v43 = vadd.f32 %v8272_v11, %v8011_v18  ;;  %v8287_v37 = vadd.f32 %v8286_v55, %v8012_v58 }
0x1e95   : > { %v8302_v45 = vpop.f32.mrf.mxu1  ;;  %v8316_v1 = vpop.f32.mrf.mxu0  ;;  %v8347_v61 = vmax.f32 %v8273_v43, 0.0  ;;  %v8348_v4 = vmax.f32 %v8287_v37, 0.0 }
0x1e96   : > { %v8303_v47 = vadd.f32 %v8302_v45, %v8013_v59  ;;  %v8317_v41 = vadd.f32 %v8316_v1, %v8014_v60 }
0x1e98   : > { %v8355_v52 = vmax.f32 %v8303_v47, 0.0  ;;  %v8356_v27 = vmax.f32 %v8317_v41, 0.0 }
0x1e9a   : > { %v8361_v0 = vpack.c.bf16 %v8355_v52, %v8349_v23  ;;  %v8362_v5 = vpack.c.bf16 %v8356_v27, %v8350_v8  ;;  %v8274_v30 = vpop.f32.mrf.mxu2  ;;  %v8288_v31 = vpop.f32.mrf.mxu3 }
0x1e9b   : > { %v8275_v13 = vadd.f32 %v8274_v30, %v8011_v18  ;;  %v8289_v17 = vadd.f32 %v8288_v31, %v8012_v58  ;;  %v13617_v30 = vld [vmem:[#allocation5 + $0x468] sm:$0xf]  ;;  %v14778_v31 = vld [vmem:[#allocation5 + $0x470] sm:$0xf0] }
0x1e9c   : > { %8791 = vmatmul.bf16.vlgmr.msrb.gmra.mxu2 %v8361_v0  ;;  %8805 = vmatmul.bf16.vlgmr.msrb.gmra.mxu3 %v8362_v5 }
0x1e9d   : > { %v8353_v7 = vmax.f32 %v8275_v13, 0.0  ;;  %v8354_v16 = vmax.f32 %v8289_v17, 0.0  ;;  %v14777_v13 = vld [vmem:[#allocation5 + $0x46c] sm:$0xf]  ;;  %v13618_v17 = vor.u32 %v14778_v31, %v13617_v30  ;;  %v13545_v31 = vld [vmem:[#allocation5 + $0x3d8] sm:$0xf] }
0x1e9f   : > { %v8359_v15 = vpack.c.bf16 %v8353_v7, %v8347_v61  ;;  %v8360_v2 = vpack.c.bf16 %v8354_v16, %v8348_v4  ;;  %v13619_v61 = vld [vmem:[#allocation5 + $0x474] sm:$0xf0]  ;;  %v13625_v4 = vld [vmem:[#allocation5 + $0x470] sm:$0xf]  ;;  %v14779_v7 = vld [vmem:[#allocation5 + $0x478] sm:$0xf0]  ;;  %9068 = vmatpush.bf16.msra.mxu2 %v13618_v17 }
0x1ea0   : > { %v13622_v16 = vor.u32 %v14777_v13, %v13619_v61  ;;  %v14760_v13 = vld [vmem:[#allocation5 + $0x3e0] sm:$0xf0] }
0x1ea1   : > { %8763 = vmatmul.bf16.vlgmr.msrb.gmra.mxu1 %v8359_v15  ;;  %8777 = vmatmul.bf16.vlgmr.msrb.gmra.mxu0 %v8360_v2  ;;  %v13626_v15 = vor.u32 %v14779_v7, %v13625_v4  ;;  %v13605_v2 = vld [vmem:[#allocation5 + $0x450] sm:$0xf]  ;;  %v14759_v4 = vld [vmem:[#allocation5 + $0x3dc] sm:$0xf]  ;;  %v13547_v7 = vld [vmem:[#allocation5 + $0x3e4] sm:$0xf0] }
0x1ea2   : > { %v8328_v21 = vpop.f32.mrf.mxu2  ;;  %v8342_v12 = vpop.f32.mrf.mxu3  ;;  %9082 = vmatpush.bf16.msra.mxu3 %v13622_v16  ;;  %v13553_v16 = vld [vmem:[#allocation5 + $0x3e0] sm:$0xf] }
0x1ea3   : > { %v8329_v51 = vadd.f32 %v8328_v21, %v8015_v36  ;;  %v8343_v10 = vadd.f32 %v8342_v12, %v8016_v50  ;;  %9096 = vmatpush.bf16.msrb.mxu1 %v13626_v15  ;;  %v14775_v21 = vld [vmem:[#allocation5 + $0x458] sm:$0xf0]  ;;  %v14774_v12 = vld [vmem:[#allocation5 + $0x454] sm:$0xf]  ;;  %v14761_v15 = vld [vmem:[#allocation5 + $0x3e8] sm:$0xf0] }
0x1ea5   : > { %v8351_v56 = vmax.f32 %v8329_v51, 0.0  ;;  %v8352_v46 = vmax.f32 %v8343_v10, 0.0  ;;  %v13607_v51 = vld [vmem:[#allocation5 + $0x45c] sm:$0xf0]  ;;  %v13613_v10 = vld [vmem:[#allocation5 + $0x458] sm:$0xf] }
0x1eaa   : > { %v8330_v19 = vpop.f32.mrf.mxu2  ;;  %v8344_v22 = vpop.f32.mrf.mxu3 }
0x1eab   : > { %v8331_v39 = vadd.f32 %v8330_v19, %v8015_v36  ;;  %v8345_v42 = vadd.f32 %v8344_v22, %v8016_v50  ;;  %v13606_v50 = vor.u32 %v14775_v21, %v13605_v2  ;;  %v14776_v19 = vld [vmem:[#allocation5 + $0x460] sm:$0xf0]  ;;  %v13546_v21 = vor.u32 %v14760_v13, %v13545_v31 }
0x1ead   : > { %v8357_v35 = vmax.f32 %v8331_v39, 0.0  ;;  %v8358_v40 = vmax.f32 %v8345_v42, 0.0  ;;  %v13610_v39 = vor.u32 %v14774_v12, %v13607_v51  ;;  %v13614_v42 = vor.u32 %v14776_v19, %v13613_v10  ;;  %9069 = vmatpush.bf16.msra.mxu2 %v13606_v50  ;;  %v14757_v50 = vld [vmem:[#allocation5 + $0x3c8] sm:$0xf0]  ;;  %v14756_v10 = vld [vmem:[#allocation5 + $0x3c4] sm:$0xf] }
0x1eae   : > { %v13550_v12 = vor.u32 %v14759_v4, %v13547_v7  ;;  %v13554_v51 = vor.u32 %v14761_v15, %v13553_v16  ;;  %v13535_v19 = vld [vmem:[#allocation5 + $0x3cc] sm:$0xf0]  ;;  %v15383_v16 = vld [vmem:[#allocation2 + $0x88] sm:$0xff] }
0x1eaf   : > { %v8363_v38 = vpack.c.bf16 %v8357_v35, %v8351_v56  ;;  %v8364_v63 = vpack.c.bf16 %v8358_v40, %v8352_v46  ;;  %9083 = vmatpush.bf16.msra.mxu3 %v13610_v39  ;;  %9097 = vmatpush.bf16.msrb.mxu1 %v13614_v42  ;;  %v13593_v46 = vld [vmem:[#allocation5 + $0x438] sm:$0xf]  ;;  %v14772_v35 = vld [vmem:[#allocation5 + $0x440] sm:$0xf0]  ;;  %v13541_v39 = vld [vmem:[#allocation5 + $0x3c8] sm:$0xf] }
0x1eb0   : > { %v13594_v40 = vor.u32 %v14772_v35, %v13593_v46  ;;  %v14758_v42 = vld [vmem:[#allocation5 + $0x3d0] sm:$0xf0] }
0x1eb1   : > { %8819 = vmatmul.bf16.vlgmr.msra.gmra.mxu1 %v8363_v38  ;;  %8833 = vmatmul.bf16.vlgmr.msra.gmra.mxu0 %v8364_v63  ;;  %v14771_v38 = vld [vmem:[#allocation5 + $0x43c] sm:$0xf]  ;;  %v13595_v63 = vld [vmem:[#allocation5 + $0x444] sm:$0xf0] }
0x1eb2   : > { %9070 = vmatpush.bf16.msra.mxu2 %v13594_v40 }
0x1f1e   : > { %v8764_v26 = vpop.f32.mrf.mxu1  ;;  %v8778_v14 = vpop.f32.mrf.mxu0 }
0x1f1f   : > { %v8765_v53 = vadd.f32 %v15172_v29, %v8764_v26  ;;  %v8792_v25 = vpop.f32.mrf.mxu2  ;;  %v8806_v44 = vpop.f32.mrf.mxu3  ;;  %v13598_v26 = vor.u32 %v14771_v38, %v13595_v63  ;;  %v13538_v38 = vor.u32 %v14756_v10, %v13535_v19  ;;  %v15385_v19 = vld [vmem:[#allocation2 + $0x80] sm:$0xff] }
0x1f21   : > { %v8779_v57 = vadd.f32 %v8778_v14, %v8765_v53  ;;  %v14773_v14 = vld [vmem:[#allocation5 + $0x448] sm:$0xf0]  ;;  %v13581_v53 = vld [vmem:[#allocation5 + $0x420] sm:$0xf]  ;;  %9084 = vmatpush.bf16.msra.mxu3 %v13598_v26 }
0x1f23   : > { %v8793_v20 = vadd.f32 %v8792_v25, %v8779_v57  ;;  %v14769_v57 = vld [vmem:[#allocation5 + $0x428] sm:$0xf0] }
0x1f25   : > { %v8807_v24 = vadd.f32 %v8806_v44, %v8793_v20  ;;  %v13583_v20 = vld [vmem:[#allocation5 + $0x42c] sm:$0xf0] }
0x1f26   : > { %v8766_v9 = vpop.f32.mrf.mxu1  ;;  %v8780_v34 = vpop.f32.mrf.mxu0 }
0x1f27   : > { %v8767_v32 = vadd.f32 %v15172_v29, %v8766_v9  ;;  %v8794_v33 = vpop.f32.mrf.mxu2  ;;  %v8808_v6 = vpop.f32.mrf.mxu3  ;;  %v13601_v29 = vld [vmem:[#allocation5 + $0x440] sm:$0xf]  ;;  %v13582_v9 = vor.u32 %v14769_v57, %v13581_v53  ;;  %v15173_v57 = vld [vmem:[#allocation20 + $0x4] ss:$0 sm:$0xff] }
0x1f28   : > { %v13602_v25 = vor.u32 %v14773_v14, %v13601_v29  ;;  %v13542_v29 = vor.u32 %v14758_v42, %v13541_v39 }
0x1f29   : > { %v8781_v54 = vadd.f32 %v8780_v34, %v8767_v32  ;;  %v14768_v34 = vld [vmem:[#allocation5 + $0x424] sm:$0xf]  ;;  %v13589_v32 = vld [vmem:[#allocation5 + $0x428] sm:$0xf]  ;;  %9071 = vmatpush.bf16.msra.mxu2 %v13582_v9 }
0x1f2a   : > { %v13586_v44 = vor.u32 %v14768_v34, %v13583_v20  ;;  %9098 = vmatpush.bf16.msrb.mxu1 %v13602_v25 }
0x1f2b   : > { %v8795_v11 = vadd.f32 %v8794_v33, %v8781_v54  ;;  %v13569_v54 = vld [vmem:[#allocation5 + $0x408] sm:$0xf]  ;;  %v13571_v33 = vld [vmem:[#allocation5 + $0x414] sm:$0xf0] }
0x1f2c   : > { %9085 = vmatpush.bf16.msra.mxu3 %v13586_v44 }
0x1f2d   : > { %v8809_v18 = vadd.f32 %v8808_v6, %v8795_v11  ;;  %v13577_v11 = vld [vmem:[#allocation5 + $0x410] sm:$0xf] }
0x1f2e   : > { %v8820_v59 = vpop.f32.mrf.mxu1  ;;  %v8834_v60 = vpop.f32.mrf.mxu0 }
0x1f2f   : > { %v8821_v62 = vadd.f32 %v8820_v59, %v8807_v24  ;;  %v14770_v24 = vld [vmem:[#allocation5 + $0x430] sm:$0xf0] }
0x1f30   : > { %v14766_v59 = vld [vmem:[#allocation5 + $0x410] sm:$0xf0] }
0x1f31   : > { %v8835_v55 = vadd.f32 %v8834_v60, %v8821_v62  ;;  %v13590_v60 = vor.u32 %v14770_v24, %v13589_v32  ;;  %v14765_v62 = vld [vmem:[#allocation5 + $0x40c] sm:$0xf]  ;;  %v13570_v6 = vor.u32 %v14766_v59, %v13569_v54 }
0x1f33   : > { %v8839_v3 = vadd.f32 %v8835_v55, %v17679_v49  ;;  %v14767_v55 = vld [vmem:[#allocation5 + $0x418] sm:$0xf0]  ;;  %9099 = vmatpush.bf16.msrb.mxu1 %v13590_v60  ;;  %9072 = vmatpush.bf16.msra.mxu2 %v13570_v6 }
0x1f35   : > { %8845 = vadd.xlane.f32.xlu2 %v8839_v3 }
0x1f36   : > { %v8822_v58 = vpop.f32.mrf.mxu1  ;;  %v8836_v1 = vpop.f32.mrf.mxu0 }
0x1f37   : > { %v8823_v45 = vadd.f32 %v8822_v58, %v8809_v18 }
0x1f39   : > { %v8837_v47 = vadd.f32 %v8836_v1, %v8823_v45  ;;  %v13574_v45 = vor.u32 %v14765_v62, %v13571_v33  ;;  %v13557_v1 = vld [vmem:[#allocation5 + $0x3f0] sm:$0xf] }
0x1f3b   : > { %v8840_v41 = vadd.f32 %v8837_v47, %v17681_v28  ;;  %v14763_v47 = vld [vmem:[#allocation5 + $0x3f8] sm:$0xf0]  ;;  %9086 = vmatpush.bf16.msra.mxu3 %v13574_v45 }
0x1f3d   : > { %v8847_v23 = vsel %vm1166_vm6, %v8840_v41, 0.0 }
0x1f3e   : > { %8848 = vadd.xlane.f32.xlu1 %v8847_v23  ;;  %v13578_v23 = vor.u32 %v14767_v55, %v13577_v11 }
0x1f40   : > { %9100 = vmatpush.bf16.msrb.mxu1 %v13578_v23 }
0x1fa8   : > { %v8846_v8 = vpop.xlane.xlu2 %8845 }
0x1fa9   : > { %v8850_v52 = vmul.f32 %v8846_v8, %v16670_v48  ;;  %v14762_v8 = vld [vmem:[#allocation5 + $0x3f4] sm:$0xf] }
0x1fab   : > { %v17689_v27 = vsub.f32 %v8839_v3, %v8850_v52  ;;  %v13559_v52 = vld [vmem:[#allocation5 + $0x3fc] sm:$0xf0] }
0x1fac   : > { %v13562_v30 = vor.u32 %v14762_v8, %v13559_v52 }
0x1fad   : > { %v8854_v49 = vmul.f32 %v17689_v27, %v17689_v27 }
0x1fae   : > { %9087 = vmatpush.bf16.msra.mxu3 %v13562_v30 }
0x1faf   : > { %8856 = vadd.xlane.f32.xlu0 %v8854_v49 }
0x1fb1   : > { %v8849_v43 = vpop.xlane.xlu1 %8848 }
0x1fb2   : > { %v8851_v37 = vmul.f32 %v8849_v43, %v16670_v48  ;;  %v13565_v43 = vld [vmem:[#allocation5 + $0x3f8] sm:$0xf]  ;;  %9088 = vmatpush.bf16.msra.mxu3 %v13550_v12  ;;  %v15384_v12 = vld [vmem:[#allocation2 + $0x78] sm:$0xff] }
0x1fb4   : > { %v17694_v0 = vsub.f32 %v8840_v41, %v8851_v37  ;;  %v14764_v37 = vld [vmem:[#allocation5 + $0x400] sm:$0xf0] }
0x1fb5   : > { %v13566_v61 = vor.u32 %v14764_v37, %v13565_v43 }
0x1fb6   : > { %v8855_v28 = vmul.f32 %v17694_v0, %v17694_v0  ;;  %9089 = vmatpush.bf16.msra.mxu3 %v13538_v38 }
0x1fb7   : > { %9101 = vmatpush.bf16.msrb.mxu1 %v13566_v61 }
0x1fb8   : > { %v8858_v5 = vsel %vm1166_vm6, %v8855_v28, 0.0 }
0x1fb9   : > { %8859 = vadd.xlane.f32.xlu1 %v8858_v5  ;;  %v13558_v5 = vor.u32 %v14763_v47, %v13557_v1 }
0x1fbb   : > { %9073 = vmatpush.bf16.msra.mxu2 %v13558_v5  ;;  %9102 = vmatpush.bf16.msrb.mxu1 %v13554_v51 }
0x1fbf   : > { %9074 = vmatpush.bf16.msra.mxu2 %v13546_v21  ;;  %9103 = vmatpush.bf16.msrb.mxu1 %v13542_v29 }
0x2022   : > { %v8857_v36 = vpop.xlane.xlu0 %8856 }
0x2023   : > { %v8861_v22 = vmul.f32 %v8857_v36, %v16670_v48  ;;  %v13533_v36 = vld [vmem:[#allocation5 + $0x3c0] sm:$0xf] }
0x2024   : > { %v13534_v40 = vor.u32 %v14757_v50, %v13533_v36 }
0x2025   : > { %v17700_v56 = vadd.f32 1e-05, %v8861_v22 }
0x2026   : > { %9075 = vmatpush.bf16.msra.mxu2 %v13534_v40 }
0x2027   : > { %15279 = vrsqrt.f32 %v17700_v56  ;;  %vm8871_vm9 = vweird.f32 %v17700_v56 }
0x202c   : > { %v8860_v3 = vpop.xlane.xlu1 %8859 }
0x202d   : > { %v17703_v18 = vpop.eup %15279  ;;  %v8862_v58 = vmul.f32 %v8860_v3, %v16670_v48 }
0x202e   : > { %v8866_v41 = vmul.f32 %v17703_v18, %v17700_v56  ;;  %vm8872_vm15 = vweird.f32 %v17703_v18  ;;  %v15174_v56 = vld [vmem:[#allocation22 + $0x4] ss:$0 sm:$0xff] }
0x202f   : > { %v8864_v49 = vadd.f32 1e-05, %v8862_v58  ;;  %vm8873_vm10 = vmor %vm8871_vm9, %vm8872_vm15 }
0x2030   : > { %v8867_v28 = vmul.f32 %v17703_v18, %v8866_v41 }
0x2031   : > { %15281 = vrsqrt.f32 %v8864_v49  ;;  %vm8881_vm12 = vweird.f32 %v8864_v49 }
0x2032   : > { %v8868_v17 = vmul.f32 0.5, %v8867_v28 }
0x2034   : > { %v8869_v2 = vsub.f32 1.5, %v8868_v17 }
0x2036   : > { %v8870_v46 = vmul.f32 %v17703_v18, %v8869_v2 }
0x2037   : > { %v15282_v22 = vpop.eup %15281 }
0x2038   : > { %v8876_v35 = vmul.f32 %v15282_v22, %v8864_v49  ;;  %v8874_v26 = vsel %vm8873_vm10, %v17703_v18, %v8870_v46  ;;  %vm8882_vm11 = vweird.f32 %v15282_v22 }
0x2039   : > { %v8885_v25 = vmul.f32 %v8874_v26, %v17689_v27  ;;  %vm8883_vm13 = vmor %vm8881_vm12, %vm8882_vm11  ;;  %v17721_v27 = vld [vmem:[#allocation7 + $0xf] sm:$0x7] }
0x203a   : > { %v8877_v63 = vmul.f32 %v15282_v22, %v8876_v35  ;;  %v8936_v62 = vperm.slane %v17721_v27, 2  ;;  %v8935_v33 = vperm.slane %v17721_v27, 1  ;;  %v17773_v35 = vld [vmem:[#allocation2 + $0x70] sm:$0xff] }
0x203b   : > { %v8890_v20 = vmul.f32 %v15173_v57, %v8885_v25  ;;  %v15387_v25 = vld [vmem:[#allocation2 + $0x68] sm:$0xff] }
0x203c   : > { %v8878_v14 = vmul.f32 0.5, %v8877_v63 }
0x203d   : > { %v17715_v24 = vadd.f32 %v15174_v56, %v8890_v20 }
0x203e   : > { %v8879_v53 = vsub.f32 1.5, %v8878_v14 }
0x2040   : > { %v8880_v9 = vmul.f32 %v15282_v22, %v8879_v53 }
0x2042   : > { %v8884_v34 = vsel %vm8883_vm13, %v15282_v22, %v8880_v9 }
0x2043   : > { %v8886_v32 = vmul.f32 %v8884_v34, %v17694_v0 }
0x2045   : > { %v8891_v44 = vmul.f32 %v15173_v57, %v8886_v32 }
0x2047   : > { %v17717_v54 = vadd.f32 %v15174_v56, %v8891_v44 }
0x2049   : > { %v8897_v59 = vpack.c.bf16 %v17717_v54, %v17715_v24 }
0x204b   : > { %9076 = vmatmul.bf16.vlgmr.msra.gmra.mxu2 %v8897_v59  ;;  %9090 = vmatmul.bf16.vlgmr.msra.gmra.mxu3 %v8897_v59 }
0x204c   : > { %9104 = vmatmul.bf16.vlgmr.msrb.gmra.mxu1 %v8897_v59 }
0x20c9   : > { %v9105_v60 = vpop.f32.mrf.mxu1 }
0x20ca   : > { %v17725_v11 = vadd.f32 %v9105_v60, %v8936_v62 }
0x20cc   : > { %v9204_v18 = vrot.slane %v17725_v11, 1  ;;  %v9194_v58 = vrot.slane %v17725_v11, 3  ;;  %v9199_v45 = vrot.slane %v17725_v11, 2  ;;  %v9189_v1 = vrot.slane %v17725_v11, 4 }
0x20cd   : > { %v9184_v47 = vrot.slane %v17725_v11, 5  ;;  %v9179_v41 = vrot.slane %v17725_v11, 6  ;;  %v9174_v23 = vrot.slane %v17725_v11, 7 }
0x20ce   : > { %v9091_v0 = vpop.f32.mrf.mxu3 }
0x20cf   : > { %v17727_v55 = vadd.f32 %v9091_v0, %v8935_v33  ;;  %v15388_v0 = vld [vmem:[#allocation2 + $0x60] sm:$0xff] }
0x20d1   : > { %v9107_v3 = vpop.f32.mrf.mxu1  ;;  %v9142_v28 = vrot.slane %v17727_v55, 1  ;;  %v9132_v21 = vrot.slane %v17727_v55, 3  ;;  %v9137_v46 = vrot.slane %v17727_v55, 2  ;;  %v9127_v57 = vrot.slane %v17727_v55, 4 }
0x20d2   : > { %v17729_v6 = vadd.f32 %v9107_v3, %v8936_v62  ;;  %v9122_v60 = vrot.slane %v17727_v55, 5  ;;  %v9077_v62 = vpop.f32.mrf.mxu2 }
0x20d4   : > { %v9205_v8 = vrot.slane %v17729_v6, 1  ;;  %v9195_v52 = vrot.slane %v17729_v6, 3  ;;  %v9200_v49 = vrot.slane %v17729_v6, 2  ;;  %v9190_v43 = vrot.slane %v17729_v6, 4 }
0x20d5   : > { %v9185_v37 = vrot.slane %v17729_v6, 5  ;;  %v9180_v5 = vrot.slane %v17729_v6, 6  ;;  %v9175_v30 = vrot.slane %v17729_v6, 7 }
0x20d6   : > { %v9093_v31 = vpop.f32.mrf.mxu3  ;;  %v17747_v13 = vsel %vm1202_vm0, %v9204_v18, %v9205_v8  ;;  %v9196_v17 = vsel %vm1190_vm1, %v9194_v58, %v9195_v52  ;;  %v9201_v61 = vsel %vm1196_vm2, %v9199_v45, %v9200_v49  ;;  %v9191_v4 = vsel %vm1184_vm3, %v9189_v1, %v9190_v43 }
0x20d7   : > { %v17752_v7 = vadd.f32 %v9093_v31, %v8935_v33  ;;  %v9233_v15 = vmul.f32 %v15383_v16, %v17747_v13  ;;  %v17756_v2 = vsel %vm1196_vm2, %v9196_v17, %v9199_v45  ;;  %v17761_v50 = vsel %vm1202_vm0, %v9201_v61, %v9204_v18  ;;  %v15391_v31 = vld [vmem:[#allocation2 + $0x48] sm:$0xff] }
0x20d8   : > { %v9231_v36 = vmul.f32 %v15384_v12, %v17756_v2  ;;  %v17764_v51 = vsel %vm1190_vm1, %v9191_v4, %v9194_v58  ;;  %v9186_v10 = vsel %vm1178_vm4, %v9184_v47, %v9185_v37  ;;  %v9232_v22 = vmul.f32 %v15385_v19, %v17761_v50 }
0x20d9   : > { %9344 = vmatpush.msra.mxu1 %v9233_v15  ;;  %v17769_v39 = vsel %vm1184_vm3, %v9186_v10, %v9189_v1  ;;  %v9143_v42 = vrot.slane %v17752_v7, 1  ;;  %v9230_v40 = vmul.f32 %v17773_v35, %v17764_v51  ;;  %v9133_v38 = vrot.slane %v17752_v7, 3  ;;  %v15389_v1 = vld [vmem:[#allocation2 + $0x58] sm:$0xff]  ;;  %v15392_v15 = vld [vmem:[#allocation2 + $0x40] sm:$0xff] }
0x20da   : > { %9307 = vmatpush.msrb.mxu3 %v9231_v36  ;;  %v9181_v63 = vsel %vm1172_vm5, %v9179_v41, %v9180_v5  ;;  %v9176_v29 = vsel %vm1166_vm6, %v9174_v23, %v9175_v30  ;;  %v9138_v53 = vrot.slane %v17752_v7, 2  ;;  %v9229_v9 = vmul.f32 %v15387_v25, %v17769_v39  ;;  %v9079_v10 = vpop.f32.mrf.mxu2 }
0x20db   : > { %9345 = vmatpush.msra.mxu1 %v9232_v22  ;;  %v17783_v26 = vsel %vm1202_vm0, %v9142_v28, %v9143_v42  ;;  %v17786_v14 = vsel %vm1178_vm4, %v9181_v63, %v9184_v47  ;;  %v9134_v56 = vsel %vm1190_vm1, %v9132_v21, %v9133_v38  ;;  %v17794_v20 = vsel %vm1172_vm5, %v9176_v29, %v9179_v41 }
0x20dc   : > { %9308 = vmatpush.msrb.mxu3 %v9230_v40  ;;  %v9171_v34 = vmul.f32 %v15383_v16, %v17783_v26  ;;  %v17797_v32 = vsel %vm1196_vm2, %v9134_v56, %v9137_v46  ;;  %v9139_v44 = vsel %vm1196_vm2, %v9137_v46, %v9138_v53  ;;  %v9128_v59 = vrot.slane %v17752_v7, 4  ;;  %v15396_v53 = vld [vmem:[#allocation2 + $0x20] sm:$0xff]  ;;  %v15398_v56 = vld [vmem:[#allocation2 + $0x10] sm:$0xff] }
0x20dd   : > { %9390 = vmatpush.msrb.mxu1 %v15383_v16  ;;  %v9169_v33 = vmul.f32 %v15384_v12, %v17797_v32  ;;  %v9228_v3 = vmul.f32 %v15388_v0, %v17786_v14  ;;  %v17805_v18 = vsel %vm1202_vm0, %v9139_v44, %v9142_v28  ;;  %v9123_v58 = vrot.slane %v17752_v7, 5  ;;  %v15390_v28 = vld [vmem:[#allocation2 + $0x50] sm:$0xff]  ;;  %v15399_v44 = vld [vmem:[#allocation2 + $0x8] sm:$0xff] }
0x20de   : > { %9309 = vmatpush.msrb.mxu3 %v9229_v9  ;;  %9271 = vmatpush.xpose.msrb.mxu2 %v9171_v34  ;;  %v8934_v45 = vperm.slane %v17721_v27, 0  ;;  %v9227_v47 = vmul.f32 %v15389_v1, %v17794_v20  ;;  %v9129_v41 = vsel %vm1184_vm3, %v9127_v57, %v9128_v59  ;;  %v17815_v8 = vsel %vm1166_vm6, %v17729_v6, %v9174_v23  ;;  %v15400_v59 = vld [vmem:[#allocation2] sm:$0xff] }
0x20df   : > { %9391 = vmatpush.msrb.mxu1 %v15385_v19  ;;  %9234 = vmatpush.xpose.msrb.mxu0 %v9169_v33  ;;  %v9170_v52 = vmul.f32 %v15385_v19, %v17805_v18  ;;  %v17819_v49 = vsel %vm1190_vm1, %v9129_v41, %v9132_v21  ;;  %v9124_v27 = vsel %vm1178_vm4, %v9122_v60, %v9123_v58  ;;  %v9118_v43 = vrot.slane %v17752_v7, 6  ;;  %v15393_v19 = vld [vmem:[#allocation2 + $0x38] sm:$0xff] }
0x20e0   : > { %9310 = vmatpush.msrb.mxu3 %v9228_v3  ;;  %v9168_v37 = vmul.f32 %v17773_v35, %v17819_v49  ;;  %v9226_v6 = vmul.f32 %v15390_v28, %v17815_v8  ;;  %v9117_v23 = vrot.slane %v17727_v55, 6  ;;  %v17827_v5 = vadd.f32 %v9077_v62, %v8934_v45 }
0x20e1   : > { %v17830_v30 = vsel %vm1184_vm3, %v9124_v27, %v9127_v57  ;;  %v9225_v17 = vmul.f32 %v15391_v31, %v17725_v11  ;;  %v9113_v4 = vrot.slane %v17752_v7, 7  ;;  %v9224_v21 = vmul.f32 %v15392_v15, %v17747_v13  ;;  %v15394_v13 = vld [vmem:[#allocation2 + $0x30] sm:$0xff] }
0x20e2   : > { %9311 = vmatpush.msrb.mxu3 %v9227_v47  ;;  %9272 = vmatpush.xpose.msrb.mxu2 %v9170_v52  ;;  %v9119_v61 = vsel %vm1172_vm5, %v9117_v23, %v9118_v43  ;;  %v9167_v16 = vmul.f32 %v15387_v25, %v17830_v30  ;;  %v9112_v36 = vrot.slane %v17727_v55, 7  ;;  %v9223_v22 = vmul.f32 %v15393_v19, %v17761_v50 }
0x20e3   : > { %9235 = vmatpush.xpose.msrb.mxu0 %v9168_v37  ;;  %v9222_v40 = vmul.f32 %v15394_v13, %v17756_v2  ;;  %v9080_v38 = vadd.f32 %v9079_v10, %v8934_v45  ;;  %v9220_v57 = vmul.f32 %v15396_v53, %v17769_v39  ;;  %v15397_v2 = vld [vmem:[#allocation2 + $0x18] sm:$0xff]  ;;  %v9217_v39 = vmul.f32 %v15399_v44, %v17815_v8 }
0x20e4   : > { %9312 = vmatpush.msrb.mxu3 %v9226_v6  ;;  %v9114_v42 = vsel %vm1166_vm6, %v9112_v36, %v9113_v4  ;;  %v9219_v9 = vmul.f32 %v15397_v2, %v17786_v14  ;;  %v9162_v14 = vmul.f32 %v15392_v15, %v17783_v26  ;;  %v9160_v62 = vmul.f32 %v15394_v13, %v17797_v32  ;;  %v14783_v10 = vld [vmem:[#allocation8 + $0x158] sm:$0xff] }
0x20e5   : > { %9273 = vmatmul.f32.vlgmr.msrb.gmra.mxu2 %v17827_v5  ;;  %v9148_v63 = vsel %vm1172_vm5, %v9114_v42, %v9117_v23  ;;  %v9158_v33 = vmul.f32 %v15396_v53, %v17830_v30  ;;  %v14781_v42 = vld [vmem:[#allocation8 + $0x148] sm:$0xff] }
0x20e6   : > { %9353 = vmatpush.msra.mxu2 %v15384_v12  ;;  %9313 = vmatpush.msrb.mxu3 %v9225_v17  ;;  %v17840_v12 = vsel %vm1178_vm4, %v9119_v61, %v9122_v60  ;;  %v9165_v50 = vmul.f32 %v15389_v1, %v9148_v63  ;;  %v9216_v60 = vmul.f32 %v15400_v59, %v17725_v11 }
0x20e7   : > { %9236 = vmatpush.xpose.msrb.mxu0 %v9167_v16  ;;  %v9166_v46 = vmul.f32 %v15388_v0, %v17840_v12  ;;  %v9157_v26 = vmul.f32 %v15397_v2, %v17840_v12  ;;  %v14784_v12 = vld [vmem:[#allocation8 + $0x160] sm:$0xff] }
0x20e8   : > { %9354 = vmatpush.msra.mxu2 %v17773_v35  ;;  %9314 = vmatpush.msrb.mxu3 %v9224_v21  ;;  %v15395_v35 = vld [vmem:[#allocation2 + $0x28] sm:$0xff]  ;;  %v14786_v21 = vld [vmem:[#allocation8 + $0x170] sm:$0xff] }
0x20e9   : > { %v9221_v29 = vmul.f32 %v15395_v35, %v17764_v51  ;;  %v9218_v51 = vmul.f32 %v15398_v56, %v17794_v20  ;;  %v9161_v20 = vmul.f32 %v15393_v19, %v17805_v18  ;;  %v9159_v11 = vmul.f32 %v15395_v35, %v17819_v49 }
0x20ea   : > { %9355 = vmatpush.msra.mxu2 %v15387_v25  ;;  %9315 = vmatpush.msrb.mxu3 %v9223_v22  ;;  %v9147_v25 = vsel %vm1166_vm6, %v17752_v7, %v9112_v36  ;;  %v9163_v7 = vmul.f32 %v15391_v31, %v17727_v55  ;;  %v9154_v18 = vmul.f32 %v15400_v59, %v17727_v55  ;;  %v14785_v36 = vld [vmem:[#allocation8 + $0x168] sm:$0xff]  ;;  %v14782_v22 = vld [vmem:[#allocation8 + $0x150] sm:$0xff] }
0x20eb   : > { %9237 = vmatpush.xpose.msrb.mxu0 %v9166_v46  ;;  %v9164_v34 = vmul.f32 %v15390_v28, %v9147_v25  ;;  %v9155_v3 = vmul.f32 %v15399_v44, %v9147_v25 }
0x20ec   : > { %9356 = vmatpush.msra.mxu2 %v15388_v0  ;;  %9316 = vmatpush.msrb.mxu3 %v9222_v40  ;;  %v9156_v0 = vmul.f32 %v15398_v56, %v9148_v63 }
0x20ed   : > { %9276 = vmatmul.f32.gmra.mxu2 %v9080_v38 }
0x20ee   : > { %9317 = vmatpush.msrb.mxu3 %v9221_v29  ;;  %9357 = vmatpush.msra.mxu2 %v15389_v1 }
0x20ef   : > { %9238 = vmatpush.xpose.msrb.mxu0 %v9165_v50 }
0x20f0   : > { %9318 = vmatpush.msrb.mxu3 %v9220_v57  ;;  %9358 = vmatpush.msra.mxu2 %v15390_v28 }
0x20f2   : > { %9319 = vmatpush.msrb.mxu3 %v9219_v9  ;;  %9359 = vmatpush.msra.mxu2 %v15391_v31 }
0x20f3   : > { %9239 = vmatpush.xpose.msrb.mxu0 %v9164_v34 }
0x20f4   : > { %9320 = vmatpush.msrb.mxu3 %v9218_v51  ;;  %9360 = vmatpush.msra.mxu2 %v15392_v15  ;;  %v14787_v15 = vld [vmem:[#allocation8 + $0x178] sm:$0xff] }
0x20f6   : > { %9321 = vmatpush.msrb.mxu3 %v9217_v39  ;;  %9361 = vmatpush.msra.mxu2 %v15393_v19  ;;  %v15175_v39 = vld [vmem:[#allocation10 + $0x5] ss:$0 sm:$0xff] }
0x20f7   : > { %9240 = vmatpush.xpose.msrb.mxu0 %v9163_v7 }
0x20f8   : > { %9322 = vmatpush.msrb.mxu3 %v9216_v60  ;;  %9362 = vmatpush.msra.mxu2 %v15394_v13  ;;  %v14780_v13 = vld [vmem:[#allocation8 + $0x140] sm:$0xff] }
0x20fa   : > { %9363 = vmatpush.msra.mxu2 %v15395_v35  ;;  %9474 = vmatpush.bf16.msra.mxu3 %v14787_v15 }
0x20fb   : > { %9241 = vmatpush.xpose.msrb.mxu0 %v9162_v14 }
0x20fc   : > { %9364 = vmatpush.msra.mxu2 %v15396_v53 }
0x20fe   : > { %9365 = vmatpush.msra.mxu2 %v15397_v2  ;;  %9475 = vmatpush.bf16.msra.mxu3 %v14786_v21  ;;  %v13763_v21 = vld [vmem:[#allocation14 + $0x858] sm:$0xf0] }
0x20ff   : > { %9242 = vmatpush.xpose.msrb.mxu0 %v9161_v20 }
0x2100   : > { %9366 = vmatpush.msra.mxu2 %v15398_v56 }
0x2102   : > { %9367 = vmatpush.msra.mxu2 %v15399_v44  ;;  %9476 = vmatpush.bf16.msra.mxu3 %v14785_v36  ;;  %v13841_v36 = vld [vmem:[#allocation14 + $0x8d8] sm:$0xf] }
0x2103   : > { %9243 = vmatpush.xpose.msrb.mxu0 %v9160_v62 }
0x2104   : > { %9368 = vmatpush.msra.mxu2 %v15400_v59 }
0x2106   : > { %9477 = vmatpush.bf16.msra.mxu3 %v14784_v12  ;;  %v14834_v12 = vld [vmem:[#allocation14 + $0x8ec] sm:$0xf0] }
0x2107   : > { %9244 = vmatpush.xpose.msrb.mxu0 %v9159_v11 }
0x210a   : > { %9478 = vmatpush.bf16.msra.mxu3 %v14783_v10 }
0x210b   : > { %9245 = vmatpush.xpose.msrb.mxu0 %v9158_v33  ;;  %v13833_v33 = vld [vmem:[#allocation14 + $0x8d0] sm:$0xf] }
0x210e   : > { %9479 = vmatpush.bf16.msra.mxu3 %v14782_v22  ;;  %v14831_v22 = vld [vmem:[#allocation14 + $0x8dc] sm:$0xf] }
0x210f   : > { %9246 = vmatpush.xpose.msrb.mxu0 %v9157_v26  ;;  %v14833_v26 = vld [vmem:[#allocation14 + $0x8e4] sm:$0xf0] }
0x2112   : > { %9480 = vmatpush.bf16.msra.mxu3 %v14781_v42  ;;  %v13843_v42 = vld [vmem:[#allocation14 + $0x8f0] sm:$0xf0] }
0x2113   : > { %9247 = vmatpush.xpose.msrb.mxu0 %v9156_v0  ;;  %v14830_v0 = vld [vmem:[#allocation14 + $0x8d4] sm:$0xf] }
0x2116   : > { %9481 = vmatpush.bf16.msra.mxu3 %v14780_v13  ;;  %v13737_v13 = vld [vmem:[#allocation14 + $0x810] sm:$0xf] }
0x2117   : > { %9248 = vmatpush.xpose.msrb.mxu0 %v9155_v3  ;;  %v13834_v3 = vor.u32 %v14833_v26, %v13833_v33  ;;  %v13795_v33 = vld [vmem:[#allocation14 + $0x890] sm:$0xf0] }
0x211b   : > { %9249 = vmatpush.xpose.msrb.mxu0 %v9154_v18  ;;  %v13835_v18 = vld [vmem:[#allocation14 + $0x8e8] sm:$0xf0] }
0x211e   : > { %9250 = vmatmul.f32.vlgmr.msrb.gmra.mxu0 %v17827_v5 }
0x2126   : > { %9253 = vmatmul.f32.gmra.mxu0 %v9080_v38 }
0x2168   : > { %v9274_v32 = vpop.f32.mrf.mxu2 }
0x2169   : > { %v9280_v58 = vsel %vm1341_vm7, %v9274_v32, -inf }
0x2170   : > { %v9277_v47 = vpop.f32.mrf.mxu2 }
0x2171   : > { %v9285_v8 = vsel %vm1347_vm8, %v9277_v47, -inf }
0x219b   : > { %v9251_v45 = vpop.f32.mrf.mxu0 }
0x219c   : > { %v9281_v1 = vmax.f32 %v9251_v45, %v9280_v58 }
0x219e   : > { %9282 = vmax.xlane.f32.xlu2 %v9281_v1 }
0x21a3   : > { %v9254_v41 = vpop.f32.mrf.mxu0 }
0x21a4   : > { %v9284_v52 = vsel %vm1166_vm6, %v9254_v41, -inf }
0x21a5   : > { %v9286_v49 = vmax.f32 %v9284_v52, %v9285_v8 }
0x21a7   : > { %9287 = vmax.xlane.f32.xlu0 %v9286_v49  ;;  %v13809_v49 = vld [vmem:[#allocation14 + $0x8a0] sm:$0xf] }
0x2211   : > { %v9283_v27 = vpop.xlane.xlu2 %9282 }
0x2212   : > { %v9289_v55 = vsub.f32 %v9251_v45, %v9283_v27  ;;  %v9290_v43 = vsub.f32 %v9274_v32, %v9283_v27  ;;  %v13838_v32 = vor.u32 %v14830_v0, %v13835_v18  ;;  %v14827_v27 = vld [vmem:[#allocation14 + $0x8b4] sm:$0xf0]  ;;  %v14797_v18 = vld [vmem:[#allocation14 + $0x7c4] sm:$0xf0] }
0x2214   : > { %v9293_v37 = vmul.f32 1.442695, %v9289_v55  ;;  %v9295_v28 = vmul.f32 1.442695, %v9290_v43  ;;  %9865 = vmatpush.bf16.msrb.mxu2 %v13838_v32  ;;  %v14824_v55 = vld [vmem:[#allocation14 + $0x8a4] sm:$0xf]  ;;  %v13810_v43 = vor.u32 %v14827_v27, %v13809_v49 }
0x2215   : > { %v14794_v32 = vld [vmem:[#allocation14 + $0x7b4] sm:$0xf]  ;;  %v13771_v49 = vld [vmem:[#allocation14 + $0x860] sm:$0xf0] }
0x2216   : > { %15283 = vpow2.f32 %v9293_v37  ;;  %v13811_v37 = vld [vmem:[#allocation14 + $0x8b8] sm:$0xf0] }
0x2217   : > { %15285 = vpow2.f32 %v9295_v28  ;;  %v13814_v28 = vor.u32 %v14824_v55, %v13811_v37  ;;  %v13665_v55 = vld [vmem:[#allocation14 + $0x780] sm:$0xf]  ;;  %v14788_v37 = vld [vmem:[#allocation14 + $0x784] sm:$0xf] }
0x2219   : > { %9866 = vmatpush.bf16.msrb.mxu2 %v13814_v28 }
0x221a   : > { %v9288_v6 = vpop.xlane.xlu0 %9287 }
0x221b   : > { %v9291_v23 = vsub.f32 %v9254_v41, %v9288_v6  ;;  %v9292_v5 = vsub.f32 %v9277_v47, %v9288_v6  ;;  %v13785_v6 = vld [vmem:[#allocation14 + $0x870] sm:$0xf] }
0x221c   : > { %v15284_v30 = vpop.eup %15283 }
0x221d   : > { %v15286_v31 = vpop.eup %15285  ;;  %v9297_v17 = vmul.f32 1.442695, %v9291_v23  ;;  %v9299_v61 = vmul.f32 1.442695, %v9292_v5  ;;  %9323 = vmatmul.f32.vlgmr.msrb.gmra.mxu3 %v15284_v30  ;;  %9369 = vmatmul.f32.vlgmr.msra.gmra.mxu2 %v15284_v30  ;;  %v14821_v23 = vld [vmem:[#allocation14 + $0x884] sm:$0xf0] }
0x221e   : > { %13627 = vmatmul.msk.f32.vlgmr.msra.gmra.mxu1 %vm1341_vm7, %v15286_v31  ;;  %v14818_v5 = vld [vmem:[#allocation14 + $0x874] sm:$0xf]  ;;  %v13786_v30 = vor.u32 %v14821_v23, %v13785_v6  ;;  %v13667_v6 = vld [vmem:[#allocation14 + $0x798] sm:$0xf0]  ;;  %v13745_v23 = vld [vmem:[#allocation14 + $0x818] sm:$0xf] }
0x221f   : > { %15287 = vpow2.f32 %v9297_v17  ;;  %9851 = vmatpush.bf16.msra.mxu1 %v13834_v3  ;;  %v13689_v3 = vld [vmem:[#allocation14 + $0x7b0] sm:$0xf] }
0x2220   : > { %15289 = vpow2.f32 %v9299_v61  ;;  %v13761_v61 = vld [vmem:[#allocation14 + $0x840] sm:$0xf] }
0x2223   : > { %9852 = vmatpush.bf16.msra.mxu1 %v13810_v43  ;;  %v14791_v43 = vld [vmem:[#allocation14 + $0x794] sm:$0xf0] }
0x2224   : > { %v13666_v28 = vor.u32 %v14791_v43, %v13665_v55 }
0x2225   : > { %v15288_v4 = vpop.eup %15287 }
0x2226   : > { %v15290_v16 = vpop.eup %15289  ;;  %9326 = vmatmul.f32.gmra.mxu3 %v15288_v4  ;;  %9372 = vmatmul.f32.gmra.mxu2 %v15288_v4  ;;  %v14815_v4 = vld [vmem:[#allocation14 + $0x854] sm:$0xf0] }
0x2227   : > { %13628 = vmatmul.msk.f32.gmra.mxu1 %vm1341_vm7, %v15290_v16  ;;  %v13762_v15 = vor.u32 %v14815_v4, %v13761_v61  ;;  %v13747_v61 = vld [vmem:[#allocation14 + $0x830] sm:$0xf0]  ;;  %v13849_v4 = vld [vmem:[#allocation14 + $0x8e0] sm:$0xf] }
0x2228   : > { %9853 = vmatpush.bf16.msra.mxu1 %v13786_v30  ;;  %v13670_v30 = vor.u32 %v14788_v37, %v13667_v6 }
0x222c   : > { %9854 = vmatpush.bf16.msra.mxu1 %v13762_v15 }
0x222f   : > { %13629 = vmatmul.msk.f32.vlgmr.msrb.gmra.mxu1 %vm1341_vm7, %v15286_v31  ;;  %v13787_v31 = vld [vmem:[#allocation14 + $0x888] sm:$0xf0] }
0x2230   : > { %v13790_v17 = vor.u32 %v14818_v5, %v13787_v31  ;;  %v14810_v5 = vld [vmem:[#allocation14 + $0x82c] sm:$0xf0] }
0x2231   : > { %v13746_v31 = vor.u32 %v14810_v5, %v13745_v23  ;;  %v13753_v23 = vld [vmem:[#allocation14 + $0x820] sm:$0xf]  ;;  %v14811_v5 = vld [vmem:[#allocation14 + $0x834] sm:$0xf0] }
0x2232   : > { %9867 = vmatpush.bf16.msrb.mxu2 %v13790_v17  ;;  %v14807_v17 = vld [vmem:[#allocation14 + $0x81c] sm:$0xf] }
0x2233   : > { %v13750_v15 = vor.u32 %v14807_v17, %v13747_v61  ;;  %v14863_v61 = vld [vmem:[#allocation17 + $0x858] sm:$0xff] }
0x2237   : > { %13630 = vmatmul.msk.f32.gmra.mxu1 %vm1341_vm7, %v15290_v16  ;;  %v14812_v16 = vld [vmem:[#allocation14 + $0x844] sm:$0xf] }
0x2238   : > { %v13766_v10 = vor.u32 %v14812_v16, %v13763_v21  ;;  %v14835_v21 = vld [vmem:[#allocation14 + $0x8f4] sm:$0xf0] }
0x223a   : > { %9868 = vmatpush.bf16.msrb.mxu2 %v13766_v10 }
0x229b   : > { %v9347_v19 = vpop.f32.mrf.mxu1 }
0x22a0   : > { %v9370_v40 = vpop.f32.mrf.mxu2  ;;  %v9324_v63 = vpop.f32.mrf.mxu3 }
0x22a1   : > { %v9348_v2 = vadd.f32 %v9347_v19, %v9324_v63  ;;  %v13842_v19 = vor.u32 %v14834_v12, %v13841_v36  ;;  %v14832_v36 = vld [vmem:[#allocation14 + $0x8e4] sm:$0xf]  ;;  %v13851_v12 = vld [vmem:[#allocation14 + $0x8f8] sm:$0xf0] }
0x22a3   : > { %9879 = vmatpush.bf16.msra.mxu0 %v13842_v19 }
0x22a4   : > { %v9350_v46 = vpop.f32.mrf.mxu1 }
0x22a9   : > { %v9373_v29 = vpop.f32.mrf.mxu2  ;;  %v9327_v57 = vpop.f32.mrf.mxu3 }
0x22aa   : > { %v9351_v9 = vadd.f32 %v9350_v46, %v9327_v57  ;;  %v13846_v46 = vor.u32 %v14831_v22, %v13843_v42  ;;  %v13850_v22 = vor.u32 %v14835_v21, %v13849_v4  ;;  %v13854_v42 = vor.u32 %v14832_v36, %v13851_v12  ;;  %v13729_v12 = vld [vmem:[#allocation14 + $0x7f0] sm:$0xf] }
0x22ab   : > { %v13754_v4 = vor.u32 %v14811_v5, %v13753_v23  ;;  %v14845_v23 = vld [vmem:[#allocation17 + $0x7c8] sm:$0xff]  ;;  %v14864_v5 = vld [vmem:[#allocation17 + $0x860] sm:$0xff] }
0x22ac   : > { %v9393_v38 = vpop.f32.mrf.mxu1  ;;  %9893 = vmatpush.bf16.msrb.mxu3 %v13846_v46  ;;  %v13721_v46 = vld [vmem:[#allocation14 + $0x7e8] sm:$0xf] }
0x22ad   : > { %v9394_v35 = vadd.f32 %v9393_v38, %v9370_v40  ;;  %v14809_v40 = vld [vmem:[#allocation14 + $0x824] sm:$0xf0]  ;;  %v14806_v38 = vld [vmem:[#allocation14 + $0x814] sm:$0xf] }
0x22ae   : > { %v13738_v63 = vor.u32 %v14809_v40, %v13737_v13  ;;  %v14804_v13 = vld [vmem:[#allocation14 + $0x7fc] sm:$0xf0]  ;;  %v14801_v40 = vld [vmem:[#allocation14 + $0x7ec] sm:$0xf] }
0x22af   : > { %15291 = vrcp.f32 %v9394_v35  ;;  %v13739_v35 = vld [vmem:[#allocation14 + $0x828] sm:$0xf0] }
0x22b0   : > { %9855 = vmatpush.bf16.msra.mxu1 %v13738_v63  ;;  %v13722_v63 = vor.u32 %v14804_v13, %v13721_v46  ;;  %v14842_v46 = vld [vmem:[#allocation17 + $0x7b0] sm:$0xff] }
0x22b4   : > { %v9396_v50 = vpop.f32.mrf.mxu1 }
0x22b5   : > { %v9397_v53 = vadd.f32 %v9396_v50, %v9373_v29  ;;  %v15292_v25 = vpop.eup %15291  ;;  %v13817_v29 = vld [vmem:[#allocation14 + $0x8a8] sm:$0xf]  ;;  %v14828_v50 = vld [vmem:[#allocation14 + $0x8bc] sm:$0xf0] }
0x22b6   : > { %v9401_v56 = vmul.f32 %v15292_v25, %v9348_v2  ;;  %v13818_v57 = vor.u32 %v14828_v50, %v13817_v29  ;;  %v14825_v25 = vld [vmem:[#allocation14 + $0x8ac] sm:$0xf]  ;;  %v13819_v2 = vld [vmem:[#allocation14 + $0x8c0] sm:$0xf0]  ;;  %v13825_v29 = vld [vmem:[#allocation14 + $0x8b0] sm:$0xf] }
0x22b7   : > { %15293 = vrcp.f32 %v9397_v53  ;;  %v13742_v53 = vor.u32 %v14806_v38, %v13739_v35  ;;  %v13723_v35 = vld [vmem:[#allocation14 + $0x800] sm:$0xf0]  ;;  %v14829_v50 = vld [vmem:[#allocation14 + $0x8c4] sm:$0xf0] }
0x22b8   : > { %9880 = vmatpush.bf16.msra.mxu0 %v13818_v57  ;;  %v13726_v57 = vor.u32 %v14801_v40, %v13723_v35  ;;  %v14850_v40 = vld [vmem:[#allocation17 + $0x7f0] sm:$0xff] }
0x22b9   : > { %9869 = vmatpush.bf16.msrb.mxu2 %v13742_v53 }
0x22bd   : > { %v15294_v34 = vpop.eup %15293 }
0x22be   : > { %v9402_v51 = vmul.f32 %v15294_v34, %v9351_v9  ;;  %v13822_v9 = vor.u32 %v14825_v25, %v13819_v2  ;;  %v13826_v25 = vor.u32 %v14829_v50, %v13825_v29  ;;  %v14826_v2 = vld [vmem:[#allocation14 + $0x8b4] sm:$0xf]  ;;  %v13705_v50 = vld [vmem:[#allocation14 + $0x7c0] sm:$0xf] }
0x22c0   : > { %v9403_v44 = vpack.c.bf16 %v9402_v51, %v9401_v56  ;;  %v13713_v56 = vld [vmem:[#allocation14 + $0x7e0] sm:$0xf]  ;;  %v14803_v51 = vld [vmem:[#allocation14 + $0x7f4] sm:$0xf0]  ;;  %9894 = vmatpush.bf16.msrb.mxu3 %v13822_v9  ;;  %v13827_v9 = vld [vmem:[#allocation14 + $0x8c8] sm:$0xf0] }
0x22c2   : > { %9482 = vmatmul.bf16.vlgmr.msra.gmra.mxu3 %v9403_v44  ;;  %v14800_v44 = vld [vmem:[#allocation14 + $0x7e4] sm:$0xf] }
0x2345   : > { %v9483_v7 = vpop.f32.mrf.mxu3 }
0x2346   : > { %v9484_v59 = vadd.f32 %v15175_v39, %v9483_v7  ;;  %v13714_v7 = vor.u32 %v14803_v51, %v13713_v56  ;;  %v13830_v56 = vor.u32 %v14826_v2, %v13827_v9  ;;  %v13697_v51 = vld [vmem:[#allocation14 + $0x7b8] sm:$0xf]  ;;  %v13707_v2 = vld [vmem:[#allocation14 + $0x7d8] sm:$0xf0]  ;;  %v14841_v9 = vld [vmem:[#allocation17 + $0x7a8] sm:$0xff] }
0x2348   : > { %v9488_v60 = vadd.f32 %v9484_v59, %v17715_v24  ;;  %v13715_v59 = vld [vmem:[#allocation14 + $0x7f8] sm:$0xf0]  ;;  %9856 = vmatpush.bf16.msra.mxu1 %v13714_v7  ;;  %v13699_v7 = vld [vmem:[#allocation14 + $0x7d0] sm:$0xf0] }
0x234a   : > { %9494 = vadd.xlane.f32.xlu2 %v9488_v60 }
0x234d   : > { %v9485_v14 = vpop.f32.mrf.mxu3 }
0x234e   : > { %v9486_v20 = vadd.f32 %v15175_v39, %v9485_v14  ;;  %v14822_v14 = vld [vmem:[#allocation14 + $0x88c] sm:$0xf0] }
0x2350   : > { %v9489_v62 = vadd.f32 %v9486_v20, %v17717_v54  ;;  %v13718_v20 = vor.u32 %v14800_v44, %v13715_v59  ;;  %v14798_v44 = vld [vmem:[#allocation14 + $0x7cc] sm:$0xf0]  ;;  %v13801_v59 = vld [vmem:[#allocation14 + $0x880] sm:$0xf] }
0x2352   : > { %v9496_v11 = vsel %vm1166_vm6, %v9489_v62, 0.0  ;;  %9870 = vmatpush.bf16.msrb.mxu2 %v13718_v20  ;;  %v13698_v20 = vor.u32 %v14798_v44, %v13697_v51  ;;  %v15177_v51 = vld [vmem:[#allocation13 + $0x5] ss:$0 sm:$0xff] }
0x2353   : > { %9497 = vadd.xlane.f32.xlu1 %v9496_v11  ;;  %v14819_v11 = vld [vmem:[#allocation14 + $0x87c] sm:$0xf] }
0x2354   : > { %v13798_v0 = vor.u32 %v14819_v11, %v13795_v33  ;;  %v13803_v11 = vld [vmem:[#allocation14 + $0x898] sm:$0xf0] }
0x2356   : > { %9895 = vmatpush.bf16.msrb.mxu3 %v13798_v0 }
0x23bd   : > { %v9495_v58 = vpop.xlane.xlu2 %9494 }
0x23be   : > { %v9499_v45 = vmul.f32 %v9495_v58, %v16670_v48  ;;  %v13690_v58 = vor.u32 %v14797_v18, %v13689_v3  ;;  %v13673_v3 = vld [vmem:[#allocation14 + $0x788] sm:$0xf]  ;;  %v14792_v18 = vld [vmem:[#allocation14 + $0x79c] sm:$0xf0] }
0x23c0   : > { %v17876_v24 = vsub.f32 %v9488_v60, %v9499_v45  ;;  %v13793_v60 = vld [vmem:[#allocation14 + $0x878] sm:$0xf]  ;;  %v13691_v45 = vld [vmem:[#allocation14 + $0x7c8] sm:$0xf0]  ;;  %9857 = vmatpush.bf16.msra.mxu1 %v13690_v58 }
0x23c2   : > { %v9503_v1 = vmul.f32 %v17876_v24, %v17876_v24 }
0x23c4   : > { %9505 = vadd.xlane.f32.xlu0 %v9503_v1  ;;  %v13769_v1 = vld [vmem:[#allocation14 + $0x848] sm:$0xf]  ;;  %9858 = vmatpush.bf16.msra.mxu1 %v13666_v28 }
0x23c6   : > { %v9498_v54 = vpop.xlane.xlu1 %9497 }
0x23c7   : > { %v9500_v47 = vmul.f32 %v9498_v54, %v16670_v48  ;;  %v14816_v54 = vld [vmem:[#allocation14 + $0x85c] sm:$0xf0] }
0x23c8   : > { %9907 = vmatpush.bf16.msrb.mxu1 %v13850_v22  ;;  %v14802_v22 = vld [vmem:[#allocation14 + $0x7f4] sm:$0xf] }
0x23c9   : > { %v17881_v41 = vsub.f32 %v9489_v62, %v9500_v47  ;;  %v13794_v62 = vor.u32 %v14822_v14, %v13793_v60  ;;  %v13694_v47 = vor.u32 %v14794_v32, %v13691_v45  ;;  %v14823_v60 = vld [vmem:[#allocation14 + $0x894] sm:$0xf0]  ;;  %v14789_v32 = vld [vmem:[#allocation14 + $0x78c] sm:$0xf] }
0x23ca   : > { %v13802_v0 = vor.u32 %v14823_v60, %v13801_v59  ;;  %v13681_v59 = vld [vmem:[#allocation14 + $0x790] sm:$0xf]  ;;  %v14793_v60 = vld [vmem:[#allocation14 + $0x7a4] sm:$0xf0] }
0x23cb   : > { %v9504_v8 = vmul.f32 %v17881_v41, %v17881_v41  ;;  %9881 = vmatpush.bf16.msra.mxu0 %v13794_v62  ;;  %9871 = vmatpush.bf16.msrb.mxu2 %v13694_v47  ;;  %v14820_v62 = vld [vmem:[#allocation14 + $0x884] sm:$0xf]  ;;  %v14817_v47 = vld [vmem:[#allocation14 + $0x864] sm:$0xf0] }
0x23cc   : > { %9908 = vmatpush.bf16.msrb.mxu1 %v13826_v25  ;;  %v13806_v45 = vor.u32 %v14820_v62, %v13803_v11  ;;  %v14796_v25 = vld [vmem:[#allocation14 + $0x7c4] sm:$0xf]  ;;  %v13683_v62 = vld [vmem:[#allocation14 + $0x7a8] sm:$0xf0] }
0x23cd   : > { %v9507_v52 = vsel %vm1166_vm6, %v9504_v8, 0.0  ;;  %v13770_v8 = vor.u32 %v14816_v54, %v13769_v1  ;;  %v13675_v1 = vld [vmem:[#allocation14 + $0x7a0] sm:$0xf0]  ;;  %v13777_v54 = vld [vmem:[#allocation14 + $0x850] sm:$0xf] }
0x23ce   : > { %9508 = vadd.xlane.f32.xlu1 %v9507_v52  ;;  %v14813_v52 = vld [vmem:[#allocation14 + $0x84c] sm:$0xf]  ;;  %v13678_v55 = vor.u32 %v14789_v32, %v13675_v1  ;;  %v13778_v43 = vor.u32 %v14817_v47, %v13777_v54  ;;  %v14848_v11 = vld [vmem:[#allocation17 + $0x7e0] sm:$0xff]  ;;  %v14859_v32 = vld [vmem:[#allocation17 + $0x838] sm:$0xff] }
0x23cf   : > { %v13774_v27 = vor.u32 %v14813_v52, %v13771_v49  ;;  %9882 = vmatpush.bf16.msra.mxu0 %v13770_v8  ;;  %9872 = vmatpush.bf16.msrb.mxu2 %v13670_v30  ;;  %v14814_v8 = vld [vmem:[#allocation14 + $0x854] sm:$0xf]  ;;  %v13779_v52 = vld [vmem:[#allocation14 + $0x868] sm:$0xf0]  ;;  %v13674_v49 = vor.u32 %v14792_v18, %v13673_v3  ;;  %v14808_v30 = vld [vmem:[#allocation14 + $0x824] sm:$0xf]  ;;  %v13682_v3 = vor.u32 %v14793_v60, %v13681_v59 }
0x23d0   : > { %9909 = vmatpush.bf16.msrb.mxu1 %v13802_v0  ;;  %v13782_v6 = vor.u32 %v14814_v8, %v13779_v52  ;;  %v14847_v1 = vld [vmem:[#allocation17 + $0x7d8] sm:$0xff]  ;;  %v14858_v54 = vld [vmem:[#allocation17 + $0x830] sm:$0xff] }
0x23d1   : > { %9896 = vmatpush.bf16.msrb.mxu3 %v13774_v27  ;;  %v14838_v47 = vld [vmem:[#allocation17 + $0x790] sm:$0xff] }
0x23d2   : > { %v14866_v8 = vld [vmem:[#allocation17 + $0x870] sm:$0xff] }
0x23d3   : > { %9883 = vmatpush.bf16.msra.mxu0 %v13746_v31  ;;  %9921 = vmatpush.bf16.msra.mxu2 %v13854_v42  ;;  %v13755_v31 = vld [vmem:[#allocation14 + $0x838] sm:$0xf0]  ;;  %v13731_v42 = vld [vmem:[#allocation14 + $0x808] sm:$0xf0]  ;;  %v14846_v52 = vld [vmem:[#allocation17 + $0x7d0] sm:$0xff] }
0x23d4   : > { %9910 = vmatpush.bf16.msrb.mxu1 %v13778_v43  ;;  %v13758_v36 = vor.u32 %v14808_v30, %v13755_v31  ;;  %v13734_v29 = vor.u32 %v14802_v22, %v13731_v42  ;;  %v14856_v43 = vld [vmem:[#allocation17 + $0x820] sm:$0xff]  ;;  %v14854_v30 = vld [vmem:[#allocation17 + $0x810] sm:$0xff]  ;;  %v14881_v22 = vld [vmem:[#allocation17 + $0x8e8] sm:$0xff] }
0x23d5   : > { %9897 = vmatpush.bf16.msrb.mxu3 %v13750_v15  ;;  %v14874_v31 = vld [vmem:[#allocation17 + $0x8b0] sm:$0xff]  ;;  %v14871_v42 = vld [vmem:[#allocation17 + $0x898] sm:$0xff] }
0x23d7   : > { %9884 = vmatpush.bf16.msra.mxu0 %v13722_v63  ;;  %9922 = vmatpush.bf16.msra.mxu2 %v13830_v56  ;;  %v14849_v56 = vld [vmem:[#allocation17 + $0x7e8] sm:$0xff] }
0x23d8   : > { %9911 = vmatpush.bf16.msrb.mxu1 %v13754_v4  ;;  %v14883_v4 = vld [vmem:[#allocation17 + $0x8f8] sm:$0xff] }
0x23d9   : > { %9898 = vmatpush.bf16.msrb.mxu3 %v13726_v57  ;;  %v14799_v57 = vld [vmem:[#allocation14 + $0x7d4] sm:$0xf0] }
0x23db   : > { %9885 = vmatpush.bf16.msra.mxu0 %v13698_v20  ;;  %9923 = vmatpush.bf16.msra.mxu2 %v13806_v45  ;;  %v14790_v20 = vld [vmem:[#allocation14 + $0x794] sm:$0xf]  ;;  %v14867_v45 = vld [vmem:[#allocation17 + $0x878] sm:$0xff] }
0x23dc   : > { %v13686_v18 = vor.u32 %v14790_v20, %v13683_v62 }
0x23df   : > { %9886 = vmatpush.bf16.msra.mxu0 %v13674_v49  ;;  %9924 = vmatpush.bf16.msra.mxu2 %v13782_v6  ;;  %v14857_v49 = vld [vmem:[#allocation17 + $0x828] sm:$0xff]  ;;  %v14875_v6 = vld [vmem:[#allocation17 + $0x8b8] sm:$0xff] }
0x23e3   : > { %9925 = vmatpush.bf16.msra.mxu2 %v13758_v36  ;;  %v14882_v36 = vld [vmem:[#allocation17 + $0x8f0] sm:$0xff] }
0x23e7   : > { %9926 = vmatpush.bf16.msra.mxu2 %v13734_v29 }
0x2437   : > { %v9506_v34 = vpop.xlane.xlu0 %9505 }
0x2438   : > { %v9510_v39 = vmul.f32 %v9506_v34, %v16670_v48 }
0x243a   : > { %v17887_v26 = vadd.f32 1e-05, %v9510_v39  ;;  %v14795_v39 = vld [vmem:[#allocation14 + $0x7bc] sm:$0xf] }
0x243b   : > { %v13702_v33 = vor.u32 %v14795_v39, %v13699_v7  ;;  %v13710_v39 = vor.u32 %v14796_v25, %v13707_v2  ;;  %v14877_v2 = vld [vmem:[#allocation17 + $0x8c8] sm:$0xff] }
0x243c   : > { %15295 = vrsqrt.f32 %v17887_v26  ;;  %vm9520_vm1 = vweird.f32 %v17887_v26 }
0x243d   : > { %9899 = vmatpush.bf16.msrb.mxu3 %v13702_v33  ;;  %9927 = vmatpush.bf16.msra.mxu2 %v13710_v39 }
0x2441   : > { %v9509_v16 = vpop.xlane.xlu1 %9508  ;;  %9900 = vmatpush.bf16.msrb.mxu3 %v13678_v55  ;;  %9928 = vmatpush.bf16.msra.mxu2 %v13686_v18  ;;  %v14865_v55 = vld [vmem:[#allocation17 + $0x868] sm:$0xff] }
0x2442   : > { %v17890_v10 = vpop.eup %15295  ;;  %v9511_v19 = vmul.f32 %v9509_v16, %v16670_v48  ;;  %v14843_v16 = vld [vmem:[#allocation17 + $0x7b8] sm:$0xff] }
0x2443   : > { %v9515_v38 = vmul.f32 %v17890_v10, %v17887_v26  ;;  %vm9521_vm0 = vweird.f32 %v17890_v10  ;;  %v14851_v26 = vld [vmem:[#allocation17 + $0x7f8] sm:$0xff]  ;;  %10343 = vmatpush.bf16.msrb.mxu0 %v14843_v16  ;;  %v14853_v16 = vld [vmem:[#allocation17 + $0x808] sm:$0xff] }
0x2444   : > { %v17895_v53 = vadd.f32 1e-05, %v9511_v19  ;;  %vm17903_vm2 = vmor %vm9520_vm1, %vm9521_vm0  ;;  %v14805_v19 = vld [vmem:[#allocation14 + $0x804] sm:$0xf0] }
0x2445   : > { %v9516_v34 = vmul.f32 %v17890_v10, %v9515_v38  ;;  %10356 = vmatpush.bf16.msra.mxu3 %v14851_v26  ;;  %v15176_v38 = vld [vmem:[#allocation11 + $0x5] ss:$0 sm:$0xff]  ;;  %v14861_v26 = vld [vmem:[#allocation17 + $0x848] sm:$0xff] }
0x2446   : > { %15297 = vrsqrt.f32 %v17895_v53  ;;  %vm9530_vm4 = vweird.f32 %v17895_v53 }
0x2447   : > { %v9517_v14 = vmul.f32 0.5, %v9516_v34  ;;  %10344 = vmatpush.bf16.msrb.mxu0 %v14842_v46  ;;  %v14860_v46 = vld [vmem:[#allocation17 + $0x840] sm:$0xff] }
0x2449   : > { %v9518_v58 = vsub.f32 1.5, %v9517_v14  ;;  %10357 = vmatpush.bf16.msra.mxu3 %v14850_v40  ;;  %v14840_v14 = vld [vmem:[#allocation17 + $0x7a0] sm:$0xff]  ;;  %v14870_v40 = vld [vmem:[#allocation17 + $0x890] sm:$0xff] }
0x244b   : > { %v9519_v37 = vmul.f32 %v17890_v10, %v9518_v58  ;;  %10345 = vmatpush.bf16.msrb.mxu0 %v14841_v9  ;;  %v14839_v58 = vld [vmem:[#allocation17 + $0x798] sm:$0xff] }
0x244c   : > { %v15298_v27 = vpop.eup %15297 }
0x244d   : > { %v9525_v28 = vmul.f32 %v15298_v27, %v17895_v53  ;;  %v9523_v15 = vsel %vm17903_vm2, %v17890_v10, %v9519_v37  ;;  %vm9531_vm3 = vweird.f32 %v15298_v27  ;;  %v13730_v10 = vor.u32 %v14805_v19, %v13729_v12  ;;  %10358 = vmatpush.bf16.msra.mxu3 %v14849_v56  ;;  %v14836_v37 = vld [vmem:[#allocation17 + $0x780] sm:$0xff] }
0x244e   : > { %v9534_v63 = vmul.f32 %v9523_v15, %v17876_v24  ;;  %vm9532_vm5 = vmor %vm9530_vm4, %vm9531_vm3  ;;  %v13706_v53 = vor.u32 %v14799_v57, %v13705_v50  ;;  %v14873_v15 = vld [vmem:[#allocation17 + $0x8a8] sm:$0xff]  ;;  %v14852_v12 = vld [vmem:[#allocation17 + $0x800] sm:$0xff] }
0x244f   : > { %v9526_v17 = vmul.f32 %v15298_v27, %v9525_v28  ;;  %9912 = vmatpush.bf16.msrb.mxu1 %v13730_v10  ;;  %10346 = vmatpush.bf16.msrb.mxu0 %v14840_v14  ;;  %v14855_v28 = vld [vmem:[#allocation17 + $0x818] sm:$0xff]  ;;  %v14872_v19 = vld [vmem:[#allocation17 + $0x8a0] sm:$0xff]  ;;  %v14878_v10 = vld [vmem:[#allocation17 + $0x8d0] sm:$0xff] }
0x2450   : > { %v9539_v44 = vmul.f32 %v15176_v38, %v9534_v63  ;;  %v14869_v63 = vld [vmem:[#allocation17 + $0x888] sm:$0xff]  ;;  %v14868_v50 = vld [vmem:[#allocation17 + $0x880] sm:$0xff] }
0x2451   : > { %v9527_v21 = vmul.f32 0.5, %v9526_v17  ;;  %10359 = vmatpush.bf16.msra.mxu3 %v14848_v11  ;;  %v14844_v17 = vld [vmem:[#allocation17 + $0x7c0] sm:$0xff] }
0x2452   : > { %v17913_v33 = vadd.f32 %v15177_v51, %v9539_v44  ;;  %v14876_v56 = vld [vmem:[#allocation17 + $0x8c0] sm:$0xff] }
0x2453   : > { %v9528_v13 = vsub.f32 1.5, %v9527_v21  ;;  %9913 = vmatpush.bf16.msrb.mxu1 %v13706_v53  ;;  %10347 = vmatpush.bf16.msrb.mxu0 %v14839_v58  ;;  %v14862_v21 = vld [vmem:[#allocation17 + $0x850] sm:$0xff] }
0x2455   : > { %v9529_v35 = vmul.f32 %v15298_v27, %v9528_v13  ;;  %10360 = vmatpush.bf16.msra.mxu3 %v14847_v1  ;;  %v14880_v13 = vld [vmem:[#allocation17 + $0x8e0] sm:$0xff] }
0x2457   : > { %v9533_v34 = vsel %vm9532_vm5, %v15298_v27, %v9529_v35  ;;  %9914 = vmatpush.bf16.msrb.mxu1 %v13682_v3  ;;  %10348 = vmatpush.bf16.msrb.mxu0 %v14838_v47  ;;  %v14837_v27 = vld [vmem:[#allocation17 + $0x788] sm:$0xff]  ;;  %v9597_v35 = vld [vmem:[#allocation16 + $0x1e] sm:$0x3f] }
0x2458   : > { %v9535_v24 = vmul.f32 %v9533_v34, %v17881_v41  ;;  %v9599_v25 = vperm.slane %v9597_v35, 0  ;;  %v9601_v9 = vperm.slane %v9597_v35, 2  ;;  %v9600_v39 = vperm.slane %v9597_v35, 1 }
0x2459   : > { %10361 = vmatpush.bf16.msra.mxu3 %v14846_v52  ;;  %v9602_v60 = vperm.slane %v9597_v35, 3 }
0x245a   : > { %v9540_v7 = vmul.f32 %v15176_v38, %v9535_v24  ;;  %v14879_v38 = vld [vmem:[#allocation17 + $0x8d8] sm:$0xff] }
0x245b   : > { %10349 = vmatpush.bf16.msrb.mxu0 %v14837_v27 }
0x245c   : > { %v9545_v0 = vadd.f32 %v15177_v51, %v9540_v7 }
0x245d   : > { %10362 = vmatpush.bf16.msra.mxu3 %v14845_v23 }
0x245e   : > { %v9546_v41 = vpack.c.bf16 %v9545_v0, %v17913_v33 }
0x245f   : > { %10350 = vmatpush.bf16.msrb.mxu0 %v14836_v37 }
0x2460   : > { %9859 = vmatmul.bf16.vlgmr.msra.gmra.mxu1 %v9546_v41  ;;  %9873 = vmatmul.bf16.vlgmr.msrb.gmra.mxu2 %v9546_v41 }
0x2461   : > { %9887 = vmatmul.bf16.vlgmr.msra.gmra.mxu0 %v9546_v41  ;;  %9901 = vmatmul.bf16.vlgmr.msrb.gmra.mxu3 %v9546_v41 }
0x2462   : > { %10369 = vmatpush.bf16.msra.mxu1 %v14859_v32  ;;  %10382 = vmatpush.bf16.msrb.mxu2 %v14867_v45 }
0x2463   : > { %10395 = vmatpush.bf16.msra.mxu0 %v14875_v6  ;;  %10363 = vmatpush.bf16.msra.mxu3 %v14844_v17 }
0x2466   : > { %10370 = vmatpush.bf16.msra.mxu1 %v14858_v54  ;;  %10383 = vmatpush.bf16.msrb.mxu2 %v14866_v8 }
0x2467   : > { %10396 = vmatpush.bf16.msra.mxu0 %v14874_v31  ;;  %10408 = vmatpush.bf16.msrb.mxu3 %v14883_v4 }
0x246a   : > { %10371 = vmatpush.bf16.msra.mxu1 %v14857_v49  ;;  %10384 = vmatpush.bf16.msrb.mxu2 %v14865_v55 }
0x246b   : > { %10397 = vmatpush.bf16.msra.mxu0 %v14873_v15  ;;  %10409 = vmatpush.bf16.msrb.mxu3 %v14882_v36 }
0x246e   : > { %10372 = vmatpush.bf16.msra.mxu1 %v14856_v43  ;;  %10385 = vmatpush.bf16.msrb.mxu2 %v14864_v5  ;;  %v9603_v43 = vperm.slane %v9597_v35, 4  ;;  %v9604_v5 = vperm.slane %v9597_v35, 5 }
0x246f   : > { %10398 = vmatpush.bf16.msra.mxu0 %v14872_v19  ;;  %10410 = vmatpush.bf16.msrb.mxu3 %v14881_v22 }
0x2470   : > { %9915 = vmatmul.bf16.vlgmr.msrb.gmra.mxu1 %v9546_v41  ;;  %9929 = vmatmul.bf16.vlgmr.msra.gmra.mxu2 %v9546_v41 }
0x2472   : > { %10373 = vmatpush.bf16.msra.mxu1 %v14855_v28  ;;  %10386 = vmatpush.bf16.msrb.mxu2 %v14863_v61 }
0x2473   : > { %10399 = vmatpush.bf16.msra.mxu0 %v14871_v42  ;;  %10411 = vmatpush.bf16.msrb.mxu3 %v14880_v13  ;;  %v15178_v42 = vld [vmem:[#allocation19 + $0x5] ss:$0 sm:$0xff] }
0x2476   : > { %10374 = vmatpush.bf16.msra.mxu1 %v14854_v30  ;;  %10387 = vmatpush.bf16.msrb.mxu2 %v14862_v21 }
0x2477   : > { %10400 = vmatpush.bf16.msra.mxu0 %v14870_v40  ;;  %10412 = vmatpush.bf16.msrb.mxu3 %v14879_v38 }
0x247a   : > { %10375 = vmatpush.bf16.msra.mxu1 %v14853_v16  ;;  %10388 = vmatpush.bf16.msrb.mxu2 %v14861_v26 }
0x247b   : > { %10401 = vmatpush.bf16.msra.mxu0 %v14869_v63  ;;  %10413 = vmatpush.bf16.msrb.mxu3 %v14878_v10 }
0x247e   : > { %10376 = vmatpush.bf16.msra.mxu1 %v14852_v12  ;;  %10389 = vmatpush.bf16.msrb.mxu2 %v14860_v46 }
0x247f   : > { %10402 = vmatpush.bf16.msra.mxu0 %v14868_v50  ;;  %10414 = vmatpush.bf16.msrb.mxu3 %v14877_v2 }
0x2483   : > { %10415 = vmatpush.bf16.msrb.mxu3 %v14876_v56 }
0x24dd   : > { %v9860_v29 = vpop.f32.mrf.mxu1 }
0x24de   : > { %v9888_v57 = vpop.f32.mrf.mxu0  ;;  %v9861_v51 = vadd.f32 %v9860_v29, %v9599_v25 }
0x24df   : > { %v9889_v24 = vadd.f32 %v9888_v57, %v9601_v9 }
0x24e0   : > { %v9935_v20 = vmax.f32 %v9861_v51, 0.0 }
0x24e1   : > { %v9937_v11 = vmax.f32 %v9889_v24, 0.0 }
0x24e3   : > { %v9874_v34 = vpop.f32.mrf.mxu2 }
0x24e4   : > { %v9902_v44 = vpop.f32.mrf.mxu3  ;;  %v9875_v41 = vadd.f32 %v9874_v34, %v9600_v39 }
0x24e5   : > { %v9862_v53 = vpop.f32.mrf.mxu1  ;;  %v9903_v18 = vadd.f32 %v9902_v44, %v9602_v60 }
0x24e6   : > { %v9863_v7 = vadd.f32 %v9862_v53, %v9599_v25  ;;  %v9890_v59 = vpop.f32.mrf.mxu0  ;;  %v9936_v8 = vmax.f32 %v9875_v41, 0.0  ;;  %v15179_v41 = vld [vmem:[#allocation20 + $0x5] ss:$0 sm:$0xff] }
0x24e7   : > { %v9891_v14 = vadd.f32 %v9890_v59, %v9601_v9  ;;  %v9938_v49 = vmax.f32 %v9903_v18, 0.0 }
0x24e8   : > { %v9941_v62 = vmax.f32 %v9863_v7, 0.0 }
0x24e9   : > { %v9943_v0 = vmax.f32 %v9891_v14, 0.0 }
0x24ea   : > { %v9947_v3 = vpack.c.bf16 %v9941_v62, %v9935_v20 }
0x24eb   : > { %v9949_v32 = vpack.c.bf16 %v9943_v0, %v9937_v11  ;;  %v9876_v58 = vpop.f32.mrf.mxu2 }
0x24ec   : > { %v9877_v45 = vadd.f32 %v9876_v58, %v9600_v39  ;;  %v9904_v1 = vpop.f32.mrf.mxu3  ;;  %10351 = vmatmul.bf16.vlgmr.msrb.gmra.mxu0 %v9947_v3 }
0x24ed   : > { %v9905_v54 = vadd.f32 %v9904_v1, %v9602_v60  ;;  %10377 = vmatmul.bf16.vlgmr.msra.gmra.mxu1 %v9949_v32  ;;  %v9916_v47 = vpop.f32.mrf.mxu1  ;;  %v15180_v32 = vld [vmem:[#allocation22 + $0x5] ss:$0 sm:$0xff] }
0x24ee   : > { %v9942_v52 = vmax.f32 %v9877_v45, 0.0  ;;  %v9917_v6 = vadd.f32 %v9916_v47, %v9603_v43 }
0x24ef   : > { %v9944_v27 = vmax.f32 %v9905_v54, 0.0 }
0x24f0   : > { %v9948_v55 = vpack.c.bf16 %v9942_v52, %v9936_v8  ;;  %v9939_v31 = vmax.f32 %v9917_v6, 0.0  ;;  %v14889_v6 = vld [vmem:[#allocation26 + $0x28] sm:$0xff] }
0x24f1   : > { %v9950_v37 = vpack.c.bf16 %v9944_v27, %v9938_v49  ;;  %v14891_v27 = vld [vmem:[#allocation26 + $0x38] sm:$0xff] }
0x24f2   : > { %10364 = vmatmul.bf16.vlgmr.msra.gmra.mxu3 %v9948_v55  ;;  %10552 = vmatpush.bf16.msrb.mxu1 %v14891_v27 }
0x24f3   : > { %10390 = vmatmul.bf16.vlgmr.msrb.gmra.mxu2 %v9950_v37  ;;  %v9930_v28 = vpop.f32.mrf.mxu2 }
0x24f4   : > { %v9931_v61 = vadd.f32 %v9930_v28, %v9604_v5 }
0x24f5   : > { %v9918_v23 = vpop.f32.mrf.mxu1 }
0x24f6   : > { %v9919_v30 = vadd.f32 %v9918_v23, %v9603_v43  ;;  %v9940_v21 = vmax.f32 %v9931_v61, 0.0  ;;  %v14890_v43 = vld [vmem:[#allocation26 + $0x30] sm:$0xff]  ;;  %v14888_v23 = vld [vmem:[#allocation26 + $0x20] sm:$0xff] }
0x24f7   : > { %10553 = vmatpush.bf16.msrb.mxu1 %v14890_v43 }
0x24f8   : > { %v9945_v17 = vmax.f32 %v9919_v30, 0.0 }
0x24fa   : > { %v9951_v4 = vpack.c.bf16 %v9945_v17, %v9939_v31  ;;  %v14887_v31 = vld [vmem:[#allocation26 + $0x18] sm:$0xff] }
0x24fb   : > { %v9932_v16 = vpop.f32.mrf.mxu2  ;;  %10554 = vmatpush.bf16.msrb.mxu1 %v14889_v6  ;;  %v14899_v17 = vld [vmem:[#allocation29 + $0x38] sm:$0xff] }
0x24fc   : > { %v9933_v15 = vadd.f32 %v9932_v16, %v9604_v5  ;;  %10403 = vmatmul.bf16.vlgmr.msra.gmra.mxu0 %v9951_v4  ;;  %10637 = vmatpush.bf16.msra.mxu2 %v14899_v17  ;;  %v14898_v4 = vld [vmem:[#allocation29 + $0x30] sm:$0xff] }
0x24fe   : > { %v9946_v36 = vmax.f32 %v9933_v15, 0.0  ;;  %v14886_v15 = vld [vmem:[#allocation26 + $0x10] sm:$0xff] }
0x24ff   : > { %10555 = vmatpush.bf16.msrb.mxu1 %v14888_v23 }
0x2500   : > { %v9952_v12 = vpack.c.bf16 %v9946_v36, %v9940_v21  ;;  %10638 = vmatpush.bf16.msra.mxu2 %v14898_v4 }
0x2502   : > { %10416 = vmatmul.bf16.vlgmr.msrb.gmra.mxu3 %v9952_v12  ;;  %v14885_v12 = vld [vmem:[#allocation26 + $0x8] sm:$0xff] }
0x2503   : > { %10556 = vmatpush.bf16.msrb.mxu1 %v14887_v31 }
0x2507   : > { %10557 = vmatpush.bf16.msrb.mxu1 %v14886_v15 }
0x250b   : > { %10558 = vmatpush.bf16.msrb.mxu1 %v14885_v12 }
0x2569   : > { %v10352_v19 = vpop.f32.mrf.mxu0 }
0x256a   : > { %v10378_v26 = vpop.f32.mrf.mxu1  ;;  %v10353_v40 = vadd.f32 %v15178_v42, %v10352_v19  ;;  %v10454_v19 = vld [vmem:[#allocation23] sm:$0x1]  ;;  %v10455_v42 = vld [vmem:[#allocation25] sm:$0x1] }
0x2571   : > { %v10354_v22 = vpop.f32.mrf.mxu0 }
0x2572   : > { %v10380_v46 = vpop.f32.mrf.mxu1 }
0x2573   : > { %v14884_v46 = vld [vmem:[#allocation26] sm:$0xff] }
0x2574   : > { %10559 = vmatpush.bf16.msrb.mxu1 %v14884_v46 }
0x2575   : > { %v10365_v13 = vpop.f32.mrf.mxu3 }
0x2576   : > { %v10391_v38 = vpop.f32.mrf.mxu2  ;;  %v10366_v63 = vadd.f32 %v10365_v13, %v10353_v40 }
0x2578   : > { %v10379_v35 = vadd.f32 %v10378_v26, %v10366_v63 }
0x2579   : > { %v10404_v10 = vpop.f32.mrf.mxu0 }
0x257a   : > { %v10392_v57 = vadd.f32 %v10391_v38, %v10379_v35 }
0x257c   : > { %v10405_v2 = vadd.f32 %v10404_v10, %v10392_v57  ;;  %v14896_v57 = vld [vmem:[#allocation29 + $0x20] sm:$0xff] }
0x257d   : > { %v10367_v29 = vpop.f32.mrf.mxu3 }
0x257e   : > { %v10393_v50 = vpop.f32.mrf.mxu2 }
0x2581   : > { %v10406_v25 = vpop.f32.mrf.mxu0 }
0x2582   : > { %v14895_v25 = vld [vmem:[#allocation29 + $0x18] sm:$0xff] }
0x2585   : > { %v10417_v9 = vpop.f32.mrf.mxu3 }
0x2586   : > { %v10418_v34 = vadd.f32 %v10417_v9, %v10405_v2  ;;  %v14894_v2 = vld [vmem:[#allocation29 + $0x10] sm:$0xff]  ;;  %v14893_v9 = vld [vmem:[#allocation29 + $0x8] sm:$0xff] }
0x2588   : > { %v10421_v56 = vadd.f32 %v10418_v34, %v17913_v33  ;;  %v10503_v34 = vld [vmem:[#allocation28] sm:$0x1] }
0x258a   : > { %10426 = vadd.xlane.f32.xlu2 %v10421_v56 }
0x258d   : > { %v10419_v51 = vpop.f32.mrf.mxu3 }
0x25fd   : > { %v10427_v44 = vpop.xlane.xlu2 %10426 }
0x25fe   : > { %v10428_v24 = vmul.f32 %v10427_v44, %v16670_v48 }
0x2600   : > { %v10429_v53 = vsub.f32 %v10421_v56, %v10428_v24  ;;  %v14892_v56 = vld [vmem:[#allocation29] sm:$0xff] }
0x2602   : > { %v10430_v39 = vmul.f32 %v10429_v53, %v10429_v53 }
0x2604   : > { %10431 = vadd.xlane.f32.xlu0 %v10430_v39 }
0x2677   : > { %v10432_v7 = vpop.xlane.xlu0 %10431 }
0x2678   : > { %v10433_v59 = vmul.f32 %v10432_v7, %v16670_v48 }
0x267a   : > { %v10434_v60 = vadd.f32 1e-05, %v10433_v59 }
0x267c   : > { %15299 = vrsqrt.f32 %v10434_v60  ;;  %vm10441_vm8 = vweird.f32 %v10434_v60 }
0x2682   : > { %v15300_v14 = vpop.eup %15299 }
0x2683   : > { %v10436_v20 = vmul.f32 %v15300_v14, %v10434_v60  ;;  %vm10442_vm7 = vweird.f32 %v15300_v14 }
0x2684   : > { %vm10443_vm14 = vmor %vm10441_vm8, %vm10442_vm7 }
0x2685   : > { %v10437_v62 = vmul.f32 %v15300_v14, %v10436_v20  ;;  %v10588_v20 = vld [vmem:[#allocation31] sm:$0x1] }
0x2687   : > { %v10438_v11 = vmul.f32 0.5, %v10437_v62 }
0x2689   : > { %v10439_v0 = vsub.f32 1.5, %v10438_v11 }
0x268b   : > { %v10440_v33 = vmul.f32 %v15300_v14, %v10439_v0 }
0x268d   : > { %v10444_v3 = vsel %vm10443_vm14, %v15300_v14, %v10440_v33 }
0x268e   : > { %v10445_v18 = vmul.f32 %v10444_v3, %v10429_v53 }
0x2690   : > { %v10449_v58 = vmul.f32 %v15179_v41, %v10445_v18 }
0x2692   : > { %v10453_v45 = vadd.f32 %v15180_v32, %v10449_v58 }
0x2694   : > { %v10456_v1 = vsel %vm1166_vm6, %v10453_v45, 0.0 }
0x2695   : > { %10457 = vadd.xlane.f32.xlu1 %v10456_v1 }
0x2708   : > { %v10458_v54 = vpop.xlane.xlu1 %10457 }
0x2709   : > { %v10459_v47 = vmul.f32 %v10458_v54, %v16670_v48 }
0x270b   : > { %v10460_v8 = vsub.f32 %v10453_v45, %v10459_v47 }
0x270d   : > { %v10461_v52 = vmul.f32 %v10460_v8, %v10460_v8 }
0x270f   : > { %v10462_v49 = vsel %vm1166_vm6, %v10461_v52, 0.0 }
0x2710   : > { %10463 = vadd.xlane.f32.xlu2 %v10462_v49 }
0x2783   : > { %v10464_v55 = vpop.xlane.xlu2 %10463 }
0x2784   : > { %v10465_v37 = vmul.f32 %v10464_v55, %v16670_v48  ;;  %v14897_v48 = vld [vmem:[#allocation29 + $0x28] sm:$0xff] }
0x2785   : > { %10639 = vmatpush.bf16.msra.mxu2 %v14897_v48 }
0x2786   : > { %v10466_v28 = vadd.f32 1e-05, %v10465_v37 }
0x2788   : > { %15301 = vrsqrt.f32 %v10466_v28  ;;  %vm10473_vm15 = vweird.f32 %v10466_v28 }
0x2789   : > { %10640 = vmatpush.bf16.msra.mxu2 %v14896_v57 }
0x278d   : > { %10641 = vmatpush.bf16.msra.mxu2 %v14895_v25 }
0x278e   : > { %v15302_v5 = vpop.eup %15301 }
0x278f   : > { %v10468_v30 = vmul.f32 %v15302_v5, %v10466_v28  ;;  %vm10474_vm6 = vweird.f32 %v15302_v5 }
0x2790   : > { %vm10475_vm9 = vmor %vm10473_vm15, %vm10474_vm6 }
0x2791   : > { %v10469_v61 = vmul.f32 %v15302_v5, %v10468_v30  ;;  %10642 = vmatpush.bf16.msra.mxu2 %v14894_v2 }
0x2793   : > { %v10470_v16 = vmul.f32 0.5, %v10469_v61 }
0x2795   : > { %v10471_v21 = vsub.f32 1.5, %v10470_v16  ;;  %10643 = vmatpush.bf16.msra.mxu2 %v14893_v9 }
0x2797   : > { %v10472_v36 = vmul.f32 %v15302_v5, %v10471_v21 }
0x2799   : > { %v10476_v26 = vsel %vm10475_vm9, %v15302_v5, %v10472_v36  ;;  %10644 = vmatpush.bf16.msra.mxu2 %v14892_v56 }
0x279a   : > { %v10477_v22 = vmul.f32 %v10476_v26, %v10460_v8 }
0x279c   : > { %v10478_v13 = vmul.f32 %v10477_v22, %v10454_v19 }
0x279e   : > { %v10479_v40 = vadd.f32 %v10478_v13, %v10455_v42 }
0x27a0   : > { %v10481_v38 = vmin.f32 %v10479_v40, 0.0  ;;  %vm10480_vm10 = vcmp.gt.f32.partialorder %v10479_v40, 0.0 }
0x27a2   : > { %v10482_v63 = vmul.f32 1.442695, %v10481_v38 }
0x27a4   : > { %15303 = vpow2.f32 %v10482_v63 }
0x27aa   : > { %v15304_v10 = vpop.eup %15303 }
0x27ab   : > { %v14047_v35 = vadd.f32 -1.0, %v15304_v10 }
0x27ad   : > { %v10485_v29 = vsel %vm10480_vm10, %v10479_v40, %v14047_v35 }
0x27ae   : > { %v10486_v50 = vpack.c.bf16 %v10485_v29, %v10485_v29 }
0x27b0   : > { %10560 = vmatmul.bf16.vlgmr.msrb.gmra.mxu1 %v10486_v50 }
0x282d   : > { %v10561_v51 = vpop.f32.mrf.mxu1 }
0x282e   : > { %v10562_v44 = vadd.f32 %v10561_v51, %v10503_v34 }
0x2830   : > { %v10566_v24 = vmin.f32 %v10562_v44, 0.0  ;;  %vm10565_vm11 = vcmp.gt.f32.partialorder %v10562_v44, 0.0 }
0x2832   : > { %v10567_v53 = vmul.f32 1.442695, %v10566_v24 }
0x2834   : > { %15305 = vpow2.f32 %v10567_v53 }
0x2835   : > { %v10563_v39 = vpop.f32.mrf.mxu1 }
0x283a   : > { %v15306_v7 = vpop.eup %15305 }
0x283b   : > { %v14080_v59 = vadd.f32 -1.0, %v15306_v7 }
0x283d   : > { %v10570_v60 = vsel %vm10565_vm11, %v10562_v44, %v14080_v59 }
0x283e   : > { %v10571_v14 = vpack.c.bf16 %v10570_v60, %v10570_v60 }
0x2840   : > { %10645 = vmatmul.bf16.vlgmr.msra.gmra.mxu2 %v10571_v14 }
0x28c3   : > { %v10646_v62 = vpop.f32.mrf.mxu2 }
0x28c4   : > { %v10647_v11 = vadd.f32 %v10646_v62, %v10588_v20 }
0x28c6   : > { %v10650_v0 = vsub.f32 0.0, %v10647_v11 }
0x28c8   : > { %v10651_v33 = vmul.f32 1.442695, %v10650_v0 }
0x28ca   : > { %15307 = vpow2.f32 %v10651_v33 }
0x28cb   : > { %v10648_v41 = vpop.f32.mrf.mxu2 }
0x28d0   : > { %v15308_v3 = vpop.eup %15307 }
0x28d1   : > { %v10653_v18 = vadd.f32 1.0, %v15308_v3 }
0x28d3   : > { %15309 = vrcp.f32 %v10653_v18 }
0x28d9   : > { %v15310_v32 = vpop.eup %15309 }
0x28da   : > { %10655 = vst [vmem:[%s927_s8] sm:$0x1] %v15310_v32 }
0x28db   : > { %15998 = shalt.err (!%p15995_p8)
}
0x28dc   : > { %14976 = dma.vmem_to_hbm [thread:$0]  (%p16252_p5), %s10668_s26, 16, %s10670_s12, %s10657_s20  }
0x28dd PF: > { %s18049_s1 = sld [smem:[#allocation47_spill]] }
0x28de   : > { %s18050_s27 = sld [smem:[#allocation44_spill]] }
0x28e3   : > { %p15078_p9 = scmp.ge.s32.totalorder %s18049_s1, 2 }
0x28e4   : > { %s10681_s10 = sand.u32 1, %s18050_s27  }
0x28e5   : > { %p15037_p10 = pnand %p15078_p9, %p16256_p6  ;;  %s10682_s21 = scalar_lea.sflag [#allocation4], %s10681_s10 }
0x28e7   : > { %p15038_p11 = pneg %p15037_p10 }
0x28e9   : > { %16056 = dma.done.wait (%p15038_p11), %s10682_s21, 16  }
0x28ea   : > { %16058 = vsyncadd (%p15038_p11), %s10682_s21, 4294967280  ;;  %s18052_s24 = sld [smem:[#allocation49_spill]] }
0x28eb   : > { %s18053_s1 = sld [smem:[#allocation45_spill]] }
0x28ec   : > { %s18054_s22 = sld [smem:[#allocation46_spill]] }
0x28ed   : > { %s18055_s23 = sld [smem:[#allocation50_spill]] }
0x28f0   : > { %p40_p12 = scmp.ge.s32.totalorder %s18052_s24, 4  }
0x28f2   :  { %42 = sbr.rel (!%p40_p12) target bundleno = 24 (0x18), region = 272 }
0x28f7   :  { %10687 = vsyncpa [#allocation3], 1 }
0x28f8   :  { %10689 = vsyncpa [#allocation3 + $0x1], 1 }
0x28f9   :  { %10690 = vsyncpa [#allocation6], 1 }
0x28fa   :  { %10691 = vsyncpa [#allocation9], 1 }
0x28fb   :  { %10692 = vsyncpa [#allocation12], 1 }
0x28fc   :  { %10693 = vsyncpa [#allocation15], 1 }
0x28fd   :  { %10694 = vsyncpa [#allocation18], 1 }
0x28fe   :  { %10695 = vsyncpa [#allocation21], 1 }
0x28ff   :  { %10696 = vsyncpa [#allocation24], 1 }
0x2900   :  { %10697 = vsyncpa [#allocation27], 1 }
0x2901   :  { %10698 = vsyncpa [#allocation30], 1 }
0x2902   :  { %10699 = vsyncpa [#allocation4], 1 }
0x2903   :  { %10701 = vsyncpa [#allocation4 + $0x1], 1 }

</bundles_post_ra>
